<compile_context>
chip_gen: v7x
topology: tpu7x:2x2x1
jax: 0.10.0
libtpu: 0.0.40
codegen_flags: <defaults>
</compile_context>

<pallas_src>
import math
from functools import partial

import jax
import jax.numpy as jnp
import numpy as np
from jax import lax
from jax.experimental import pallas as pl
from jax.experimental.pallas import tpu as pltpu


# ----------------------------------------------------------------------------
# Pallas kernel: fused [Snake1d] -> dilated Conv1d -> bias -> [+res] -> [tanh]
# Grid = (batch, L-tiles).  Each step produces one (C_out, TL) output tile.
# ----------------------------------------------------------------------------
def _conv1d_kernel(*refs, K, dilation, C_in, P, apply_snake, apply_tanh,
                   has_res, has_strip, mask_len):
    it = iter(refs)
    x_ref = next(it)                                   # (1, C_in, W_main)
    s_ref = next(it) if has_strip else None            # (1, 1, C_in, halo)
    w_ref = next(it)                                   # (C_out, K*C_in) bf16
    b_ref = next(it)                                   # (C_out, 1) f32
    a_ref = next(it) if apply_snake else None          # (C_in, 1) f32  alpha
    ia_ref = next(it) if apply_snake else None         # (C_in, 1) f32  1/(alpha+1e-9)
    r_ref = next(it) if has_res else None              # (1, C_out, TLo)
    o_ref = next(it)                                   # (1, C_out, TLo)
    xs_ref = next(it) if K > 1 else None               # scratch (K*C_in, TLo) f32

    TLo = o_ref.shape[2]
    W = x_ref.shape[2]

    xm = x_ref[0].astype(jnp.float32)                  # (C_in, W)
    if mask_len is not None:
        # Columns >= true input length are either the stale tail of a clamped
        # (partial) DMA block or "virtual" right padding; zero them so they act as
        # the conv's zero padding (snake(0) == 0 keeps that exact).
        lane = lax.broadcasted_iota(jnp.int32, (1, W), 1)
        gcol = pl.program_id(1) * W + lane
        xm = jnp.where(gcol < mask_len, xm, 0.0)

    if has_strip:
        # strip = [P left-halo cols | (halo - P) right-halo cols] for this tile,
        # already zero-masked at the sequence edges by the wrapper gather.
        st = s_ref[0, 0].astype(jnp.float32)           # (C_in, halo)
        parts = []
        if P > 0:
            parts.append(st[:, :P])
        parts.append(xm)
        if st.shape[1] - P > 0:
            parts.append(st[:, P:])
        win = jnp.concatenate(parts, axis=1) if len(parts) > 1 else xm
    else:
        win = xm                                       # single-tile path: pre-padded

    if apply_snake:
        # Snake1d: x + (1/(alpha+1e-9)) * sin(alpha*x)^2  (inv_alpha precomputed)
        a = a_ref[...]
        inv_a = ia_ref[...]
        win = win + inv_a * jnp.square(jnp.sin(a * win))

    if K == 1:
        operand = win[:, :TLo].astype(jnp.bfloat16)
    else:
        # im2col staging: shift on the read side, full-width (unmasked) stores per tap.
        for k in range(K):                              # static unroll
            d0 = k * dilation
            xs_ref[k * C_in:(k + 1) * C_in, :] = win[:, d0:d0 + TLo]
        operand = xs_ref[...].astype(jnp.bfloat16)

    # Single wide MXU matmul: (C_out, K*C_in) @ (K*C_in, TLo), bf16 in / f32 accumulate.
    acc = jnp.dot(w_ref[...], operand, preferred_element_type=jnp.float32)
    acc = acc + b_ref[...]
    if has_res:
        acc = acc + r_ref[0].astype(jnp.float32)
    if apply_tanh:
        acc = jnp.tanh(acc)
    o_ref[0] = acc.astype(o_ref.dtype)


def conv1d_pallas(x, prm, kernel_size, *, dilation=1, padding=0, apply_tanh=False,
                  residual=None, tile_l=4096, out_dtype=jnp.bfloat16):
    """y = Conv1d(Snake(x) if alpha else x, W, dilation, padding) + b [+ residual][, tanh].

    x: (B, C_in, L) bf16/f32.  prm: prepped dict with 'w_flat' (C_out, K*C_in) bf16,
    'b_col' (C_out, 1) f32 and optionally 'alpha_col'/'inv_alpha_col' (C_in, 1) f32.
    residual: (B, C_out, L_out) or None (fused elementwise add in the epilogue).
    tile_l: target L tile (multiple of 128); a footprint cap keeps VMEM under ~12 MiB
    so it is safe for v5e's 16 MiB scoped default and v7x's per-core budget.
    """
    K = kernel_size
    w_flat, b_col = prm['w_flat'], prm['b_col']
    alpha_col = prm.get('alpha_col')
    inv_alpha_col = prm.get('inv_alpha_col')
    apply_snake = alpha_col is not None

    B, C_in, L_in = x.shape
    C_out = w_flat.shape[0]
    assert w_flat.shape[1] == K * C_in
    halo = dilation * (K - 1)
    P = padding
    assert 0 <= P <= max(halo, 0) or K == 1
    L_out = L_in + 2 * P - halo
    assert L_out > 0

    # ---- lane-aligned L tile, capped by an explicit per-tile VMEM footprint ----
    LANE = 128
    in_bc = 2 * C_in * x.dtype.itemsize                      # double-buffered input
    out_bc = 2 * C_out * jnp.dtype(out_dtype).itemsize       # double-buffered output
    res_bc = 2 * C_out * residual.dtype.itemsize if residual is not None else 0
    scr_bc = K * C_in * 4 if K > 1 else 0                    # im2col scratch (f32)
    win_bc = 2 * C_in * 4                                    # snaked window value
    bpc = in_bc + out_bc + res_bc + scr_bc + win_bc + 64
    cap = max(LANE, ((12 * 1024 * 1024) // bpc) // LANE * LANE)
    TL = min(max(LANE, (tile_l // LANE) * LANE), cap)
    nT = pl.cdiv(L_out, TL)

    args, in_specs = [], []
    has_strip = False
    mask_len = None

    if nT == 1:
        # Short input: one full-width block; materialize the (tiny) padding directly.
        W_main = L_in + 2 * P
        xk = jnp.pad(x, ((0, 0), (0, 0), (P, P))) if P > 0 else x
        TLo = L_out
        in_specs.append(pl.BlockSpec((1, C_in, W_main), lambda bb, j: (bb, 0, 0)))
        args.append(xk)
    else:
        TLo = TL
        xk = x
        if (nT - 1) * TL >= L_in:
            # Rare corner (e.g. transposed-conv phase pass with L_in % TL == 0): the
            # last main block would start past the end of the array; pad it out.
            xk = jnp.pad(x, ((0, 0), (0, 0), (0, nT * TL - L_in)))
        mask_len = L_in
        in_specs.append(pl.BlockSpec((1, C_in, TL), lambda bb, j: (bb, 0, j)))
        args.append(xk)
        if K > 1:
            # Tiny per-tile halo strips: [P cols before the tile | halo-P cols after],
            # gathered once (negligible HBM traffic) and zero-masked at the edges.
            has_strip = True
            u = jnp.arange(halo)
            jj = jnp.arange(nT)
            col = jj[:, None] * TL + jnp.where(u[None, :] < P, u[None, :] - P,
                                               u[None, :] - P + TL)
            ok = (col >= 0) & (col < L_in)
            colc = jnp.clip(col, 0, xk.shape[-1] - 1).reshape(-1)
            strips = jnp.take(xk, colc, axis=2)                      # (B, C_in, nT*halo)
            strips = jnp.where(ok.reshape(-1)[None, None, :], strips,
                               jnp.zeros((), strips.dtype))
            strips = strips.reshape(B, C_in, nT, halo).transpose(0, 2, 1, 3)
            in_specs.append(pl.BlockSpec((1, 1, C_in, halo),
                                         lambda bb, j: (bb, j, 0, 0)))
            args.append(strips)

    in_specs.append(pl.BlockSpec((C_out, K * C_in), lambda bb, j: (0, 0)))
    args.append(w_flat)
    in_specs.append(pl.BlockSpec((C_out, 1), lambda bb, j: (0, 0)))
    args.append(b_col)
    if apply_snake:
        in_specs.append(pl.BlockSpec((C_in, 1), lambda bb, j: (0, 0)))
        args.append(alpha_col)
        in_specs.append(pl.BlockSpec((C_in, 1), lambda bb, j: (0, 0)))
        args.append(inv_alpha_col)
    if residual is not None:
        assert residual.shape == (B, C_out, L_out)
        in_specs.append(pl.BlockSpec((1, C_out, TLo), lambda bb, j: (bb, 0, j)))
        args.append(residual)

    scratch = [pltpu.VMEM((K * C_in, TLo), jnp.float32)] if K > 1 else []

    kernel = partial(_conv1d_kernel, K=K, dilation=dilation, C_in=C_in, P=P,
                     apply_snake=apply_snake, apply_tanh=apply_tanh,
                     has_res=residual is not None, has_strip=has_strip,
                     mask_len=mask_len)

    flops = 2 * B * C_out * K * C_in * L_out
    transc = (B * C_in * L_in if apply_snake else 0) + \
             (B * C_out * L_out if apply_tanh else 0)
    bytes_acc = int(args[0].nbytes + w_flat.nbytes + b_col.nbytes +
                    (residual.nbytes if residual is not None else 0) +
                    B * C_out * L_out * jnp.dtype(out_dtype).itemsize)
    vmem_need = bpc * TLo + 2 * w_flat.nbytes + (1 << 20)
    vlim = int(min(28 * 1024 * 1024, max(16 * 1024 * 1024, vmem_need)))

    # TODO(synk): for v7x with B == 1 and a single L tile, one TensorCore stays idle;
    # splitting that case into 2 tiles would need a smaller TL just for that shape.
    out = pl.pallas_call(
        kernel,
        out_shape=jax.ShapeDtypeStruct((B, C_out, L_out), out_dtype),
        grid=(B, nT),
        in_specs=in_specs,
        out_specs=pl.BlockSpec((1, C_out, TLo), lambda bb, j: (bb, 0, j)),
        scratch_shapes=scratch,
        compiler_params=pltpu.CompilerParams(
            dimension_semantics=("parallel", "parallel"),
            vmem_limit_bytes=vlim),
        cost_estimate=pl.CostEstimate(flops=flops, transcendentals=transc,
                                      bytes_accessed=bytes_acc),
    )(*args)
    return out


def conv_transpose1d_pallas(x, prm, *, stride, tile_l=4096):
    """ConvTranspose1d(kernel=2*stride, stride, padding=ceil(stride/2)) with a fused
    Snake1d on the input, expressed as a K=2 Pallas conv producing all `stride` output
    phases stacked along channels (row order o*stride + r)."""
    B, C_in, L = x.shape
    s = stride
    pad = math.ceil(s / 2)
    y = conv1d_pallas(x, prm, 2, dilation=1, padding=1, tile_l=tile_l,
                      out_dtype=jnp.bfloat16)                     # (B, C_out*s, L+1)
    C_out = y.shape[1] // s
    Lq = L + 1
    # TODO(synk): the phase interleave + crop is still a wrapper-side relayout pass over
    # the post-upsample activation (now bf16); fusing it needs lane-interleaved stores
    # or a polyphase consumer kernel.
    y = jnp.swapaxes(y.reshape(B, C_out, s, Lq), 2, 3).reshape(B, C_out, Lq * s)
    L_out = (L - 1) * s - 2 * pad + 2 * s
    return y[:, :, pad:pad + L_out]


# ----------------------------------------------------------------------------
# One-time parameter prep (hoisted out of the per-layer calls)
# ----------------------------------------------------------------------------
def _prep_conv(w, b, alpha=None):
    C_out, C_in, K = w.shape
    d = {'w_flat': jnp.transpose(w, (0, 2, 1)).reshape(C_out, K * C_in)
                      .astype(jnp.bfloat16),
         'b_col': b.reshape(C_out, 1).astype(jnp.float32)}
    if alpha is not None:
        a = alpha.reshape(-1, 1).astype(jnp.float32)
        d['alpha_col'] = a
        d['inv_alpha_col'] = 1.0 / (a + 1e-9)
    return d


def _prep_conv_transpose(wt, bt, stride, alpha):
    # y_full[b, o, s*q + r] = sum_c ( w[c,o,s+r]*x[b,c,q-1] + w[c,o,r]*x[b,c,q] ) + b[o]
    C_in, C_out, Kt = wt.shape
    s = stride
    assert Kt == 2 * s
    w2 = jnp.transpose(wt, (1, 2, 0))                          # (C_out, 2s, C_in)
    w_stk = jnp.stack([w2[:, s:, :], w2[:, :s, :]], axis=2)    # (C_out, s, 2, C_in)
    w_stk = jnp.transpose(w_stk, (0, 1, 3, 2)).reshape(C_out * s, C_in, 2)
    b_stk = jnp.repeat(bt, s)                                  # row index o*s + r
    return _prep_conv(w_stk, b_stk, alpha)


def prepare_decoder_params(params, rates):
    p = {'in': _prep_conv(params['w_in'], params['b_in']),
         'out': _prep_conv(params['w_out'], params['b_out'], params['alpha_out']),
         'blocks': []}
    for blk, s in zip(params['blocks'], rates):
        pb = {'t': _prep_conv_transpose(blk['wt'], blk['bt'], s, blk['alpha']),
              'rus': [{'c1': _prep_conv(ru['w1'], ru['b1'], ru['alpha1']),
                       'c2': _prep_conv(ru['w2'], ru['b2'], ru['alpha2'])}
                      for ru in blk['rus']]}
        p['blocks'].append(pb)
    return p


# ----------------------------------------------------------------------------
# Decoder forward (Pallas) — mirrors the PyTorch module structure
# ----------------------------------------------------------------------------
def decoder_pallas(x, prepped, rates, tile_l=4096):
    x = conv1d_pallas(x, prepped['in'], 7, padding=3, tile_l=tile_l)
    for blk, s in zip(prepped['blocks'], rates):                          # DecoderBlocks
        x = conv_transpose1d_pallas(x, blk['t'], stride=s, tile_l=tile_l)
        for d, ru in zip((1, 3, 9), blk['rus']):                          # ResidualUnits
            y = conv1d_pallas(x, ru['c1'], 7, dilation=d, padding=3 * d, tile_l=tile_l)
            # k=1 conv with the residual add fused into the kernel epilogue
            x = conv1d_pallas(y, ru['c2'], 1, residual=x, tile_l=tile_l)
    x = conv1d_pallas(x, prepped['out'], 7, padding=3, apply_tanh=True,
                      tile_l=tile_l, out_dtype=jnp.float32)
    return x


# ----------------------------------------------------------------------------
# Pure-JAX reference (f32 activations, bf16 MXU operands) — verification only
# ----------------------------------------------------------------------------
def _snake_ref(x, alpha):
    a = alpha.reshape(1, -1, 1)
    return x + (1.0 / (a + 1e-9)) * jnp.square(jnp.sin(a * x))


def _conv1d_ref(x, w, b, dilation=1, padding=0):
    out = lax.conv_general_dilated(
        x.astype(jnp.bfloat16), w.astype(jnp.bfloat16),
        window_strides=(1,), padding=[(padding, padding)],
        rhs_dilation=(dilation,), dimension_numbers=('NCH', 'OIH', 'NCH'),
        preferred_element_type=jnp.float32)
    return out + b.reshape(1, -1, 1)


def _conv_transpose1d_ref(x, w, b, stride):
    _, _, K = w.shape
    p = math.ceil(stride / 2)
    wf = jnp.transpose(w[:, :, ::-1], (1, 0, 2))              # (C_out, C_in, K), flipped
    q = K - 1 - p
    out = lax.conv_general_dilated(
        x.astype(jnp.bfloat16), wf.astype(jnp.bfloat16),
        window_strides=(1,), padding=[(q, q)],
        lhs_dilation=(stride,), dimension_numbers=('NCH', 'OIH', 'NCH'),
        preferred_element_type=jnp.float32)
    return out + b.reshape(1, -1, 1)


def decoder_ref(x, params, rates):
    x = _conv1d_ref(x, params['w_in'], params['b_in'], padding=3)
    for blk, s in zip(params['blocks'], rates):
        x = _snake_ref(x, blk['alpha'])
        x = _conv_transpose1d_ref(x, blk['wt'], blk['bt'], stride=s)
        for d, ru in zip((1, 3, 9), blk['rus']):
            y = _snake_ref(x, ru['alpha1'])
            y = _conv1d_ref(y, ru['w1'], ru['b1'], dilation=d, padding=3 * d)
            y = _snake_ref(y, ru['alpha2'])
            y = _conv1d_ref(y, ru['w2'], ru['b2'])
            x = x + y
    x = _snake_ref(x, params['alpha_out'])
    x = _conv1d_ref(x, params['w_out'], params['b_out'], padding=3)
    return jnp.tanh(x)


# ----------------------------------------------------------------------------
# Deterministic parameter init (shapes per the module's __init__)
# ----------------------------------------------------------------------------
def _conv_init(key, c_out, c_in, k):
    kw, kb = jax.random.split(key)
    bound = 1.0 / math.sqrt(c_in * k)
    w = jax.random.uniform(kw, (c_out, c_in, k), jnp.float32, -bound, bound)
    b = jax.random.uniform(kb, (c_out,), jnp.float32, -bound, bound)
    return w, b  # weight-norm is identity at init (g == ||v||) -> effective weight == v


def _convT_init(key, c_in, c_out, k):
    kw, kb = jax.random.split(key)
    bound = 1.0 / math.sqrt(c_in * k)
    w = jax.random.uniform(kw, (c_in, c_out, k), jnp.float32, -bound, bound)
    b = jax.random.uniform(kb, (c_out,), jnp.float32, -bound, bound)
    return w, b


def _alpha_init(key, c):
    # Snake1d inits alpha to ones; perturb deterministically so per-channel
    # broadcasting is actually exercised.
    return 0.5 + jax.random.uniform(key, (c,), jnp.float32, 0.0, 1.0)


def init_decoder_params(key, input_channel, channels, rates, d_out=1):
    keys = iter(jax.random.split(key, 128))
    params = {}
    params['w_in'], params['b_in'] = _conv_init(next(keys), channels, input_channel, 7)
    blocks = []
    out_dim = channels
    for i, s in enumerate(rates):
        in_dim = channels // (2 ** i)
        out_dim = channels // (2 ** (i + 1))
        wt, bt = _convT_init(next(keys), in_dim, out_dim, 2 * s)
        rus = []
        for _d in (1, 3, 9):
            w1, b1 = _conv_init(next(keys), out_dim, out_dim, 7)
            w2, b2 = _conv_init(next(keys), out_dim, out_dim, 1)
            rus.append(dict(alpha1=_alpha_init(next(keys), out_dim), w1=w1, b1=b1,
                            alpha2=_alpha_init(next(keys), out_dim), w2=w2, b2=b2))
        blocks.append(dict(alpha=_alpha_init(next(keys), in_dim), wt=wt, bt=bt, rus=rus))
    params['blocks'] = blocks
    params['alpha_out'] = _alpha_init(next(keys), out_dim)
    params['w_out'], params['b_out'] = _conv_init(next(keys), d_out, out_dim, 7)
    return params


if __name__ == "__main__":
    input_channel, channels, rates, d_out = 8, 32, (2, 2), 1

    key = jax.random.PRNGKey(0)
    kx, kp, kx2 = jax.random.split(key, 3)
    params = init_decoder_params(kp, input_channel, channels, rates, d_out)
    prepped = prepare_decoder_params(params, rates)          # hoisted, done once

    decoder_jit = jax.jit(decoder_pallas, static_argnums=(2, 3))

    # Case 1: small length -> every conv runs as a single (full-length) tile.
    B, L = 2, 16
    x = jax.random.normal(kx, (B, input_channel, L), jnp.float32)
    out = jax.block_until_ready(decoder_jit(x, prepped, rates, 2048))
    ref = decoder_ref(x, params, rates)
    assert out.shape == (B, d_out, L * rates[0] * rates[1]), out.shape
    np.testing.assert_allclose(np.asarray(out), np.asarray(ref), atol=2e-2, rtol=2e-2)

    # Case 2: longer length with a small tile -> exercises the L-tiled no-pad path
    # (halo strips, in-kernel edge masking, partial edge blocks, fused residual add).
    B2, L2 = 1, 80
    x2 = jax.random.normal(kx2, (B2, input_channel, L2), jnp.float32)
    out2 = jax.block_until_ready(decoder_jit(x2, prepped, rates, 128))
    ref2 = decoder_ref(x2, params, rates)
    assert out2.shape == (B2, d_out, L2 * rates[0] * rates[1]), out2.shape
    np.testing.assert_allclose(np.asarray(out2), np.asarray(ref2), atol=2e-2, rtol=2e-2)

    print("KERNEL_OK")
</pallas_src>

<mosaic_0001>
module attributes {stable_mosaic.version = 11 : i64} {
  func.func @_conv1d_kernel(%arg0: i32, %arg1: i32, %arg2: memref<1x8x22xf32, #tpu.memory_space<vmem>>, %arg3: memref<32x56xbf16, #tpu.memory_space<vmem>>, %arg4: memref<32x1xf32, #tpu.memory_space<vmem>>, %arg5: memref<1x32x16xbf16, #tpu.memory_space<vmem>>, %arg6: memref<56x16xf32, #tpu.memory_space<vmem>>) attributes {dimension_semantics = [#tpu.dimension_semantics<parallel>, #tpu.dimension_semantics<parallel>], iteration_bounds = array<i64: 2, 1>, scalar_prefetch = 0 : i64, scratch_operands = 1 : i64, tpu.core_type = #tpu.core_type<tc>, window_params = [{transform_indices = @transform_0, window_bounds = array<i64: 1, 8, 22>}, {pipeline_mode = #tpu.pipeline_mode<synchronous>, transform_indices = @transform_1, window_bounds = array<i64: 32, 56>}, {pipeline_mode = #tpu.pipeline_mode<synchronous>, transform_indices = @transform_2, window_bounds = array<i64: 32, 1>}, {transform_indices = @transform_3, window_bounds = array<i64: 1, 32, 16>}]} {
    %c0 = arith.constant 0 : index
    %c0_0 = arith.constant 0 : index
    %c0_1 = arith.constant 0 : index
    %0 = vector.load %arg2[%c0, %c0_0, %c0_1] : memref<1x8x22xf32, #tpu.memory_space<vmem>>, vector<1x8x22xf32>
    %1 = vector.shape_cast %0 : vector<1x8x22xf32> to vector<8x22xf32>
    %2 = vector.extract_strided_slice %1 {offsets = [0, 0], sizes = [8, 16], strides = [1, 1]} : vector<8x22xf32> to vector<8x16xf32>
    %c0_2 = arith.constant 0 : index
    %c0_3 = arith.constant 0 : index
    %3 = vector.load %arg6[%c0_2, %c0_3] : memref<56x16xf32, #tpu.memory_space<vmem>>, vector<8x16xf32>
    tpu.vector_store %arg6[%c0_2, %c0_3], %2 {strides = array<i32>} : memref<56x16xf32, #tpu.memory_space<vmem>>, vector<8x16xf32>,
    %4 = vector.extract_strided_slice %1 {offsets = [0, 1], sizes = [8, 16], strides = [1, 1]} : vector<8x22xf32> to vector<8x16xf32>
    %c8 = arith.constant 8 : index
    %c0_4 = arith.constant 0 : index
    %5 = vector.load %arg6[%c8, %c0_4] : memref<56x16xf32, #tpu.memory_space<vmem>>, vector<8x16xf32>
    tpu.vector_store %arg6[%c8, %c0_4], %4 {strides = array<i32>} : memref<56x16xf32, #tpu.memory_space<vmem>>, vector<8x16xf32>,
    %6 = vector.extract_strided_slice %1 {offsets = [0, 2], sizes = [8, 16], strides = [1, 1]} : vector<8x22xf32> to vector<8x16xf32>
    %c16 = arith.constant 16 : index
    %c0_5 = arith.constant 0 : index
    %7 = vector.load %arg6[%c16, %c0_5] : memref<56x16xf32, #tpu.memory_space<vmem>>, vector<8x16xf32>
    tpu.vector_store %arg6[%c16, %c0_5], %6 {strides = array<i32>} : memref<56x16xf32, #tpu.memory_space<vmem>>, vector<8x16xf32>,
    %8 = vector.extract_strided_slice %1 {offsets = [0, 3], sizes = [8, 16], strides = [1, 1]} : vector<8x22xf32> to vector<8x16xf32>
    %c24 = arith.constant 24 : index
    %c0_6 = arith.constant 0 : index
    %9 = vector.load %arg6[%c24, %c0_6] : memref<56x16xf32, #tpu.memory_space<vmem>>, vector<8x16xf32>
    tpu.vector_store %arg6[%c24, %c0_6], %8 {strides = array<i32>} : memref<56x16xf32, #tpu.memory_space<vmem>>, vector<8x16xf32>,
    %10 = vector.extract_strided_slice %1 {offsets = [0, 4], sizes = [8, 16], strides = [1, 1]} : vector<8x22xf32> to vector<8x16xf32>
    %c32 = arith.constant 32 : index
    %c0_7 = arith.constant 0 : index
    %11 = vector.load %arg6[%c32, %c0_7] : memref<56x16xf32, #tpu.memory_space<vmem>>, vector<8x16xf32>
    tpu.vector_store %arg6[%c32, %c0_7], %10 {strides = array<i32>} : memref<56x16xf32, #tpu.memory_space<vmem>>, vector<8x16xf32>,
    %12 = vector.extract_strided_slice %1 {offsets = [0, 5], sizes = [8, 16], strides = [1, 1]} : vector<8x22xf32> to vector<8x16xf32>
    %c40 = arith.constant 40 : index
    %c0_8 = arith.constant 0 : index
    %13 = vector.load %arg6[%c40, %c0_8] : memref<56x16xf32, #tpu.memory_space<vmem>>, vector<8x16xf32>
    tpu.vector_store %arg6[%c40, %c0_8], %12 {strides = array<i32>} : memref<56x16xf32, #tpu.memory_space<vmem>>, vector<8x16xf32>,
    %14 = vector.extract_strided_slice %1 {offsets = [0, 6], sizes = [8, 16], strides = [1, 1]} : vector<8x22xf32> to vector<8x16xf32>
    %c48 = arith.constant 48 : index
    %c0_9 = arith.constant 0 : index
    %15 = vector.load %arg6[%c48, %c0_9] : memref<56x16xf32, #tpu.memory_space<vmem>>, vector<8x16xf32>
    tpu.vector_store %arg6[%c48, %c0_9], %14 {strides = array<i32>} : memref<56x16xf32, #tpu.memory_space<vmem>>, vector<8x16xf32>,
    %c0_10 = arith.constant 0 : index
    %c0_11 = arith.constant 0 : index
    %16 = vector.load %arg6[%c0_10, %c0_11] : memref<56x16xf32, #tpu.memory_space<vmem>>, vector<56x16xf32>
    %17 = arith.truncf %16 : vector<56x16xf32> to vector<56x16xbf16>
    %c0_12 = arith.constant 0 : index
    %c0_13 = arith.constant 0 : index
    %18 = vector.load %arg3[%c0_12, %c0_13] : memref<32x56xbf16, #tpu.memory_space<vmem>>, vector<32x56xbf16>
    %cst = arith.constant dense<0.000000e+00> : vector<32x16xf32>
    %19 = tpu.matmul %18, %17, %cst {dimension_numbers = #tpu.dot_dimension_numbers<[1], [0], [0], [1], [0, 0, 1, 1], [], []>} : vector<32x56xbf16>, vector<56x16xbf16>, vector<32x16xf32> -> vector<32x16xf32>
    %c0_14 = arith.constant 0 : index
    %c0_15 = arith.constant 0 : index
    %20 = vector.load %arg4[%c0_14, %c0_15] : memref<32x1xf32, #tpu.memory_space<vmem>>, vector<32x1xf32>
    %21 = vector.broadcast %20 : vector<32x1xf32> to vector<32x16xf32>
    %22 = arith.addf %19, %21 : vector<32x16xf32>
    %23 = arith.truncf %22 : vector<32x16xf32> to vector<32x16xbf16>
    %c0_16 = arith.constant 0 : index
    %c0_17 = arith.constant 0 : index
    %c0_18 = arith.constant 0 : index
    %24 = vector.load %arg5[%c0_16, %c0_17, %c0_18] : memref<1x32x16xbf16, #tpu.memory_space<vmem>>, vector<1x32x16xbf16>
    %25 = vector.shape_cast %24 : vector<1x32x16xbf16> to vector<32x16xbf16>
    %26 = vector.shape_cast %23 : vector<32x16xbf16> to vector<1x32x16xbf16>
    tpu.vector_store %arg5[%c0_16, %c0_17, %c0_18], %26 {strides = array<i32>} : memref<1x32x16xbf16, #tpu.memory_space<vmem>>, vector<1x32x16xbf16>,
    return
  }
  func.func @transform_0(%arg0: i32, %arg1: i32) -> (i32, i32, i32) {
    %c0_i32 = arith.constant 0 : i32
    %c0_i32_0 = arith.constant 0 : i32
    %c0_i32_1 = arith.constant 0 : i32
    return %arg0, %c0_i32, %c0_i32_0 : i32, i32, i32
  }
  func.func @transform_1(%arg0: i32, %arg1: i32) -> (i32, i32) {
    %c0_i32 = arith.constant 0 : i32
    %c0_i32_0 = arith.constant 0 : i32
    %c0_i32_1 = arith.constant 0 : i32
    return %c0_i32, %c0_i32_0 : i32, i32
  }
  func.func @transform_2(%arg0: i32, %arg1: i32) -> (i32, i32) {
    %c0_i32 = arith.constant 0 : i32
    %c0_i32_0 = arith.constant 0 : i32
    %c0_i32_1 = arith.constant 0 : i32
    return %c0_i32, %c0_i32_0 : i32, i32
  }
  func.func @transform_3(%arg0: i32, %arg1: i32) -> (i32, i32, i32) {
    %c0_i32 = arith.constant 0 : i32
    %c0_i32_0 = arith.constant 0 : i32
    return %arg0, %c0_i32, %arg1 : i32, i32, i32
  }
}

module attributes {stable_mosaic.version = 11 : i64} {
  func.func @_conv1d_kernel(%arg0: i32, %arg1: i32, %arg2: memref<1x32x18xbf16, #tpu.memory_space<vmem>>, %arg3: memref<32x64xbf16, #tpu.memory_space<vmem>>, %arg4: memref<32x1xf32, #tpu.memory_space<vmem>>, %arg5: memref<32x1xf32, #tpu.memory_space<vmem>>, %arg6: memref<32x1xf32, #tpu.memory_space<vmem>>, %arg7: memref<1x32x17xbf16, #tpu.memory_space<vmem>>, %arg8: memref<64x17xf32, #tpu.memory_space<vmem>>) attributes {dimension_semantics = [#tpu.dimension_semantics<parallel>, #tpu.dimension_semantics<parallel>], iteration_bounds = array<i64: 2, 1>, scalar_prefetch = 0 : i64, scratch_operands = 1 : i64, tpu.core_type = #tpu.core_type<tc>, window_params = [{transform_indices = @transform_0, window_bounds = array<i64: 1, 32, 18>}, {pipeline_mode = #tpu.pipeline_mode<synchronous>, transform_indices = @transform_1, window_bounds = array<i64: 32, 64>}, {pipeline_mode = #tpu.pipeline_mode<synchronous>, transform_indices = @transform_2, window_bounds = array<i64: 32, 1>}, {pipeline_mode = #tpu.pipeline_mode<synchronous>, transform_indices = @transform_3, window_bounds = array<i64: 32, 1>}, {pipeline_mode = #tpu.pipeline_mode<synchronous>, transform_indices = @transform_4, window_bounds = array<i64: 32, 1>}, {transform_indices = @transform_5, window_bounds = array<i64: 1, 32, 17>}]} {
    %c0 = arith.constant 0 : index
    %c0_0 = arith.constant 0 : index
    %c0_1 = arith.constant 0 : index
    %0 = vector.load %arg2[%c0, %c0_0, %c0_1] : memref<1x32x18xbf16, #tpu.memory_space<vmem>>, vector<1x32x18xbf16>
    %1 = vector.shape_cast %0 : vector<1x32x18xbf16> to vector<32x18xbf16>
    %2 = arith.extf %1 : vector<32x18xbf16> to vector<32x18xf32>
    %c0_2 = arith.constant 0 : index
    %c0_3 = arith.constant 0 : index
    %3 = vector.load %arg5[%c0_2, %c0_3] : memref<32x1xf32, #tpu.memory_space<vmem>>, vector<32x1xf32>
    %c0_4 = arith.constant 0 : index
    %c0_5 = arith.constant 0 : index
    %4 = vector.load %arg6[%c0_4, %c0_5] : memref<32x1xf32, #tpu.memory_space<vmem>>, vector<32x1xf32>
    %5 = vector.broadcast %3 : vector<32x1xf32> to vector<32x18xf32>
    %6 = arith.mulf %5, %2 : vector<32x18xf32>
    %7 = math.sin %6 : vector<32x18xf32>
    %8 = arith.mulf %7, %7 : vector<32x18xf32>
    %9 = vector.broadcast %4 : vector<32x1xf32> to vector<32x18xf32>
    %10 = arith.mulf %9, %8 : vector<32x18xf32>
    %11 = arith.addf %2, %10 : vector<32x18xf32>
    %12 = vector.extract_strided_slice %11 {offsets = [0, 0], sizes = [32, 17], strides = [1, 1]} : vector<32x18xf32> to vector<32x17xf32>
    %c0_6 = arith.constant 0 : index
    %c0_7 = arith.constant 0 : index
    %13 = vector.load %arg8[%c0_6, %c0_7] : memref<64x17xf32, #tpu.memory_space<vmem>>, vector<32x17xf32>
    tpu.vector_store %arg8[%c0_6, %c0_7], %12 {strides = array<i32>} : memref<64x17xf32, #tpu.memory_space<vmem>>, vector<32x17xf32>,
    %14 = vector.extract_strided_slice %11 {offsets = [0, 1], sizes = [32, 17], strides = [1, 1]} : vector<32x18xf32> to vector<32x17xf32>
    %c32 = arith.constant 32 : index
    %c0_8 = arith.constant 0 : index
    %15 = vector.load %arg8[%c32, %c0_8] : memref<64x17xf32, #tpu.memory_space<vmem>>, vector<32x17xf32>
    tpu.vector_store %arg8[%c32, %c0_8], %14 {strides = array<i32>} : memref<64x17xf32, #tpu.memory_space<vmem>>, vector<32x17xf32>,
    %c0_9 = arith.constant 0 : index
    %c0_10 = arith.constant 0 : index
    %16 = vector.load %arg8[%c0_9, %c0_10] : memref<64x17xf32, #tpu.memory_space<vmem>>, vector<64x17xf32>
    %17 = arith.truncf %16 : vector<64x17xf32> to vector<64x17xbf16>
    %c0_11 = arith.constant 0 : index
    %c0_12 = arith.constant 0 : index
    %18 = vector.load %arg3[%c0_11, %c0_12] : memref<32x64xbf16, #tpu.memory_space<vmem>>, vector<32x64xbf16>
    %cst = arith.constant dense<0.000000e+00> : vector<32x17xf32>
    %19 = tpu.matmul %18, %17, %cst {dimension_numbers = #tpu.dot_dimension_numbers<[1], [0], [0], [1], [0, 0, 1, 1], [], []>} : vector<32x64xbf16>, vector<64x17xbf16>, vector<32x17xf32> -> vector<32x17xf32>
    %c0_13 = arith.constant 0 : index
    %c0_14 = arith.constant 0 : index
    %20 = vector.load %arg4[%c0_13, %c0_14] : memref<32x1xf32, #tpu.memory_space<vmem>>, vector<32x1xf32>
    %21 = vector.broadcast %20 : vector<32x1xf32> to vector<32x17xf32>
    %22 = arith.addf %19, %21 : vector<32x17xf32>
    %23 = arith.truncf %22 : vector<32x17xf32> to vector<32x17xbf16>
    %c0_15 = arith.constant 0 : index
    %c0_16 = arith.constant 0 : index
    %c0_17 = arith.constant 0 : index
    %24 = vector.load %arg7[%c0_15, %c0_16, %c0_17] : memref<1x32x17xbf16, #tpu.memory_space<vmem>>, vector<1x32x17xbf16>
    %25 = vector.shape_cast %24 : vector<1x32x17xbf16> to vector<32x17xbf16>
    %26 = vector.shape_cast %23 : vector<32x17xbf16> to vector<1x32x17xbf16>
    tpu.vector_store %arg7[%c0_15, %c0_16, %c0_17], %26 {strides = array<i32>} : memref<1x32x17xbf16, #tpu.memory_space<vmem>>, vector<1x32x17xbf16>,
    return
  }
  func.func @transform_0(%arg0: i32, %arg1: i32) -> (i32, i32, i32) {
    %c0_i32 = arith.constant 0 : i32
    %c0_i32_0 = arith.constant 0 : i32
    %c0_i32_1 = arith.constant 0 : i32
    return %arg0, %c0_i32, %c0_i32_0 : i32, i32, i32
  }
  func.func @transform_1(%arg0: i32, %arg1: i32) -> (i32, i32) {
    %c0_i32 = arith.constant 0 : i32
    %c0_i32_0 = arith.constant 0 : i32
    %c0_i32_1 = arith.constant 0 : i32
    return %c0_i32, %c0_i32_0 : i32, i32
  }
  func.func @transform_2(%arg0: i32, %arg1: i32) -> (i32, i32) {
    %c0_i32 = arith.constant 0 : i32
    %c0_i32_0 = arith.constant 0 : i32
    %c0_i32_1 = arith.constant 0 : i32
    return %c0_i32, %c0_i32_0 : i32, i32
  }
  func.func @transform_3(%arg0: i32, %arg1: i32) -> (i32, i32) {
    %c0_i32 = arith.constant 0 : i32
    %c0_i32_0 = arith.constant 0 : i32
    %c0_i32_1 = arith.constant 0 : i32
    return %c0_i32, %c0_i32_0 : i32, i32
  }
  func.func @transform_4(%arg0: i32, %arg1: i32) -> (i32, i32) {
    %c0_i32 = arith.constant 0 : i32
    %c0_i32_0 = arith.constant 0 : i32
    %c0_i32_1 = arith.constant 0 : i32
    return %c0_i32, %c0_i32_0 : i32, i32
  }
  func.func @transform_5(%arg0: i32, %arg1: i32) -> (i32, i32, i32) {
    %c0_i32 = arith.constant 0 : i32
    %c0_i32_0 = arith.constant 0 : i32
    return %arg0, %c0_i32, %arg1 : i32, i32, i32
  }
}

module attributes {stable_mosaic.version = 11 : i64} {
  func.func @_conv1d_kernel(%arg0: i32, %arg1: i32, %arg2: memref<1x16x38xbf16, #tpu.memory_space<vmem>>, %arg3: memref<16x112xbf16, #tpu.memory_space<vmem>>, %arg4: memref<16x1xf32, #tpu.memory_space<vmem>>, %arg5: memref<16x1xf32, #tpu.memory_space<vmem>>, %arg6: memref<16x1xf32, #tpu.memory_space<vmem>>, %arg7: memref<1x16x32xbf16, #tpu.memory_space<vmem>>, %arg8: memref<112x32xf32, #tpu.memory_space<vmem>>) attributes {dimension_semantics = [#tpu.dimension_semantics<parallel>, #tpu.dimension_semantics<parallel>], iteration_bounds = array<i64: 2, 1>, scalar_prefetch = 0 : i64, scratch_operands = 1 : i64, tpu.core_type = #tpu.core_type<tc>, window_params = [{transform_indices = @transform_0, window_bounds = array<i64: 1, 16, 38>}, {pipeline_mode = #tpu.pipeline_mode<synchronous>, transform_indices = @transform_1, window_bounds = array<i64: 16, 112>}, {pipeline_mode = #tpu.pipeline_mode<synchronous>, transform_indices = @transform_2, window_bounds = array<i64: 16, 1>}, {pipeline_mode = #tpu.pipeline_mode<synchronous>, transform_indices = @transform_3, window_bounds = array<i64: 16, 1>}, {pipeline_mode = #tpu.pipeline_mode<synchronous>, transform_indices = @transform_4, window_bounds = array<i64: 16, 1>}, {transform_indices = @transform_5, window_bounds = array<i64: 1, 16, 32>}]} {
    %c0 = arith.constant 0 : index
    %c0_0 = arith.constant 0 : index
    %c0_1 = arith.constant 0 : index
    %0 = vector.load %arg2[%c0, %c0_0, %c0_1] : memref<1x16x38xbf16, #tpu.memory_space<vmem>>, vector<1x16x38xbf16>
    %1 = vector.shape_cast %0 : vector<1x16x38xbf16> to vector<16x38xbf16>
    %2 = arith.extf %1 : vector<16x38xbf16> to vector<16x38xf32>
    %c0_2 = arith.constant 0 : index
    %c0_3 = arith.constant 0 : index
    %3 = vector.load %arg5[%c0_2, %c0_3] : memref<16x1xf32, #tpu.memory_space<vmem>>, vector<16x1xf32>
    %c0_4 = arith.constant 0 : index
    %c0_5 = arith.constant 0 : index
    %4 = vector.load %arg6[%c0_4, %c0_5] : memref<16x1xf32, #tpu.memory_space<vmem>>, vector<16x1xf32>
    %5 = vector.broadcast %3 : vector<16x1xf32> to vector<16x38xf32>
    %6 = arith.mulf %5, %2 : vector<16x38xf32>
    %7 = math.sin %6 : vector<16x38xf32>
    %8 = arith.mulf %7, %7 : vector<16x38xf32>
    %9 = vector.broadcast %4 : vector<16x1xf32> to vector<16x38xf32>
    %10 = arith.mulf %9, %8 : vector<16x38xf32>
    %11 = arith.addf %2, %10 : vector<16x38xf32>
    %12 = vector.extract_strided_slice %11 {offsets = [0, 0], sizes = [16, 32], strides = [1, 1]} : vector<16x38xf32> to vector<16x32xf32>
    %c0_6 = arith.constant 0 : index
    %c0_7 = arith.constant 0 : index
    %13 = vector.load %arg8[%c0_6, %c0_7] : memref<112x32xf32, #tpu.memory_space<vmem>>, vector<16x32xf32>
    tpu.vector_store %arg8[%c0_6, %c0_7], %12 {strides = array<i32>} : memref<112x32xf32, #tpu.memory_space<vmem>>, vector<16x32xf32>,
    %14 = vector.extract_strided_slice %11 {offsets = [0, 1], sizes = [16, 32], strides = [1, 1]} : vector<16x38xf32> to vector<16x32xf32>
    %c16 = arith.constant 16 : index
    %c0_8 = arith.constant 0 : index
    %15 = vector.load %arg8[%c16, %c0_8] : memref<112x32xf32, #tpu.memory_space<vmem>>, vector<16x32xf32>
    tpu.vector_store %arg8[%c16, %c0_8], %14 {strides = array<i32>} : memref<112x32xf32, #tpu.memory_space<vmem>>, vector<16x32xf32>,
    %16 = vector.extract_strided_slice %11 {offsets = [0, 2], sizes = [16, 32], strides = [1, 1]} : vector<16x38xf32> to vector<16x32xf32>
    %c32 = arith.constant 32 : index
    %c0_9 = arith.constant 0 : index
    %17 = vector.load %arg8[%c32, %c0_9] : memref<112x32xf32, #tpu.memory_space<vmem>>, vector<16x32xf32>
    tpu.vector_store %arg8[%c32, %c0_9], %16 {strides = array<i32>} : memref<112x32xf32, #tpu.memory_space<vmem>>, vector<16x32xf32>,
    %18 = vector.extract_strided_slice %11 {offsets = [0, 3], sizes = [16, 32], strides = [1, 1]} : vector<16x38xf32> to vector<16x32xf32>
    %c48 = arith.constant 48 : index
    %c0_10 = arith.constant 0 : index
    %19 = vector.load %arg8[%c48, %c0_10] : memref<112x32xf32, #tpu.memory_space<vmem>>, vector<16x32xf32>
    tpu.vector_store %arg8[%c48, %c0_10], %18 {strides = array<i32>} : memref<112x32xf32, #tpu.memory_space<vmem>>, vector<16x32xf32>,
    %20 = vector.extract_strided_slice %11 {offsets = [0, 4], sizes = [16, 32], strides = [1, 1]} : vector<16x38xf32> to vector<16x32xf32>
    %c64 = arith.constant 64 : index
    %c0_11 = arith.constant 0 : index
    %21 = vector.load %arg8[%c64, %c0_11] : memref<112x32xf32, #tpu.memory_space<vmem>>, vector<16x32xf32>
    tpu.vector_store %arg8[%c64, %c0_11], %20 {strides = array<i32>} : memref<112x32xf32, #tpu.memory_space<vmem>>, vector<16x32xf32>,
    %22 = vector.extract_strided_slice %11 {offsets = [0, 5], sizes = [16, 32], strides = [1, 1]} : vector<16x38xf32> to vector<16x32xf32>
    %c80 = arith.constant 80 : index
    %c0_12 = arith.constant 0 : index
    %23 = vector.load %arg8[%c80, %c0_12] : memref<112x32xf32, #tpu.memory_space<vmem>>, vector<16x32xf32>
    tpu.vector_store %arg8[%c80, %c0_12], %22 {strides = array<i32>} : memref<112x32xf32, #tpu.memory_space<vmem>>, vector<16x32xf32>,
    %24 = vector.extract_strided_slice %11 {offsets = [0, 6], sizes = [16, 32], strides = [1, 1]} : vector<16x38xf32> to vector<16x32xf32>
    %c96 = arith.constant 96 : index
    %c0_13 = arith.constant 0 : index
    %25 = vector.load %arg8[%c96, %c0_13] : memref<112x32xf32, #tpu.memory_space<vmem>>, vector<16x32xf32>
    tpu.vector_store %arg8[%c96, %c0_13], %24 {strides = array<i32>} : memref<112x32xf32, #tpu.memory_space<vmem>>, vector<16x32xf32>,
    %c0_14 = arith.constant 0 : index
    %c0_15 = arith.constant 0 : index
    %26 = vector.load %arg8[%c0_14, %c0_15] : memref<112x32xf32, #tpu.memory_space<vmem>>, vector<112x32xf32>
    %27 = arith.truncf %26 : vector<112x32xf32> to vector<112x32xbf16>
    %c0_16 = arith.constant 0 : index
    %c0_17 = arith.constant 0 : index
    %28 = vector.load %arg3[%c0_16, %c0_17] : memref<16x112xbf16, #tpu.memory_space<vmem>>, vector<16x112xbf16>
    %cst = arith.constant dense<0.000000e+00> : vector<16x32xf32>
    %29 = tpu.matmul %28, %27, %cst {dimension_numbers = #tpu.dot_dimension_numbers<[1], [0], [0], [1], [0, 0, 1, 1], [], []>} : vector<16x112xbf16>, vector<112x32xbf16>, vector<16x32xf32> -> vector<16x32xf32>
    %c0_18 = arith.constant 0 : index
    %c0_19 = arith.constant 0 : index
    %30 = vector.load %arg4[%c0_18, %c0_19] : memref<16x1xf32, #tpu.memory_space<vmem>>, vector<16x1xf32>
    %31 = vector.broadcast %30 : vector<16x1xf32> to vector<16x32xf32>
    %32 = arith.addf %29, %31 : vector<16x32xf32>
    %33 = arith.truncf %32 : vector<16x32xf32> to vector<16x32xbf16>
    %c0_20 = arith.constant 0 : index
    %c0_21 = arith.constant 0 : index
    %c0_22 = arith.constant 0 : index
    %34 = vector.load %arg7[%c0_20, %c0_21, %c0_22] : memref<1x16x32xbf16, #tpu.memory_space<vmem>>, vector<1x16x32xbf16>
    %35 = vector.shape_cast %34 : vector<1x16x32xbf16> to vector<16x32xbf16>
    %36 = vector.shape_cast %33 : vector<16x32xbf16> to vector<1x16x32xbf16>
    tpu.vector_store %arg7[%c0_20, %c0_21, %c0_22], %36 {strides = array<i32>} : memref<1x16x32xbf16, #tpu.memory_space<vmem>>, vector<1x16x32xbf16>,
    return
  }
  func.func @transform_0(%arg0: i32, %arg1: i32) -> (i32, i32, i32) {
    %c0_i32 = arith.constant 0 : i32
    %c0_i32_0 = arith.constant 0 : i32
    %c0_i32_1 = arith.constant 0 : i32
    return %arg0, %c0_i32, %c0_i32_0 : i32, i32, i32
  }
  func.func @transform_1(%arg0: i32, %arg1: i32) -> (i32, i32) {
    %c0_i32 = arith.constant 0 : i32
    %c0_i32_0 = arith.constant 0 : i32
    %c0_i32_1 = arith.constant 0 : i32
    return %c0_i32, %c0_i32_0 : i32, i32
  }
  func.func @transform_2(%arg0: i32, %arg1: i32) -> (i32, i32) {
    %c0_i32 = arith.constant 0 : i32
    %c0_i32_0 = arith.constant 0 : i32
    %c0_i32_1 = arith.constant 0 : i32
    return %c0_i32, %c0_i32_0 : i32, i32
  }
  func.func @transform_3(%arg0: i32, %arg1: i32) -> (i32, i32) {
    %c0_i32 = arith.constant 0 : i32
    %c0_i32_0 = arith.constant 0 : i32
    %c0_i32_1 = arith.constant 0 : i32
    return %c0_i32, %c0_i32_0 : i32, i32
  }
  func.func @transform_4(%arg0: i32, %arg1: i32) -> (i32, i32) {
    %c0_i32 = arith.constant 0 : i32
    %c0_i32_0 = arith.constant 0 : i32
    %c0_i32_1 = arith.constant 0 : i32
    return %c0_i32, %c0_i32_0 : i32, i32
  }
  func.func @transform_5(%arg0: i32, %arg1: i32) -> (i32, i32, i32) {
    %c0_i32 = arith.constant 0 : i32
    %c0_i32_0 = arith.constant 0 : i32
    return %arg0, %c0_i32, %arg1 : i32, i32, i32
  }
}

module attributes {stable_mosaic.version = 11 : i64} {
  func.func @_conv1d_kernel(%arg0: i32, %arg1: i32, %arg2: memref<1x16x32xbf16, #tpu.memory_space<vmem>>, %arg3: memref<16x16xbf16, #tpu.memory_space<vmem>>, %arg4: memref<16x1xf32, #tpu.memory_space<vmem>>, %arg5: memref<16x1xf32, #tpu.memory_space<vmem>>, %arg6: memref<16x1xf32, #tpu.memory_space<vmem>>, %arg7: memref<1x16x32xbf16, #tpu.memory_space<vmem>>, %arg8: memref<1x16x32xbf16, #tpu.memory_space<vmem>>) attributes {dimension_semantics = [#tpu.dimension_semantics<parallel>, #tpu.dimension_semantics<parallel>], iteration_bounds = array<i64: 2, 1>, scalar_prefetch = 0 : i64, scratch_operands = 0 : i64, tpu.core_type = #tpu.core_type<tc>, window_params = [{transform_indices = @transform_0, window_bounds = array<i64: 1, 16, 32>}, {pipeline_mode = #tpu.pipeline_mode<synchronous>, transform_indices = @transform_1, window_bounds = array<i64: 16, 16>}, {pipeline_mode = #tpu.pipeline_mode<synchronous>, transform_indices = @transform_2, window_bounds = array<i64: 16, 1>}, {pipeline_mode = #tpu.pipeline_mode<synchronous>, transform_indices = @transform_3, window_bounds = array<i64: 16, 1>}, {pipeline_mode = #tpu.pipeline_mode<synchronous>, transform_indices = @transform_4, window_bounds = array<i64: 16, 1>}, {transform_indices = @transform_5, window_bounds = array<i64: 1, 16, 32>}, {transform_indices = @transform_6, window_bounds = array<i64: 1, 16, 32>}]} {
    %c0 = arith.constant 0 : index
    %c0_0 = arith.constant 0 : index
    %c0_1 = arith.constant 0 : index
    %0 = vector.load %arg2[%c0, %c0_0, %c0_1] : memref<1x16x32xbf16, #tpu.memory_space<vmem>>, vector<1x16x32xbf16>
    %1 = vector.shape_cast %0 : vector<1x16x32xbf16> to vector<16x32xbf16>
    %2 = arith.extf %1 : vector<16x32xbf16> to vector<16x32xf32>
    %c0_2 = arith.constant 0 : index
    %c0_3 = arith.constant 0 : index
    %3 = vector.load %arg5[%c0_2, %c0_3] : memref<16x1xf32, #tpu.memory_space<vmem>>, vector<16x1xf32>
    %c0_4 = arith.constant 0 : index
    %c0_5 = arith.constant 0 : index
    %4 = vector.load %arg6[%c0_4, %c0_5] : memref<16x1xf32, #tpu.memory_space<vmem>>, vector<16x1xf32>
    %5 = vector.broadcast %3 : vector<16x1xf32> to vector<16x32xf32>
    %6 = arith.mulf %5, %2 : vector<16x32xf32>
    %7 = math.sin %6 : vector<16x32xf32>
    %8 = arith.mulf %7, %7 : vector<16x32xf32>
    %9 = vector.broadcast %4 : vector<16x1xf32> to vector<16x32xf32>
    %10 = arith.mulf %9, %8 : vector<16x32xf32>
    %11 = arith.addf %2, %10 : vector<16x32xf32>
    %12 = arith.truncf %11 : vector<16x32xf32> to vector<16x32xbf16>
    %c0_6 = arith.constant 0 : index
    %c0_7 = arith.constant 0 : index
    %13 = vector.load %arg3[%c0_6, %c0_7] : memref<16x16xbf16, #tpu.memory_space<vmem>>, vector<16x16xbf16>
    %cst = arith.constant dense<0.000000e+00> : vector<16x32xf32>
    %14 = tpu.matmul %13, %12, %cst {dimension_numbers = #tpu.dot_dimension_numbers<[1], [0], [0], [1], [0, 0, 1, 1], [], []>} : vector<16x16xbf16>, vector<16x32xbf16>, vector<16x32xf32> -> vector<16x32xf32>
    %c0_8 = arith.constant 0 : index
    %c0_9 = arith.constant 0 : index
    %15 = vector.load %arg4[%c0_8, %c0_9] : memref<16x1xf32, #tpu.memory_space<vmem>>, vector<16x1xf32>
    %16 = vector.broadcast %15 : vector<16x1xf32> to vector<16x32xf32>
    %17 = arith.addf %14, %16 : vector<16x32xf32>
    %c0_10 = arith.constant 0 : index
    %c0_11 = arith.constant 0 : index
    %c0_12 = arith.constant 0 : index
    %18 = vector.load %arg7[%c0_10, %c0_11, %c0_12] : memref<1x16x32xbf16, #tpu.memory_space<vmem>>, vector<1x16x32xbf16>
    %19 = vector.shape_cast %18 : vector<1x16x32xbf16> to vector<16x32xbf16>
    %20 = arith.extf %19 : vector<16x32xbf16> to vector<16x32xf32>
    %21 = arith.addf %17, %20 : vector<16x32xf32>
    %22 = arith.truncf %21 : vector<16x32xf32> to vector<16x32xbf16>
    %c0_13 = arith.constant 0 : index
    %c0_14 = arith.constant 0 : index
    %c0_15 = arith.constant 0 : index
    %23 = vector.load %arg8[%c0_13, %c0_14, %c0_15] : memref<1x16x32xbf16, #tpu.memory_space<vmem>>, vector<1x16x32xbf16>
    %24 = vector.shape_cast %23 : vector<1x16x32xbf16> to vector<16x32xbf16>
    %25 = vector.shape_cast %22 : vector<16x32xbf16> to vector<1x16x32xbf16>
    tpu.vector_store %arg8[%c0_13, %c0_14, %c0_15], %25 {strides = array<i32>} : memref<1x16x32xbf16, #tpu.memory_space<vmem>>, vector<1x16x32xbf16>,
    return
  }
  func.func @transform_0(%arg0: i32, %arg1: i32) -> (i32, i32, i32) {
    %c0_i32 = arith.constant 0 : i32
    %c0_i32_0 = arith.constant 0 : i32
    %c0_i32_1 = arith.constant 0 : i32
    return %arg0, %c0_i32, %c0_i32_0 : i32, i32, i32
  }
  func.func @transform_1(%arg0: i32, %arg1: i32) -> (i32, i32) {
    %c0_i32 = arith.constant 0 : i32
    %c0_i32_0 = arith.constant 0 : i32
    %c0_i32_1 = arith.constant 0 : i32
    return %c0_i32, %c0_i32_0 : i32, i32
  }
  func.func @transform_2(%arg0: i32, %arg1: i32) -> (i32, i32) {
    %c0_i32 = arith.constant 0 : i32
    %c0_i32_0 = arith.constant 0 : i32
    %c0_i32_1 = arith.constant 0 : i32
    return %c0_i32, %c0_i32_0 : i32, i32
  }
  func.func @transform_3(%arg0: i32, %arg1: i32) -> (i32, i32) {
    %c0_i32 = arith.constant 0 : i32
    %c0_i32_0 = arith.constant 0 : i32
    %c0_i32_1 = arith.constant 0 : i32
    return %c0_i32, %c0_i32_0 : i32, i32
  }
  func.func @transform_4(%arg0: i32, %arg1: i32) -> (i32, i32) {
    %c0_i32 = arith.constant 0 : i32
    %c0_i32_0 = arith.constant 0 : i32
    %c0_i32_1 = arith.constant 0 : i32
    return %c0_i32, %c0_i32_0 : i32, i32
  }
  func.func @transform_5(%arg0: i32, %arg1: i32) -> (i32, i32, i32) {
    %c0_i32 = arith.constant 0 : i32
    %c0_i32_0 = arith.constant 0 : i32
    return %arg0, %c0_i32, %arg1 : i32, i32, i32
  }
  func.func @transform_6(%arg0: i32, %arg1: i32) -> (i32, i32, i32) {
    %c0_i32 = arith.constant 0 : i32
    %c0_i32_0 = arith.constant 0 : i32
    return %arg0, %c0_i32, %arg1 : i32, i32, i32
  }
}

module attributes {stable_mosaic.version = 11 : i64} {
  func.func @_conv1d_kernel(%arg0: i32, %arg1: i32, %arg2: memref<1x16x50xbf16, #tpu.memory_space<vmem>>, %arg3: memref<16x112xbf16, #tpu.memory_space<vmem>>, %arg4: memref<16x1xf32, #tpu.memory_space<vmem>>, %arg5: memref<16x1xf32, #tpu.memory_space<vmem>>, %arg6: memref<16x1xf32, #tpu.memory_space<vmem>>, %arg7: memref<1x16x32xbf16, #tpu.memory_space<vmem>>, %arg8: memref<112x32xf32, #tpu.memory_space<vmem>>) attributes {dimension_semantics = [#tpu.dimension_semantics<parallel>, #tpu.dimension_semantics<parallel>], iteration_bounds = array<i64: 2, 1>, scalar_prefetch = 0 : i64, scratch_operands = 1 : i64, tpu.core_type = #tpu.core_type<tc>, window_params = [{transform_indices = @transform_0, window_bounds = array<i64: 1, 16, 50>}, {pipeline_mode = #tpu.pipeline_mode<synchronous>, transform_indices = @transform_1, window_bounds = array<i64: 16, 112>}, {pipeline_mode = #tpu.pipeline_mode<synchronous>, transform_indices = @transform_2, window_bounds = array<i64: 16, 1>}, {pipeline_mode = #tpu.pipeline_mode<synchronous>, transform_indices = @transform_3, window_bounds = array<i64: 16, 1>}, {pipeline_mode = #tpu.pipeline_mode<synchronous>, transform_indices = @transform_4, window_bounds = array<i64: 16, 1>}, {transform_indices = @transform_5, window_bounds = array<i64: 1, 16, 32>}]} {
    %c0 = arith.constant 0 : index
    %c0_0 = arith.constant 0 : index
    %c0_1 = arith.constant 0 : index
    %0 = vector.load %arg2[%c0, %c0_0, %c0_1] : memref<1x16x50xbf16, #tpu.memory_space<vmem>>, vector<1x16x50xbf16>
    %1 = vector.shape_cast %0 : vector<1x16x50xbf16> to vector<16x50xbf16>
    %2 = arith.extf %1 : vector<16x50xbf16> to vector<16x50xf32>
    %c0_2 = arith.constant 0 : index
    %c0_3 = arith.constant 0 : index
    %3 = vector.load %arg5[%c0_2, %c0_3] : memref<16x1xf32, #tpu.memory_space<vmem>>, vector<16x1xf32>
    %c0_4 = arith.constant 0 : index
    %c0_5 = arith.constant 0 : index
    %4 = vector.load %arg6[%c0_4, %c0_5] : memref<16x1xf32, #tpu.memory_space<vmem>>, vector<16x1xf32>
    %5 = vector.broadcast %3 : vector<16x1xf32> to vector<16x50xf32>
    %6 = arith.mulf %5, %2 : vector<16x50xf32>
    %7 = math.sin %6 : vector<16x50xf32>
    %8 = arith.mulf %7, %7 : vector<16x50xf32>
    %9 = vector.broadcast %4 : vector<16x1xf32> to vector<16x50xf32>
    %10 = arith.mulf %9, %8 : vector<16x50xf32>
    %11 = arith.addf %2, %10 : vector<16x50xf32>
    %12 = vector.extract_strided_slice %11 {offsets = [0, 0], sizes = [16, 32], strides = [1, 1]} : vector<16x50xf32> to vector<16x32xf32>
    %c0_6 = arith.constant 0 : index
    %c0_7 = arith.constant 0 : index
    %13 = vector.load %arg8[%c0_6, %c0_7] : memref<112x32xf32, #tpu.memory_space<vmem>>, vector<16x32xf32>
    tpu.vector_store %arg8[%c0_6, %c0_7], %12 {strides = array<i32>} : memref<112x32xf32, #tpu.memory_space<vmem>>, vector<16x32xf32>,
    %14 = vector.extract_strided_slice %11 {offsets = [0, 3], sizes = [16, 32], strides = [1, 1]} : vector<16x50xf32> to vector<16x32xf32>
    %c16 = arith.constant 16 : index
    %c0_8 = arith.constant 0 : index
    %15 = vector.load %arg8[%c16, %c0_8] : memref<112x32xf32, #tpu.memory_space<vmem>>, vector<16x32xf32>
    tpu.vector_store %arg8[%c16, %c0_8], %14 {strides = array<i32>} : memref<112x32xf32, #tpu.memory_space<vmem>>, vector<16x32xf32>,
    %16 = vector.extract_strided_slice %11 {offsets = [0, 6], sizes = [16, 32], strides = [1, 1]} : vector<16x50xf32> to vector<16x32xf32>
    %c32 = arith.constant 32 : index
    %c0_9 = arith.constant 0 : index
    %17 = vector.load %arg8[%c32, %c0_9] : memref<112x32xf32, #tpu.memory_space<vmem>>, vector<16x32xf32>
    tpu.vector_store %arg8[%c32, %c0_9], %16 {strides = array<i32>} : memref<112x32xf32, #tpu.memory_space<vmem>>, vector<16x32xf32>,
    %18 = vector.extract_strided_slice %11 {offsets = [0, 9], sizes = [16, 32], strides = [1, 1]} : vector<16x50xf32> to vector<16x32xf32>
    %c48 = arith.constant 48 : index
    %c0_10 = arith.constant 0 : index
    %19 = vector.load %arg8[%c48, %c0_10] : memref<112x32xf32, #tpu.memory_space<vmem>>, vector<16x32xf32>
    tpu.vector_store %arg8[%c48, %c0_10], %18 {strides = array<i32>} : memref<112x32xf32, #tpu.memory_space<vmem>>, vector<16x32xf32>,
    %20 = vector.extract_strided_slice %11 {offsets = [0, 12], sizes = [16, 32], strides = [1, 1]} : vector<16x50xf32> to vector<16x32xf32>
    %c64 = arith.constant 64 : index
    %c0_11 = arith.constant 0 : index
    %21 = vector.load %arg8[%c64, %c0_11] : memref<112x32xf32, #tpu.memory_space<vmem>>, vector<16x32xf32>
    tpu.vector_store %arg8[%c64, %c0_11], %20 {strides = array<i32>} : memref<112x32xf32, #tpu.memory_space<vmem>>, vector<16x32xf32>,
    %22 = vector.extract_strided_slice %11 {offsets = [0, 15], sizes = [16, 32], strides = [1, 1]} : vector<16x50xf32> to vector<16x32xf32>
    %c80 = arith.constant 80 : index
    %c0_12 = arith.constant 0 : index
    %23 = vector.load %arg8[%c80, %c0_12] : memref<112x32xf32, #tpu.memory_space<vmem>>, vector<16x32xf32>
    tpu.vector_store %arg8[%c80, %c0_12], %22 {strides = array<i32>} : memref<112x32xf32, #tpu.memory_space<vmem>>, vector<16x32xf32>,
    %24 = vector.extract_strided_slice %11 {offsets = [0, 18], sizes = [16, 32], strides = [1, 1]} : vector<16x50xf32> to vector<16x32xf32>
    %c96 = arith.constant 96 : index
    %c0_13 = arith.constant 0 : index
    %25 = vector.load %arg8[%c96, %c0_13] : memref<112x32xf32, #tpu.memory_space<vmem>>, vector<16x32xf32>
    tpu.vector_store %arg8[%c96, %c0_13], %24 {strides = array<i32>} : memref<112x32xf32, #tpu.memory_space<vmem>>, vector<16x32xf32>,
    %c0_14 = arith.constant 0 : index
    %c0_15 = arith.constant 0 : index
    %26 = vector.load %arg8[%c0_14, %c0_15] : memref<112x32xf32, #tpu.memory_space<vmem>>, vector<112x32xf32>
    %27 = arith.truncf %26 : vector<112x32xf32> to vector<112x32xbf16>
    %c0_16 = arith.constant 0 : index
    %c0_17 = arith.constant 0 : index
    %28 = vector.load %arg3[%c0_16, %c0_17] : memref<16x112xbf16, #tpu.memory_space<vmem>>, vector<16x112xbf16>
    %cst = arith.constant dense<0.000000e+00> : vector<16x32xf32>
    %29 = tpu.matmul %28, %27, %cst {dimension_numbers = #tpu.dot_dimension_numbers<[1], [0], [0], [1], [0, 0, 1, 1], [], []>} : vector<16x112xbf16>, vector<112x32xbf16>, vector<16x32xf32> -> vector<16x32xf32>
    %c0_18 = arith.constant 0 : index
    %c0_19 = arith.constant 0 : index
    %30 = vector.load %arg4[%c0_18, %c0_19] : memref<16x1xf32, #tpu.memory_space<vmem>>, vector<16x1xf32>
    %31 = vector.broadcast %30 : vector<16x1xf32> to vector<16x32xf32>
    %32 = arith.addf %29, %31 : vector<16x32xf32>
    %33 = arith.truncf %32 : vector<16x32xf32> to vector<16x32xbf16>
    %c0_20 = arith.constant 0 : index
    %c0_21 = arith.constant 0 : index
    %c0_22 = arith.constant 0 : index
    %34 = vector.load %arg7[%c0_20, %c0_21, %c0_22] : memref<1x16x32xbf16, #tpu.memory_space<vmem>>, vector<1x16x32xbf16>
    %35 = vector.shape_cast %34 : vector<1x16x32xbf16> to vector<16x32xbf16>
    %36 = vector.shape_cast %33 : vector<16x32xbf16> to vector<1x16x32xbf16>
    tpu.vector_store %arg7[%c0_20, %c0_21, %c0_22], %36 {strides = array<i32>} : memref<1x16x32xbf16, #tpu.memory_space<vmem>>, vector<1x16x32xbf16>,
    return
  }
  func.func @transform_0(%arg0: i32, %arg1: i32) -> (i32, i32, i32) {
    %c0_i32 = arith.constant 0 : i32
    %c0_i32_0 = arith.constant 0 : i32
    %c0_i32_1 = arith.constant 0 : i32
    return %arg0, %c0_i32, %c0_i32_0 : i32, i32, i32
  }
  func.func @transform_1(%arg0: i32, %arg1: i32) -> (i32, i32) {
    %c0_i32 = arith.constant 0 : i32
    %c0_i32_0 = arith.constant 0 : i32
    %c0_i32_1 = arith.constant 0 : i32
    return %c0_i32, %c0_i32_0 : i32, i32
  }
  func.func @transform_2(%arg0: i32, %arg1: i32) -> (i32, i32) {
    %c0_i32 = arith.constant 0 : i32
    %c0_i32_0 = arith.constant 0 : i32
    %c0_i32_1 = arith.constant 0 : i32
    return %c0_i32, %c0_i32_0 : i32, i32
  }
  func.func @transform_3(%arg0: i32, %arg1: i32) -> (i32, i32) {
    %c0_i32 = arith.constant 0 : i32
    %c0_i32_0 = arith.constant 0 : i32
    %c0_i32_1 = arith.constant 0 : i32
    return %c0_i32, %c0_i32_0 : i32, i32
  }
  func.func @transform_4(%arg0: i32, %arg1: i32) -> (i32, i32) {
    %c0_i32 = arith.constant 0 : i32
    %c0_i32_0 = arith.constant 0 : i32
    %c0_i32_1 = arith.constant 0 : i32
    return %c0_i32, %c0_i32_0 : i32, i32
  }
  func.func @transform_5(%arg0: i32, %arg1: i32) -> (i32, i32, i32) {
    %c0_i32 = arith.constant 0 : i32
    %c0_i32_0 = arith.constant 0 : i32
    return %arg0, %c0_i32, %arg1 : i32, i32, i32
  }
}

module attributes {stable_mosaic.version = 11 : i64} {
  func.func @_conv1d_kernel(%arg0: i32, %arg1: i32, %arg2: memref<1x16x86xbf16, #tpu.memory_space<vmem>>, %arg3: memref<16x112xbf16, #tpu.memory_space<vmem>>, %arg4: memref<16x1xf32, #tpu.memory_space<vmem>>, %arg5: memref<16x1xf32, #tpu.memory_space<vmem>>, %arg6: memref<16x1xf32, #tpu.memory_space<vmem>>, %arg7: memref<1x16x32xbf16, #tpu.memory_space<vmem>>, %arg8: memref<112x32xf32, #tpu.memory_space<vmem>>) attributes {dimension_semantics = [#tpu.dimension_semantics<parallel>, #tpu.dimension_semantics<parallel>], iteration_bounds = array<i64: 2, 1>, scalar_prefetch = 0 : i64, scratch_operands = 1 : i64, tpu.core_type = #tpu.core_type<tc>, window_params = [{transform_indices = @transform_0, window_bounds = array<i64: 1, 16, 86>}, {pipeline_mode = #tpu.pipeline_mode<synchronous>, transform_indices = @transform_1, window_bounds = array<i64: 16, 112>}, {pipeline_mode = #tpu.pipeline_mode<synchronous>, transform_indices = @transform_2, window_bounds = array<i64: 16, 1>}, {pipeline_mode = #tpu.pipeline_mode<synchronous>, transform_indices = @transform_3, window_bounds = array<i64: 16, 1>}, {pipeline_mode = #tpu.pipeline_mode<synchronous>, transform_indices = @transform_4, window_bounds = array<i64: 16, 1>}, {transform_indices = @transform_5, window_bounds = array<i64: 1, 16, 32>}]} {
    %c0 = arith.constant 0 : index
    %c0_0 = arith.constant 0 : index
    %c0_1 = arith.constant 0 : index
    %0 = vector.load %arg2[%c0, %c0_0, %c0_1] : memref<1x16x86xbf16, #tpu.memory_space<vmem>>, vector<1x16x86xbf16>
    %1 = vector.shape_cast %0 : vector<1x16x86xbf16> to vector<16x86xbf16>
    %2 = arith.extf %1 : vector<16x86xbf16> to vector<16x86xf32>
    %c0_2 = arith.constant 0 : index
    %c0_3 = arith.constant 0 : index
    %3 = vector.load %arg5[%c0_2, %c0_3] : memref<16x1xf32, #tpu.memory_space<vmem>>, vector<16x1xf32>
    %c0_4 = arith.constant 0 : index
    %c0_5 = arith.constant 0 : index
    %4 = vector.load %arg6[%c0_4, %c0_5] : memref<16x1xf32, #tpu.memory_space<vmem>>, vector<16x1xf32>
    %5 = vector.broadcast %3 : vector<16x1xf32> to vector<16x86xf32>
    %6 = arith.mulf %5, %2 : vector<16x86xf32>
    %7 = math.sin %6 : vector<16x86xf32>
    %8 = arith.mulf %7, %7 : vector<16x86xf32>
    %9 = vector.broadcast %4 : vector<16x1xf32> to vector<16x86xf32>
    %10 = arith.mulf %9, %8 : vector<16x86xf32>
    %11 = arith.addf %2, %10 : vector<16x86xf32>
    %12 = vector.extract_strided_slice %11 {offsets = [0, 0], sizes = [16, 32], strides = [1, 1]} : vector<16x86xf32> to vector<16x32xf32>
    %c0_6 = arith.constant 0 : index
    %c0_7 = arith.constant 0 : index
    %13 = vector.load %arg8[%c0_6, %c0_7] : memref<112x32xf32, #tpu.memory_space<vmem>>, vector<16x32xf32>
    tpu.vector_store %arg8[%c0_6, %c0_7], %12 {strides = array<i32>} : memref<112x32xf32, #tpu.memory_space<vmem>>, vector<16x32xf32>,
    %14 = vector.extract_strided_slice %11 {offsets = [0, 9], sizes = [16, 32], strides = [1, 1]} : vector<16x86xf32> to vector<16x32xf32>
    %c16 = arith.constant 16 : index
    %c0_8 = arith.constant 0 : index
    %15 = vector.load %arg8[%c16, %c0_8] : memref<112x32xf32, #tpu.memory_space<vmem>>, vector<16x32xf32>
    tpu.vector_store %arg8[%c16, %c0_8], %14 {strides = array<i32>} : memref<112x32xf32, #tpu.memory_space<vmem>>, vector<16x32xf32>,
    %16 = vector.extract_strided_slice %11 {offsets = [0, 18], sizes = [16, 32], strides = [1, 1]} : vector<16x86xf32> to vector<16x32xf32>
    %c32 = arith.constant 32 : index
    %c0_9 = arith.constant 0 : index
    %17 = vector.load %arg8[%c32, %c0_9] : memref<112x32xf32, #tpu.memory_space<vmem>>, vector<16x32xf32>
    tpu.vector_store %arg8[%c32, %c0_9], %16 {strides = array<i32>} : memref<112x32xf32, #tpu.memory_space<vmem>>, vector<16x32xf32>,
    %18 = vector.extract_strided_slice %11 {offsets = [0, 27], sizes = [16, 32], strides = [1, 1]} : vector<16x86xf32> to vector<16x32xf32>
    %c48 = arith.constant 48 : index
    %c0_10 = arith.constant 0 : index
    %19 = vector.load %arg8[%c48, %c0_10] : memref<112x32xf32, #tpu.memory_space<vmem>>, vector<16x32xf32>
    tpu.vector_store %arg8[%c48, %c0_10], %18 {strides = array<i32>} : memref<112x32xf32, #tpu.memory_space<vmem>>, vector<16x32xf32>,
    %20 = vector.extract_strided_slice %11 {offsets = [0, 36], sizes = [16, 32], strides = [1, 1]} : vector<16x86xf32> to vector<16x32xf32>
    %c64 = arith.constant 64 : index
    %c0_11 = arith.constant 0 : index
    %21 = vector.load %arg8[%c64, %c0_11] : memref<112x32xf32, #tpu.memory_space<vmem>>, vector<16x32xf32>
    tpu.vector_store %arg8[%c64, %c0_11], %20 {strides = array<i32>} : memref<112x32xf32, #tpu.memory_space<vmem>>, vector<16x32xf32>,
    %22 = vector.extract_strided_slice %11 {offsets = [0, 45], sizes = [16, 32], strides = [1, 1]} : vector<16x86xf32> to vector<16x32xf32>
    %c80 = arith.constant 80 : index
    %c0_12 = arith.constant 0 : index
    %23 = vector.load %arg8[%c80, %c0_12] : memref<112x32xf32, #tpu.memory_space<vmem>>, vector<16x32xf32>
    tpu.vector_store %arg8[%c80, %c0_12], %22 {strides = array<i32>} : memref<112x32xf32, #tpu.memory_space<vmem>>, vector<16x32xf32>,
    %24 = vector.extract_strided_slice %11 {offsets = [0, 54], sizes = [16, 32], strides = [1, 1]} : vector<16x86xf32> to vector<16x32xf32>
    %c96 = arith.constant 96 : index
    %c0_13 = arith.constant 0 : index
    %25 = vector.load %arg8[%c96, %c0_13] : memref<112x32xf32, #tpu.memory_space<vmem>>, vector<16x32xf32>
    tpu.vector_store %arg8[%c96, %c0_13], %24 {strides = array<i32>} : memref<112x32xf32, #tpu.memory_space<vmem>>, vector<16x32xf32>,
    %c0_14 = arith.constant 0 : index
    %c0_15 = arith.constant 0 : index
    %26 = vector.load %arg8[%c0_14, %c0_15] : memref<112x32xf32, #tpu.memory_space<vmem>>, vector<112x32xf32>
    %27 = arith.truncf %26 : vector<112x32xf32> to vector<112x32xbf16>
    %c0_16 = arith.constant 0 : index
    %c0_17 = arith.constant 0 : index
    %28 = vector.load %arg3[%c0_16, %c0_17] : memref<16x112xbf16, #tpu.memory_space<vmem>>, vector<16x112xbf16>
    %cst = arith.constant dense<0.000000e+00> : vector<16x32xf32>
    %29 = tpu.matmul %28, %27, %cst {dimension_numbers = #tpu.dot_dimension_numbers<[1], [0], [0], [1], [0, 0, 1, 1], [], []>} : vector<16x112xbf16>, vector<112x32xbf16>, vector<16x32xf32> -> vector<16x32xf32>
    %c0_18 = arith.constant 0 : index
    %c0_19 = arith.constant 0 : index
    %30 = vector.load %arg4[%c0_18, %c0_19] : memref<16x1xf32, #tpu.memory_space<vmem>>, vector<16x1xf32>
    %31 = vector.broadcast %30 : vector<16x1xf32> to vector<16x32xf32>
    %32 = arith.addf %29, %31 : vector<16x32xf32>
    %33 = arith.truncf %32 : vector<16x32xf32> to vector<16x32xbf16>
    %c0_20 = arith.constant 0 : index
    %c0_21 = arith.constant 0 : index
    %c0_22 = arith.constant 0 : index
    %34 = vector.load %arg7[%c0_20, %c0_21, %c0_22] : memref<1x16x32xbf16, #tpu.memory_space<vmem>>, vector<1x16x32xbf16>
    %35 = vector.shape_cast %34 : vector<1x16x32xbf16> to vector<16x32xbf16>
    %36 = vector.shape_cast %33 : vector<16x32xbf16> to vector<1x16x32xbf16>
    tpu.vector_store %arg7[%c0_20, %c0_21, %c0_22], %36 {strides = array<i32>} : memref<1x16x32xbf16, #tpu.memory_space<vmem>>, vector<1x16x32xbf16>,
    return
  }
  func.func @transform_0(%arg0: i32, %arg1: i32) -> (i32, i32, i32) {
    %c0_i32 = arith.constant 0 : i32
    %c0_i32_0 = arith.constant 0 : i32
    %c0_i32_1 = arith.constant 0 : i32
    return %arg0, %c0_i32, %c0_i32_0 : i32, i32, i32
  }
  func.func @transform_1(%arg0: i32, %arg1: i32) -> (i32, i32) {
    %c0_i32 = arith.constant 0 : i32
    %c0_i32_0 = arith.constant 0 : i32
    %c0_i32_1 = arith.constant 0 : i32
    return %c0_i32, %c0_i32_0 : i32, i32
  }
  func.func @transform_2(%arg0: i32, %arg1: i32) -> (i32, i32) {
    %c0_i32 = arith.constant 0 : i32
    %c0_i32_0 = arith.constant 0 : i32
    %c0_i32_1 = arith.constant 0 : i32
    return %c0_i32, %c0_i32_0 : i32, i32
  }
  func.func @transform_3(%arg0: i32, %arg1: i32) -> (i32, i32) {
    %c0_i32 = arith.constant 0 : i32
    %c0_i32_0 = arith.constant 0 : i32
    %c0_i32_1 = arith.constant 0 : i32
    return %c0_i32, %c0_i32_0 : i32, i32
  }
  func.func @transform_4(%arg0: i32, %arg1: i32) -> (i32, i32) {
    %c0_i32 = arith.constant 0 : i32
    %c0_i32_0 = arith.constant 0 : i32
    %c0_i32_1 = arith.constant 0 : i32
    return %c0_i32, %c0_i32_0 : i32, i32
  }
  func.func @transform_5(%arg0: i32, %arg1: i32) -> (i32, i32, i32) {
    %c0_i32 = arith.constant 0 : i32
    %c0_i32_0 = arith.constant 0 : i32
    return %arg0, %c0_i32, %arg1 : i32, i32, i32
  }
}

module attributes {stable_mosaic.version = 11 : i64} {
  func.func @_conv1d_kernel(%arg0: i32, %arg1: i32, %arg2: memref<1x16x34xbf16, #tpu.memory_space<vmem>>, %arg3: memref<16x32xbf16, #tpu.memory_space<vmem>>, %arg4: memref<16x1xf32, #tpu.memory_space<vmem>>, %arg5: memref<16x1xf32, #tpu.memory_space<vmem>>, %arg6: memref<16x1xf32, #tpu.memory_space<vmem>>, %arg7: memref<1x16x33xbf16, #tpu.memory_space<vmem>>, %arg8: memref<32x33xf32, #tpu.memory_space<vmem>>) attributes {dimension_semantics = [#tpu.dimension_semantics<parallel>, #tpu.dimension_semantics<parallel>], iteration_bounds = array<i64: 2, 1>, scalar_prefetch = 0 : i64, scratch_operands = 1 : i64, tpu.core_type = #tpu.core_type<tc>, window_params = [{transform_indices = @transform_0, window_bounds = array<i64: 1, 16, 34>}, {pipeline_mode = #tpu.pipeline_mode<synchronous>, transform_indices = @transform_1, window_bounds = array<i64: 16, 32>}, {pipeline_mode = #tpu.pipeline_mode<synchronous>, transform_indices = @transform_2, window_bounds = array<i64: 16, 1>}, {pipeline_mode = #tpu.pipeline_mode<synchronous>, transform_indices = @transform_3, window_bounds = array<i64: 16, 1>}, {pipeline_mode = #tpu.pipeline_mode<synchronous>, transform_indices = @transform_4, window_bounds = array<i64: 16, 1>}, {transform_indices = @transform_5, window_bounds = array<i64: 1, 16, 33>}]} {
    %c0 = arith.constant 0 : index
    %c0_0 = arith.constant 0 : index
    %c0_1 = arith.constant 0 : index
    %0 = vector.load %arg2[%c0, %c0_0, %c0_1] : memref<1x16x34xbf16, #tpu.memory_space<vmem>>, vector<1x16x34xbf16>
    %1 = vector.shape_cast %0 : vector<1x16x34xbf16> to vector<16x34xbf16>
    %2 = arith.extf %1 : vector<16x34xbf16> to vector<16x34xf32>
    %c0_2 = arith.constant 0 : index
    %c0_3 = arith.constant 0 : index
    %3 = vector.load %arg5[%c0_2, %c0_3] : memref<16x1xf32, #tpu.memory_space<vmem>>, vector<16x1xf32>
    %c0_4 = arith.constant 0 : index
    %c0_5 = arith.constant 0 : index
    %4 = vector.load %arg6[%c0_4, %c0_5] : memref<16x1xf32, #tpu.memory_space<vmem>>, vector<16x1xf32>
    %5 = vector.broadcast %3 : vector<16x1xf32> to vector<16x34xf32>
    %6 = arith.mulf %5, %2 : vector<16x34xf32>
    %7 = math.sin %6 : vector<16x34xf32>
    %8 = arith.mulf %7, %7 : vector<16x34xf32>
    %9 = vector.broadcast %4 : vector<16x1xf32> to vector<16x34xf32>
    %10 = arith.mulf %9, %8 : vector<16x34xf32>
    %11 = arith.addf %2, %10 : vector<16x34xf32>
    %12 = vector.extract_strided_slice %11 {offsets = [0, 0], sizes = [16, 33], strides = [1, 1]} : vector<16x34xf32> to vector<16x33xf32>
    %c0_6 = arith.constant 0 : index
    %c0_7 = arith.constant 0 : index
    %13 = vector.load %arg8[%c0_6, %c0_7] : memref<32x33xf32, #tpu.memory_space<vmem>>, vector<16x33xf32>
    tpu.vector_store %arg8[%c0_6, %c0_7], %12 {strides = array<i32>} : memref<32x33xf32, #tpu.memory_space<vmem>>, vector<16x33xf32>,
    %14 = vector.extract_strided_slice %11 {offsets = [0, 1], sizes = [16, 33], strides = [1, 1]} : vector<16x34xf32> to vector<16x33xf32>
    %c16 = arith.constant 16 : index
    %c0_8 = arith.constant 0 : index
    %15 = vector.load %arg8[%c16, %c0_8] : memref<32x33xf32, #tpu.memory_space<vmem>>, vector<16x33xf32>
    tpu.vector_store %arg8[%c16, %c0_8], %14 {strides = array<i32>} : memref<32x33xf32, #tpu.memory_space<vmem>>, vector<16x33xf32>,
    %c0_9 = arith.constant 0 : index
    %c0_10 = arith.constant 0 : index
    %16 = vector.load %arg8[%c0_9, %c0_10] : memref<32x33xf32, #tpu.memory_space<vmem>>, vector<32x33xf32>
    %17 = arith.truncf %16 : vector<32x33xf32> to vector<32x33xbf16>
    %c0_11 = arith.constant 0 : index
    %c0_12 = arith.constant 0 : index
    %18 = vector.load %arg3[%c0_11, %c0_12] : memref<16x32xbf16, #tpu.memory_space<vmem>>, vector<16x32xbf16>
    %cst = arith.constant dense<0.000000e+00> : vector<16x33xf32>
    %19 = tpu.matmul %18, %17, %cst {dimension_numbers = #tpu.dot_dimension_numbers<[1], [0], [0], [1], [0, 0, 1, 1], [], []>} : vector<16x32xbf16>, vector<32x33xbf16>, vector<16x33xf32> -> vector<16x33xf32>
    %c0_13 = arith.constant 0 : index
    %c0_14 = arith.constant 0 : index
    %20 = vector.load %arg4[%c0_13, %c0_14] : memref<16x1xf32, #tpu.memory_space<vmem>>, vector<16x1xf32>
    %21 = vector.broadcast %20 : vector<16x1xf32> to vector<16x33xf32>
    %22 = arith.addf %19, %21 : vector<16x33xf32>
    %23 = arith.truncf %22 : vector<16x33xf32> to vector<16x33xbf16>
    %c0_15 = arith.constant 0 : index
    %c0_16 = arith.constant 0 : index
    %c0_17 = arith.constant 0 : index
    %24 = vector.load %arg7[%c0_15, %c0_16, %c0_17] : memref<1x16x33xbf16, #tpu.memory_space<vmem>>, vector<1x16x33xbf16>
    %25 = vector.shape_cast %24 : vector<1x16x33xbf16> to vector<16x33xbf16>
    %26 = vector.shape_cast %23 : vector<16x33xbf16> to vector<1x16x33xbf16>
    tpu.vector_store %arg7[%c0_15, %c0_16, %c0_17], %26 {strides = array<i32>} : memref<1x16x33xbf16, #tpu.memory_space<vmem>>, vector<1x16x33xbf16>,
    return
  }
  func.func @transform_0(%arg0: i32, %arg1: i32) -> (i32, i32, i32) {
    %c0_i32 = arith.constant 0 : i32
    %c0_i32_0 = arith.constant 0 : i32
    %c0_i32_1 = arith.constant 0 : i32
    return %arg0, %c0_i32, %c0_i32_0 : i32, i32, i32
  }
  func.func @transform_1(%arg0: i32, %arg1: i32) -> (i32, i32) {
    %c0_i32 = arith.constant 0 : i32
    %c0_i32_0 = arith.constant 0 : i32
    %c0_i32_1 = arith.constant 0 : i32
    return %c0_i32, %c0_i32_0 : i32, i32
  }
  func.func @transform_2(%arg0: i32, %arg1: i32) -> (i32, i32) {
    %c0_i32 = arith.constant 0 : i32
    %c0_i32_0 = arith.constant 0 : i32
    %c0_i32_1 = arith.constant 0 : i32
    return %c0_i32, %c0_i32_0 : i32, i32
  }
  func.func @transform_3(%arg0: i32, %arg1: i32) -> (i32, i32) {
    %c0_i32 = arith.constant 0 : i32
    %c0_i32_0 = arith.constant 0 : i32
    %c0_i32_1 = arith.constant 0 : i32
    return %c0_i32, %c0_i32_0 : i32, i32
  }
  func.func @transform_4(%arg0: i32, %arg1: i32) -> (i32, i32) {
    %c0_i32 = arith.constant 0 : i32
    %c0_i32_0 = arith.constant 0 : i32
    %c0_i32_1 = arith.constant 0 : i32
    return %c0_i32, %c0_i32_0 : i32, i32
  }
  func.func @transform_5(%arg0: i32, %arg1: i32) -> (i32, i32, i32) {
    %c0_i32 = arith.constant 0 : i32
    %c0_i32_0 = arith.constant 0 : i32
    return %arg0, %c0_i32, %arg1 : i32, i32, i32
  }
}

module attributes {stable_mosaic.version = 11 : i64} {
  func.func @_conv1d_kernel(%arg0: i32, %arg1: i32, %arg2: memref<1x8x70xbf16, #tpu.memory_space<vmem>>, %arg3: memref<8x56xbf16, #tpu.memory_space<vmem>>, %arg4: memref<8x1xf32, #tpu.memory_space<vmem>>, %arg5: memref<8x1xf32, #tpu.memory_space<vmem>>, %arg6: memref<8x1xf32, #tpu.memory_space<vmem>>, %arg7: memref<1x8x64xbf16, #tpu.memory_space<vmem>>, %arg8: memref<56x64xf32, #tpu.memory_space<vmem>>) attributes {dimension_semantics = [#tpu.dimension_semantics<parallel>, #tpu.dimension_semantics<parallel>], iteration_bounds = array<i64: 2, 1>, scalar_prefetch = 0 : i64, scratch_operands = 1 : i64, tpu.core_type = #tpu.core_type<tc>, window_params = [{transform_indices = @transform_0, window_bounds = array<i64: 1, 8, 70>}, {pipeline_mode = #tpu.pipeline_mode<synchronous>, transform_indices = @transform_1, window_bounds = array<i64: 8, 56>}, {pipeline_mode = #tpu.pipeline_mode<synchronous>, transform_indices = @transform_2, window_bounds = array<i64: 8, 1>}, {pipeline_mode = #tpu.pipeline_mode<synchronous>, transform_indices = @transform_3, window_bounds = array<i64: 8, 1>}, {pipeline_mode = #tpu.pipeline_mode<synchronous>, transform_indices = @transform_4, window_bounds = array<i64: 8, 1>}, {transform_indices = @transform_5, window_bounds = array<i64: 1, 8, 64>}]} {
    %c0 = arith.constant 0 : index
    %c0_0 = arith.constant 0 : index
    %c0_1 = arith.constant 0 : index
    %0 = vector.load %arg2[%c0, %c0_0, %c0_1] : memref<1x8x70xbf16, #tpu.memory_space<vmem>>, vector<1x8x70xbf16>
    %1 = vector.shape_cast %0 : vector<1x8x70xbf16> to vector<8x70xbf16>
    %2 = arith.extf %1 : vector<8x70xbf16> to vector<8x70xf32>
    %c0_2 = arith.constant 0 : index
    %c0_3 = arith.constant 0 : index
    %3 = vector.load %arg5[%c0_2, %c0_3] : memref<8x1xf32, #tpu.memory_space<vmem>>, vector<8x1xf32>
    %c0_4 = arith.constant 0 : index
    %c0_5 = arith.constant 0 : index
    %4 = vector.load %arg6[%c0_4, %c0_5] : memref<8x1xf32, #tpu.memory_space<vmem>>, vector<8x1xf32>
    %5 = vector.broadcast %3 : vector<8x1xf32> to vector<8x70xf32>
    %6 = arith.mulf %5, %2 : vector<8x70xf32>
    %7 = math.sin %6 : vector<8x70xf32>
    %8 = arith.mulf %7, %7 : vector<8x70xf32>
    %9 = vector.broadcast %4 : vector<8x1xf32> to vector<8x70xf32>
    %10 = arith.mulf %9, %8 : vector<8x70xf32>
    %11 = arith.addf %2, %10 : vector<8x70xf32>
    %12 = vector.extract_strided_slice %11 {offsets = [0, 0], sizes = [8, 64], strides = [1, 1]} : vector<8x70xf32> to vector<8x64xf32>
    %c0_6 = arith.constant 0 : index
    %c0_7 = arith.constant 0 : index
    %13 = vector.load %arg8[%c0_6, %c0_7] : memref<56x64xf32, #tpu.memory_space<vmem>>, vector<8x64xf32>
    tpu.vector_store %arg8[%c0_6, %c0_7], %12 {strides = array<i32>} : memref<56x64xf32, #tpu.memory_space<vmem>>, vector<8x64xf32>,
    %14 = vector.extract_strided_slice %11 {offsets = [0, 1], sizes = [8, 64], strides = [1, 1]} : vector<8x70xf32> to vector<8x64xf32>
    %c8 = arith.constant 8 : index
    %c0_8 = arith.constant 0 : index
    %15 = vector.load %arg8[%c8, %c0_8] : memref<56x64xf32, #tpu.memory_space<vmem>>, vector<8x64xf32>
    tpu.vector_store %arg8[%c8, %c0_8], %14 {strides = array<i32>} : memref<56x64xf32, #tpu.memory_space<vmem>>, vector<8x64xf32>,
    %16 = vector.extract_strided_slice %11 {offsets = [0, 2], sizes = [8, 64], strides = [1, 1]} : vector<8x70xf32> to vector<8x64xf32>
    %c16 = arith.constant 16 : index
    %c0_9 = arith.constant 0 : index
    %17 = vector.load %arg8[%c16, %c0_9] : memref<56x64xf32, #tpu.memory_space<vmem>>, vector<8x64xf32>
    tpu.vector_store %arg8[%c16, %c0_9], %16 {strides = array<i32>} : memref<56x64xf32, #tpu.memory_space<vmem>>, vector<8x64xf32>,
    %18 = vector.extract_strided_slice %11 {offsets = [0, 3], sizes = [8, 64], strides = [1, 1]} : vector<8x70xf32> to vector<8x64xf32>
    %c24 = arith.constant 24 : index
    %c0_10 = arith.constant 0 : index
    %19 = vector.load %arg8[%c24, %c0_10] : memref<56x64xf32, #tpu.memory_space<vmem>>, vector<8x64xf32>
    tpu.vector_store %arg8[%c24, %c0_10], %18 {strides = array<i32>} : memref<56x64xf32, #tpu.memory_space<vmem>>, vector<8x64xf32>,
    %20 = vector.extract_strided_slice %11 {offsets = [0, 4], sizes = [8, 64], strides = [1, 1]} : vector<8x70xf32> to vector<8x64xf32>
    %c32 = arith.constant 32 : index
    %c0_11 = arith.constant 0 : index
    %21 = vector.load %arg8[%c32, %c0_11] : memref<56x64xf32, #tpu.memory_space<vmem>>, vector<8x64xf32>
    tpu.vector_store %arg8[%c32, %c0_11], %20 {strides = array<i32>} : memref<56x64xf32, #tpu.memory_space<vmem>>, vector<8x64xf32>,
    %22 = vector.extract_strided_slice %11 {offsets = [0, 5], sizes = [8, 64], strides = [1, 1]} : vector<8x70xf32> to vector<8x64xf32>
    %c40 = arith.constant 40 : index
    %c0_12 = arith.constant 0 : index
    %23 = vector.load %arg8[%c40, %c0_12] : memref<56x64xf32, #tpu.memory_space<vmem>>, vector<8x64xf32>
    tpu.vector_store %arg8[%c40, %c0_12], %22 {strides = array<i32>} : memref<56x64xf32, #tpu.memory_space<vmem>>, vector<8x64xf32>,
    %24 = vector.extract_strided_slice %11 {offsets = [0, 6], sizes = [8, 64], strides = [1, 1]} : vector<8x70xf32> to vector<8x64xf32>
    %c48 = arith.constant 48 : index
    %c0_13 = arith.constant 0 : index
    %25 = vector.load %arg8[%c48, %c0_13] : memref<56x64xf32, #tpu.memory_space<vmem>>, vector<8x64xf32>
    tpu.vector_store %arg8[%c48, %c0_13], %24 {strides = array<i32>} : memref<56x64xf32, #tpu.memory_space<vmem>>, vector<8x64xf32>,
    %c0_14 = arith.constant 0 : index
    %c0_15 = arith.constant 0 : index
    %26 = vector.load %arg8[%c0_14, %c0_15] : memref<56x64xf32, #tpu.memory_space<vmem>>, vector<56x64xf32>
    %27 = arith.truncf %26 : vector<56x64xf32> to vector<56x64xbf16>
    %c0_16 = arith.constant 0 : index
    %c0_17 = arith.constant 0 : index
    %28 = vector.load %arg3[%c0_16, %c0_17] : memref<8x56xbf16, #tpu.memory_space<vmem>>, vector<8x56xbf16>
    %cst = arith.constant dense<0.000000e+00> : vector<8x64xf32>
    %29 = tpu.matmul %28, %27, %cst {dimension_numbers = #tpu.dot_dimension_numbers<[1], [0], [0], [1], [0, 0, 1, 1], [], []>} : vector<8x56xbf16>, vector<56x64xbf16>, vector<8x64xf32> -> vector<8x64xf32>
    %c0_18 = arith.constant 0 : index
    %c0_19 = arith.constant 0 : index
    %30 = vector.load %arg4[%c0_18, %c0_19] : memref<8x1xf32, #tpu.memory_space<vmem>>, vector<8x1xf32>
    %31 = vector.broadcast %30 : vector<8x1xf32> to vector<8x64xf32>
    %32 = arith.addf %29, %31 : vector<8x64xf32>
    %33 = arith.truncf %32 : vector<8x64xf32> to vector<8x64xbf16>
    %c0_20 = arith.constant 0 : index
    %c0_21 = arith.constant 0 : index
    %c0_22 = arith.constant 0 : index
    %34 = vector.load %arg7[%c0_20, %c0_21, %c0_22] : memref<1x8x64xbf16, #tpu.memory_space<vmem>>, vector<1x8x64xbf16>
    %35 = vector.shape_cast %34 : vector<1x8x64xbf16> to vector<8x64xbf16>
    %36 = vector.shape_cast %33 : vector<8x64xbf16> to vector<1x8x64xbf16>
    tpu.vector_store %arg7[%c0_20, %c0_21, %c0_22], %36 {strides = array<i32>} : memref<1x8x64xbf16, #tpu.memory_space<vmem>>, vector<1x8x64xbf16>,
    return
  }
  func.func @transform_0(%arg0: i32, %arg1: i32) -> (i32, i32, i32) {
    %c0_i32 = arith.constant 0 : i32
    %c0_i32_0 = arith.constant 0 : i32
    %c0_i32_1 = arith.constant 0 : i32
    return %arg0, %c0_i32, %c0_i32_0 : i32, i32, i32
  }
  func.func @transform_1(%arg0: i32, %arg1: i32) -> (i32, i32) {
    %c0_i32 = arith.constant 0 : i32
    %c0_i32_0 = arith.constant 0 : i32
    %c0_i32_1 = arith.constant 0 : i32
    return %c0_i32, %c0_i32_0 : i32, i32
  }
  func.func @transform_2(%arg0: i32, %arg1: i32) -> (i32, i32) {
    %c0_i32 = arith.constant 0 : i32
    %c0_i32_0 = arith.constant 0 : i32
    %c0_i32_1 = arith.constant 0 : i32
    return %c0_i32, %c0_i32_0 : i32, i32
  }
  func.func @transform_3(%arg0: i32, %arg1: i32) -> (i32, i32) {
    %c0_i32 = arith.constant 0 : i32
    %c0_i32_0 = arith.constant 0 : i32
    %c0_i32_1 = arith.constant 0 : i32
    return %c0_i32, %c0_i32_0 : i32, i32
  }
  func.func @transform_4(%arg0: i32, %arg1: i32) -> (i32, i32) {
    %c0_i32 = arith.constant 0 : i32
    %c0_i32_0 = arith.constant 0 : i32
    %c0_i32_1 = arith.constant 0 : i32
    return %c0_i32, %c0_i32_0 : i32, i32
  }
  func.func @transform_5(%arg0: i32, %arg1: i32) -> (i32, i32, i32) {
    %c0_i32 = arith.constant 0 : i32
    %c0_i32_0 = arith.constant 0 : i32
    return %arg0, %c0_i32, %arg1 : i32, i32, i32
  }
}

module attributes {stable_mosaic.version = 11 : i64} {
  func.func @_conv1d_kernel(%arg0: i32, %arg1: i32, %arg2: memref<1x8x64xbf16, #tpu.memory_space<vmem>>, %arg3: memref<8x8xbf16, #tpu.memory_space<vmem>>, %arg4: memref<8x1xf32, #tpu.memory_space<vmem>>, %arg5: memref<8x1xf32, #tpu.memory_space<vmem>>, %arg6: memref<8x1xf32, #tpu.memory_space<vmem>>, %arg7: memref<1x8x64xbf16, #tpu.memory_space<vmem>>, %arg8: memref<1x8x64xbf16, #tpu.memory_space<vmem>>) attributes {dimension_semantics = [#tpu.dimension_semantics<parallel>, #tpu.dimension_semantics<parallel>], iteration_bounds = array<i64: 2, 1>, scalar_prefetch = 0 : i64, scratch_operands = 0 : i64, tpu.core_type = #tpu.core_type<tc>, window_params = [{transform_indices = @transform_0, window_bounds = array<i64: 1, 8, 64>}, {pipeline_mode = #tpu.pipeline_mode<synchronous>, transform_indices = @transform_1, window_bounds = array<i64: 8, 8>}, {pipeline_mode = #tpu.pipeline_mode<synchronous>, transform_indices = @transform_2, window_bounds = array<i64: 8, 1>}, {pipeline_mode = #tpu.pipeline_mode<synchronous>, transform_indices = @transform_3, window_bounds = array<i64: 8, 1>}, {pipeline_mode = #tpu.pipeline_mode<synchronous>, transform_indices = @transform_4, window_bounds = array<i64: 8, 1>}, {transform_indices = @transform_5, window_bounds = array<i64: 1, 8, 64>}, {transform_indices = @transform_6, window_bounds = array<i64: 1, 8, 64>}]} {
    %c0 = arith.constant 0 : index
    %c0_0 = arith.constant 0 : index
    %c0_1 = arith.constant 0 : index
    %0 = vector.load %arg2[%c0, %c0_0, %c0_1] : memref<1x8x64xbf16, #tpu.memory_space<vmem>>, vector<1x8x64xbf16>
    %1 = vector.shape_cast %0 : vector<1x8x64xbf16> to vector<8x64xbf16>
    %2 = arith.extf %1 : vector<8x64xbf16> to vector<8x64xf32>
    %c0_2 = arith.constant 0 : index
    %c0_3 = arith.constant 0 : index
    %3 = vector.load %arg5[%c0_2, %c0_3] : memref<8x1xf32, #tpu.memory_space<vmem>>, vector<8x1xf32>
    %c0_4 = arith.constant 0 : index
    %c0_5 = arith.constant 0 : index
    %4 = vector.load %arg6[%c0_4, %c0_5] : memref<8x1xf32, #tpu.memory_space<vmem>>, vector<8x1xf32>
    %5 = vector.broadcast %3 : vector<8x1xf32> to vector<8x64xf32>
    %6 = arith.mulf %5, %2 : vector<8x64xf32>
    %7 = math.sin %6 : vector<8x64xf32>
    %8 = arith.mulf %7, %7 : vector<8x64xf32>
    %9 = vector.broadcast %4 : vector<8x1xf32> to vector<8x64xf32>
    %10 = arith.mulf %9, %8 : vector<8x64xf32>
    %11 = arith.addf %2, %10 : vector<8x64xf32>
    %12 = arith.truncf %11 : vector<8x64xf32> to vector<8x64xbf16>
    %c0_6 = arith.constant 0 : index
    %c0_7 = arith.constant 0 : index
    %13 = vector.load %arg3[%c0_6, %c0_7] : memref<8x8xbf16, #tpu.memory_space<vmem>>, vector<8x8xbf16>
    %cst = arith.constant dense<0.000000e+00> : vector<8x64xf32>
    %14 = tpu.matmul %13, %12, %cst {dimension_numbers = #tpu.dot_dimension_numbers<[1], [0], [0], [1], [0, 0, 1, 1], [], []>} : vector<8x8xbf16>, vector<8x64xbf16>, vector<8x64xf32> -> vector<8x64xf32>
    %c0_8 = arith.constant 0 : index
    %c0_9 = arith.constant 0 : index
    %15 = vector.load %arg4[%c0_8, %c0_9] : memref<8x1xf32, #tpu.memory_space<vmem>>, vector<8x1xf32>
    %16 = vector.broadcast %15 : vector<8x1xf32> to vector<8x64xf32>
    %17 = arith.addf %14, %16 : vector<8x64xf32>
    %c0_10 = arith.constant 0 : index
    %c0_11 = arith.constant 0 : index
    %c0_12 = arith.constant 0 : index
    %18 = vector.load %arg7[%c0_10, %c0_11, %c0_12] : memref<1x8x64xbf16, #tpu.memory_space<vmem>>, vector<1x8x64xbf16>
    %19 = vector.shape_cast %18 : vector<1x8x64xbf16> to vector<8x64xbf16>
    %20 = arith.extf %19 : vector<8x64xbf16> to vector<8x64xf32>
    %21 = arith.addf %17, %20 : vector<8x64xf32>
    %22 = arith.truncf %21 : vector<8x64xf32> to vector<8x64xbf16>
    %c0_13 = arith.constant 0 : index
    %c0_14 = arith.constant 0 : index
    %c0_15 = arith.constant 0 : index
    %23 = vector.load %arg8[%c0_13, %c0_14, %c0_15] : memref<1x8x64xbf16, #tpu.memory_space<vmem>>, vector<1x8x64xbf16>
    %24 = vector.shape_cast %23 : vector<1x8x64xbf16> to vector<8x64xbf16>
    %25 = vector.shape_cast %22 : vector<8x64xbf16> to vector<1x8x64xbf16>
    tpu.vector_store %arg8[%c0_13, %c0_14, %c0_15], %25 {strides = array<i32>} : memref<1x8x64xbf16, #tpu.memory_space<vmem>>, vector<1x8x64xbf16>,
    return
  }
  func.func @transform_0(%arg0: i32, %arg1: i32) -> (i32, i32, i32) {
    %c0_i32 = arith.constant 0 : i32
    %c0_i32_0 = arith.constant 0 : i32
    %c0_i32_1 = arith.constant 0 : i32
    return %arg0, %c0_i32, %c0_i32_0 : i32, i32, i32
  }
  func.func @transform_1(%arg0: i32, %arg1: i32) -> (i32, i32) {
    %c0_i32 = arith.constant 0 : i32
    %c0_i32_0 = arith.constant 0 : i32
    %c0_i32_1 = arith.constant 0 : i32
    return %c0_i32, %c0_i32_0 : i32, i32
  }
  func.func @transform_2(%arg0: i32, %arg1: i32) -> (i32, i32) {
    %c0_i32 = arith.constant 0 : i32
    %c0_i32_0 = arith.constant 0 : i32
    %c0_i32_1 = arith.constant 0 : i32
    return %c0_i32, %c0_i32_0 : i32, i32
  }
  func.func @transform_3(%arg0: i32, %arg1: i32) -> (i32, i32) {
    %c0_i32 = arith.constant 0 : i32
    %c0_i32_0 = arith.constant 0 : i32
    %c0_i32_1 = arith.constant 0 : i32
    return %c0_i32, %c0_i32_0 : i32, i32
  }
  func.func @transform_4(%arg0: i32, %arg1: i32) -> (i32, i32) {
    %c0_i32 = arith.constant 0 : i32
    %c0_i32_0 = arith.constant 0 : i32
    %c0_i32_1 = arith.constant 0 : i32
    return %c0_i32, %c0_i32_0 : i32, i32
  }
  func.func @transform_5(%arg0: i32, %arg1: i32) -> (i32, i32, i32) {
    %c0_i32 = arith.constant 0 : i32
    %c0_i32_0 = arith.constant 0 : i32
    return %arg0, %c0_i32, %arg1 : i32, i32, i32
  }
  func.func @transform_6(%arg0: i32, %arg1: i32) -> (i32, i32, i32) {
    %c0_i32 = arith.constant 0 : i32
    %c0_i32_0 = arith.constant 0 : i32
    return %arg0, %c0_i32, %arg1 : i32, i32, i32
  }
}

module attributes {stable_mosaic.version = 11 : i64} {
  func.func @_conv1d_kernel(%arg0: i32, %arg1: i32, %arg2: memref<1x8x82xbf16, #tpu.memory_space<vmem>>, %arg3: memref<8x56xbf16, #tpu.memory_space<vmem>>, %arg4: memref<8x1xf32, #tpu.memory_space<vmem>>, %arg5: memref<8x1xf32, #tpu.memory_space<vmem>>, %arg6: memref<8x1xf32, #tpu.memory_space<vmem>>, %arg7: memref<1x8x64xbf16, #tpu.memory_space<vmem>>, %arg8: memref<56x64xf32, #tpu.memory_space<vmem>>) attributes {dimension_semantics = [#tpu.dimension_semantics<parallel>, #tpu.dimension_semantics<parallel>], iteration_bounds = array<i64: 2, 1>, scalar_prefetch = 0 : i64, scratch_operands = 1 : i64, tpu.core_type = #tpu.core_type<tc>, window_params = [{transform_indices = @transform_0, window_bounds = array<i64: 1, 8, 82>}, {pipeline_mode = #tpu.pipeline_mode<synchronous>, transform_indices = @transform_1, window_bounds = array<i64: 8, 56>}, {pipeline_mode = #tpu.pipeline_mode<synchronous>, transform_indices = @transform_2, window_bounds = array<i64: 8, 1>}, {pipeline_mode = #tpu.pipeline_mode<synchronous>, transform_indices = @transform_3, window_bounds = array<i64: 8, 1>}, {pipeline_mode = #tpu.pipeline_mode<synchronous>, transform_indices = @transform_4, window_bounds = array<i64: 8, 1>}, {transform_indices = @transform_5, window_bounds = array<i64: 1, 8, 64>}]} {
    %c0 = arith.constant 0 : index
    %c0_0 = arith.constant 0 : index
    %c0_1 = arith.constant 0 : index
    %0 = vector.load %arg2[%c0, %c0_0, %c0_1] : memref<1x8x82xbf16, #tpu.memory_space<vmem>>, vector<1x8x82xbf16>
    %1 = vector.shape_cast %0 : vector<1x8x82xbf16> to vector<8x82xbf16>
    %2 = arith.extf %1 : vector<8x82xbf16> to vector<8x82xf32>
    %c0_2 = arith.constant 0 : index
    %c0_3 = arith.constant 0 : index
    %3 = vector.load %arg5[%c0_2, %c0_3] : memref<8x1xf32, #tpu.memory_space<vmem>>, vector<8x1xf32>
    %c0_4 = arith.constant 0 : index
    %c0_5 = arith.constant 0 : index
    %4 = vector.load %arg6[%c0_4, %c0_5] : memref<8x1xf32, #tpu.memory_space<vmem>>, vector<8x1xf32>
    %5 = vector.broadcast %3 : vector<8x1xf32> to vector<8x82xf32>
    %6 = arith.mulf %5, %2 : vector<8x82xf32>
    %7 = math.sin %6 : vector<8x82xf32>
    %8 = arith.mulf %7, %7 : vector<8x82xf32>
    %9 = vector.broadcast %4 : vector<8x1xf32> to vector<8x82xf32>
    %10 = arith.mulf %9, %8 : vector<8x82xf32>
    %11 = arith.addf %2, %10 : vector<8x82xf32>
    %12 = vector.extract_strided_slice %11 {offsets = [0, 0], sizes = [8, 64], strides = [1, 1]} : vector<8x82xf32> to vector<8x64xf32>
    %c0_6 = arith.constant 0 : index
    %c0_7 = arith.constant 0 : index
    %13 = vector.load %arg8[%c0_6, %c0_7] : memref<56x64xf32, #tpu.memory_space<vmem>>, vector<8x64xf32>
    tpu.vector_store %arg8[%c0_6, %c0_7], %12 {strides = array<i32>} : memref<56x64xf32, #tpu.memory_space<vmem>>, vector<8x64xf32>,
    %14 = vector.extract_strided_slice %11 {offsets = [0, 3], sizes = [8, 64], strides = [1, 1]} : vector<8x82xf32> to vector<8x64xf32>
    %c8 = arith.constant 8 : index
    %c0_8 = arith.constant 0 : index
    %15 = vector.load %arg8[%c8, %c0_8] : memref<56x64xf32, #tpu.memory_space<vmem>>, vector<8x64xf32>
    tpu.vector_store %arg8[%c8, %c0_8], %14 {strides = array<i32>} : memref<56x64xf32, #tpu.memory_space<vmem>>, vector<8x64xf32>,
    %16 = vector.extract_strided_slice %11 {offsets = [0, 6], sizes = [8, 64], strides = [1, 1]} : vector<8x82xf32> to vector<8x64xf32>
    %c16 = arith.constant 16 : index
    %c0_9 = arith.constant 0 : index
    %17 = vector.load %arg8[%c16, %c0_9] : memref<56x64xf32, #tpu.memory_space<vmem>>, vector<8x64xf32>
    tpu.vector_store %arg8[%c16, %c0_9], %16 {strides = array<i32>} : memref<56x64xf32, #tpu.memory_space<vmem>>, vector<8x64xf32>,
    %18 = vector.extract_strided_slice %11 {offsets = [0, 9], sizes = [8, 64], strides = [1, 1]} : vector<8x82xf32> to vector<8x64xf32>
    %c24 = arith.constant 24 : index
    %c0_10 = arith.constant 0 : index
    %19 = vector.load %arg8[%c24, %c0_10] : memref<56x64xf32, #tpu.memory_space<vmem>>, vector<8x64xf32>
    tpu.vector_store %arg8[%c24, %c0_10], %18 {strides = array<i32>} : memref<56x64xf32, #tpu.memory_space<vmem>>, vector<8x64xf32>,
    %20 = vector.extract_strided_slice %11 {offsets = [0, 12], sizes = [8, 64], strides = [1, 1]} : vector<8x82xf32> to vector<8x64xf32>
    %c32 = arith.constant 32 : index
    %c0_11 = arith.constant 0 : index
    %21 = vector.load %arg8[%c32, %c0_11] : memref<56x64xf32, #tpu.memory_space<vmem>>, vector<8x64xf32>
    tpu.vector_store %arg8[%c32, %c0_11], %20 {strides = array<i32>} : memref<56x64xf32, #tpu.memory_space<vmem>>, vector<8x64xf32>,
    %22 = vector.extract_strided_slice %11 {offsets = [0, 15], sizes = [8, 64], strides = [1, 1]} : vector<8x82xf32> to vector<8x64xf32>
    %c40 = arith.constant 40 : index
    %c0_12 = arith.constant 0 : index
    %23 = vector.load %arg8[%c40, %c0_12] : memref<56x64xf32, #tpu.memory_space<vmem>>, vector<8x64xf32>
    tpu.vector_store %arg8[%c40, %c0_12], %22 {strides = array<i32>} : memref<56x64xf32, #tpu.memory_space<vmem>>, vector<8x64xf32>,
    %24 = vector.extract_strided_slice %11 {offsets = [0, 18], sizes = [8, 64], strides = [1, 1]} : vector<8x82xf32> to vector<8x64xf32>
    %c48 = arith.constant 48 : index
    %c0_13 = arith.constant 0 : index
    %25 = vector.load %arg8[%c48, %c0_13] : memref<56x64xf32, #tpu.memory_space<vmem>>, vector<8x64xf32>
    tpu.vector_store %arg8[%c48, %c0_13], %24 {strides = array<i32>} : memref<56x64xf32, #tpu.memory_space<vmem>>, vector<8x64xf32>,
    %c0_14 = arith.constant 0 : index
    %c0_15 = arith.constant 0 : index
    %26 = vector.load %arg8[%c0_14, %c0_15] : memref<56x64xf32, #tpu.memory_space<vmem>>, vector<56x64xf32>
    %27 = arith.truncf %26 : vector<56x64xf32> to vector<56x64xbf16>
    %c0_16 = arith.constant 0 : index
    %c0_17 = arith.constant 0 : index
    %28 = vector.load %arg3[%c0_16, %c0_17] : memref<8x56xbf16, #tpu.memory_space<vmem>>, vector<8x56xbf16>
    %cst = arith.constant dense<0.000000e+00> : vector<8x64xf32>
    %29 = tpu.matmul %28, %27, %cst {dimension_numbers = #tpu.dot_dimension_numbers<[1], [0], [0], [1], [0, 0, 1, 1], [], []>} : vector<8x56xbf16>, vector<56x64xbf16>, vector<8x64xf32> -> vector<8x64xf32>
    %c0_18 = arith.constant 0 : index
    %c0_19 = arith.constant 0 : index
    %30 = vector.load %arg4[%c0_18, %c0_19] : memref<8x1xf32, #tpu.memory_space<vmem>>, vector<8x1xf32>
    %31 = vector.broadcast %30 : vector<8x1xf32> to vector<8x64xf32>
    %32 = arith.addf %29, %31 : vector<8x64xf32>
    %33 = arith.truncf %32 : vector<8x64xf32> to vector<8x64xbf16>
    %c0_20 = arith.constant 0 : index
    %c0_21 = arith.constant 0 : index
    %c0_22 = arith.constant 0 : index
    %34 = vector.load %arg7[%c0_20, %c0_21, %c0_22] : memref<1x8x64xbf16, #tpu.memory_space<vmem>>, vector<1x8x64xbf16>
    %35 = vector.shape_cast %34 : vector<1x8x64xbf16> to vector<8x64xbf16>
    %36 = vector.shape_cast %33 : vector<8x64xbf16> to vector<1x8x64xbf16>
    tpu.vector_store %arg7[%c0_20, %c0_21, %c0_22], %36 {strides = array<i32>} : memref<1x8x64xbf16, #tpu.memory_space<vmem>>, vector<1x8x64xbf16>,
    return
  }
  func.func @transform_0(%arg0: i32, %arg1: i32) -> (i32, i32, i32) {
    %c0_i32 = arith.constant 0 : i32
    %c0_i32_0 = arith.constant 0 : i32
    %c0_i32_1 = arith.constant 0 : i32
    return %arg0, %c0_i32, %c0_i32_0 : i32, i32, i32
  }
  func.func @transform_1(%arg0: i32, %arg1: i32) -> (i32, i32) {
    %c0_i32 = arith.constant 0 : i32
    %c0_i32_0 = arith.constant 0 : i32
    %c0_i32_1 = arith.constant 0 : i32
    return %c0_i32, %c0_i32_0 : i32, i32
  }
  func.func @transform_2(%arg0: i32, %arg1: i32) -> (i32, i32) {
    %c0_i32 = arith.constant 0 : i32
    %c0_i32_0 = arith.constant 0 : i32
    %c0_i32_1 = arith.constant 0 : i32
    return %c0_i32, %c0_i32_0 : i32, i32
  }
  func.func @transform_3(%arg0: i32, %arg1: i32) -> (i32, i32) {
    %c0_i32 = arith.constant 0 : i32
    %c0_i32_0 = arith.constant 0 : i32
    %c0_i32_1 = arith.constant 0 : i32
    return %c0_i32, %c0_i32_0 : i32, i32
  }
  func.func @transform_4(%arg0: i32, %arg1: i32) -> (i32, i32) {
    %c0_i32 = arith.constant 0 : i32
    %c0_i32_0 = arith.constant 0 : i32
    %c0_i32_1 = arith.constant 0 : i32
    return %c0_i32, %c0_i32_0 : i32, i32
  }
  func.func @transform_5(%arg0: i32, %arg1: i32) -> (i32, i32, i32) {
    %c0_i32 = arith.constant 0 : i32
    %c0_i32_0 = arith.constant 0 : i32
    return %arg0, %c0_i32, %arg1 : i32, i32, i32
  }
}

module attributes {stable_mosaic.version = 11 : i64} {
  func.func @_conv1d_kernel(%arg0: i32, %arg1: i32, %arg2: memref<1x8x118xbf16, #tpu.memory_space<vmem>>, %arg3: memref<8x56xbf16, #tpu.memory_space<vmem>>, %arg4: memref<8x1xf32, #tpu.memory_space<vmem>>, %arg5: memref<8x1xf32, #tpu.memory_space<vmem>>, %arg6: memref<8x1xf32, #tpu.memory_space<vmem>>, %arg7: memref<1x8x64xbf16, #tpu.memory_space<vmem>>, %arg8: memref<56x64xf32, #tpu.memory_space<vmem>>) attributes {dimension_semantics = [#tpu.dimension_semantics<parallel>, #tpu.dimension_semantics<parallel>], iteration_bounds = array<i64: 2, 1>, scalar_prefetch = 0 : i64, scratch_operands = 1 : i64, tpu.core_type = #tpu.core_type<tc>, window_params = [{transform_indices = @transform_0, window_bounds = array<i64: 1, 8, 118>}, {pipeline_mode = #tpu.pipeline_mode<synchronous>, transform_indices = @transform_1, window_bounds = array<i64: 8, 56>}, {pipeline_mode = #tpu.pipeline_mode<synchronous>, transform_indices = @transform_2, window_bounds = array<i64: 8, 1>}, {pipeline_mode = #tpu.pipeline_mode<synchronous>, transform_indices = @transform_3, window_bounds = array<i64: 8, 1>}, {pipeline_mode = #tpu.pipeline_mode<synchronous>, transform_indices = @transform_4, window_bounds = array<i64: 8, 1>}, {transform_indices = @transform_5, window_bounds = array<i64: 1, 8, 64>}]} {
    %c0 = arith.constant 0 : index
    %c0_0 = arith.constant 0 : index
    %c0_1 = arith.constant 0 : index
    %0 = vector.load %arg2[%c0, %c0_0, %c0_1] : memref<1x8x118xbf16, #tpu.memory_space<vmem>>, vector<1x8x118xbf16>
    %1 = vector.shape_cast %0 : vector<1x8x118xbf16> to vector<8x118xbf16>
    %2 = arith.extf %1 : vector<8x118xbf16> to vector<8x118xf32>
    %c0_2 = arith.constant 0 : index
    %c0_3 = arith.constant 0 : index
    %3 = vector.load %arg5[%c0_2, %c0_3] : memref<8x1xf32, #tpu.memory_space<vmem>>, vector<8x1xf32>
    %c0_4 = arith.constant 0 : index
    %c0_5 = arith.constant 0 : index
    %4 = vector.load %arg6[%c0_4, %c0_5] : memref<8x1xf32, #tpu.memory_space<vmem>>, vector<8x1xf32>
    %5 = vector.broadcast %3 : vector<8x1xf32> to vector<8x118xf32>
    %6 = arith.mulf %5, %2 : vector<8x118xf32>
    %7 = math.sin %6 : vector<8x118xf32>
    %8 = arith.mulf %7, %7 : vector<8x118xf32>
    %9 = vector.broadcast %4 : vector<8x1xf32> to vector<8x118xf32>
    %10 = arith.mulf %9, %8 : vector<8x118xf32>
    %11 = arith.addf %2, %10 : vector<8x118xf32>
    %12 = vector.extract_strided_slice %11 {offsets = [0, 0], sizes = [8, 64], strides = [1, 1]} : vector<8x118xf32> to vector<8x64xf32>
    %c0_6 = arith.constant 0 : index
    %c0_7 = arith.constant 0 : index
    %13 = vector.load %arg8[%c0_6, %c0_7] : memref<56x64xf32, #tpu.memory_space<vmem>>, vector<8x64xf32>
    tpu.vector_store %arg8[%c0_6, %c0_7], %12 {strides = array<i32>} : memref<56x64xf32, #tpu.memory_space<vmem>>, vector<8x64xf32>,
    %14 = vector.extract_strided_slice %11 {offsets = [0, 9], sizes = [8, 64], strides = [1, 1]} : vector<8x118xf32> to vector<8x64xf32>
    %c8 = arith.constant 8 : index
    %c0_8 = arith.constant 0 : index
    %15 = vector.load %arg8[%c8, %c0_8] : memref<56x64xf32, #tpu.memory_space<vmem>>, vector<8x64xf32>
    tpu.vector_store %arg8[%c8, %c0_8], %14 {strides = array<i32>} : memref<56x64xf32, #tpu.memory_space<vmem>>, vector<8x64xf32>,
    %16 = vector.extract_strided_slice %11 {offsets = [0, 18], sizes = [8, 64], strides = [1, 1]} : vector<8x118xf32> to vector<8x64xf32>
    %c16 = arith.constant 16 : index
    %c0_9 = arith.constant 0 : index
    %17 = vector.load %arg8[%c16, %c0_9] : memref<56x64xf32, #tpu.memory_space<vmem>>, vector<8x64xf32>
    tpu.vector_store %arg8[%c16, %c0_9], %16 {strides = array<i32>} : memref<56x64xf32, #tpu.memory_space<vmem>>, vector<8x64xf32>,
    %18 = vector.extract_strided_slice %11 {offsets = [0, 27], sizes = [8, 64], strides = [1, 1]} : vector<8x118xf32> to vector<8x64xf32>
    %c24 = arith.constant 24 : index
    %c0_10 = arith.constant 0 : index
    %19 = vector.load %arg8[%c24, %c0_10] : memref<56x64xf32, #tpu.memory_space<vmem>>, vector<8x64xf32>
    tpu.vector_store %arg8[%c24, %c0_10], %18 {strides = array<i32>} : memref<56x64xf32, #tpu.memory_space<vmem>>, vector<8x64xf32>,
    %20 = vector.extract_strided_slice %11 {offsets = [0, 36], sizes = [8, 64], strides = [1, 1]} : vector<8x118xf32> to vector<8x64xf32>
    %c32 = arith.constant 32 : index
    %c0_11 = arith.constant 0 : index
    %21 = vector.load %arg8[%c32, %c0_11] : memref<56x64xf32, #tpu.memory_space<vmem>>, vector<8x64xf32>
    tpu.vector_store %arg8[%c32, %c0_11], %20 {strides = array<i32>} : memref<56x64xf32, #tpu.memory_space<vmem>>, vector<8x64xf32>,
    %22 = vector.extract_strided_slice %11 {offsets = [0, 45], sizes = [8, 64], strides = [1, 1]} : vector<8x118xf32> to vector<8x64xf32>
    %c40 = arith.constant 40 : index
    %c0_12 = arith.constant 0 : index
    %23 = vector.load %arg8[%c40, %c0_12] : memref<56x64xf32, #tpu.memory_space<vmem>>, vector<8x64xf32>
    tpu.vector_store %arg8[%c40, %c0_12], %22 {strides = array<i32>} : memref<56x64xf32, #tpu.memory_space<vmem>>, vector<8x64xf32>,
    %24 = vector.extract_strided_slice %11 {offsets = [0, 54], sizes = [8, 64], strides = [1, 1]} : vector<8x118xf32> to vector<8x64xf32>
    %c48 = arith.constant 48 : index
    %c0_13 = arith.constant 0 : index
    %25 = vector.load %arg8[%c48, %c0_13] : memref<56x64xf32, #tpu.memory_space<vmem>>, vector<8x64xf32>
    tpu.vector_store %arg8[%c48, %c0_13], %24 {strides = array<i32>} : memref<56x64xf32, #tpu.memory_space<vmem>>, vector<8x64xf32>,
    %c0_14 = arith.constant 0 : index
    %c0_15 = arith.constant 0 : index
    %26 = vector.load %arg8[%c0_14, %c0_15] : memref<56x64xf32, #tpu.memory_space<vmem>>, vector<56x64xf32>
    %27 = arith.truncf %26 : vector<56x64xf32> to vector<56x64xbf16>
    %c0_16 = arith.constant 0 : index
    %c0_17 = arith.constant 0 : index
    %28 = vector.load %arg3[%c0_16, %c0_17] : memref<8x56xbf16, #tpu.memory_space<vmem>>, vector<8x56xbf16>
    %cst = arith.constant dense<0.000000e+00> : vector<8x64xf32>
    %29 = tpu.matmul %28, %27, %cst {dimension_numbers = #tpu.dot_dimension_numbers<[1], [0], [0], [1], [0, 0, 1, 1], [], []>} : vector<8x56xbf16>, vector<56x64xbf16>, vector<8x64xf32> -> vector<8x64xf32>
    %c0_18 = arith.constant 0 : index
    %c0_19 = arith.constant 0 : index
    %30 = vector.load %arg4[%c0_18, %c0_19] : memref<8x1xf32, #tpu.memory_space<vmem>>, vector<8x1xf32>
    %31 = vector.broadcast %30 : vector<8x1xf32> to vector<8x64xf32>
    %32 = arith.addf %29, %31 : vector<8x64xf32>
    %33 = arith.truncf %32 : vector<8x64xf32> to vector<8x64xbf16>
    %c0_20 = arith.constant 0 : index
    %c0_21 = arith.constant 0 : index
    %c0_22 = arith.constant 0 : index
    %34 = vector.load %arg7[%c0_20, %c0_21, %c0_22] : memref<1x8x64xbf16, #tpu.memory_space<vmem>>, vector<1x8x64xbf16>
    %35 = vector.shape_cast %34 : vector<1x8x64xbf16> to vector<8x64xbf16>
    %36 = vector.shape_cast %33 : vector<8x64xbf16> to vector<1x8x64xbf16>
    tpu.vector_store %arg7[%c0_20, %c0_21, %c0_22], %36 {strides = array<i32>} : memref<1x8x64xbf16, #tpu.memory_space<vmem>>, vector<1x8x64xbf16>,
    return
  }
  func.func @transform_0(%arg0: i32, %arg1: i32) -> (i32, i32, i32) {
    %c0_i32 = arith.constant 0 : i32
    %c0_i32_0 = arith.constant 0 : i32
    %c0_i32_1 = arith.constant 0 : i32
    return %arg0, %c0_i32, %c0_i32_0 : i32, i32, i32
  }
  func.func @transform_1(%arg0: i32, %arg1: i32) -> (i32, i32) {
    %c0_i32 = arith.constant 0 : i32
    %c0_i32_0 = arith.constant 0 : i32
    %c0_i32_1 = arith.constant 0 : i32
    return %c0_i32, %c0_i32_0 : i32, i32
  }
  func.func @transform_2(%arg0: i32, %arg1: i32) -> (i32, i32) {
    %c0_i32 = arith.constant 0 : i32
    %c0_i32_0 = arith.constant 0 : i32
    %c0_i32_1 = arith.constant 0 : i32
    return %c0_i32, %c0_i32_0 : i32, i32
  }
  func.func @transform_3(%arg0: i32, %arg1: i32) -> (i32, i32) {
    %c0_i32 = arith.constant 0 : i32
    %c0_i32_0 = arith.constant 0 : i32
    %c0_i32_1 = arith.constant 0 : i32
    return %c0_i32, %c0_i32_0 : i32, i32
  }
  func.func @transform_4(%arg0: i32, %arg1: i32) -> (i32, i32) {
    %c0_i32 = arith.constant 0 : i32
    %c0_i32_0 = arith.constant 0 : i32
    %c0_i32_1 = arith.constant 0 : i32
    return %c0_i32, %c0_i32_0 : i32, i32
  }
  func.func @transform_5(%arg0: i32, %arg1: i32) -> (i32, i32, i32) {
    %c0_i32 = arith.constant 0 : i32
    %c0_i32_0 = arith.constant 0 : i32
    return %arg0, %c0_i32, %arg1 : i32, i32, i32
  }
}

module attributes {stable_mosaic.version = 11 : i64} {
  func.func @_conv1d_kernel(%arg0: i32, %arg1: i32, %arg2: memref<1x8x70xbf16, #tpu.memory_space<vmem>>, %arg3: memref<1x56xbf16, #tpu.memory_space<vmem>>, %arg4: memref<1x1xf32, #tpu.memory_space<vmem>>, %arg5: memref<8x1xf32, #tpu.memory_space<vmem>>, %arg6: memref<8x1xf32, #tpu.memory_space<vmem>>, %arg7: memref<1x1x64xf32, #tpu.memory_space<vmem>>, %arg8: memref<56x64xf32, #tpu.memory_space<vmem>>) attributes {dimension_semantics = [#tpu.dimension_semantics<parallel>, #tpu.dimension_semantics<parallel>], iteration_bounds = array<i64: 2, 1>, scalar_prefetch = 0 : i64, scratch_operands = 1 : i64, tpu.core_type = #tpu.core_type<tc>, window_params = [{transform_indices = @transform_0, window_bounds = array<i64: 1, 8, 70>}, {pipeline_mode = #tpu.pipeline_mode<synchronous>, transform_indices = @transform_1, window_bounds = array<i64: 1, 56>}, {pipeline_mode = #tpu.pipeline_mode<synchronous>, transform_indices = @transform_2, window_bounds = array<i64: 1, 1>}, {pipeline_mode = #tpu.pipeline_mode<synchronous>, transform_indices = @transform_3, window_bounds = array<i64: 8, 1>}, {pipeline_mode = #tpu.pipeline_mode<synchronous>, transform_indices = @transform_4, window_bounds = array<i64: 8, 1>}, {transform_indices = @transform_5, window_bounds = array<i64: 1, 1, 64>}]} {
    %c0 = arith.constant 0 : index
    %c0_0 = arith.constant 0 : index
    %c0_1 = arith.constant 0 : index
    %0 = vector.load %arg2[%c0, %c0_0, %c0_1] : memref<1x8x70xbf16, #tpu.memory_space<vmem>>, vector<1x8x70xbf16>
    %1 = vector.shape_cast %0 : vector<1x8x70xbf16> to vector<8x70xbf16>
    %2 = arith.extf %1 : vector<8x70xbf16> to vector<8x70xf32>
    %c0_2 = arith.constant 0 : index
    %c0_3 = arith.constant 0 : index
    %3 = vector.load %arg5[%c0_2, %c0_3] : memref<8x1xf32, #tpu.memory_space<vmem>>, vector<8x1xf32>
    %c0_4 = arith.constant 0 : index
    %c0_5 = arith.constant 0 : index
    %4 = vector.load %arg6[%c0_4, %c0_5] : memref<8x1xf32, #tpu.memory_space<vmem>>, vector<8x1xf32>
    %5 = vector.broadcast %3 : vector<8x1xf32> to vector<8x70xf32>
    %6 = arith.mulf %5, %2 : vector<8x70xf32>
    %7 = math.sin %6 : vector<8x70xf32>
    %8 = arith.mulf %7, %7 : vector<8x70xf32>
    %9 = vector.broadcast %4 : vector<8x1xf32> to vector<8x70xf32>
    %10 = arith.mulf %9, %8 : vector<8x70xf32>
    %11 = arith.addf %2, %10 : vector<8x70xf32>
    %12 = vector.extract_strided_slice %11 {offsets = [0, 0], sizes = [8, 64], strides = [1, 1]} : vector<8x70xf32> to vector<8x64xf32>
    %c0_6 = arith.constant 0 : index
    %c0_7 = arith.constant 0 : index
    %13 = vector.load %arg8[%c0_6, %c0_7] : memref<56x64xf32, #tpu.memory_space<vmem>>, vector<8x64xf32>
    tpu.vector_store %arg8[%c0_6, %c0_7], %12 {strides = array<i32>} : memref<56x64xf32, #tpu.memory_space<vmem>>, vector<8x64xf32>,
    %14 = vector.extract_strided_slice %11 {offsets = [0, 1], sizes = [8, 64], strides = [1, 1]} : vector<8x70xf32> to vector<8x64xf32>
    %c8 = arith.constant 8 : index
    %c0_8 = arith.constant 0 : index
    %15 = vector.load %arg8[%c8, %c0_8] : memref<56x64xf32, #tpu.memory_space<vmem>>, vector<8x64xf32>
    tpu.vector_store %arg8[%c8, %c0_8], %14 {strides = array<i32>} : memref<56x64xf32, #tpu.memory_space<vmem>>, vector<8x64xf32>,
    %16 = vector.extract_strided_slice %11 {offsets = [0, 2], sizes = [8, 64], strides = [1, 1]} : vector<8x70xf32> to vector<8x64xf32>
    %c16 = arith.constant 16 : index
    %c0_9 = arith.constant 0 : index
    %17 = vector.load %arg8[%c16, %c0_9] : memref<56x64xf32, #tpu.memory_space<vmem>>, vector<8x64xf32>
    tpu.vector_store %arg8[%c16, %c0_9], %16 {strides = array<i32>} : memref<56x64xf32, #tpu.memory_space<vmem>>, vector<8x64xf32>,
    %18 = vector.extract_strided_slice %11 {offsets = [0, 3], sizes = [8, 64], strides = [1, 1]} : vector<8x70xf32> to vector<8x64xf32>
    %c24 = arith.constant 24 : index
    %c0_10 = arith.constant 0 : index
    %19 = vector.load %arg8[%c24, %c0_10] : memref<56x64xf32, #tpu.memory_space<vmem>>, vector<8x64xf32>
    tpu.vector_store %arg8[%c24, %c0_10], %18 {strides = array<i32>} : memref<56x64xf32, #tpu.memory_space<vmem>>, vector<8x64xf32>,
    %20 = vector.extract_strided_slice %11 {offsets = [0, 4], sizes = [8, 64], strides = [1, 1]} : vector<8x70xf32> to vector<8x64xf32>
    %c32 = arith.constant 32 : index
    %c0_11 = arith.constant 0 : index
    %21 = vector.load %arg8[%c32, %c0_11] : memref<56x64xf32, #tpu.memory_space<vmem>>, vector<8x64xf32>
    tpu.vector_store %arg8[%c32, %c0_11], %20 {strides = array<i32>} : memref<56x64xf32, #tpu.memory_space<vmem>>, vector<8x64xf32>,
    %22 = vector.extract_strided_slice %11 {offsets = [0, 5], sizes = [8, 64], strides = [1, 1]} : vector<8x70xf32> to vector<8x64xf32>
    %c40 = arith.constant 40 : index
    %c0_12 = arith.constant 0 : index
    %23 = vector.load %arg8[%c40, %c0_12] : memref<56x64xf32, #tpu.memory_space<vmem>>, vector<8x64xf32>
    tpu.vector_store %arg8[%c40, %c0_12], %22 {strides = array<i32>} : memref<56x64xf32, #tpu.memory_space<vmem>>, vector<8x64xf32>,
    %24 = vector.extract_strided_slice %11 {offsets = [0, 6], sizes = [8, 64], strides = [1, 1]} : vector<8x70xf32> to vector<8x64xf32>
    %c48 = arith.constant 48 : index
    %c0_13 = arith.constant 0 : index
    %25 = vector.load %arg8[%c48, %c0_13] : memref<56x64xf32, #tpu.memory_space<vmem>>, vector<8x64xf32>
    tpu.vector_store %arg8[%c48, %c0_13], %24 {strides = array<i32>} : memref<56x64xf32, #tpu.memory_space<vmem>>, vector<8x64xf32>,
    %c0_14 = arith.constant 0 : index
    %c0_15 = arith.constant 0 : index
    %26 = vector.load %arg8[%c0_14, %c0_15] : memref<56x64xf32, #tpu.memory_space<vmem>>, vector<56x64xf32>
    %27 = arith.truncf %26 : vector<56x64xf32> to vector<56x64xbf16>
    %c0_16 = arith.constant 0 : index
    %c0_17 = arith.constant 0 : index
    %28 = vector.load %arg3[%c0_16, %c0_17] : memref<1x56xbf16, #tpu.memory_space<vmem>>, vector<1x56xbf16>
    %cst = arith.constant dense<0.000000e+00> : vector<1x64xf32>
    %29 = tpu.matmul %28, %27, %cst {dimension_numbers = #tpu.dot_dimension_numbers<[1], [0], [0], [1], [0, 0, 1, 1], [], []>} : vector<1x56xbf16>, vector<56x64xbf16>, vector<1x64xf32> -> vector<1x64xf32>
    %c0_18 = arith.constant 0 : index
    %c0_19 = arith.constant 0 : index
    %30 = vector.load %arg4[%c0_18, %c0_19] : memref<1x1xf32, #tpu.memory_space<vmem>>, vector<1x1xf32>
    %31 = vector.broadcast %30 : vector<1x1xf32> to vector<1x64xf32>
    %32 = arith.addf %29, %31 : vector<1x64xf32>
    %33 = math.tanh %32 : vector<1x64xf32>
    %c0_20 = arith.constant 0 : index
    %c0_21 = arith.constant 0 : index
    %c0_22 = arith.constant 0 : index
    %34 = vector.load %arg7[%c0_20, %c0_21, %c0_22] : memref<1x1x64xf32, #tpu.memory_space<vmem>>, vector<1x1x64xf32>
    %35 = vector.shape_cast %34 : vector<1x1x64xf32> to vector<1x64xf32>
    %36 = vector.shape_cast %33 : vector<1x64xf32> to vector<1x1x64xf32>
    tpu.vector_store %arg7[%c0_20, %c0_21, %c0_22], %36 {strides = array<i32>} : memref<1x1x64xf32, #tpu.memory_space<vmem>>, vector<1x1x64xf32>,
    return
  }
  func.func @transform_0(%arg0: i32, %arg1: i32) -> (i32, i32, i32) {
    %c0_i32 = arith.constant 0 : i32
    %c0_i32_0 = arith.constant 0 : i32
    %c0_i32_1 = arith.constant 0 : i32
    return %arg0, %c0_i32, %c0_i32_0 : i32, i32, i32
  }
  func.func @transform_1(%arg0: i32, %arg1: i32) -> (i32, i32) {
    %c0_i32 = arith.constant 0 : i32
    %c0_i32_0 = arith.constant 0 : i32
    %c0_i32_1 = arith.constant 0 : i32
    return %c0_i32, %c0_i32_0 : i32, i32
  }
  func.func @transform_2(%arg0: i32, %arg1: i32) -> (i32, i32) {
    %c0_i32 = arith.constant 0 : i32
    %c0_i32_0 = arith.constant 0 : i32
    %c0_i32_1 = arith.constant 0 : i32
    return %c0_i32, %c0_i32_0 : i32, i32
  }
  func.func @transform_3(%arg0: i32, %arg1: i32) -> (i32, i32) {
    %c0_i32 = arith.constant 0 : i32
    %c0_i32_0 = arith.constant 0 : i32
    %c0_i32_1 = arith.constant 0 : i32
    return %c0_i32, %c0_i32_0 : i32, i32
  }
  func.func @transform_4(%arg0: i32, %arg1: i32) -> (i32, i32) {
    %c0_i32 = arith.constant 0 : i32
    %c0_i32_0 = arith.constant 0 : i32
    %c0_i32_1 = arith.constant 0 : i32
    return %c0_i32, %c0_i32_0 : i32, i32
  }
  func.func @transform_5(%arg0: i32, %arg1: i32) -> (i32, i32, i32) {
    %c0_i32 = arith.constant 0 : i32
    %c0_i32_0 = arith.constant 0 : i32
    return %arg0, %c0_i32, %arg1 : i32, i32, i32
  }
}

</mosaic_0001>

<bundles_post_ra>
// kernel: decoder_pallas.16
= control target key start
LH: loop header
LB: loop body
LE: loop exit
PB: predicated region body
PF: predicated region fallthrough
CT: control target
= control target key end

     0   :  { %s552_s12 = smov 0   ;;  %s554_s13 = smov 0   ;;  %s616_s0 = inlined_call_operand.vmem [shape: f32[2,8,22], index: 0, kind: input, shape index: {}]   ;;  %s617_s1 = inlined_call_operand.vmem [shape: bf16[32,56], index: 1, kind: input, shape index: {}]   ;;  %s618_s2 = inlined_call_operand.vmem [shape: f32[32,1], index: 2, kind: input, shape index: {}]   ;;  %s619_s3 = inlined_call_operand.vmem [shape: bf16[2,32,16], index: 3, kind: output, shape index: {}]  }
   0x1   :  { %s556_s14 = smov 0  }
   0x2 LB: > { %s25_s15 = sadd.s32 1, %s519_s13  ;;  %p428_p0 = scmp.ge.s32.totalorder %s523_s14, 1  ;;  %s523_s14 = sphi %s556_s14, %s13_s14   ;;  %s519_s13 = sphi %s554_s13, %s621_s13   ;;  %s515_s12 = sphi %s552_s12, %s620_s12  }
   0x3   : > { %p27_p1 = scmp.ge.s32.totalorder %s25_s15, 2  ;;  %p150_p2 = scmp.lt.s32.totalorder %s523_s14, 3 }
   0x5   : > { %s623_s15 = smov (%p27_p1, %s25_s15), 0  ;;  %p151_p3 = pnand %p428_p0, %p150_p2 }
   0x6   : > { %p176_p4 = scmp.lt.s32.totalorder (!%p151_p3), %s515_s12, 1  ;;  %vm190_vm0 = vcmask (!%p151_p3), 130048   ;;  %s525_s20 = smov (!%p151_p3), 127   ;;  %v499_v1 = vld [vmem:[%s617_s1] sm:$0xff] (!%p151_p3)   ;;  %vm266_vm1 = vcmask (!%p151_p3), 457728   ;;  %v233_v2 = vld [vmem:[%s618_s2 + $0x8] sm:$0xff] (!%p151_p3) }
   0x7   : > { %154 = sbr.rel (%p151_p3) target bundleno = 379 (0x17b), region = 32  ;;  %s526_s21 = smov (!%p151_p3), 125   ;;  %461 = vmatprep.mubr.msk.bf16.mxu0 (!%p151_p3), %vm266_vm1, %v499_v1  ;;  %v232_v3 = vld [vmem:[%s618_s2] sm:$0xff] (!%p151_p3)  ;;  %v531_v4 = vmov (!%p151_p3), 0   ;;  %v234_v5 = vld [vmem:[%s618_s2 + $0x10] sm:$0xff] (!%p151_p3)  ;;  %v235_v6 = vld [vmem:[%s618_s2 + $0x18] sm:$0xff] (!%p151_p3) }
   0x8   : > { %s527_s22 = smov (!%p151_p3), 126   ;;  %s528_s23 = smov (!%p151_p3), 124   ;;  %498 = vset.pattern.permute.xlu1 (!%p151_p3), %v531_v4  ;;  %497 = vset.pattern.permute.xlu0 (!%p151_p3), %v531_v4  ;;  %vm273_vm2 = vcmask (!%p151_p3), 1043456   ;;  %v500_v25 = vld [vmem:[%s617_s1 + $0x8] sm:$0xff] (!%p151_p3)   ;;  %vm342_vm3 = vcmask (!%p151_p3), 125952  }
   0x9   : > { %s529_s24 = smov (!%p151_p3), 123   ;;  %s530_s25 = smov (!%p151_p3), 122  }
   0xe   : > { %s625_s12 = smov (!%p176_p4, %s515_s12), 1 }
   0xf   : > { %s429_s16 = sshll.u32 %s625_s12, 3  ;;  %s442_s11 = sshll.u32 %s625_s12, 4 }
  0x10   : > { %s179_s19 = scalar_lea.vmem %s616_s0, %s429_s16  ;;  %s187_s18 = scalar_lea.vmem %s619_s3, %s442_s11 }
  0x11   : > { %v189_v0 = vld [vmem:[%s179_s19] sm:$0xff] }
  0x12   : > { %193 = vrot.lane.b32.xlu0 %v189_v0, %s525_s20  ;;  %201 = vrot.lane.b32.xlu1 %v189_v0, %s526_s21  ;;  %191 = vst.msk [vmem:[#allocation2] sm:$0xff] %vm190_vm0, %v189_v0 }
  0x16   : > { %197 = vrot.lane.b32.xlu0 %v189_v0, %s527_s22  ;;  %205 = vrot.lane.b32.xlu1 %v189_v0, %s528_s23 }
  0x19   : > { %v217_v11 = vld [vmem:[#allocation2] sm:$0xff] }
  0x1a   : > { %209 = vrot.lane.b32.xlu0 %v189_v0, %s529_s24  ;;  %213 = vrot.lane.b32.xlu1 %v189_v0, %s530_s25 }
  0x1e   : > { %243 = vperm.xlu1 %498, %v233_v2   ;;  %238 = vperm.xlu0 %497, %v232_v3  }
  0x22   : > { %248 = vperm.xlu1 %498, %v234_v5   ;;  %253 = vperm.xlu0 %497, %v235_v6  }
  0x84   : > { %v194_v7 = vpop.permute.xlu0 %193  ;;  %v202_v8 = vpop.permute.xlu1 %201 }
  0x85   : > { %196 = vst.msk [vmem:[#allocation2 + $0x8] sm:$0xff] %vm190_vm0, %v194_v7  ;;  %204 = vst.msk [vmem:[#allocation2 + $0x18] sm:$0xff] %vm190_vm0, %v202_v8 }
  0x88   : > { %v198_v9 = vpop.permute.xlu0 %197  ;;  %v206_v10 = vpop.permute.xlu1 %205 }
  0x89   : > { %200 = vst.msk [vmem:[#allocation2 + $0x10] sm:$0xff] %vm190_vm0, %v198_v9  ;;  %208 = vst.msk [vmem:[#allocation2 + $0x20] sm:$0xff] %vm190_vm0, %v206_v10 }
  0x8c   : > { %v210_v12 = vpop.permute.xlu0 %209  ;;  %v218_v13 = vld [vmem:[#allocation2 + $0x8] sm:$0xff]  ;;  %v214_v14 = vpop.permute.xlu1 %213  ;;  %v220_v16 = vld [vmem:[#allocation2 + $0x18] sm:$0xff] }
  0x8d   : > { %212 = vst.msk [vmem:[#allocation2 + $0x28] sm:$0xff] %vm190_vm0, %v210_v12  ;;  %v224_v15 = vpack.c.bf16 %v218_v13, %v217_v11  ;;  %216 = vst.msk [vmem:[#allocation2 + $0x30] sm:$0xff] %vm190_vm0, %v214_v14 }
  0x8f   : > { %453 = vmatprep.subr.bf16.mxu0 %v224_v15 }
  0x90   : > { %454 = vmatpush3.bf16.msra.mxu0 %v224_v15  ;;  %v219_v17 = vld [vmem:[#allocation2 + $0x10] sm:$0xff]  ;;  %v221_v19 = vld [vmem:[#allocation2 + $0x20] sm:$0xff] }
  0x91   : > { %v225_v18 = vpack.c.bf16 %v220_v16, %v219_v17 }
  0x93   : > { %455 = vmatprep.subr.bf16.mxu0 %v225_v18 }
  0x94   : > { %456 = vmatpush3.bf16.msra.mxu0 %v225_v18  ;;  %v222_v20 = vld [vmem:[#allocation2 + $0x28] sm:$0xff]  ;;  %v223_v21 = vld [vmem:[#allocation2 + $0x30] sm:$0xff] }
  0x95   : > { %v226_v22 = vpack.c.bf16 %v222_v20, %v221_v19  ;;  %v227_v23 = vpack.c.bf16 %v223_v21, %v223_v21 }
  0x97   : > { %457 = vmatprep.subr.bf16.mxu0 %v226_v22  ;;  %v275_v24 = vsel %vm273_vm2, %v227_v23, 0 }
  0x98   : > { %458 = vmatpush3.bf16.msra.mxu0 %v226_v22 }
  0x99   : > { %465 = vmatprep.subr.msk.bf16.mxu0 %vm273_vm2, %v227_v23 }
  0x9c   : > { %460 = vmatpush3.bf16.msra.mxu0 %v275_v24 }
  0x9d   : > { %v244_v26 = vpop.permute.xlu1 %243  ;;  %v239_v27 = vpop.permute.xlu0 %238 }
  0x9f   : > { %462 = vmatmul.mubr.msk.bf16.vlgmr.msra.gmra.mrb[0].mxu0 %vm266_vm1, %v500_v25 }
  0xa1   : > { %v249_v28 = vpop.permute.xlu1 %248  ;;  %v254_v32 = vpop.permute.xlu0 %253 }
 0x172   : > { %v463_v29 = vpop.f32.mrb[0].mxu0 }
 0x173   : > { %v320_v30 = vadd.f32 %v463_v29, %v249_v28  ;;  %v311_v31 = vpop.f32.mrb[1].mxu0 }
 0x174   : > { %v312_v33 = vadd.f32 %v311_v31, %v239_v27  ;;  %v464_v34 = vpop.f32.mrb[2].mxu0 }
 0x175   : > { %v445_v35 = vpack.c.bf16 %v320_v30, %v320_v30  ;;  %v323_v36 = vadd.f32 %v464_v34, %v254_v32  ;;  %v314_v37 = vpop.f32.mrb[3].mxu0 }
 0x176   : > { %v443_v38 = vpack.c.bf16 %v312_v33, %v312_v33  ;;  %v315_v39 = vadd.f32 %v314_v37, %v244_v26 }
 0x177   : > { %345 = vst.msk [vmem:[%s187_s18 + $0x8] sm:$0xf] %vm342_vm3, %v445_v35  ;;  %v446_v40 = vpack.c.bf16 %v323_v36, %v323_v36 }
 0x178   : > { %343 = vst.msk [vmem:[%s187_s18] sm:$0xf] %vm342_vm3, %v443_v38  ;;  %v444_v41 = vpack.c.bf16 %v315_v39, %v315_v39 }
 0x179   : > { %346 = vst.msk [vmem:[%s187_s18 + $0xc] sm:$0xf] %vm342_vm3, %v446_v40 }
 0x17a   : > { %344 = vst.msk [vmem:[%s187_s18 + $0x4] sm:$0xf] %vm342_vm3, %v444_v41 }
 0x17b PF: > { %s13_s14 = sadd.s32 1, %s523_s14   ;;  %s620_s12 = smov %s519_s13 }
 0x17c   : > { %p10_p5 = scmp.ge.s32.totalorder %s13_s14, 4   ;;  %s621_s13 = smov %s623_s15 }
 0x17e   :  { %12 = sbr.rel (!%p10_p5) target bundleno = 2 (0x2), region = 62 }

// kernel: decoder_pallas.17
= control target key start
LH: loop header
LB: loop body
LE: loop exit
PB: predicated region body
PF: predicated region fallthrough
CT: control target
= control target key end

     0   :  { %s1161_s18 = smov 0   ;;  %s1163_s19 = smov 0   ;;  %s1564_s0 = inlined_call_operand.vmem [shape: bf16[2,32,18], index: 0, kind: input, shape index: {}]   ;;  %s1565_s1 = inlined_call_operand.vmem [shape: bf16[32,64], index: 1, kind: input, shape index: {}]   ;;  %s1566_s2 = inlined_call_operand.vmem [shape: f32[32,1], index: 2, kind: input, shape index: {}]   ;;  %s1567_s3 = inlined_call_operand.vmem [shape: f32[32,1], index: 3, kind: input, shape index: {}]   ;;  %s1568_s4 = inlined_call_operand.vmem [shape: f32[32,1], index: 4, kind: input, shape index: {}]   ;;  %s1569_s5 = inlined_call_operand.vmem [shape: bf16[2,32,17], index: 5, kind: output, shape index: {}]  }
   0x1   :  { %s1165_s20 = smov 0  }
   0x2 LB: > { %s27_s21 = sadd.s32 1, %s1117_s19  ;;  %p967_p0 = scmp.ge.s32.totalorder %s1121_s20, 1  ;;  %s1121_s20 = sphi %s1165_s20, %s15_s20   ;;  %s1117_s19 = sphi %s1163_s19, %s1577_s19   ;;  %s1113_s18 = sphi %s1161_s18, %s1576_s18  }
   0x3   : > { %p29_p1 = scmp.ge.s32.totalorder %s27_s21, 2  ;;  %p201_p2 = scmp.lt.s32.totalorder %s1121_s20, 3 }
   0x5   : > { %s1579_s21 = smov (%p29_p1, %s27_s21), 0  ;;  %p202_p3 = pnand %p967_p0, %p201_p2 }
   0x6   : > { %v256_v0 = vld [vmem:[%s1567_s3 + $0x10] sm:$0xff] (!%p202_p3)  ;;  %v254_v1 = vld [vmem:[%s1567_s3] sm:$0xff] (!%p202_p3)  ;;  %v1123_v2 = vmov (!%p202_p3), 0   ;;  %v257_v3 = vld [vmem:[%s1567_s3 + $0x18] sm:$0xff] (!%p202_p3)  ;;  %p232_p4 = scmp.lt.s32.totalorder (!%p202_p3), %s1113_s18, 1  ;;  %s1130_s17 = smov (!%p202_p3), 127  }
   0x7   : > { %205 = sbr.rel (%p202_p3) target bundleno = 626 (0x272), region = 40  ;;  %1080 = vset.pattern.permute.xlu1 (!%p202_p3), %v1123_v2  ;;  %1079 = vset.pattern.permute.xlu0 (!%p202_p3), %v1123_v2  ;;  %v255_v4 = vld [vmem:[%s1567_s3 + $0x8] sm:$0xff] (!%p202_p3)  ;;  %v258_v6 = vld [vmem:[%s1568_s4] sm:$0xff] (!%p202_p3)  ;;  %v261_v7 = vld [vmem:[%s1568_s4 + $0x18] sm:$0xff] (!%p202_p3)  ;;  %v1124_v56 = vmov (!%p202_p3), 683565275  }
   0x8   : > { %274 = vperm.xlu1 (!%p202_p3), %1080, %v256_v0   ;;  %264 = vperm.xlu0 (!%p202_p3), %1079, %v254_v1   ;;  %v259_v5 = vld [vmem:[%s1568_s4 + $0x8] sm:$0xff] (!%p202_p3)  ;;  %v260_v8 = vld [vmem:[%s1568_s4 + $0x10] sm:$0xff] (!%p202_p3)  ;;  %v1125_v58 = vmov (!%p202_p3), 2475754826   ;;  %v1126_v60 = vmov (!%p202_p3), 2131351028  }
   0x9   : > { %v1127_v62 = vmov (!%p202_p3), 2102212464   ;;  %v1128_v0 = vmov (!%p202_p3), 920167782  }
   0xc   : > { %279 = vperm.xlu1 (!%p202_p3), %1080, %v257_v3   ;;  %269 = vperm.xlu0 (!%p202_p3), %1079, %v255_v4  }
   0xe   : > { %s1581_s18 = smov (!%p232_p4, %s1113_s18), 1 }
   0xf   : > { %s998_s13 = sshll.u32 %s1581_s18, 4 }
  0x10   : > { %713 = vperm.xlu1 %1080, %v259_v5   ;;  %708 = vperm.xlu0 %1079, %v258_v6   ;;  %s236_s16 = scalar_lea.vmem %s1564_s0, %s998_s13  ;;  %s244_s11 = scalar_lea.vmem %s1569_s5, %s998_s13 }
  0x11   : > { %v1215_v9 = vld [vmem:[%s236_s16 + $0x8] sm:$0xff]   ;;  %v1217_v10 = vld [vmem:[%s236_s16] sm:$0xff]  }
  0x12   : > { %v1010_v11 = vunpack.c.l.bf16 %v1215_v9  ;;  %v1006_v12 = vunpack.c.l.bf16 %v1217_v10  ;;  %v1011_v17 = vunpack.c.h.bf16 %v1215_v9  ;;  %v1007_v18 = vunpack.c.h.bf16 %v1217_v10 }
  0x14   : > { %723 = vperm.xlu1 %1080, %v261_v7   ;;  %718 = vperm.xlu0 %1079, %v260_v8   ;;  %v1129_v8 = vmov 1326507024  }
  0x87   : > { %v275_v13 = vpop.permute.xlu1 %274  ;;  %v265_v14 = vpop.permute.xlu0 %264 }
  0x88   : > { %v1223_v15 = vmul.f32 %v1010_v11, %v275_v13  ;;  %v1227_v16 = vmul.f32 %v1006_v12, %v265_v14 }
  0x8a   : > { %v494_v19 = vand.u32 2147483647, %v1223_v15  ;;  %v497_v20 = vand.u32 2139095040, %v1223_v15  ;;  %v286_v21 = vand.u32 2147483647, %v1227_v16  ;;  %v289_v22 = vand.u32 2139095040, %v1227_v16 }
  0x8b   : > { %v280_v23 = vpop.permute.xlu1 %279  ;;  %v270_v24 = vpop.permute.xlu0 %269 }
  0x8c   : > { %v498_v25 = vshrl.u32 %v497_v20, 23  ;;  %v501_v26 = vand.u32 8388607, %v494_v19  ;;  %v293_v27 = vand.u32 8388607, %v286_v21  ;;  %v1241_v28 = vmul.f32 %v1011_v17, %v280_v23 }
  0x8d   : > { %v290_v29 = vshrl.u32 %v289_v22, 23  ;;  %v1245_v30 = vmul.f32 %v1007_v18, %v270_v24 }
  0x8e   : > { %v980_v31 = vadd.s32 4294967169, %v498_v25  ;;  %v502_v32 = vor.u32 8388608, %v501_v26  ;;  %v598_v33 = vand.u32 2147483647, %v1241_v28  ;;  %v294_v35 = vor.u32 8388608, %v293_v27 }
  0x8f   : > { %v972_v34 = vadd.s32 4294967169, %v290_v29  ;;  %v601_v36 = vand.u32 2139095040, %v1241_v28  ;;  %v390_v41 = vand.u32 2147483647, %v1245_v30  ;;  %v393_v42 = vand.u32 2139095040, %v1245_v30 }
  0x90   : > { %v504_v37 = vadd.s32 1, %v980_v31  ;;  %v1251_v38 = vand.u32 8388607, %v598_v33  ;;  %v1255_v43 = vshll.u32 %v502_v32, 8  ;;  %v1257_v45 = vshll.u32 %v294_v35, 8 }
  0x91   : > { %v296_v39 = vadd.s32 1, %v972_v34  ;;  %v602_v40 = vshrl.u32 %v601_v36, 23  ;;  %v1262_v53 = vshrl.u32 %v393_v42, 23  ;;  %v1266_v54 = vand.u32 8388607, %v390_v41 }
  0x92   : > { %vm505_vm0 = vcmp.gt.s32.totalorder %v504_v37, 0  ;;  %v606_v50 = vor.u32 8388608, %v1251_v38 }
  0x93   : > { %v506_v44 = vsel %vm505_vm0, %v504_v37, 0  ;;  %vm297_vm1 = vcmp.gt.s32.totalorder %v296_v39, 0  ;;  %v984_v46 = vadd.s32 4294967169, %v602_v40 }
  0x94   : > { %v507_v47 = vshrl.u32 %v506_v44, 5  ;;  %v508_v48 = vand.u32 31, %v506_v44  ;;  %v298_v49 = vsel %vm297_vm1, %v296_v39, 0 }
  0x95   : > { %v1260_v51 = vshrl.u32 %v298_v49, 5  ;;  %v300_v52 = vand.u32 31, %v298_v49  ;;  %v1273_v2 = vadd.s32 1, %v984_v46 }
  0x96   : > { %v509_v55 = vsub.s32 32, %v508_v48  ;;  %v511_v57 = vshll.u32 %v1124_v56, %v508_v48  ;;  %v514_v59 = vshll.u32 %v1125_v58, %v508_v48  ;;  %v517_v61 = vshll.u32 %v1126_v60, %v508_v48 }
  0x97   : > { %v520_v63 = vshll.u32 %v1127_v62, %v508_v48  ;;  %v523_v1 = vshll.u32 %v1128_v0, %v508_v48  ;;  %vm526_vm2 = vcmp.lt.s32.totalorder %v507_v47, 1  ;;  %vm527_vm3 = vcmp.lt.s32.totalorder %v507_v47, 2 }
  0x98   : > { %v510_v3 = vshrl.u32 %v1124_v56, %v509_v55  ;;  %v512_v4 = vshrl.u32 %v1125_v58, %v509_v55  ;;  %v515_v5 = vshrl.u32 %v1126_v60, %v509_v55  ;;  %v518_v6 = vshrl.u32 %v1127_v62, %v509_v55 }
  0x99   : > { %v521_v7 = vshrl.u32 %v1128_v0, %v509_v55  ;;  %v524_v13 = vshrl.u32 %v1129_v8, %v509_v55  ;;  %vm528_vm4 = vcmp.lt.s32.totalorder %v507_v47, 3  ;;  %v301_v23 = vsub.s32 32, %v300_v52 }
  0x9a   : > { %v513_v14 = vor.u32 %v512_v4, %v511_v57  ;;  %v516_v20 = vor.u32 %v515_v5, %v514_v59  ;;  %v519_v22 = vor.u32 %v518_v6, %v517_v61  ;;  %vm529_vm5 = vcmp.lt.s32.totalorder %v507_v47, 4 }
  0x9b   : > { %v522_v24 = vor.u32 %v521_v7, %v520_v63  ;;  %v525_v25 = vor.u32 %v524_v13, %v523_v1  ;;  %v303_v26 = vshll.u32 %v1124_v56, %v300_v52  ;;  %v306_v37 = vshll.u32 %v1125_v58, %v300_v52 }
  0x9c   : > { %v530_v27 = vsel %vm526_vm2, %v510_v3, %v513_v14  ;;  %v531_v29 = vsel %vm529_vm5, %v519_v22, 2102212464  ;;  %v534_v31 = vsel %vm526_vm2, %v513_v14, %v516_v20  ;;  %v538_v32 = vsel %vm526_vm2, %v516_v20, %v519_v22 }
  0x9d   : > { %v532_v34 = vsel %vm528_vm4, %v516_v20, %v531_v29  ;;  %v535_v35 = vsel %vm529_vm5, %v522_v24, 920167782  ;;  %v539_v36 = vsel %vm529_vm5, %v525_v25, 1326507024  ;;  %v302_v42 = vshrl.u32 %v1124_v56, %v301_v23 }
  0x9e   : > { %v536_v39 = vsel %vm528_vm4, %v519_v22, %v535_v35  ;;  %v540_v40 = vsel %vm528_vm4, %v522_v24, %v539_v36  ;;  %v304_v44 = vshrl.u32 %v1125_v58, %v301_v23  ;;  %v533_v46 = vsel %vm527_vm3, %v530_v27, %v532_v34 }
  0x9f   : > { %v537_v48 = vsel %vm527_vm3, %v534_v31, %v536_v39  ;;  %v541_v49 = vsel %vm527_vm3, %v538_v32, %v540_v40  ;;  %v307_v55 = vshrl.u32 %v1126_v60, %v301_v23  ;;  %v309_v4 = vshll.u32 %v1126_v60, %v300_v52 }
  0xa0   : > { %v1296_v57 = vmul.u32.u64.low %v1255_v43, %v541_v49  ;;  %v1297_v59 = vmul.u32.u64.high %v1255_v43, %v541_v49, %v1296_v57  ;;  %v1300_v61 = vmul.u32.u64.low %v1255_v43, %v537_v48  ;;  %v1301_v63 = vmul.u32.u64.high %v1255_v43, %v537_v48, %v1300_v61 }
  0xa1   : > { %v305_v1 = vor.u32 %v304_v44, %v303_v26  ;;  %v308_v3 = vor.u32 %v307_v55, %v306_v37  ;;  %v310_v5 = vshrl.u32 %v1127_v62, %v301_v23  ;;  %v549_v47 = vmul.u32 %v1255_v43, %v533_v46 }
  0xa2   : > { %v312_v6 = vshll.u32 %v1127_v62, %v300_v52  ;;  %v313_v7 = vshrl.u32 %v1128_v0, %v301_v23  ;;  %v316_v13 = vshrl.u32 %v1129_v8, %v301_v23  ;;  %v315_v20 = vshll.u32 %v1128_v0, %v300_v52 }
  0xa3   : > { %v311_v14 = vor.u32 %v310_v5, %v309_v4  ;;  %vm318_vm6 = vcmp.lt.s32.totalorder %v1260_v51, 1  ;;  %vm319_vm7 = vcmp.lt.s32.totalorder %v1260_v51, 2  ;;  %vm551_vm8 = vc.u32 %v1297_v59, %v1300_v61 }
  0xa4   : > { %v552_v22 = vadd.s32 1, %v1301_v63  ;;  %v314_v24 = vor.u32 %v313_v7, %v312_v6  ;;  %vm320_vm9 = vcmp.lt.s32.totalorder %v1260_v51, 3  ;;  %v317_v43 = vor.u32 %v316_v13, %v315_v20 }
  0xa5   : > { %vm321_vm10 = vcmp.lt.s32.totalorder %v1260_v51, 4  ;;  %v322_v25 = vsel %vm318_vm6, %v302_v42, %v305_v1  ;;  %v326_v23 = vsel %vm318_vm6, %v305_v1, %v308_v3  ;;  %v330_v29 = vsel %vm318_vm6, %v308_v3, %v311_v14 }
  0xa6   : > { %v553_v26 = vsel %vm551_vm8, %v552_v22, %v1301_v63  ;;  %v323_v52 = vsel %vm321_vm10, %v311_v14, 2102212464  ;;  %v327_v27 = vsel %vm321_vm10, %v314_v24, 920167782  ;;  %v331_v35 = vsel %vm321_vm10, %v317_v43, 1326507024 }
  0xa7   : > { %v554_v31 = vadd.s32 %v553_v26, %v549_v47  ;;  %v324_v32 = vsel %vm320_vm9, %v308_v3, %v323_v52  ;;  %v328_v34 = vsel %vm320_vm9, %v311_v14, %v327_v27  ;;  %v332_v39 = vsel %vm320_vm9, %v314_v24, %v331_v35 }
  0xa8   : > { %v325_v36 = vsel %vm319_vm7, %v322_v25, %v324_v32  ;;  %v329_v37 = vsel %vm319_vm7, %v326_v23, %v328_v34  ;;  %vm609_vm11 = vcmp.gt.s32.totalorder %v1273_v2, 0  ;;  %v333_v42 = vsel %vm319_vm7, %v330_v29, %v332_v39 }
  0xa9   : > { %v555_v40 = vadd.s32 536870912, %v554_v31  ;;  %v1327_v44 = vmul.u32.u64.low %v1257_v45, %v329_v37  ;;  %v1328_v46 = vmul.u32.u64.high %v1257_v45, %v329_v37, %v1327_v44  ;;  %v610_v55 = vsel %vm609_vm11, %v1273_v2, 0 }
  0xaa   : > { %v1332_v48 = vmul.u32.u64.low %v1257_v45, %v333_v42  ;;  %v1333_v49 = vmul.u32.u64.high %v1257_v45, %v333_v42, %v1332_v48  ;;  %v976_v57 = vadd.s32 4294967169, %v1262_v53  ;;  %v612_v1 = vand.u32 31, %v610_v55 }
  0xab   : > { %v1337_v63 = vshrl.u32 %v555_v40, 30  ;;  %v341_v3 = vmul.u32 %v1257_v45, %v325_v36  ;;  %v611_v51 = vshrl.u32 %v610_v55, 5  ;;  %v1342_v4 = vshll.u32 %v606_v50, 8 }
  0xac   : > { %v344_v47 = vadd.s32 1, %v1328_v46  ;;  %v613_v6 = vsub.s32 32, %v612_v1  ;;  %v398_v7 = vor.u32 8388608, %v1266_v54  ;;  %vm343_vm12 = vc.u32 %v1333_v49, %v1327_v44 }
  0xad   : > { %v557_v5 = vshll.u32 %v1337_v63, 30  ;;  %v615_v53 = vshll.u32 %v1124_v56, %v612_v1  ;;  %v618_v2 = vshll.u32 %v1125_v58, %v612_v1  ;;  %v400_v45 = vadd.s32 1, %v976_v57 }
  0xae   : > { %v345_v38 = vsel %vm343_vm12, %v344_v47, %v1328_v46  ;;  %v616_v50 = vshrl.u32 %v1125_v58, %v613_v6  ;;  %v621_v14 = vshll.u32 %v1126_v60, %v612_v1  ;;  %v619_v22 = vshrl.u32 %v1126_v60, %v613_v6 }
  0xaf   : > { %v1351_v13 = vsub.s32 %v554_v31, %v557_v5  ;;  %v346_v20 = vadd.s32 %v345_v38, %v341_v3  ;;  %v622_v24 = vshrl.u32 %v1127_v62, %v613_v6  ;;  %v624_v43 = vshll.u32 %v1127_v62, %v612_v1 }
  0xb0   : > { %v617_v23 = vor.u32 %v616_v50, %v615_v53  ;;  %v625_v26 = vshrl.u32 %v1128_v0, %v613_v6  ;;  %v627_v52 = vshll.u32 %v1128_v0, %v612_v1  ;;  %v620_v29 = vor.u32 %v619_v22, %v618_v2 }
  0xb1   : > { %v560_v25 = vsub.s32 0, %v1351_v13  ;;  %v347_v27 = vadd.s32 536870912, %v346_v20  ;;  %v623_v31 = vor.u32 %v622_v24, %v621_v14  ;;  %v628_v32 = vshrl.u32 %v1129_v8, %v613_v6 }
  0xb2   : > { %v614_v35 = vshrl.u32 %v1124_v56, %v613_v6  ;;  %v626_v36 = vor.u32 %v625_v26, %v624_v43  ;;  %vm630_vm13 = vcmp.lt.s32.totalorder %v611_v51, 1  ;;  %vm632_vm14 = vcmp.lt.s32.totalorder %v611_v51, 3 }
  0xb3   : > { %v981_v34 = vmin.u32 %v560_v25, %v1351_v13  ;;  %v1365_v37 = vshrl.u32 %v347_v27, 30  ;;  %v629_v39 = vor.u32 %v628_v32, %v627_v52  ;;  %vm633_vm15 = vcmp.lt.s32.totalorder %v611_v51, 4 }
  0xb4   : > { %v634_v42 = vsel %vm630_vm13, %v614_v35, %v617_v23  ;;  %v635_v46 = vsel %vm633_vm15, %v623_v31, 2102212464  ;;  %v638_v48 = vsel %vm630_vm13, %v617_v23, %v620_v29  ;;  %v639_v1 = vsel %vm633_vm15, %v626_v36, 920167782 }
  0xb5   : > { %v562_v40 = vclz %v981_v34  ;;  %v349_v55 = vshll.u32 %v1365_v37, 30  ;;  %v636_v57 = vsel %vm632_vm14, %v620_v29, %v635_v46  ;;  %v642_v3 = vsel %vm630_vm13, %v620_v29, %v623_v31 }
  0xb6   : > { %vm631_vm0 = vcmp.lt.s32.totalorder %v611_v51, 2  ;;  %v640_v47 = vsel %vm632_vm14, %v623_v31, %v639_v1  ;;  %v643_v6 = vsel %vm633_vm15, %v629_v39, 1326507024  ;;  %vm401_vm2 = vcmp.gt.s32.totalorder %v400_v45, 0 }
  0xb7   : > { %v982_v5 = vadd.s32 4294967294, %v562_v40  ;;  %v1370_v53 = vsub.s32 %v346_v20, %v349_v55  ;;  %v637_v2 = vsel %vm631_vm0, %v634_v42, %v636_v57  ;;  %v641_v38 = vsel %vm631_vm0, %v638_v48, %v640_v47 }
  0xb8   : > { %v644_v50 = vsel %vm632_vm14, %v626_v36, %v643_v6  ;;  %v1374_v22 = vmul.u32.u64.low %v1342_v4, %v641_v38  ;;  %v1375_v24 = vmul.u32.u64.high %v1342_v4, %v641_v38, %v1374_v22  ;;  %v550_v20 = vadd.s32 %v1300_v61, %v1297_v59 }
  0xb9   : > { %vm983_vm1 = vcmp.lt.s32.totalorder %v982_v5, 0  ;;  %v645_v14 = vsel %vm631_vm0, %v642_v3, %v644_v50  ;;  %v352_v25 = vsub.s32 0, %v1370_v53  ;;  %v342_v27 = vadd.s32 %v1327_v44, %v1333_v49 }
  0xba   : > { %v565_v43 = vsel %vm983_vm1, 0, %v982_v5  ;;  %v1380_v23 = vmul.u32.u64.low %v1342_v4, %v645_v14  ;;  %v1381_v26 = vmul.u32.u64.high %v1342_v4, %v645_v14, %v1380_v23  ;;  %v653_v31 = vmul.u32 %v1342_v4, %v637_v2 }
  0xbb   : > { %v566_v52 = vsub.s32 32, %v565_v43  ;;  %v570_v51 = vsub.s32 4294967266, %v565_v43  ;;  %v973_v29 = vmin.u32 %v352_v25, %v1370_v53  ;;  %v402_v32 = vsel %vm401_vm2, %v400_v45, 0 }
  0xbc   : > { %v567_v34 = vshll.u32 %v1351_v13, %v565_v43  ;;  %v656_v39 = vadd.s32 1, %v1375_v24  ;;  %vm655_vm3 = vc.u32 %v1381_v26, %v1374_v22  ;;  %v404_v59 = vand.u32 31, %v402_v32 }
  0xbd   : > { %v568_v35 = vshrl.u32 %v550_v20, %v566_v52  ;;  %v571_v36 = vadd.s32 127, %v570_v51  ;;  %v354_v40 = vclz %v973_v29  ;;  %v1395_v61 = vshll.u32 %v398_v7, 8 }
  0xbe   : > { %v657_v4 = vsel %vm655_vm3, %v656_v39, %v1375_v24  ;;  %v372_v45 = vsub.s32 4, %v1365_v37  ;;  %v1399_v46 = vshrl.u32 %v402_v32, 5  ;;  %v405_v48 = vsub.s32 32, %v404_v59 }
  0xbf   : > { %v569_v44 = vor.u32 %v568_v35, %v567_v34  ;;  %v572_v49 = vshll.u32 %v571_v36, 23  ;;  %v974_v13 = vadd.s32 4294967294, %v354_v40  ;;  %v658_v42 = vadd.s32 %v657_v4, %v653_v31 }
  0xc0   : > { %vm496_vm4 = vcmp.lt.s32.totalorder %v1223_v15, 0  ;;  %v407_v1 = vshll.u32 %v1124_v56, %v404_v59  ;;  %v410_v54 = vshll.u32 %v1125_v58, %v404_v59  ;;  %v408_v3 = vshrl.u32 %v1125_v58, %v405_v48 }
  0xc1   : > { %v573_v55 = vor.u32 4788187, %v572_v49  ;;  %v576_v57 = vcvt.s32.f32 %v569_v44  ;;  %vm975_vm5 = vcmp.lt.s32.totalorder %v974_v13, 0  ;;  %v659_v7 = vadd.s32 536870912, %v658_v42 }
  0xc2   : > { %v413_v5 = vshll.u32 %v1126_v60, %v404_v59  ;;  %v357_v6 = vsel %vm975_vm5, 0, %v974_v13  ;;  %v411_v2 = vshrl.u32 %v1126_v60, %v405_v48  ;;  %v414_v38 = vshrl.u32 %v1127_v62, %v405_v48 }
  0xc3   : > { %v574_v47 = vand.u32 2147483647, %v573_v55  ;;  %v358_v50 = vsub.s32 32, %v357_v6  ;;  %v359_v14 = vshll.u32 %v1370_v53, %v357_v6  ;;  %v362_v24 = vsub.s32 4294967266, %v357_v6 }
  0xc4   : > { %v1409_v43 = vshrl.u32 %v659_v7, 30  ;;  %v409_v23 = vor.u32 %v408_v3, %v407_v1  ;;  %v412_v20 = vor.u32 %v411_v2, %v410_v54  ;;  %v415_v52 = vor.u32 %v414_v38, %v413_v5 }
  0xc5   : > { %v577_v25 = vmul.f32 %v576_v57, %v574_v47  ;;  %v360_v51 = vshrl.u32 %v342_v27, %v358_v50  ;;  %v363_v58 = vadd.s32 127, %v362_v24  ;;  %v416_v31 = vshll.u32 %v1127_v62, %v404_v59 }
  0xc6   : > { %v661_v29 = vshll.u32 %v1409_v43, 30  ;;  %v417_v60 = vshrl.u32 %v1128_v0, %v405_v48  ;;  %v419_v34 = vshll.u32 %v1128_v0, %v404_v59  ;;  %v420_v53 = vshrl.u32 %v1129_v8, %v405_v48 }
  0xc7   : > { %v578_v32 = vxor.u32 2147483648, %v577_v25  ;;  %v361_v35 = vor.u32 %v360_v51, %v359_v14  ;;  %v364_v36 = vshll.u32 %v363_v58, 23  ;;  %vm422_vm6 = vcmp.lt.s32.totalorder %v1399_v46, 1 }
  0xc8   : > { %v662_v39 = vsub.s32 %v658_v42, %v661_v29  ;;  %v406_v40 = vshrl.u32 %v1124_v56, %v405_v48  ;;  %v418_v27 = vor.u32 %v417_v60, %v416_v31  ;;  %v421_v44 = vor.u32 %v420_v53, %v419_v34 }
  0xc9   : > { %vm423_vm7 = vcmp.lt.s32.totalorder %v1399_v46, 2  ;;  %v579_v62 = vsel %vm496_vm4, %v578_v32, %v577_v25  ;;  %v365_v49 = vor.u32 4788187, %v364_v36  ;;  %vm425_vm8 = vcmp.lt.s32.totalorder %v1399_v46, 4 }
  0xca   : > { %v664_v4 = vsub.s32 0, %v662_v39  ;;  %vm424_vm9 = vcmp.lt.s32.totalorder %v1399_v46, 3  ;;  %v427_v0 = vsel %vm425_vm8, %v415_v52, 2102212464  ;;  %v430_v8 = vsel %vm422_vm6, %v409_v23, %v412_v20 }
  0xcb   : > { %v431_v59 = vsel %vm425_vm8, %v418_v27, 920167782  ;;  %v366_v13 = vand.u32 2147483647, %v365_v49  ;;  %v368_v56 = vcvt.s32.f32 %v361_v35  ;;  %v426_v55 = vsel %vm422_vm6, %v406_v40, %v409_v23 }
  0xcc   : > { %v985_v42 = vmin.u32 %v664_v4, %v662_v39  ;;  %v432_v48 = vsel %vm424_vm9, %v415_v52, %v431_v59  ;;  %v434_v1 = vsel %vm422_vm6, %v412_v20, %v415_v52  ;;  %v435_v54 = vsel %vm425_vm8, %v421_v44, 1326507024 }
  0xcd   : > { %v433_v57 = vsel %vm423_vm7, %v430_v8, %v432_v48  ;;  %v369_v7 = vmul.f32 %v368_v56, %v366_v13  ;;  %v428_v5 = vsel %vm424_vm9, %v412_v20, %v427_v0  ;;  %v436_v47 = vsel %vm424_vm9, %v418_v27, %v435_v54 }
  0xce   : > { %v666_v3 = vclz %v985_v42  ;;  %v437_v6 = vsel %vm423_vm7, %v434_v1, %v436_v47  ;;  %v1434_v2 = vmul.u32.u64.low %v1395_v61, %v433_v57  ;;  %v1435_v38 = vmul.u32.u64.high %v1395_v61, %v433_v57, %v1434_v2 }
  0xcf   : > { %vm1440_vm10 = vcmp.le.f32.partialorder %v494_v19, 0.7853982  ;;  %v370_v14 = vxor.u32 2147483648, %v369_v7  ;;  %v1445_v25 = vmul.u32.u64.low %v1395_v61, %v437_v6  ;;  %v1446_v23 = vmul.u32.u64.high %v1395_v61, %v437_v6, %v1445_v25 }
  0xd0   : > { %v986_v24 = vadd.s32 4294967294, %v666_v3  ;;  %vm288_vm11 = vcmp.lt.s32.totalorder %v1227_v16, 0  ;;  %v429_v20 = vsel %vm423_vm7, %v426_v55, %v428_v5  ;;  %vm1453_vm12 = vcmp.le.f32.partialorder %v286_v21, 0.7853982  ;;  %v777_v5 = vld [vmem:[%s1566_s2 + $0x10] sm:$0xff] }
  0xd1   : > { %v582_v19 = vsel %vm1440_vm10, %v1223_v15, %v579_v62  ;;  %v371_v51 = vsel %vm288_vm11, %v370_v14, %v369_v7  ;;  %v654_v58 = vadd.s32 %v1374_v22, %v1381_v26  ;;  %v373_v46 = vsel %vm288_vm11, %v372_v45, %v1365_v37 }
  0xd2   : > { %vm987_vm13 = vcmp.lt.s32.totalorder %v986_v24, 0  ;;  %v448_v31 = vadd.s32 1, %v1435_v38  ;;  %v374_v21 = vsel %vm1453_vm12, %v1227_v16, %v371_v51  ;;  %1083 = vcosq.f32 %v582_v19 }
  0xd3   : > { %v669_v29 = vsel %vm987_vm13, 0, %v986_v24  ;;  %v445_v34 = vmul.u32 %v1395_v61, %v429_v20  ;;  %v580_v53 = vsub.s32 4, %v1337_v63  ;;  %vm447_vm14 = vc.u32 %v1446_v23, %v1434_v2 }
  0xd4   : > { %v670_v32 = vsub.s32 32, %v669_v29  ;;  %v674_v60 = vsub.s32 4294967266, %v669_v29  ;;  %v671_v22 = vshll.u32 %v662_v39, %v669_v29  ;;  %v375_v37 = vsel %vm1453_vm12, 0, %v373_v46  ;;  %v709_v29 = vpop.permute.xlu0 %708 }
  0xd5   : > { %1085 = vcosq.f32 %v374_v21  ;;  %v449_v35 = vsel %vm447_vm14, %v448_v31, %v1435_v38  ;;  %v581_v61 = vsel %vm496_vm4, %v580_v53, %v1337_v63  ;;  %v379_v44 = vadd.s32 3, %v375_v37 }
  0xd6   : > { %v672_v26 = vshrl.u32 %v654_v58, %v670_v32  ;;  %v675_v45 = vadd.s32 127, %v674_v60  ;;  %1087 = vsinq.f32 %v374_v21  ;;  %v450_v36 = vadd.s32 %v449_v35, %v445_v34 }
  0xd7   : > { %v583_v62 = vsel %vm1440_vm10, 0, %v581_v61  ;;  %1089 = vsinq.f32 %v582_v19  ;;  %v380_v42 = vand.u32 3, %v379_v44  ;;  %v684_v48 = vsub.s32 4, %v1409_v43 }
  0xd8   : > { %v673_v40 = vor.u32 %v672_v26, %v671_v22  ;;  %v676_v27 = vshll.u32 %v675_v45, 23  ;;  %v451_v39 = vadd.s32 536870912, %v450_v36  ;;  %v587_v0 = vadd.s32 3, %v583_v62 }
  0xd9   : > { %vm600_vm15 = vcmp.lt.s32.totalorder %v1241_v28, 0  ;;  %vm1488_vm0 = vcmp.le.f32.partialorder %v598_v33, 0.7853982  ;;  %vm385_vm1 = vcmp.eq.s32.totalorder %v380_v42, 2  ;;  %vm381_vm2 = vcmp.lt.s32.totalorder %v380_v42, 2 }
  0xda   : > { %v677_v49 = vor.u32 4788187, %v676_v27  ;;  %v1481_v4 = vshrl.u32 %v451_v39, 30  ;;  %v680_v59 = vcvt.s32.f32 %v673_v40  ;;  %v588_v1 = vand.u32 3, %v587_v0  ;;  %v719_v27 = vpop.permute.xlu0 %718 }
  0xdb   : > { %v685_v50 = vsel %vm600_vm15, %v684_v48, %v1409_v43  ;;  %vm382_vm3 = vcmp.eq.s32.totalorder %v380_v42, 0  ;;  %vm378_vm5 = vweird.f32 %v1227_v16  ;;  %vm586_vm8 = vweird.f32 %v1223_v15  ;;  %v775_v48 = vld [vmem:[%s1566_s2] sm:$0xff] }
  0xdc   : > { %v678_v8 = vand.u32 2147483647, %v677_v49  ;;  %v1084_v13 = vpop.eup %1083  ;;  %v453_v56 = vshll.u32 %v1481_v4, 30  ;;  %vm593_vm4 = vcmp.eq.s32.totalorder %v588_v1, 2  ;;  %v687_v43 = vsel %vm1488_vm0, 0, %v685_v50 }
  0xdd   : > { %v594_v47 = vxor.u32 2147483648, %v1084_v13  ;;  %vm590_vm6 = vcmp.eq.s32.totalorder %v588_v1, 0  ;;  %vm589_vm7 = vcmp.lt.s32.totalorder %v588_v1, 2  ;;  %v691_v53 = vadd.s32 3, %v687_v43 }
  0xde   : > { %v681_v55 = vmul.f32 %v680_v59, %v678_v8  ;;  %v454_v57 = vsub.s32 %v450_v36, %v453_v56  ;;  %vm734_vm10 = vcmask 138240   ;;  %v446_v16 = vadd.s32 %v1434_v2, %v1446_v23 }
  0xdf   : > { %v1086_v63 = vpop.eup %1085  ;;  %v692_v61 = vand.u32 3, %v691_v53  ;;  %vm690_vm14 = vweird.f32 %v1241_v28 }
  0xe0   : > { %v1088_v54 = vpop.eup %1087  ;;  %v682_v7 = vxor.u32 2147483648, %v681_v55  ;;  %v386_v3 = vxor.u32 2147483648, %v1086_v63  ;;  %v456_v6 = vsub.s32 0, %v454_v57 }
  0xe1   : > { %v383_v38 = vxor.u32 2147483648, %v1088_v54  ;;  %v1090_v25 = vpop.eup %1089  ;;  %vm697_vm11 = vcmp.eq.s32.totalorder %v692_v61, 2  ;;  %vm694_vm12 = vcmp.eq.s32.totalorder %v692_v61, 0  ;;  %vm693_vm13 = vcmp.lt.s32.totalorder %v692_v61, 2 }
  0xe2   : > { %v683_v14 = vsel %vm600_vm15, %v682_v7, %v681_v55  ;;  %v387_v24 = vsel %vm385_vm1, %v386_v3, %v1088_v54  ;;  %v977_v20 = vmin.u32 %v456_v6, %v454_v57  ;;  %v591_v51 = vxor.u32 2147483648, %v1090_v25 }
  0xe3   : > { %v384_v52 = vsel %vm382_vm3, %v1086_v63, %v383_v38  ;;  %v686_v33 = vsel %vm1488_vm0, %v1241_v28, %v683_v14  ;;  %v595_v58 = vsel %vm593_vm4, %v594_v47, %v1090_v25  ;;  %v476_v54 = vsub.s32 4, %v1481_v4 }
  0xe4   : > { %v388_v19 = vsel %vm381_vm2, %v384_v52, %v387_v24  ;;  %1091 = vcosq.f32 %v686_v33  ;;  %v458_v46 = vclz %v977_v20  ;;  %v592_v21 = vsel %vm590_vm6, %v1084_v13, %v591_v51  ;;  %v714_v13 = vpop.permute.xlu1 %713 }
  0xe5   : > { %v389_v31 = vsel %vm378_vm5, nan, %v388_v19  ;;  %1093 = vsinq.f32 %v686_v33  ;;  %v596_v34 = vsel %vm589_vm7, %v592_v21, %v595_v58  ;;  %vm392_vm15 = vcmp.lt.s32.totalorder %v1245_v30, 0 }
  0xe6   : > { %v978_v32 = vadd.s32 4294967294, %v458_v46  ;;  %v702_v60 = vmul.f32 %v389_v31, %v389_v31  ;;  %v597_v22 = vsel %vm586_vm8, nan, %v596_v34  ;;  %vm391_vm0 = vcmp.le.f32.partialorder %v390_v41, 0.7853982  ;;  %v1081_v31 = vld [vmem:[%s1565_s1] sm:$0xff]  }
  0xe7   : > { %v704_v26 = vmul.f32 %v597_v22, %v597_v22  ;;  %v477_v28 = vsel %vm392_vm15, %v476_v54, %v1481_v4  ;;  %vm482_vm4 = vweird.f32 %v1245_v30  ;;  %vm809_vm5 = vcmask 523264  }
  0xe8   : > { %vm979_vm9 = vcmp.lt.s32.totalorder %v978_v32, 0  ;;  %v726_v37 = vmul.f32 %v709_v29, %v702_v60  ;;  %v724_v6 = vpop.permute.xlu1 %723  ;;  %v479_v25 = vsel %vm391_vm0, 0, %v477_v28  ;;  %1027 = vmatprep.mubr.msk.bf16.mxu0 %vm809_vm5, %v1081_v31  ;;  %v778_v60 = vld [vmem:[%s1566_s2 + $0x18] sm:$0xff]  ;;  %vm881_vm6 = vcmask 134144  }
  0xe9   : > { %v461_v45 = vsel %vm979_vm9, 0, %v978_v32  ;;  %v728_v39 = vmul.f32 %v719_v27, %v704_v26  ;;  %v483_v20 = vadd.s32 3, %v479_v25 }
  0xea   : > { %v462_v35 = vsub.s32 32, %v461_v45  ;;  %v466_v36 = vsub.s32 4294967266, %v461_v45  ;;  %v730_v40 = vadd.f32 %v1006_v12, %v726_v37  ;;  %v463_v15 = vshll.u32 %v454_v57, %v461_v45 }
  0xeb   : > { %v732_v2 = vadd.f32 %v1010_v11, %v728_v39  ;;  %v484_v52 = vand.u32 3, %v483_v20  ;;  %v1082_v39 = vld [vmem:[%s1565_s1 + $0x8] sm:$0xff]  }
  0xec   : > { %v464_v44 = vshrl.u32 %v446_v16, %v462_v35  ;;  %v467_v62 = vadd.s32 127, %v466_v36  ;;  %735 = vst.msk [vmem:[#allocation2] sm:$0xff] %vm734_vm10, %v730_v40  ;;  %743 = vrot.lane.b32.xlu0 %v730_v40, %s1130_s17 }
  0xed   : > { %737 = vst.msk [vmem:[#allocation2 + $0x10] sm:$0xff] %vm734_vm10, %v732_v2  ;;  %vm489_vm1 = vcmp.eq.s32.totalorder %v484_v52, 2  ;;  %vm486_vm2 = vcmp.eq.s32.totalorder %v484_v52, 0  ;;  %vm485_vm3 = vcmp.lt.s32.totalorder %v484_v52, 2 }
  0xee   : > { %v1092_v49 = vpop.eup %1091  ;;  %v465_v23 = vor.u32 %v464_v44, %v463_v15  ;;  %v468_v0 = vshll.u32 %v467_v62, 23 }
  0xef   : > { %v698_v8 = vxor.u32 2147483648, %v1092_v49  ;;  %v1094_v59 = vpop.eup %1093 }
  0xf0   : > { %v469_v12 = vor.u32 4788187, %v468_v0  ;;  %v695_v56 = vxor.u32 2147483648, %v1094_v59  ;;  %747 = vrot.lane.b32.xlu0 %v732_v2, %s1130_s17  ;;  %v472_v11 = vcvt.s32.f32 %v465_v23 }
  0xf1   : > { %v699_v42 = vsel %vm697_vm11, %v698_v8, %v1094_v59 }
  0xf2   : > { %v470_v55 = vand.u32 2147483647, %v469_v12  ;;  %v696_v63 = vsel %vm694_vm12, %v1092_v49, %v695_v56 }
  0xf3   : > { %v700_v57 = vsel %vm693_vm13, %v696_v63, %v699_v42  ;;  %v759_v21 = vld [vmem:[#allocation2] sm:$0xff] }
  0xf4   : > { %v473_v1 = vmul.f32 %v472_v11, %v470_v55  ;;  %v701_v7 = vsel %vm690_vm14, nan, %v700_v57  ;;  %781 = vperm.xlu0 %1079, %v775_v48   ;;  %v761_v34 = vld [vmem:[#allocation2 + $0x10] sm:$0xff] }
  0xf5   : > { %v705_v3 = vmul.f32 %v701_v7, %v701_v7 }
  0xf6   : > { %v474_v47 = vxor.u32 2147483648, %v473_v1 }
  0xf7   : > { %v729_v38 = vmul.f32 %v724_v6, %v705_v3 }
  0xf8   : > { %v475_v50 = vsel %vm392_vm15, %v474_v47, %v473_v1  ;;  %791 = vperm.xlu0 %1079, %v777_v5  }
  0xf9   : > { %v478_v14 = vsel %vm391_vm0, %v1245_v30, %v475_v50  ;;  %v733_v24 = vadd.f32 %v1011_v17, %v729_v38  ;;  %v776_v30 = vld [vmem:[%s1566_s2 + $0x8] sm:$0xff] }
  0xfa   : > { %1095 = vcosq.f32 %v478_v14 }
  0xfb   : > { %1097 = vsinq.f32 %v478_v14  ;;  %738 = vst.msk [vmem:[#allocation2 + $0x18] sm:$0xff] %vm734_vm10, %v733_v24 }
 0x104   : > { %v1096_v33 = vpop.eup %1095 }
 0x105   : > { %v1098_v19 = vpop.eup %1097  ;;  %v490_v51 = vxor.u32 2147483648, %v1096_v33 }
 0x106   : > { %v487_v58 = vxor.u32 2147483648, %v1098_v19 }
 0x107   : > { %v491_v41 = vsel %vm489_vm1, %v490_v51, %v1098_v19 }
 0x108   : > { %v488_v4 = vsel %vm486_vm2, %v1096_v33, %v487_v58 }
 0x109   : > { %v492_v9 = vsel %vm485_vm3, %v488_v4, %v491_v41 }
 0x10a   : > { %v493_v17 = vsel %vm482_vm4, nan, %v492_v9 }
 0x10b   : > { %v703_v46 = vmul.f32 %v493_v17, %v493_v17 }
 0x10d   : > { %v727_v29 = vmul.f32 %v714_v13, %v703_v46 }
 0x10f   : > { %v731_v43 = vadd.f32 %v1007_v18, %v727_v29  ;;  %v762_v18 = vld [vmem:[#allocation2 + $0x18] sm:$0xff] }
 0x110   : > { %v768_v53 = vpack.c.bf16 %v762_v18, %v761_v34 }
 0x111   : > { %736 = vst.msk [vmem:[#allocation2 + $0x8] sm:$0xff] %vm734_vm10, %v731_v43  ;;  %745 = vrot.lane.b32.xlu1 %v731_v43, %s1130_s17 }
 0x115   : > { %749 = vrot.lane.b32.xlu1 %v733_v24, %s1130_s17 }
 0x118   : > { %v760_v10 = vld [vmem:[#allocation2 + $0x8] sm:$0xff] }
 0x119   : > { %786 = vperm.xlu1 %1080, %v776_v30   ;;  %v767_v32 = vpack.c.bf16 %v760_v10, %v759_v21 }
 0x11b   : > { %1019 = vmatprep.subr.bf16.mxu0 %v767_v32 }
 0x11c   : > { %1020 = vmatpush3.bf16.msra.mxu0 %v767_v32 }
 0x11d   : > { %796 = vperm.xlu1 %1080, %v778_v60   ;;  %1021 = vmatprep.subr.bf16.mxu0 %v768_v53 }
 0x120   : > { %1022 = vmatpush3.bf16.msra.mxu0 %v768_v53 }
 0x15e   : > { %v744_v22 = vpop.permute.xlu0 %743 }
 0x15f   : > { %755 = vst.msk [vmem:[#allocation2 + $0x20] sm:$0xff] %vm734_vm10, %v744_v22 }
 0x162   : > { %v748_v37 = vpop.permute.xlu0 %747 }
 0x163   : > { %757 = vst.msk [vmem:[#allocation2 + $0x30] sm:$0xff] %vm734_vm10, %v748_v37 }
 0x166   : > { %v763_v16 = vld [vmem:[#allocation2 + $0x20] sm:$0xff] }
 0x16a   : > { %v765_v40 = vld [vmem:[#allocation2 + $0x30] sm:$0xff] }
 0x173   : > { %v782_v15 = vpop.permute.xlu0 %781 }
 0x177   : > { %v792_v62 = vpop.permute.xlu0 %791 }
 0x183   : > { %v746_v26 = vpop.permute.xlu1 %745 }
 0x184   : > { %756 = vst.msk [vmem:[#allocation2 + $0x28] sm:$0xff] %vm734_vm10, %v746_v26 }
 0x187   : > { %v750_v45 = vpop.permute.xlu1 %749 }
 0x188   : > { %758 = vst.msk [vmem:[#allocation2 + $0x38] sm:$0xff] %vm734_vm10, %v750_v45 }
 0x18b   : > { %v764_v35 = vld [vmem:[#allocation2 + $0x28] sm:$0xff] }
 0x18c   : > { %v769_v36 = vpack.c.bf16 %v764_v35, %v763_v16 }
 0x18e   : > { %1023 = vmatprep.subr.bf16.mxu0 %v769_v36 }
 0x18f   : > { %1024 = vmatpush3.bf16.msra.mxu0 %v769_v36  ;;  %v766_v27 = vld [vmem:[#allocation2 + $0x38] sm:$0xff] }
 0x190   : > { %v770_v61 = vpack.c.bf16 %v766_v27, %v765_v40 }
 0x192   : > { %1025 = vmatprep.subr.bf16.mxu0 %v770_v61 }
 0x193   : > { %1026 = vmatpush3.bf16.msra.mxu0 %v770_v61 }
 0x196   : > { %1028 = vmatmul.mubr.msk.bf16.vlgmr.msra.gmra.mrb[0].mxu0 %vm809_vm5, %v1082_v39 }
 0x198   : > { %v787_v44 = vpop.permute.xlu1 %786 }
 0x19c   : > { %v797_v0 = vpop.permute.xlu1 %796 }
 0x269   : > { %v1029_v49 = vpop.f32.mrb[0].mxu0 }
 0x26a   : > { %v859_v2 = vadd.f32 %v1029_v49, %v792_v62  ;;  %v850_v23 = vpop.f32.mrb[1].mxu0 }
 0x26b   : > { %v851_v8 = vadd.f32 %v850_v23, %v782_v15  ;;  %v1030_v59 = vpop.f32.mrb[2].mxu0 }
 0x26c   : > { %v1002_v12 = vpack.c.bf16 %v859_v2, %v859_v2  ;;  %v862_v13 = vadd.f32 %v1030_v59, %v797_v0  ;;  %v853_v56 = vpop.f32.mrb[3].mxu0 }
 0x26d   : > { %v1000_v42 = vpack.c.bf16 %v851_v8, %v851_v8  ;;  %v854_v48 = vadd.f32 %v853_v56, %v787_v44 }
 0x26e   : > { %884 = vst.msk [vmem:[%s244_s11 + $0x8] sm:$0xf] %vm881_vm6, %v1002_v12  ;;  %v1003_v55 = vpack.c.bf16 %v862_v13, %v862_v13 }
 0x26f   : > { %882 = vst.msk [vmem:[%s244_s11] sm:$0xf] %vm881_vm6, %v1000_v42  ;;  %v1001_v11 = vpack.c.bf16 %v854_v48, %v854_v48 }
 0x270   : > { %885 = vst.msk [vmem:[%s244_s11 + $0xc] sm:$0xf] %vm881_vm6, %v1003_v55 }
 0x271   : > { %883 = vst.msk [vmem:[%s244_s11 + $0x4] sm:$0xf] %vm881_vm6, %v1001_v11 }
 0x272 PF: > { %s15_s20 = sadd.s32 1, %s1121_s20   ;;  %s1576_s18 = smov %s1117_s19 }
 0x273   : > { %p12_p5 = scmp.ge.s32.totalorder %s15_s20, 4   ;;  %s1577_s19 = smov %s1579_s21 }
 0x275   :  { %14 = sbr.rel (!%p12_p5) target bundleno = 2 (0x2), region = 70 }

// kernel: decoder_pallas.18
= control target key start
LH: loop header
LB: loop body
LE: loop exit
PB: predicated region body
PF: predicated region fallthrough
CT: control target
= control target key end

     0   :  { %s900_s18 = smov 0   ;;  %s902_s19 = smov 0   ;;  %s1063_s0 = inlined_call_operand.vmem [shape: bf16[2,16,38], index: 0, kind: input, shape index: {}]   ;;  %s1064_s1 = inlined_call_operand.vmem [shape: bf16[16,112], index: 1, kind: input, shape index: {}]   ;;  %s1065_s2 = inlined_call_operand.vmem [shape: f32[16,1], index: 2, kind: input, shape index: {}]   ;;  %s1066_s3 = inlined_call_operand.vmem [shape: f32[16,1], index: 3, kind: input, shape index: {}]   ;;  %s1067_s4 = inlined_call_operand.vmem [shape: f32[16,1], index: 4, kind: input, shape index: {}]   ;;  %s1068_s5 = inlined_call_operand.vmem [shape: bf16[2,16,32], index: 5, kind: output, shape index: {}]  }
   0x1   :  { %s904_s20 = smov 0  }
   0x2 LB: > { %s27_s21 = sadd.s32 1, %s849_s19  ;;  %p720_p0 = scmp.ge.s32.totalorder %s853_s20, 1  ;;  %s853_s20 = sphi %s904_s20, %s15_s20   ;;  %s849_s19 = sphi %s902_s19, %s1072_s19   ;;  %s845_s18 = sphi %s900_s18, %s1071_s18  }
   0x3   : > { %p29_p1 = scmp.ge.s32.totalorder %s27_s21, 2  ;;  %p201_p2 = scmp.lt.s32.totalorder %s853_s20, 3 }
   0x5   : > { %s1074_s21 = smov (%p29_p1, %s27_s21), 0  ;;  %p202_p3 = pnand %p720_p0, %p201_p2 }
   0x6   : > { %v250_v0 = vld [vmem:[%s1066_s3] sm:$0xff] (!%p202_p3)  ;;  %v855_v2 = vmov (!%p202_p3), 0   ;;  %v251_v3 = vld [vmem:[%s1066_s3 + $0x8] sm:$0xff] (!%p202_p3)  ;;  %p232_p4 = scmp.lt.s32.totalorder (!%p202_p3), %s845_s18, 1  ;;  %v856_v5 = vmov (!%p202_p3), 0.0   ;;  %s863_s9 = smov (!%p202_p3), 127  }
   0x7   : > { %205 = sbr.rel (%p202_p3) target bundleno = 601 (0x259), region = 40  ;;  %v252_v1 = vld [vmem:[%s1067_s4] sm:$0xff] (!%p202_p3)  ;;  %820 = vset.pattern.permute.xlu0 (!%p202_p3), %v855_v2  ;;  %821 = vset.pattern.permute.xlu1 (!%p202_p3), %v855_v2  ;;  %v253_v4 = vld [vmem:[%s1067_s4 + $0x8] sm:$0xff] (!%p202_p3)  ;;  %v857_v29 = vmov (!%p202_p3), 683565275   ;;  %s864_s10 = smov (!%p202_p3), 126  }
   0x8   : > { %256 = vperm.xlu0 (!%p202_p3), %820, %v250_v0   ;;  %478 = vperm.xlu1 (!%p202_p3), %821, %v252_v1   ;;  %v858_v33 = vmov (!%p202_p3), 2475754826   ;;  %v859_v35 = vmov (!%p202_p3), 2131351028   ;;  %v860_v37 = vmov (!%p202_p3), 2102212464  }
   0x9   : > { %755 = vmatprep.subr.bf16.mxu0 (!%p202_p3), %v856_v5  ;;  %v861_v39 = vmov (!%p202_p3), 920167782   ;;  %v862_v46 = vmov (!%p202_p3), 1326507024   ;;  %s865_s11 = smov (!%p202_p3), 125   ;;  %s866_s12 = smov (!%p202_p3), 124  }
   0xa   : > { %s867_s13 = smov (!%p202_p3), 123   ;;  %s868_s14 = smov (!%p202_p3), 122  }
   0xc   : > { %261 = vperm.xlu0 (!%p202_p3), %820, %v251_v3   ;;  %483 = vperm.xlu1 (!%p202_p3), %821, %v253_v4  }
   0xe   : > { %s1076_s18 = smov (!%p232_p4, %s845_s18), 1 }
   0xf   : > { %s739_s30 = sshll.u32 %s1076_s18, 3 }
  0x10   : > { %s236_s8 = scalar_lea.vmem %s1063_s0, %s739_s30  ;;  %s244_s27 = scalar_lea.vmem %s1068_s5, %s739_s30 }
  0x11   : > { %v939_v6 = vld [vmem:[%s236_s8] sm:$0xff]  }
  0x12   : > { %v745_v7 = vunpack.c.l.bf16 %v939_v6  ;;  %v746_v10 = vunpack.c.h.bf16 %v939_v6  ;;  %v566_v6 = vld [vmem:[%s1065_s2] sm:$0xff] }
  0x87   : > { %v257_v8 = vpop.permute.xlu0 %256 }
  0x88   : > { %v944_v9 = vmul.f32 %v745_v7, %v257_v8 }
  0x8a   : > { %v266_v11 = vand.u32 2147483647, %v944_v9  ;;  %v269_v12 = vand.u32 2139095040, %v944_v9  ;;  %vm268_vm14 = vcmp.lt.s32.totalorder %v944_v9, 0 }
  0x8b   : > { %v262_v13 = vpop.permute.xlu0 %261 }
  0x8c   : > { %v270_v14 = vshrl.u32 %v269_v12, 23  ;;  %v951_v15 = vmul.f32 %v746_v10, %v262_v13  ;;  %v273_v16 = vand.u32 8388607, %v266_v11  ;;  %vm267_vm15 = vcmp.le.f32.partialorder %v266_v11, 0.7853982 }
  0x8e   : > { %v725_v17 = vadd.s32 4294967169, %v270_v14  ;;  %v373_v18 = vand.u32 2139095040, %v951_v15  ;;  %v274_v20 = vor.u32 8388608, %v273_v16  ;;  %v370_v22 = vand.u32 2147483647, %v951_v15 }
  0x90   : > { %v276_v19 = vadd.s32 1, %v725_v17  ;;  %v374_v21 = vshrl.u32 %v373_v18, 23  ;;  %v957_v27 = vshll.u32 %v274_v20, 8  ;;  %v377_v31 = vand.u32 8388607, %v370_v22 }
  0x92   : > { %vm277_vm0 = vcmp.gt.s32.totalorder %v276_v19, 0  ;;  %v729_v24 = vadd.s32 4294967169, %v374_v21  ;;  %v378_v61 = vor.u32 8388608, %v377_v31 }
  0x93   : > { %v278_v23 = vsel %vm277_vm0, %v276_v19, 0  ;;  %vm372_vm0 = vcmp.lt.s32.totalorder %v951_v15, 0 }
  0x94   : > { %v279_v25 = vshrl.u32 %v278_v23, 5  ;;  %v280_v26 = vand.u32 31, %v278_v23  ;;  %v380_v32 = vadd.s32 1, %v729_v24  ;;  %v418_v17 = vshll.u32 %v378_v61, 8 }
  0x96   : > { %v281_v28 = vsub.s32 32, %v280_v26  ;;  %v283_v30 = vshll.u32 %v857_v29, %v280_v26  ;;  %v286_v34 = vshll.u32 %v858_v33, %v280_v26  ;;  %v289_v36 = vshll.u32 %v859_v35, %v280_v26 }
  0x97   : > { %v292_v38 = vshll.u32 %v860_v37, %v280_v26  ;;  %v295_v40 = vshll.u32 %v861_v39, %v280_v26  ;;  %vm298_vm1 = vcmp.lt.s32.totalorder %v279_v25, 1  ;;  %vm300_vm2 = vcmp.lt.s32.totalorder %v279_v25, 3 }
  0x98   : > { %v284_v41 = vshrl.u32 %v858_v33, %v281_v28  ;;  %v287_v42 = vshrl.u32 %v859_v35, %v281_v28  ;;  %v290_v43 = vshrl.u32 %v860_v37, %v281_v28  ;;  %v282_v44 = vshrl.u32 %v857_v29, %v281_v28 }
  0x99   : > { %v293_v45 = vshrl.u32 %v861_v39, %v281_v28  ;;  %v296_v47 = vshrl.u32 %v862_v46, %v281_v28  ;;  %vm381_vm3 = vcmp.gt.s32.totalorder %v380_v32, 0  ;;  %vm301_vm4 = vcmp.lt.s32.totalorder %v279_v25, 4 }
  0x9a   : > { %v285_v48 = vor.u32 %v284_v41, %v283_v30  ;;  %v288_v49 = vor.u32 %v287_v42, %v286_v34  ;;  %v291_v50 = vor.u32 %v290_v43, %v289_v36  ;;  %v382_v53 = vsel %vm381_vm3, %v380_v32, 0 }
  0x9b   : > { %v294_v51 = vor.u32 %v293_v45, %v292_v38  ;;  %v297_v52 = vor.u32 %v296_v47, %v295_v40  ;;  %vm299_vm5 = vcmp.lt.s32.totalorder %v279_v25, 2  ;;  %v384_v0 = vand.u32 31, %v382_v53 }
  0x9c   : > { %v302_v54 = vsel %vm298_vm1, %v282_v44, %v285_v48  ;;  %v303_v55 = vsel %vm301_vm4, %v291_v50, 2102212464  ;;  %v306_v56 = vsel %vm298_vm1, %v285_v48, %v288_v49  ;;  %v310_v57 = vsel %vm298_vm1, %v288_v49, %v291_v50 }
  0x9d   : > { %v304_v58 = vsel %vm300_vm2, %v288_v49, %v303_v55  ;;  %v307_v59 = vsel %vm301_vm4, %v294_v51, 920167782  ;;  %v311_v60 = vsel %vm301_vm4, %v297_v52, 1326507024  ;;  %v383_v14 = vshrl.u32 %v382_v53, 5 }
  0x9e   : > { %v308_v62 = vsel %vm300_vm2, %v291_v50, %v307_v59  ;;  %v312_v63 = vsel %vm300_vm2, %v294_v51, %v311_v60  ;;  %v305_v1 = vsel %vm299_vm5, %v302_v54, %v304_v58  ;;  %v385_v16 = vsub.s32 32, %v384_v0 }
  0x9f   : > { %v309_v2 = vsel %vm299_vm5, %v306_v56, %v308_v62  ;;  %v313_v3 = vsel %vm299_vm5, %v310_v57, %v312_v63  ;;  %v321_v18 = vmul.u32 %v957_v27, %v305_v1  ;;  %v387_v19 = vshll.u32 %v857_v29, %v384_v0 }
  0xa0   : > { %v970_v4 = vmul.u32.u64.low %v957_v27, %v313_v3  ;;  %v971_v8 = vmul.u32.u64.high %v957_v27, %v313_v3, %v970_v4  ;;  %v974_v12 = vmul.u32.u64.low %v957_v27, %v309_v2  ;;  %v975_v13 = vmul.u32.u64.high %v957_v27, %v309_v2, %v974_v12 }
  0xa1   : > { %v390_v20 = vshll.u32 %v858_v33, %v384_v0  ;;  %v393_v21 = vshll.u32 %v859_v35, %v384_v0  ;;  %v388_v23 = vshrl.u32 %v858_v33, %v385_v16  ;;  %v391_v24 = vshrl.u32 %v859_v35, %v385_v16 }
  0xa2   : > { %v394_v25 = vshrl.u32 %v860_v37, %v385_v16  ;;  %v396_v26 = vshll.u32 %v860_v37, %v384_v0  ;;  %vm323_vm6 = vc.u32 %v971_v8, %v974_v12  ;;  %v324_v28 = vadd.s32 1, %v975_v13 }
  0xa3   : > { %v397_v30 = vshrl.u32 %v861_v39, %v385_v16  ;;  %v399_v31 = vshll.u32 %v861_v39, %v384_v0  ;;  %v389_v32 = vor.u32 %v388_v23, %v387_v19  ;;  %v392_v34 = vor.u32 %v391_v24, %v390_v20 }
  0xa4   : > { %v395_v36 = vor.u32 %v394_v25, %v393_v21  ;;  %v400_v38 = vshrl.u32 %v862_v46, %v385_v16  ;;  %v325_v27 = vsel %vm323_vm6, %v324_v28, %v975_v13  ;;  %vm402_vm7 = vcmp.lt.s32.totalorder %v383_v14, 1 }
  0xa5   : > { %v398_v40 = vor.u32 %v397_v30, %v396_v26  ;;  %vm405_vm8 = vcmp.lt.s32.totalorder %v383_v14, 4  ;;  %v326_v33 = vadd.s32 %v325_v27, %v321_v18  ;;  %vm404_vm9 = vcmp.lt.s32.totalorder %v383_v14, 3 }
  0xa6   : > { %v401_v35 = vor.u32 %v400_v38, %v399_v31  ;;  %v407_v37 = vsel %vm405_vm8, %v395_v36, 2102212464  ;;  %v386_v41 = vshrl.u32 %v857_v29, %v385_v16  ;;  %v410_v42 = vsel %vm402_vm7, %v389_v32, %v392_v34 }
  0xa7   : > { %v411_v43 = vsel %vm405_vm8, %v398_v40, 920167782  ;;  %v414_v44 = vsel %vm402_vm7, %v392_v34, %v395_v36  ;;  %v327_v45 = vadd.s32 536870912, %v326_v33  ;;  %vm403_vm10 = vcmp.lt.s32.totalorder %v383_v14, 2 }
  0xa8   : > { %v412_v39 = vsel %vm404_vm9, %v395_v36, %v411_v43  ;;  %v415_v47 = vsel %vm405_vm8, %v401_v35, 1326507024  ;;  %v406_v48 = vsel %vm402_vm7, %v386_v41, %v389_v32  ;;  %v408_v46 = vsel %vm404_vm9, %v392_v34, %v407_v37 }
  0xa9   : > { %v413_v49 = vsel %vm403_vm10, %v410_v42, %v412_v39  ;;  %v416_v50 = vsel %vm404_vm9, %v398_v40, %v415_v47  ;;  %v328_v51 = vshrl.u32 %v327_v45, 30  ;;  %v409_v57 = vsel %vm403_vm10, %v406_v48, %v408_v46 }
  0xaa   : > { %v417_v52 = vsel %vm403_vm10, %v414_v44, %v416_v50  ;;  %v985_v53 = vmul.u32.u64.low %v418_v17, %v413_v49  ;;  %v986_v54 = vmul.u32.u64.high %v418_v17, %v413_v49, %v985_v53  ;;  %v425_v60 = vmul.u32 %v418_v17, %v409_v57 }
  0xab   : > { %v988_v55 = vmul.u32.u64.low %v418_v17, %v417_v52  ;;  %v989_v56 = vmul.u32.u64.high %v418_v17, %v417_v52, %v988_v55  ;;  %v329_v29 = vshll.u32 %v328_v51, 30  ;;  %v322_v18 = vadd.s32 %v974_v12, %v971_v8 }
  0xac   : > { %v428_v59 = vadd.s32 1, %v986_v54  ;;  %v352_v40 = vsub.s32 4, %v328_v51  ;;  %vm1004_vm1 = vcmp.le.f32.partialorder %v370_v22, 0.7853982  ;;  %vm358_vm5 = vweird.f32 %v944_v9 }
  0xad   : > { %v330_v58 = vsub.s32 %v326_v33, %v329_v29  ;;  %vm427_vm11 = vc.u32 %v989_v56, %v985_v53  ;;  %v426_v8 = vadd.s32 %v985_v53, %v989_v56  ;;  %vm490_vm6 = vcmask 261120  }
  0xae   : > { %v429_v62 = vsel %vm427_vm11, %v428_v59, %v986_v54  ;;  %v353_v44 = vsel %vm268_vm14, %v352_v40, %v328_v51  ;;  %vm462_vm10 = vweird.f32 %v951_v15  ;;  %vm869_vm11 = vmmov 0  }
  0xaf   : > { %v332_v61 = vsub.s32 0, %v330_v58  ;;  %v430_v63 = vadd.s32 %v429_v62, %v425_v60  ;;  %v355_v46 = vsel %vm267_vm15, 0, %v353_v44  ;;  %769 = vmatprep.mubr.msk.bf16.mxu0 %vm869_vm11, %v856_v5 }
  0xb0   : > { %v359_v52 = vadd.s32 3, %v355_v46 }
  0xb1   : > { %v726_v0 = vmin.u32 %v332_v61, %v330_v58  ;;  %v431_v1 = vadd.s32 536870912, %v430_v63 }
  0xb2   : > { %v360_v56 = vand.u32 3, %v359_v52 }
  0xb3   : > { %v334_v2 = vclz %v726_v0  ;;  %v432_v3 = vshrl.u32 %v431_v1, 30 }
  0xb4   : > { %vm365_vm2 = vcmp.eq.s32.totalorder %v360_v56, 2  ;;  %vm362_vm3 = vcmp.eq.s32.totalorder %v360_v56, 0  ;;  %vm361_vm4 = vcmp.lt.s32.totalorder %v360_v56, 2 }
  0xb5   : > { %v727_v4 = vadd.s32 4294967294, %v334_v2  ;;  %v433_v13 = vshll.u32 %v432_v3, 30  ;;  %v456_v54 = vsub.s32 4, %v432_v3 }
  0xb7   : > { %vm728_vm12 = vcmp.lt.s32.totalorder %v727_v4, 0  ;;  %v434_v16 = vsub.s32 %v430_v63, %v433_v13  ;;  %v457_v51 = vsel %vm372_vm0, %v456_v54, %v432_v3 }
  0xb8   : > { %v337_v14 = vsel %vm728_vm12, 0, %v727_v4  ;;  %v459_v62 = vsel %vm1004_vm1, 0, %v457_v51  ;;  %v479_v4 = vpop.permute.xlu1 %478  ;;  %vm583_vm12 = vcmask 916480  }
  0xb9   : > { %v338_v19 = vsub.s32 32, %v337_v14  ;;  %v342_v17 = vsub.s32 4294967266, %v337_v14  ;;  %v436_v20 = vsub.s32 0, %v434_v16  ;;  %v339_v21 = vshll.u32 %v330_v58, %v337_v14 }
  0xba   : > { %v463_v1 = vadd.s32 3, %v459_v62 }
  0xbb   : > { %v340_v23 = vshrl.u32 %v322_v18, %v338_v19  ;;  %v343_v24 = vadd.s32 127, %v342_v17  ;;  %v730_v25 = vmin.u32 %v436_v20, %v434_v16 }
  0xbc   : > { %v464_v14 = vand.u32 3, %v463_v1 }
  0xbd   : > { %v341_v26 = vor.u32 %v340_v23, %v339_v21  ;;  %v344_v28 = vshll.u32 %v343_v24, 23  ;;  %v438_v30 = vclz %v730_v25 }
  0xbe   : > { %vm469_vm7 = vcmp.eq.s32.totalorder %v464_v14, 2  ;;  %vm466_vm8 = vcmp.eq.s32.totalorder %v464_v14, 0  ;;  %vm465_vm9 = vcmp.lt.s32.totalorder %v464_v14, 2 }
  0xbf   : > { %v345_v31 = vor.u32 4788187, %v344_v28  ;;  %v731_v32 = vadd.s32 4294967294, %v438_v30  ;;  %v348_v36 = vcvt.s32.f32 %v341_v26 }
  0xc1   : > { %v346_v34 = vand.u32 2147483647, %v345_v31  ;;  %vm732_vm13 = vcmp.lt.s32.totalorder %v731_v32, 0 }
  0xc2   : > { %v441_v27 = vsel %vm732_vm13, 0, %v731_v32  ;;  %vm636_vm13 = vcmask 257024  }
  0xc3   : > { %v349_v38 = vmul.f32 %v348_v36, %v346_v34  ;;  %v442_v12 = vsub.s32 32, %v441_v27  ;;  %v446_v33 = vsub.s32 4294967266, %v441_v27  ;;  %v443_v37 = vshll.u32 %v434_v16, %v441_v27 }
  0xc5   : > { %v350_v35 = vxor.u32 2147483648, %v349_v38  ;;  %v444_v41 = vshrl.u32 %v426_v8, %v442_v12  ;;  %v447_v42 = vadd.s32 127, %v446_v33 }
  0xc7   : > { %v351_v43 = vsel %vm268_vm14, %v350_v35, %v349_v38  ;;  %v445_v45 = vor.u32 %v444_v41, %v443_v37  ;;  %v448_v39 = vshll.u32 %v447_v42, 23 }
  0xc8   : > { %v354_v47 = vsel %vm267_vm15, %v944_v9, %v351_v43 }
  0xc9   : > { %823 = vcosq.f32 %v354_v47  ;;  %v449_v48 = vor.u32 4788187, %v448_v39  ;;  %v452_v50 = vcvt.s32.f32 %v445_v45 }
  0xca   : > { %825 = vsinq.f32 %v354_v47 }
  0xcb   : > { %v450_v49 = vand.u32 2147483647, %v449_v48 }
  0xcd   : > { %v453_v53 = vmul.f32 %v452_v50, %v450_v49 }
  0xcf   : > { %v454_v55 = vxor.u32 2147483648, %v453_v53 }
  0xd1   : > { %v455_v29 = vsel %vm372_vm0, %v454_v55, %v453_v53 }
  0xd2   : > { %v458_v58 = vsel %vm1004_vm1, %v951_v15, %v455_v29 }
  0xd3   : > { %v824_v57 = vpop.eup %823  ;;  %827 = vcosq.f32 %v458_v58 }
  0xd4   : > { %v826_v59 = vpop.eup %825  ;;  %v366_v60 = vxor.u32 2147483648, %v824_v57  ;;  %829 = vsinq.f32 %v458_v58 }
  0xd5   : > { %v363_v61 = vxor.u32 2147483648, %v826_v59 }
  0xd6   : > { %v367_v22 = vsel %vm365_vm2, %v366_v60, %v826_v59 }
  0xd7   : > { %v364_v63 = vsel %vm362_vm3, %v824_v57, %v363_v61  ;;  %v822_v57 = vld [vmem:[%s1064_s1] sm:$0xff]  }
  0xd8   : > { %v368_v0 = vsel %vm361_vm4, %v364_v63, %v367_v22 }
  0xd9   : > { %v369_v2 = vsel %vm358_vm5, nan, %v368_v0 }
  0xda   : > { %v474_v3 = vmul.f32 %v369_v2, %v369_v2 }
  0xdc   : > { %v486_v13 = vmul.f32 %v479_v4, %v474_v3 }
  0xdd   : > { %v828_v16 = vpop.eup %827 }
  0xde   : > { %v488_v18 = vadd.f32 %v745_v7, %v486_v13  ;;  %v830_v19 = vpop.eup %829  ;;  %v470_v17 = vxor.u32 2147483648, %v828_v16  ;;  %v484_v7 = vpop.permute.xlu1 %483 }
  0xdf   : > { %v467_v20 = vxor.u32 2147483648, %v830_v19 }
  0xe0   : > { %491 = vst.msk [vmem:[#allocation2] sm:$0xff] %vm490_vm6, %v488_v18  ;;  %495 = vrot.lane.b32.xlu0 %v488_v18, %s863_s9  ;;  %v471_v9 = vsel %vm469_vm7, %v470_v17, %v830_v19 }
  0xe1   : > { %v468_v21 = vsel %vm466_vm8, %v828_v16, %v467_v20 }
  0xe2   : > { %v472_v23 = vsel %vm465_vm9, %v468_v21, %v471_v9 }
  0xe3   : > { %v473_v24 = vsel %vm462_vm10, nan, %v472_v23 }
  0xe4   : > { %503 = vrot.lane.b32.xlu0 %v488_v18, %s864_s10  ;;  %v475_v25 = vmul.f32 %v473_v24, %v473_v24 }
  0xe6   : > { %v487_v26 = vmul.f32 %v484_v7, %v475_v25 }
  0xe7   : > { %v543_v15 = vld [vmem:[#allocation2] sm:$0xff] }
  0xe8   : > { %511 = vrot.lane.b32.xlu0 %v488_v18, %s865_s11  ;;  %v489_v28 = vadd.f32 %v746_v10, %v487_v26  ;;  %v567_v10 = vld [vmem:[%s1065_s2 + $0x8] sm:$0xff] }
  0xea   : > { %492 = vst.msk [vmem:[#allocation2 + $0x8] sm:$0xff] %vm490_vm6, %v489_v28  ;;  %497 = vrot.lane.b32.xlu1 %v489_v28, %s863_s9 }
  0xec   : > { %519 = vrot.lane.b32.xlu0 %v488_v18, %s866_s12 }
  0xee   : > { %505 = vrot.lane.b32.xlu1 %v489_v28, %s864_s10 }
  0xf0   : > { %527 = vrot.lane.b32.xlu0 %v488_v18, %s867_s13 }
  0xf1   : > { %v544_v30 = vld [vmem:[#allocation2 + $0x8] sm:$0xff] }
  0xf2   : > { %513 = vrot.lane.b32.xlu1 %v489_v28, %s865_s11  ;;  %v557_v31 = vpack.c.bf16 %v544_v30, %v543_v15 }
  0xf4   : > { %535 = vrot.lane.b32.xlu0 %v488_v18, %s868_s14  ;;  %756 = vmatpush3.bf16.msra.mxu0 %v557_v31 }
  0xf5   : > { %757 = vmatprep.subr.bf16.mxu0 %v856_v5 }
  0xf6   : > { %521 = vrot.lane.b32.xlu1 %v489_v28, %s866_s12 }
  0xf8   : > { %570 = vperm.xlu0 %820, %v566_v6  }
  0xfa   : > { %529 = vrot.lane.b32.xlu1 %v489_v28, %s867_s13 }
  0xfe   : > { %537 = vrot.lane.b32.xlu1 %v489_v28, %s868_s14 }
 0x102   : > { %575 = vperm.xlu1 %821, %v567_v10  }
 0x152   : > { %v496_v32 = vpop.permute.xlu0 %495 }
 0x153   : > { %501 = vst.msk [vmem:[#allocation2 + $0x10] sm:$0xff] %vm490_vm6, %v496_v32 }
 0x156   : > { %v504_v34 = vpop.permute.xlu0 %503 }
 0x157   : > { %509 = vst.msk [vmem:[#allocation2 + $0x20] sm:$0xff] %vm490_vm6, %v504_v34 }
 0x15a   : > { %v512_v36 = vpop.permute.xlu0 %511  ;;  %v545_v33 = vld [vmem:[#allocation2 + $0x10] sm:$0xff] }
 0x15b   : > { %517 = vst.msk [vmem:[#allocation2 + $0x30] sm:$0xff] %vm490_vm6, %v512_v36 }
 0x15c   : > { %v498_v38 = vpop.permute.xlu1 %497 }
 0x15d   : > { %502 = vst.msk [vmem:[#allocation2 + $0x18] sm:$0xff] %vm490_vm6, %v498_v38 }
 0x15e   : > { %v520_v27 = vpop.permute.xlu0 %519  ;;  %v547_v43 = vld [vmem:[#allocation2 + $0x20] sm:$0xff] }
 0x15f   : > { %525 = vst.msk [vmem:[#allocation2 + $0x40] sm:$0xff] %vm490_vm6, %v520_v27 }
 0x160   : > { %v506_v40 = vpop.permute.xlu1 %505 }
 0x161   : > { %510 = vst.msk [vmem:[#allocation2 + $0x28] sm:$0xff] %vm490_vm6, %v506_v40 }
 0x162   : > { %v528_v8 = vpop.permute.xlu0 %527  ;;  %v549_v47 = vld [vmem:[#allocation2 + $0x30] sm:$0xff] }
 0x163   : > { %533 = vst.msk [vmem:[#allocation2 + $0x50] sm:$0xff] %vm490_vm6, %v528_v8 }
 0x164   : > { %v514_v12 = vpop.permute.xlu1 %513  ;;  %v546_v35 = vld [vmem:[#allocation2 + $0x18] sm:$0xff] }
 0x165   : > { %518 = vst.msk [vmem:[#allocation2 + $0x38] sm:$0xff] %vm490_vm6, %v514_v12  ;;  %v558_v37 = vpack.c.bf16 %v546_v35, %v545_v33 }
 0x166   : > { %v536_v41 = vpop.permute.xlu0 %535  ;;  %v551_v50 = vld [vmem:[#allocation2 + $0x40] sm:$0xff] }
 0x167   : > { %541 = vst.msk [vmem:[#allocation2 + $0x60] sm:$0xff] %vm490_vm6, %v536_v41  ;;  %758 = vmatpush3.bf16.msra.mxu0 %v558_v37 }
 0x168   : > { %v522_v42 = vpop.permute.xlu1 %521  ;;  %759 = vmatprep.subr.bf16.mxu0 %v856_v5  ;;  %v548_v44 = vld [vmem:[#allocation2 + $0x28] sm:$0xff] }
 0x169   : > { %526 = vst.msk [vmem:[#allocation2 + $0x48] sm:$0xff] %vm490_vm6, %v522_v42  ;;  %v559_v45 = vpack.c.bf16 %v548_v44, %v547_v43 }
 0x16a   : > { %v553_v54 = vld [vmem:[#allocation2 + $0x50] sm:$0xff] }
 0x16b   : > { %760 = vmatpush3.bf16.msra.mxu0 %v559_v45 }
 0x16c   : > { %v530_v39 = vpop.permute.xlu1 %529  ;;  %761 = vmatprep.subr.bf16.mxu0 %v856_v5  ;;  %v550_v48 = vld [vmem:[#allocation2 + $0x38] sm:$0xff] }
 0x16d   : > { %534 = vst.msk [vmem:[#allocation2 + $0x58] sm:$0xff] %vm490_vm6, %v530_v39  ;;  %v560_v46 = vpack.c.bf16 %v550_v48, %v549_v47 }
 0x16e   : > { %v555_v29 = vld [vmem:[#allocation2 + $0x60] sm:$0xff] }
 0x16f   : > { %762 = vmatpush3.bf16.msra.mxu0 %v560_v46 }
 0x170   : > { %v538_v49 = vpop.permute.xlu1 %537  ;;  %763 = vmatprep.subr.bf16.mxu0 %v856_v5  ;;  %v552_v52 = vld [vmem:[#allocation2 + $0x48] sm:$0xff] }
 0x171   : > { %542 = vst.msk [vmem:[#allocation2 + $0x68] sm:$0xff] %vm490_vm6, %v538_v49  ;;  %v561_v53 = vpack.c.bf16 %v552_v52, %v551_v50 }
 0x173   : > { %764 = vmatpush3.bf16.msra.mxu0 %v561_v53 }
 0x174   : > { %765 = vmatprep.subr.bf16.mxu0 %v856_v5  ;;  %v554_v55 = vld [vmem:[#allocation2 + $0x58] sm:$0xff] }
 0x175   : > { %v562_v56 = vpack.c.bf16 %v554_v55, %v553_v54 }
 0x177   : > { %766 = vmatpush3.bf16.msra.mxu0 %v562_v56  ;;  %v571_v58 = vpop.permute.xlu0 %570 }
 0x178   : > { %767 = vmatprep.subr.bf16.mxu0 %v856_v5  ;;  %v556_v11 = vld [vmem:[#allocation2 + $0x68] sm:$0xff] }
 0x179   : > { %v563_v51 = vpack.c.bf16 %v556_v11, %v555_v29 }
 0x17b   : > { %768 = vmatpush3.bf16.msra.mxu0 %v563_v51 }
 0x17e   : > { %770 = vmatmul.mubr.msk.bf16.vlgmr.msra.gmra.mrb[0].mxu0 %vm583_vm12, %v822_v57 }
 0x181   : > { %v576_v5 = vpop.permute.xlu1 %575 }
 0x251   : > { %v621_v59 = vpop.f32.mrb[0].mxu0 }
 0x252   : > { %v622_v60 = vadd.f32 %v621_v59, %v571_v58  ;;  %v771_v61 = vpop.f32.mrb[1].mxu0 }
 0x253   : > { %v624_v62 = vpop.f32.mrb[2].mxu0 }
 0x254   : > { %v741_v22 = vpack.c.bf16 %v622_v60, %v622_v60  ;;  %v625_v63 = vadd.f32 %v624_v62, %v576_v5  ;;  %v772_v0 = vpop.f32.mrb[3].mxu0 }
 0x256   : > { %637 = vst.msk [vmem:[%s244_s27] sm:$0xf] %vm636_vm13, %v741_v22  ;;  %v742_v1 = vpack.c.bf16 %v625_v63, %v625_v63 }
 0x258   : > { %638 = vst.msk [vmem:[%s244_s27 + $0x4] sm:$0xf] %vm636_vm13, %v742_v1 }
 0x259 PF: > { %s15_s20 = sadd.s32 1, %s853_s20   ;;  %s1071_s18 = smov %s849_s19 }
 0x25a   : > { %p12_p5 = scmp.ge.s32.totalorder %s15_s20, 4   ;;  %s1072_s19 = smov %s1074_s21 }
 0x25c   :  { %14 = sbr.rel (!%p12_p5) target bundleno = 2 (0x2), region = 70 }

// kernel: decoder_pallas.19
= control target key start
LH: loop header
LB: loop body
LE: loop exit
PB: predicated region body
PF: predicated region fallthrough
CT: control target
= control target key end

     0   :  { %s891_s21 = smov 0   ;;  %s893_s22 = smov 0   ;;  %s1029_s0 = inlined_call_operand.vmem [shape: bf16[2,16,32], index: 0, kind: input, shape index: {}]   ;;  %s1030_s1 = inlined_call_operand.vmem [shape: bf16[16,16], index: 1, kind: input, shape index: {}]   ;;  %s1031_s2 = inlined_call_operand.vmem [shape: f32[16,1], index: 2, kind: input, shape index: {}]   ;;  %s1032_s3 = inlined_call_operand.vmem [shape: f32[16,1], index: 3, kind: input, shape index: {}]   ;;  %s1033_s4 = inlined_call_operand.vmem [shape: f32[16,1], index: 4, kind: input, shape index: {}]   ;;  %s1034_s5 = inlined_call_operand.vmem [shape: bf16[2,16,32], index: 5, kind: input, shape index: {}]   ;;  %s1035_s6 = inlined_call_operand.vmem [shape: bf16[2,16,32], index: 6, kind: output, shape index: {}]  }
   0x1   :  { %s895_s23 = smov 0  }
   0x2 LB: > { %s28_s24 = sadd.s32 1, %s841_s22  ;;  %p729_p0 = scmp.ge.s32.totalorder %s845_s23, 1  ;;  %s845_s23 = sphi %s895_s23, %s16_s23   ;;  %s841_s22 = sphi %s893_s22, %s1037_s22   ;;  %s837_s21 = sphi %s891_s21, %s1036_s21  }
   0x3   : > { %p30_p1 = scmp.ge.s32.totalorder %s28_s24, 2  ;;  %p241_p2 = scmp.lt.s32.totalorder %s845_s23, 3 }
   0x5   : > { %s1039_s24 = smov (%p30_p1, %s28_s24), 0  ;;  %p242_p3 = pnand %p729_p0, %p241_p2 }
   0x6   : > { %v308_v0 = vld [vmem:[%s1032_s3] sm:$0xff] (!%p242_p3)  ;;  %v847_v1 = vmov (!%p242_p3), 0   ;;  %v309_v3 = vld [vmem:[%s1032_s3 + $0x8] sm:$0xff] (!%p242_p3)  ;;  %v848_v7 = vmov (!%p242_p3), 0.0   ;;  %vm849_vm0 = vmmov (!%p242_p3), 0   ;;  %p282_p4 = scmp.lt.s32.totalorder (!%p242_p3), %s837_s21, 1 }
   0x7   : > { %245 = sbr.rel (%p242_p3) target bundleno = 460 (0x1cc), region = 44  ;;  %812 = vset.pattern.permute.xlu0 (!%p242_p3), %v847_v1  ;;  %813 = vset.pattern.permute.xlu1 (!%p242_p3), %v847_v1  ;;  %v310_v2 = vld [vmem:[%s1033_s4] sm:$0xff] (!%p242_p3)  ;;  %v311_v4 = vld [vmem:[%s1033_s4 + $0x8] sm:$0xff] (!%p242_p3)  ;;  %v850_v31 = vmov (!%p242_p3), 683565275  }
   0x8   : > { %314 = vperm.xlu0 (!%p242_p3), %812, %v308_v0   ;;  %536 = vperm.xlu1 (!%p242_p3), %813, %v310_v2   ;;  %v551_v5 = vld [vmem:[%s1031_s2] sm:$0xff] (!%p242_p3)  ;;  %v552_v6 = vld [vmem:[%s1031_s2 + $0x8] sm:$0xff] (!%p242_p3)  ;;  %v851_v35 = vmov (!%p242_p3), 2475754826   ;;  %v852_v37 = vmov (!%p242_p3), 2131351028  }
   0x9   : > { %765 = vmatprep.subr.bf16.mxu0 (!%p242_p3), %v848_v7  ;;  %767 = vmatprep.mubr.msk.bf16.mxu0 (!%p242_p3), %vm849_vm0, %v848_v7  ;;  %v853_v39 = vmov (!%p242_p3), 2102212464   ;;  %v854_v41 = vmov (!%p242_p3), 920167782   ;;  %v855_v48 = vmov (!%p242_p3), 1326507024  }
   0xc   : > { %319 = vperm.xlu0 (!%p242_p3), %812, %v309_v3   ;;  %541 = vperm.xlu1 (!%p242_p3), %813, %v311_v4  }
   0xe   : > { %s1041_s21 = smov (!%p282_p4, %s837_s21), 1 }
   0xf   : > { %s931_s13 = sshll.u32 %s1041_s21, 3 }
  0x10   : > { %555 = vperm.xlu0 %812, %v551_v5   ;;  %560 = vperm.xlu1 %813, %v552_v6   ;;  %s286_s16 = scalar_lea.vmem %s1029_s0, %s931_s13  ;;  %s294_s21 = scalar_lea.vmem %s1034_s5, %s931_s13 }
  0x11   : > { %v937_v8 = vld [vmem:[%s286_s16] sm:$0xff]   ;;  %s302_s27 = scalar_lea.vmem %s1035_s6, %s931_s13 }
  0x12   : > { %v757_v9 = vunpack.c.l.bf16 %v937_v8  ;;  %v758_v12 = vunpack.c.h.bf16 %v937_v8 }
  0x87   : > { %v315_v10 = vpop.permute.xlu0 %314 }
  0x88   : > { %v942_v11 = vmul.f32 %v757_v9, %v315_v10 }
  0x8a   : > { %v324_v13 = vand.u32 2147483647, %v942_v11  ;;  %v327_v14 = vand.u32 2139095040, %v942_v11  ;;  %vm326_vm15 = vcmp.lt.s32.totalorder %v942_v11, 0 }
  0x8b   : > { %v320_v15 = vpop.permute.xlu0 %319 }
  0x8c   : > { %v328_v16 = vshrl.u32 %v327_v14, 23  ;;  %v949_v17 = vmul.f32 %v758_v12, %v320_v15  ;;  %v331_v18 = vand.u32 8388607, %v324_v13  ;;  %vm325_vm0 = vcmp.le.f32.partialorder %v324_v13, 0.7853982 }
  0x8e   : > { %v736_v19 = vadd.s32 4294967169, %v328_v16  ;;  %v431_v20 = vand.u32 2139095040, %v949_v17  ;;  %v332_v22 = vor.u32 8388608, %v331_v18  ;;  %v428_v24 = vand.u32 2147483647, %v949_v17 }
  0x90   : > { %v334_v21 = vadd.s32 1, %v736_v19  ;;  %v432_v23 = vshrl.u32 %v431_v20, 23  ;;  %v955_v29 = vshll.u32 %v332_v22, 8  ;;  %v435_v33 = vand.u32 8388607, %v428_v24 }
  0x92   : > { %vm335_vm1 = vcmp.gt.s32.totalorder %v334_v21, 0  ;;  %v740_v26 = vadd.s32 4294967169, %v432_v23  ;;  %v436_v63 = vor.u32 8388608, %v435_v33 }
  0x93   : > { %v336_v25 = vsel %vm335_vm1, %v334_v21, 0  ;;  %vm430_vm1 = vcmp.lt.s32.totalorder %v949_v17, 0 }
  0x94   : > { %v337_v27 = vshrl.u32 %v336_v25, 5  ;;  %v338_v28 = vand.u32 31, %v336_v25  ;;  %v438_v34 = vadd.s32 1, %v740_v26  ;;  %v476_v18 = vshll.u32 %v436_v63, 8 }
  0x96   : > { %v339_v30 = vsub.s32 32, %v338_v28  ;;  %v341_v32 = vshll.u32 %v850_v31, %v338_v28  ;;  %v344_v36 = vshll.u32 %v851_v35, %v338_v28  ;;  %v347_v38 = vshll.u32 %v852_v37, %v338_v28 }
  0x97   : > { %v350_v40 = vshll.u32 %v853_v39, %v338_v28  ;;  %v353_v42 = vshll.u32 %v854_v41, %v338_v28  ;;  %vm356_vm2 = vcmp.lt.s32.totalorder %v337_v27, 1  ;;  %vm358_vm3 = vcmp.lt.s32.totalorder %v337_v27, 3 }
  0x98   : > { %v342_v43 = vshrl.u32 %v851_v35, %v339_v30  ;;  %v345_v44 = vshrl.u32 %v852_v37, %v339_v30  ;;  %v348_v45 = vshrl.u32 %v853_v39, %v339_v30  ;;  %v340_v46 = vshrl.u32 %v850_v31, %v339_v30 }
  0x99   : > { %v351_v47 = vshrl.u32 %v854_v41, %v339_v30  ;;  %v354_v49 = vshrl.u32 %v855_v48, %v339_v30  ;;  %vm439_vm4 = vcmp.gt.s32.totalorder %v438_v34, 0  ;;  %vm359_vm5 = vcmp.lt.s32.totalorder %v337_v27, 4 }
  0x9a   : > { %v343_v50 = vor.u32 %v342_v43, %v341_v32  ;;  %v346_v51 = vor.u32 %v345_v44, %v344_v36  ;;  %v349_v52 = vor.u32 %v348_v45, %v347_v38  ;;  %v440_v55 = vsel %vm439_vm4, %v438_v34, 0 }
  0x9b   : > { %v352_v53 = vor.u32 %v351_v47, %v350_v40  ;;  %v355_v54 = vor.u32 %v354_v49, %v353_v42  ;;  %vm357_vm6 = vcmp.lt.s32.totalorder %v337_v27, 2  ;;  %v442_v2 = vand.u32 31, %v440_v55 }
  0x9c   : > { %v360_v56 = vsel %vm356_vm2, %v340_v46, %v343_v50  ;;  %v361_v57 = vsel %vm359_vm5, %v349_v52, 2102212464  ;;  %v364_v58 = vsel %vm356_vm2, %v343_v50, %v346_v51  ;;  %v368_v59 = vsel %vm356_vm2, %v346_v51, %v349_v52 }
  0x9d   : > { %v362_v60 = vsel %vm358_vm3, %v346_v51, %v361_v57  ;;  %v365_v61 = vsel %vm359_vm5, %v352_v53, 920167782  ;;  %v369_v62 = vsel %vm359_vm5, %v355_v54, 1326507024  ;;  %v441_v15 = vshrl.u32 %v440_v55, 5 }
  0x9e   : > { %v366_v0 = vsel %vm358_vm3, %v349_v52, %v365_v61  ;;  %v370_v1 = vsel %vm358_vm3, %v352_v53, %v369_v62  ;;  %v363_v3 = vsel %vm357_vm6, %v360_v56, %v362_v60  ;;  %v443_v16 = vsub.s32 32, %v442_v2 }
  0x9f   : > { %v367_v4 = vsel %vm357_vm6, %v364_v58, %v366_v0  ;;  %v371_v5 = vsel %vm357_vm6, %v368_v59, %v370_v1  ;;  %v379_v19 = vmul.u32 %v955_v29, %v363_v3  ;;  %v445_v20 = vshll.u32 %v850_v31, %v442_v2 }
  0xa0   : > { %v968_v6 = vmul.u32.u64.low %v955_v29, %v371_v5  ;;  %v969_v7 = vmul.u32.u64.high %v955_v29, %v371_v5, %v968_v6  ;;  %v972_v10 = vmul.u32.u64.low %v955_v29, %v367_v4  ;;  %v973_v14 = vmul.u32.u64.high %v955_v29, %v367_v4, %v972_v10 }
  0xa1   : > { %v448_v21 = vshll.u32 %v851_v35, %v442_v2  ;;  %v451_v22 = vshll.u32 %v852_v37, %v442_v2  ;;  %v446_v23 = vshrl.u32 %v851_v35, %v443_v16  ;;  %v449_v25 = vshrl.u32 %v852_v37, %v443_v16 }
  0xa2   : > { %v452_v26 = vshrl.u32 %v853_v39, %v443_v16  ;;  %v454_v27 = vshll.u32 %v853_v39, %v442_v2  ;;  %vm381_vm7 = vc.u32 %v969_v7, %v972_v10  ;;  %v382_v28 = vadd.s32 1, %v973_v14 }
  0xa3   : > { %v455_v30 = vshrl.u32 %v854_v41, %v443_v16  ;;  %v457_v32 = vshll.u32 %v854_v41, %v442_v2  ;;  %v447_v33 = vor.u32 %v446_v23, %v445_v20  ;;  %v450_v34 = vor.u32 %v449_v25, %v448_v21 }
  0xa4   : > { %v453_v36 = vor.u32 %v452_v26, %v451_v22  ;;  %v458_v38 = vshrl.u32 %v855_v48, %v443_v16  ;;  %v383_v29 = vsel %vm381_vm7, %v382_v28, %v973_v14  ;;  %vm460_vm8 = vcmp.lt.s32.totalorder %v441_v15, 1 }
  0xa5   : > { %v456_v40 = vor.u32 %v455_v30, %v454_v27  ;;  %vm463_vm9 = vcmp.lt.s32.totalorder %v441_v15, 4  ;;  %v384_v35 = vadd.s32 %v383_v29, %v379_v19  ;;  %vm462_vm10 = vcmp.lt.s32.totalorder %v441_v15, 3 }
  0xa6   : > { %v459_v37 = vor.u32 %v458_v38, %v457_v32  ;;  %v465_v39 = vsel %vm463_vm9, %v453_v36, 2102212464  ;;  %v444_v42 = vshrl.u32 %v850_v31, %v443_v16  ;;  %v468_v43 = vsel %vm460_vm8, %v447_v33, %v450_v34 }
  0xa7   : > { %v469_v44 = vsel %vm463_vm9, %v456_v40, 920167782  ;;  %v472_v45 = vsel %vm460_vm8, %v450_v34, %v453_v36  ;;  %v385_v46 = vadd.s32 536870912, %v384_v35  ;;  %vm461_vm11 = vcmp.lt.s32.totalorder %v441_v15, 2 }
  0xa8   : > { %v470_v41 = vsel %vm462_vm10, %v453_v36, %v469_v44  ;;  %v473_v47 = vsel %vm463_vm9, %v459_v37, 1326507024  ;;  %v464_v49 = vsel %vm460_vm8, %v444_v42, %v447_v33  ;;  %v466_v48 = vsel %vm462_vm10, %v450_v34, %v465_v39 }
  0xa9   : > { %v471_v50 = vsel %vm461_vm11, %v468_v43, %v470_v41  ;;  %v474_v51 = vsel %vm462_vm10, %v456_v40, %v473_v47  ;;  %v386_v52 = vshrl.u32 %v385_v46, 30  ;;  %v467_v58 = vsel %vm461_vm11, %v464_v49, %v466_v48 }
  0xaa   : > { %v475_v53 = vsel %vm461_vm11, %v472_v45, %v474_v51  ;;  %v983_v54 = vmul.u32.u64.low %v476_v18, %v471_v50  ;;  %v984_v55 = vmul.u32.u64.high %v476_v18, %v471_v50, %v983_v54  ;;  %v483_v61 = vmul.u32 %v476_v18, %v467_v58 }
  0xab   : > { %v986_v56 = vmul.u32.u64.low %v476_v18, %v475_v53  ;;  %v987_v57 = vmul.u32.u64.high %v476_v18, %v475_v53, %v986_v56  ;;  %v387_v31 = vshll.u32 %v386_v52, 30  ;;  %v380_v16 = vadd.s32 %v972_v10, %v969_v7 }
  0xac   : > { %v486_v60 = vadd.s32 1, %v984_v55  ;;  %vm429_vm2 = vcmp.le.f32.partialorder %v428_v24, 0.7853982  ;;  %vm416_vm6 = vweird.f32 %v942_v11  ;;  %vm520_vm10 = vweird.f32 %v949_v17 }
  0xad   : > { %v388_v59 = vsub.s32 %v384_v35, %v387_v31  ;;  %vm485_vm12 = vc.u32 %v987_v57, %v983_v54  ;;  %v484_v29 = vadd.s32 %v983_v54, %v987_v57  ;;  %v410_v35 = vsub.s32 4, %v386_v52 }
  0xae   : > { %v487_v63 = vsel %vm485_vm12, %v486_v60, %v984_v55  ;;  %vm568_vm11 = vcmask 130048   ;;  %vm627_vm12 = vcmask 257024  }
  0xaf   : > { %v390_v62 = vsub.s32 0, %v388_v59  ;;  %v488_v0 = vadd.s32 %v487_v63, %v483_v61  ;;  %v411_v41 = vsel %vm326_vm15, %v410_v35, %v386_v52 }
  0xb0   : > { %v413_v50 = vsel %vm325_vm0, 0, %v411_v41 }
  0xb1   : > { %v737_v1 = vmin.u32 %v390_v62, %v388_v59  ;;  %v489_v2 = vadd.s32 536870912, %v488_v0  ;;  %v417_v54 = vadd.s32 3, %v413_v50 }
  0xb3   : > { %v392_v3 = vclz %v737_v1  ;;  %v490_v4 = vshrl.u32 %v489_v2, 30  ;;  %v418_v31 = vand.u32 3, %v417_v54 }
  0xb5   : > { %v738_v5 = vadd.s32 4294967294, %v392_v3  ;;  %v491_v6 = vshll.u32 %v490_v4, 30  ;;  %v514_v53 = vsub.s32 4, %v490_v4  ;;  %vm420_vm3 = vcmp.eq.s32.totalorder %v418_v31, 0 }
  0xb6   : > { %vm423_vm4 = vcmp.eq.s32.totalorder %v418_v31, 2  ;;  %vm419_vm5 = vcmp.lt.s32.totalorder %v418_v31, 2 }
  0xb7   : > { %vm739_vm13 = vcmp.lt.s32.totalorder %v738_v5, 0  ;;  %v492_v15 = vsub.s32 %v488_v0, %v491_v6  ;;  %v515_v13 = vsel %vm430_vm1, %v514_v53, %v490_v4  ;;  %v537_v6 = vpop.permute.xlu1 %536 }
  0xb8   : > { %v395_v14 = vsel %vm739_vm13, 0, %v738_v5  ;;  %v517_v61 = vsel %vm429_vm2, 0, %v515_v13 }
  0xb9   : > { %v396_v19 = vsub.s32 32, %v395_v14  ;;  %v400_v18 = vsub.s32 4294967266, %v395_v14  ;;  %v494_v20 = vsub.s32 0, %v492_v15  ;;  %v397_v21 = vshll.u32 %v388_v59, %v395_v14 }
  0xba   : > { %v521_v0 = vadd.s32 3, %v517_v61 }
  0xbb   : > { %v398_v22 = vshrl.u32 %v380_v16, %v396_v19  ;;  %v401_v23 = vadd.s32 127, %v400_v18  ;;  %v741_v25 = vmin.u32 %v494_v20, %v492_v15 }
  0xbc   : > { %v522_v2 = vand.u32 3, %v521_v0 }
  0xbd   : > { %v399_v26 = vor.u32 %v398_v22, %v397_v21  ;;  %v402_v27 = vshll.u32 %v401_v23, 23  ;;  %v496_v28 = vclz %v741_v25 }
  0xbe   : > { %vm527_vm7 = vcmp.eq.s32.totalorder %v522_v2, 2  ;;  %vm524_vm8 = vcmp.eq.s32.totalorder %v522_v2, 0  ;;  %vm523_vm9 = vcmp.lt.s32.totalorder %v522_v2, 2 }
  0xbf   : > { %v403_v30 = vor.u32 4788187, %v402_v27  ;;  %v742_v32 = vadd.s32 4294967294, %v496_v28  ;;  %v406_v34 = vcvt.s32.f32 %v399_v26  ;;  %v814_v28 = vld [vmem:[%s1030_s1] sm:$0xff]  }
  0xc1   : > { %v404_v33 = vand.u32 2147483647, %v403_v30  ;;  %vm743_vm14 = vcmp.lt.s32.totalorder %v742_v32, 0 }
  0xc2   : > { %v499_v38 = vsel %vm743_vm14, 0, %v742_v32  ;;  %v556_v32 = vpop.permute.xlu0 %555 }
  0xc3   : > { %v407_v36 = vmul.f32 %v406_v34, %v404_v33  ;;  %v500_v7 = vsub.s32 32, %v499_v38  ;;  %v504_v10 = vsub.s32 4294967266, %v499_v38  ;;  %v501_v37 = vshll.u32 %v492_v15, %v499_v38 }
  0xc5   : > { %v408_v40 = vxor.u32 2147483648, %v407_v36  ;;  %v502_v39 = vshrl.u32 %v484_v29, %v500_v7  ;;  %v505_v42 = vadd.s32 127, %v504_v10 }
  0xc7   : > { %v409_v43 = vsel %vm326_vm15, %v408_v40, %v407_v36  ;;  %v503_v44 = vor.u32 %v502_v39, %v501_v37  ;;  %v506_v45 = vshll.u32 %v505_v42, 23 }
  0xc8   : > { %v412_v46 = vsel %vm325_vm0, %v942_v11, %v409_v43  ;;  %v542_v11 = vpop.permute.xlu1 %541 }
  0xc9   : > { %815 = vcosq.f32 %v412_v46  ;;  %v507_v47 = vor.u32 4788187, %v506_v45  ;;  %v510_v48 = vcvt.s32.f32 %v503_v44 }
  0xca   : > { %817 = vsinq.f32 %v412_v46 }
  0xcb   : > { %v508_v49 = vand.u32 2147483647, %v507_v47 }
  0xcc   : > { %v561_v34 = vpop.permute.xlu1 %560 }
  0xcd   : > { %v511_v51 = vmul.f32 %v510_v48, %v508_v49 }
  0xcf   : > { %v512_v55 = vxor.u32 2147483648, %v511_v51 }
  0xd1   : > { %v513_v56 = vsel %vm430_vm1, %v512_v55, %v511_v51 }
  0xd2   : > { %v516_v52 = vsel %vm429_vm2, %v949_v17, %v513_v56  ;;  %v760_v17 = vld [vmem:[%s294_s21] sm:$0xff]  }
  0xd3   : > { %v816_v57 = vpop.eup %815  ;;  %819 = vcosq.f32 %v516_v52  ;;  %v761_v30 = vunpack.c.l.bf16 %v760_v17 }
  0xd4   : > { %v818_v58 = vpop.eup %817  ;;  %v424_v59 = vxor.u32 2147483648, %v816_v57  ;;  %821 = vsinq.f32 %v516_v52 }
  0xd5   : > { %v421_v60 = vxor.u32 2147483648, %v818_v58 }
  0xd6   : > { %v425_v63 = vsel %vm423_vm4, %v424_v59, %v818_v58 }
  0xd7   : > { %v422_v62 = vsel %vm420_vm3, %v816_v57, %v421_v60 }
  0xd8   : > { %v426_v1 = vsel %vm419_vm5, %v422_v62, %v425_v63 }
  0xd9   : > { %v427_v3 = vsel %vm416_vm6, nan, %v426_v1 }
  0xda   : > { %v532_v15 = vmul.f32 %v427_v3, %v427_v3 }
  0xdc   : > { %v544_v21 = vmul.f32 %v537_v6, %v532_v15 }
  0xdd   : > { %v820_v24 = vpop.eup %819 }
  0xde   : > { %v822_v4 = vpop.eup %821  ;;  %v528_v5 = vxor.u32 2147483648, %v820_v24  ;;  %v546_v25 = vadd.f32 %v757_v9, %v544_v21 }
  0xdf   : > { %v525_v14 = vxor.u32 2147483648, %v822_v4 }
  0xe0   : > { %v529_v16 = vsel %vm527_vm7, %v528_v5, %v822_v4 }
  0xe1   : > { %v526_v19 = vsel %vm524_vm8, %v820_v24, %v525_v14 }
  0xe2   : > { %v530_v18 = vsel %vm523_vm9, %v526_v19, %v529_v16 }
  0xe3   : > { %v531_v20 = vsel %vm520_vm10, nan, %v530_v18 }
  0xe4   : > { %v533_v22 = vmul.f32 %v531_v20, %v531_v20 }
  0xe6   : > { %v545_v23 = vmul.f32 %v542_v11, %v533_v22 }
  0xe8   : > { %v547_v26 = vadd.f32 %v758_v12, %v545_v23  ;;  %v762_v12 = vunpack.c.h.bf16 %v760_v17 }
  0xea   : > { %v548_v27 = vpack.c.bf16 %v547_v26, %v546_v25 }
  0xec   : > { %766 = vmatpush3.bf16.msra.mxu0 %v548_v27 }
  0xef   : > { %768 = vmatmul.mubr.msk.bf16.vlgmr.msra.gmra.mrb[0].mxu0 %vm568_vm11, %v814_v28 }
 0x1c2   : > { %v606_v9 = vpop.f32.mrb[0].mxu0 }
 0x1c3   : > { %v607_v33 = vadd.f32 %v606_v9, %v556_v32  ;;  %v769_v8 = vpop.f32.mrb[1].mxu0 }
 0x1c4   : > { %v609_v36 = vpop.f32.mrb[2].mxu0 }
 0x1c5   : > { %v617_v38 = vadd.f32 %v761_v30, %v607_v33  ;;  %v610_v29 = vadd.f32 %v609_v36, %v561_v34  ;;  %v770_v7 = vpop.f32.mrb[3].mxu0 }
 0x1c7   : > { %v753_v10 = vpack.c.bf16 %v617_v38, %v617_v38  ;;  %v618_v40 = vadd.f32 %v762_v12, %v610_v29 }
 0x1c9   : > { %628 = vst.msk [vmem:[%s302_s27] sm:$0xf] %vm627_vm12, %v753_v10  ;;  %v754_v35 = vpack.c.bf16 %v618_v40, %v618_v40 }
 0x1cb   : > { %629 = vst.msk [vmem:[%s302_s27 + $0x4] sm:$0xf] %vm627_vm12, %v754_v35 }
 0x1cc PF: > { %s16_s23 = sadd.s32 1, %s845_s23   ;;  %s1036_s21 = smov %s841_s22 }
 0x1cd   : > { %p13_p5 = scmp.ge.s32.totalorder %s16_s23, 4   ;;  %s1037_s22 = smov %s1039_s24 }
 0x1cf   :  { %15 = sbr.rel (!%p13_p5) target bundleno = 2 (0x2), region = 77 }

// kernel: decoder_pallas.20
= control target key start
LH: loop header
LB: loop body
LE: loop exit
PB: predicated region body
PF: predicated region fallthrough
CT: control target
= control target key end

     0   :  { %s900_s18 = smov 0   ;;  %s902_s19 = smov 0   ;;  %s1063_s0 = inlined_call_operand.vmem [shape: bf16[2,16,50], index: 0, kind: input, shape index: {}]   ;;  %s1064_s1 = inlined_call_operand.vmem [shape: bf16[16,112], index: 1, kind: input, shape index: {}]   ;;  %s1065_s2 = inlined_call_operand.vmem [shape: f32[16,1], index: 2, kind: input, shape index: {}]   ;;  %s1066_s3 = inlined_call_operand.vmem [shape: f32[16,1], index: 3, kind: input, shape index: {}]   ;;  %s1067_s4 = inlined_call_operand.vmem [shape: f32[16,1], index: 4, kind: input, shape index: {}]   ;;  %s1068_s5 = inlined_call_operand.vmem [shape: bf16[2,16,32], index: 5, kind: output, shape index: {}]  }
   0x1   :  { %s904_s20 = smov 0  }
   0x2 LB: > { %s27_s21 = sadd.s32 1, %s849_s19  ;;  %p720_p0 = scmp.ge.s32.totalorder %s853_s20, 1  ;;  %s853_s20 = sphi %s904_s20, %s15_s20   ;;  %s849_s19 = sphi %s902_s19, %s1072_s19   ;;  %s845_s18 = sphi %s900_s18, %s1071_s18  }
   0x3   : > { %p29_p1 = scmp.ge.s32.totalorder %s27_s21, 2  ;;  %p201_p2 = scmp.lt.s32.totalorder %s853_s20, 3 }
   0x5   : > { %s1074_s21 = smov (%p29_p1, %s27_s21), 0  ;;  %p202_p3 = pnand %p720_p0, %p201_p2 }
   0x6   : > { %v250_v0 = vld [vmem:[%s1066_s3] sm:$0xff] (!%p202_p3)  ;;  %v855_v2 = vmov (!%p202_p3), 0   ;;  %v251_v3 = vld [vmem:[%s1066_s3 + $0x8] sm:$0xff] (!%p202_p3)  ;;  %p232_p4 = scmp.lt.s32.totalorder (!%p202_p3), %s845_s18, 1  ;;  %v856_v5 = vmov (!%p202_p3), 0.0   ;;  %s863_s9 = smov (!%p202_p3), 125  }
   0x7   : > { %205 = sbr.rel (%p202_p3) target bundleno = 601 (0x259), region = 40  ;;  %v252_v1 = vld [vmem:[%s1067_s4] sm:$0xff] (!%p202_p3)  ;;  %820 = vset.pattern.permute.xlu0 (!%p202_p3), %v855_v2  ;;  %821 = vset.pattern.permute.xlu1 (!%p202_p3), %v855_v2  ;;  %v253_v4 = vld [vmem:[%s1067_s4 + $0x8] sm:$0xff] (!%p202_p3)  ;;  %v857_v29 = vmov (!%p202_p3), 683565275   ;;  %s864_s10 = smov (!%p202_p3), 122  }
   0x8   : > { %256 = vperm.xlu0 (!%p202_p3), %820, %v250_v0   ;;  %478 = vperm.xlu1 (!%p202_p3), %821, %v252_v1   ;;  %v858_v33 = vmov (!%p202_p3), 2475754826   ;;  %v859_v35 = vmov (!%p202_p3), 2131351028   ;;  %v860_v37 = vmov (!%p202_p3), 2102212464  }
   0x9   : > { %755 = vmatprep.subr.bf16.mxu0 (!%p202_p3), %v856_v5  ;;  %v861_v39 = vmov (!%p202_p3), 920167782   ;;  %v862_v46 = vmov (!%p202_p3), 1326507024   ;;  %s865_s11 = smov (!%p202_p3), 119   ;;  %s866_s12 = smov (!%p202_p3), 116  }
   0xa   : > { %s867_s13 = smov (!%p202_p3), 113   ;;  %s868_s14 = smov (!%p202_p3), 110  }
   0xc   : > { %261 = vperm.xlu0 (!%p202_p3), %820, %v251_v3   ;;  %483 = vperm.xlu1 (!%p202_p3), %821, %v253_v4  }
   0xe   : > { %s1076_s18 = smov (!%p232_p4, %s845_s18), 1 }
   0xf   : > { %s739_s30 = sshll.u32 %s1076_s18, 3 }
  0x10   : > { %s236_s8 = scalar_lea.vmem %s1063_s0, %s739_s30  ;;  %s244_s27 = scalar_lea.vmem %s1068_s5, %s739_s30 }
  0x11   : > { %v939_v6 = vld [vmem:[%s236_s8] sm:$0xff]  }
  0x12   : > { %v745_v7 = vunpack.c.l.bf16 %v939_v6  ;;  %v746_v10 = vunpack.c.h.bf16 %v939_v6  ;;  %v566_v6 = vld [vmem:[%s1065_s2] sm:$0xff] }
  0x87   : > { %v257_v8 = vpop.permute.xlu0 %256 }
  0x88   : > { %v944_v9 = vmul.f32 %v745_v7, %v257_v8 }
  0x8a   : > { %v266_v11 = vand.u32 2147483647, %v944_v9  ;;  %v269_v12 = vand.u32 2139095040, %v944_v9  ;;  %vm268_vm14 = vcmp.lt.s32.totalorder %v944_v9, 0 }
  0x8b   : > { %v262_v13 = vpop.permute.xlu0 %261 }
  0x8c   : > { %v270_v14 = vshrl.u32 %v269_v12, 23  ;;  %v951_v15 = vmul.f32 %v746_v10, %v262_v13  ;;  %v273_v16 = vand.u32 8388607, %v266_v11  ;;  %vm267_vm15 = vcmp.le.f32.partialorder %v266_v11, 0.7853982 }
  0x8e   : > { %v725_v17 = vadd.s32 4294967169, %v270_v14  ;;  %v373_v18 = vand.u32 2139095040, %v951_v15  ;;  %v274_v20 = vor.u32 8388608, %v273_v16  ;;  %v370_v22 = vand.u32 2147483647, %v951_v15 }
  0x90   : > { %v276_v19 = vadd.s32 1, %v725_v17  ;;  %v374_v21 = vshrl.u32 %v373_v18, 23  ;;  %v957_v27 = vshll.u32 %v274_v20, 8  ;;  %v377_v31 = vand.u32 8388607, %v370_v22 }
  0x92   : > { %vm277_vm0 = vcmp.gt.s32.totalorder %v276_v19, 0  ;;  %v729_v24 = vadd.s32 4294967169, %v374_v21  ;;  %v378_v61 = vor.u32 8388608, %v377_v31 }
  0x93   : > { %v278_v23 = vsel %vm277_vm0, %v276_v19, 0  ;;  %vm372_vm0 = vcmp.lt.s32.totalorder %v951_v15, 0 }
  0x94   : > { %v279_v25 = vshrl.u32 %v278_v23, 5  ;;  %v280_v26 = vand.u32 31, %v278_v23  ;;  %v380_v32 = vadd.s32 1, %v729_v24  ;;  %v418_v17 = vshll.u32 %v378_v61, 8 }
  0x96   : > { %v281_v28 = vsub.s32 32, %v280_v26  ;;  %v283_v30 = vshll.u32 %v857_v29, %v280_v26  ;;  %v286_v34 = vshll.u32 %v858_v33, %v280_v26  ;;  %v289_v36 = vshll.u32 %v859_v35, %v280_v26 }
  0x97   : > { %v292_v38 = vshll.u32 %v860_v37, %v280_v26  ;;  %v295_v40 = vshll.u32 %v861_v39, %v280_v26  ;;  %vm298_vm1 = vcmp.lt.s32.totalorder %v279_v25, 1  ;;  %vm300_vm2 = vcmp.lt.s32.totalorder %v279_v25, 3 }
  0x98   : > { %v284_v41 = vshrl.u32 %v858_v33, %v281_v28  ;;  %v287_v42 = vshrl.u32 %v859_v35, %v281_v28  ;;  %v290_v43 = vshrl.u32 %v860_v37, %v281_v28  ;;  %v282_v44 = vshrl.u32 %v857_v29, %v281_v28 }
  0x99   : > { %v293_v45 = vshrl.u32 %v861_v39, %v281_v28  ;;  %v296_v47 = vshrl.u32 %v862_v46, %v281_v28  ;;  %vm381_vm3 = vcmp.gt.s32.totalorder %v380_v32, 0  ;;  %vm301_vm4 = vcmp.lt.s32.totalorder %v279_v25, 4 }
  0x9a   : > { %v285_v48 = vor.u32 %v284_v41, %v283_v30  ;;  %v288_v49 = vor.u32 %v287_v42, %v286_v34  ;;  %v291_v50 = vor.u32 %v290_v43, %v289_v36  ;;  %v382_v53 = vsel %vm381_vm3, %v380_v32, 0 }
  0x9b   : > { %v294_v51 = vor.u32 %v293_v45, %v292_v38  ;;  %v297_v52 = vor.u32 %v296_v47, %v295_v40  ;;  %vm299_vm5 = vcmp.lt.s32.totalorder %v279_v25, 2  ;;  %v384_v0 = vand.u32 31, %v382_v53 }
  0x9c   : > { %v302_v54 = vsel %vm298_vm1, %v282_v44, %v285_v48  ;;  %v303_v55 = vsel %vm301_vm4, %v291_v50, 2102212464  ;;  %v306_v56 = vsel %vm298_vm1, %v285_v48, %v288_v49  ;;  %v310_v57 = vsel %vm298_vm1, %v288_v49, %v291_v50 }
  0x9d   : > { %v304_v58 = vsel %vm300_vm2, %v288_v49, %v303_v55  ;;  %v307_v59 = vsel %vm301_vm4, %v294_v51, 920167782  ;;  %v311_v60 = vsel %vm301_vm4, %v297_v52, 1326507024  ;;  %v383_v14 = vshrl.u32 %v382_v53, 5 }
  0x9e   : > { %v308_v62 = vsel %vm300_vm2, %v291_v50, %v307_v59  ;;  %v312_v63 = vsel %vm300_vm2, %v294_v51, %v311_v60  ;;  %v305_v1 = vsel %vm299_vm5, %v302_v54, %v304_v58  ;;  %v385_v16 = vsub.s32 32, %v384_v0 }
  0x9f   : > { %v309_v2 = vsel %vm299_vm5, %v306_v56, %v308_v62  ;;  %v313_v3 = vsel %vm299_vm5, %v310_v57, %v312_v63  ;;  %v321_v18 = vmul.u32 %v957_v27, %v305_v1  ;;  %v387_v19 = vshll.u32 %v857_v29, %v384_v0 }
  0xa0   : > { %v970_v4 = vmul.u32.u64.low %v957_v27, %v313_v3  ;;  %v971_v8 = vmul.u32.u64.high %v957_v27, %v313_v3, %v970_v4  ;;  %v974_v12 = vmul.u32.u64.low %v957_v27, %v309_v2  ;;  %v975_v13 = vmul.u32.u64.high %v957_v27, %v309_v2, %v974_v12 }
  0xa1   : > { %v390_v20 = vshll.u32 %v858_v33, %v384_v0  ;;  %v393_v21 = vshll.u32 %v859_v35, %v384_v0  ;;  %v388_v23 = vshrl.u32 %v858_v33, %v385_v16  ;;  %v391_v24 = vshrl.u32 %v859_v35, %v385_v16 }
  0xa2   : > { %v394_v25 = vshrl.u32 %v860_v37, %v385_v16  ;;  %v396_v26 = vshll.u32 %v860_v37, %v384_v0  ;;  %vm323_vm6 = vc.u32 %v971_v8, %v974_v12  ;;  %v324_v28 = vadd.s32 1, %v975_v13 }
  0xa3   : > { %v397_v30 = vshrl.u32 %v861_v39, %v385_v16  ;;  %v399_v31 = vshll.u32 %v861_v39, %v384_v0  ;;  %v389_v32 = vor.u32 %v388_v23, %v387_v19  ;;  %v392_v34 = vor.u32 %v391_v24, %v390_v20 }
  0xa4   : > { %v395_v36 = vor.u32 %v394_v25, %v393_v21  ;;  %v400_v38 = vshrl.u32 %v862_v46, %v385_v16  ;;  %v325_v27 = vsel %vm323_vm6, %v324_v28, %v975_v13  ;;  %vm402_vm7 = vcmp.lt.s32.totalorder %v383_v14, 1 }
  0xa5   : > { %v398_v40 = vor.u32 %v397_v30, %v396_v26  ;;  %vm405_vm8 = vcmp.lt.s32.totalorder %v383_v14, 4  ;;  %v326_v33 = vadd.s32 %v325_v27, %v321_v18  ;;  %vm404_vm9 = vcmp.lt.s32.totalorder %v383_v14, 3 }
  0xa6   : > { %v401_v35 = vor.u32 %v400_v38, %v399_v31  ;;  %v407_v37 = vsel %vm405_vm8, %v395_v36, 2102212464  ;;  %v386_v41 = vshrl.u32 %v857_v29, %v385_v16  ;;  %v410_v42 = vsel %vm402_vm7, %v389_v32, %v392_v34 }
  0xa7   : > { %v411_v43 = vsel %vm405_vm8, %v398_v40, 920167782  ;;  %v414_v44 = vsel %vm402_vm7, %v392_v34, %v395_v36  ;;  %v327_v45 = vadd.s32 536870912, %v326_v33  ;;  %vm403_vm10 = vcmp.lt.s32.totalorder %v383_v14, 2 }
  0xa8   : > { %v412_v39 = vsel %vm404_vm9, %v395_v36, %v411_v43  ;;  %v415_v47 = vsel %vm405_vm8, %v401_v35, 1326507024  ;;  %v406_v48 = vsel %vm402_vm7, %v386_v41, %v389_v32  ;;  %v408_v46 = vsel %vm404_vm9, %v392_v34, %v407_v37 }
  0xa9   : > { %v413_v49 = vsel %vm403_vm10, %v410_v42, %v412_v39  ;;  %v416_v50 = vsel %vm404_vm9, %v398_v40, %v415_v47  ;;  %v328_v51 = vshrl.u32 %v327_v45, 30  ;;  %v409_v57 = vsel %vm403_vm10, %v406_v48, %v408_v46 }
  0xaa   : > { %v417_v52 = vsel %vm403_vm10, %v414_v44, %v416_v50  ;;  %v985_v53 = vmul.u32.u64.low %v418_v17, %v413_v49  ;;  %v986_v54 = vmul.u32.u64.high %v418_v17, %v413_v49, %v985_v53  ;;  %v425_v60 = vmul.u32 %v418_v17, %v409_v57 }
  0xab   : > { %v988_v55 = vmul.u32.u64.low %v418_v17, %v417_v52  ;;  %v989_v56 = vmul.u32.u64.high %v418_v17, %v417_v52, %v988_v55  ;;  %v329_v29 = vshll.u32 %v328_v51, 30  ;;  %v322_v18 = vadd.s32 %v974_v12, %v971_v8 }
  0xac   : > { %v428_v59 = vadd.s32 1, %v986_v54  ;;  %v352_v40 = vsub.s32 4, %v328_v51  ;;  %vm1004_vm1 = vcmp.le.f32.partialorder %v370_v22, 0.7853982  ;;  %vm358_vm5 = vweird.f32 %v944_v9 }
  0xad   : > { %v330_v58 = vsub.s32 %v326_v33, %v329_v29  ;;  %vm427_vm11 = vc.u32 %v989_v56, %v985_v53  ;;  %v426_v8 = vadd.s32 %v985_v53, %v989_v56  ;;  %vm490_vm6 = vcmask 261120  }
  0xae   : > { %v429_v62 = vsel %vm427_vm11, %v428_v59, %v986_v54  ;;  %v353_v44 = vsel %vm268_vm14, %v352_v40, %v328_v51  ;;  %vm462_vm10 = vweird.f32 %v951_v15  ;;  %vm869_vm11 = vmmov 0  }
  0xaf   : > { %v332_v61 = vsub.s32 0, %v330_v58  ;;  %v430_v63 = vadd.s32 %v429_v62, %v425_v60  ;;  %v355_v46 = vsel %vm267_vm15, 0, %v353_v44  ;;  %769 = vmatprep.mubr.msk.bf16.mxu0 %vm869_vm11, %v856_v5 }
  0xb0   : > { %v359_v52 = vadd.s32 3, %v355_v46 }
  0xb1   : > { %v726_v0 = vmin.u32 %v332_v61, %v330_v58  ;;  %v431_v1 = vadd.s32 536870912, %v430_v63 }
  0xb2   : > { %v360_v56 = vand.u32 3, %v359_v52 }
  0xb3   : > { %v334_v2 = vclz %v726_v0  ;;  %v432_v3 = vshrl.u32 %v431_v1, 30 }
  0xb4   : > { %vm365_vm2 = vcmp.eq.s32.totalorder %v360_v56, 2  ;;  %vm362_vm3 = vcmp.eq.s32.totalorder %v360_v56, 0  ;;  %vm361_vm4 = vcmp.lt.s32.totalorder %v360_v56, 2 }
  0xb5   : > { %v727_v4 = vadd.s32 4294967294, %v334_v2  ;;  %v433_v13 = vshll.u32 %v432_v3, 30  ;;  %v456_v54 = vsub.s32 4, %v432_v3 }
  0xb7   : > { %vm728_vm12 = vcmp.lt.s32.totalorder %v727_v4, 0  ;;  %v434_v16 = vsub.s32 %v430_v63, %v433_v13  ;;  %v457_v51 = vsel %vm372_vm0, %v456_v54, %v432_v3 }
  0xb8   : > { %v337_v14 = vsel %vm728_vm12, 0, %v727_v4  ;;  %v459_v62 = vsel %vm1004_vm1, 0, %v457_v51  ;;  %v479_v4 = vpop.permute.xlu1 %478  ;;  %vm583_vm12 = vcmask 916480  }
  0xb9   : > { %v338_v19 = vsub.s32 32, %v337_v14  ;;  %v342_v17 = vsub.s32 4294967266, %v337_v14  ;;  %v436_v20 = vsub.s32 0, %v434_v16  ;;  %v339_v21 = vshll.u32 %v330_v58, %v337_v14 }
  0xba   : > { %v463_v1 = vadd.s32 3, %v459_v62 }
  0xbb   : > { %v340_v23 = vshrl.u32 %v322_v18, %v338_v19  ;;  %v343_v24 = vadd.s32 127, %v342_v17  ;;  %v730_v25 = vmin.u32 %v436_v20, %v434_v16 }
  0xbc   : > { %v464_v14 = vand.u32 3, %v463_v1 }
  0xbd   : > { %v341_v26 = vor.u32 %v340_v23, %v339_v21  ;;  %v344_v28 = vshll.u32 %v343_v24, 23  ;;  %v438_v30 = vclz %v730_v25 }
  0xbe   : > { %vm469_vm7 = vcmp.eq.s32.totalorder %v464_v14, 2  ;;  %vm466_vm8 = vcmp.eq.s32.totalorder %v464_v14, 0  ;;  %vm465_vm9 = vcmp.lt.s32.totalorder %v464_v14, 2 }
  0xbf   : > { %v345_v31 = vor.u32 4788187, %v344_v28  ;;  %v731_v32 = vadd.s32 4294967294, %v438_v30  ;;  %v348_v36 = vcvt.s32.f32 %v341_v26 }
  0xc1   : > { %v346_v34 = vand.u32 2147483647, %v345_v31  ;;  %vm732_vm13 = vcmp.lt.s32.totalorder %v731_v32, 0 }
  0xc2   : > { %v441_v27 = vsel %vm732_vm13, 0, %v731_v32  ;;  %vm636_vm13 = vcmask 257024  }
  0xc3   : > { %v349_v38 = vmul.f32 %v348_v36, %v346_v34  ;;  %v442_v12 = vsub.s32 32, %v441_v27  ;;  %v446_v33 = vsub.s32 4294967266, %v441_v27  ;;  %v443_v37 = vshll.u32 %v434_v16, %v441_v27 }
  0xc5   : > { %v350_v35 = vxor.u32 2147483648, %v349_v38  ;;  %v444_v41 = vshrl.u32 %v426_v8, %v442_v12  ;;  %v447_v42 = vadd.s32 127, %v446_v33 }
  0xc7   : > { %v351_v43 = vsel %vm268_vm14, %v350_v35, %v349_v38  ;;  %v445_v45 = vor.u32 %v444_v41, %v443_v37  ;;  %v448_v39 = vshll.u32 %v447_v42, 23 }
  0xc8   : > { %v354_v47 = vsel %vm267_vm15, %v944_v9, %v351_v43 }
  0xc9   : > { %823 = vcosq.f32 %v354_v47  ;;  %v449_v48 = vor.u32 4788187, %v448_v39  ;;  %v452_v50 = vcvt.s32.f32 %v445_v45 }
  0xca   : > { %825 = vsinq.f32 %v354_v47 }
  0xcb   : > { %v450_v49 = vand.u32 2147483647, %v449_v48 }
  0xcd   : > { %v453_v53 = vmul.f32 %v452_v50, %v450_v49 }
  0xcf   : > { %v454_v55 = vxor.u32 2147483648, %v453_v53 }
  0xd1   : > { %v455_v29 = vsel %vm372_vm0, %v454_v55, %v453_v53 }
  0xd2   : > { %v458_v58 = vsel %vm1004_vm1, %v951_v15, %v455_v29 }
  0xd3   : > { %v824_v57 = vpop.eup %823  ;;  %827 = vcosq.f32 %v458_v58 }
  0xd4   : > { %v826_v59 = vpop.eup %825  ;;  %v366_v60 = vxor.u32 2147483648, %v824_v57  ;;  %829 = vsinq.f32 %v458_v58 }
  0xd5   : > { %v363_v61 = vxor.u32 2147483648, %v826_v59 }
  0xd6   : > { %v367_v22 = vsel %vm365_vm2, %v366_v60, %v826_v59 }
  0xd7   : > { %v364_v63 = vsel %vm362_vm3, %v824_v57, %v363_v61  ;;  %v822_v57 = vld [vmem:[%s1064_s1] sm:$0xff]  }
  0xd8   : > { %v368_v0 = vsel %vm361_vm4, %v364_v63, %v367_v22 }
  0xd9   : > { %v369_v2 = vsel %vm358_vm5, nan, %v368_v0 }
  0xda   : > { %v474_v3 = vmul.f32 %v369_v2, %v369_v2 }
  0xdc   : > { %v486_v13 = vmul.f32 %v479_v4, %v474_v3 }
  0xdd   : > { %v828_v16 = vpop.eup %827 }
  0xde   : > { %v488_v18 = vadd.f32 %v745_v7, %v486_v13  ;;  %v830_v19 = vpop.eup %829  ;;  %v470_v17 = vxor.u32 2147483648, %v828_v16  ;;  %v484_v7 = vpop.permute.xlu1 %483 }
  0xdf   : > { %v467_v20 = vxor.u32 2147483648, %v830_v19 }
  0xe0   : > { %491 = vst.msk [vmem:[#allocation2] sm:$0xff] %vm490_vm6, %v488_v18  ;;  %495 = vrot.lane.b32.xlu0 %v488_v18, %s863_s9  ;;  %v471_v9 = vsel %vm469_vm7, %v470_v17, %v830_v19 }
  0xe1   : > { %v468_v21 = vsel %vm466_vm8, %v828_v16, %v467_v20 }
  0xe2   : > { %v472_v23 = vsel %vm465_vm9, %v468_v21, %v471_v9 }
  0xe3   : > { %v473_v24 = vsel %vm462_vm10, nan, %v472_v23 }
  0xe4   : > { %503 = vrot.lane.b32.xlu0 %v488_v18, %s864_s10  ;;  %v475_v25 = vmul.f32 %v473_v24, %v473_v24 }
  0xe6   : > { %v487_v26 = vmul.f32 %v484_v7, %v475_v25 }
  0xe7   : > { %v543_v15 = vld [vmem:[#allocation2] sm:$0xff] }
  0xe8   : > { %511 = vrot.lane.b32.xlu0 %v488_v18, %s865_s11  ;;  %v489_v28 = vadd.f32 %v746_v10, %v487_v26  ;;  %v567_v10 = vld [vmem:[%s1065_s2 + $0x8] sm:$0xff] }
  0xea   : > { %492 = vst.msk [vmem:[#allocation2 + $0x8] sm:$0xff] %vm490_vm6, %v489_v28  ;;  %497 = vrot.lane.b32.xlu1 %v489_v28, %s863_s9 }
  0xec   : > { %519 = vrot.lane.b32.xlu0 %v488_v18, %s866_s12 }
  0xee   : > { %505 = vrot.lane.b32.xlu1 %v489_v28, %s864_s10 }
  0xf0   : > { %527 = vrot.lane.b32.xlu0 %v488_v18, %s867_s13 }
  0xf1   : > { %v544_v30 = vld [vmem:[#allocation2 + $0x8] sm:$0xff] }
  0xf2   : > { %513 = vrot.lane.b32.xlu1 %v489_v28, %s865_s11  ;;  %v557_v31 = vpack.c.bf16 %v544_v30, %v543_v15 }
  0xf4   : > { %535 = vrot.lane.b32.xlu0 %v488_v18, %s868_s14  ;;  %756 = vmatpush3.bf16.msra.mxu0 %v557_v31 }
  0xf5   : > { %757 = vmatprep.subr.bf16.mxu0 %v856_v5 }
  0xf6   : > { %521 = vrot.lane.b32.xlu1 %v489_v28, %s866_s12 }
  0xf8   : > { %570 = vperm.xlu0 %820, %v566_v6  }
  0xfa   : > { %529 = vrot.lane.b32.xlu1 %v489_v28, %s867_s13 }
  0xfe   : > { %537 = vrot.lane.b32.xlu1 %v489_v28, %s868_s14 }
 0x102   : > { %575 = vperm.xlu1 %821, %v567_v10  }
 0x152   : > { %v496_v32 = vpop.permute.xlu0 %495 }
 0x153   : > { %501 = vst.msk [vmem:[#allocation2 + $0x10] sm:$0xff] %vm490_vm6, %v496_v32 }
 0x156   : > { %v504_v34 = vpop.permute.xlu0 %503 }
 0x157   : > { %509 = vst.msk [vmem:[#allocation2 + $0x20] sm:$0xff] %vm490_vm6, %v504_v34 }
 0x15a   : > { %v512_v36 = vpop.permute.xlu0 %511  ;;  %v545_v33 = vld [vmem:[#allocation2 + $0x10] sm:$0xff] }
 0x15b   : > { %517 = vst.msk [vmem:[#allocation2 + $0x30] sm:$0xff] %vm490_vm6, %v512_v36 }
 0x15c   : > { %v498_v38 = vpop.permute.xlu1 %497 }
 0x15d   : > { %502 = vst.msk [vmem:[#allocation2 + $0x18] sm:$0xff] %vm490_vm6, %v498_v38 }
 0x15e   : > { %v520_v27 = vpop.permute.xlu0 %519  ;;  %v547_v43 = vld [vmem:[#allocation2 + $0x20] sm:$0xff] }
 0x15f   : > { %525 = vst.msk [vmem:[#allocation2 + $0x40] sm:$0xff] %vm490_vm6, %v520_v27 }
 0x160   : > { %v506_v40 = vpop.permute.xlu1 %505 }
 0x161   : > { %510 = vst.msk [vmem:[#allocation2 + $0x28] sm:$0xff] %vm490_vm6, %v506_v40 }
 0x162   : > { %v528_v8 = vpop.permute.xlu0 %527  ;;  %v549_v47 = vld [vmem:[#allocation2 + $0x30] sm:$0xff] }
 0x163   : > { %533 = vst.msk [vmem:[#allocation2 + $0x50] sm:$0xff] %vm490_vm6, %v528_v8 }
 0x164   : > { %v514_v12 = vpop.permute.xlu1 %513  ;;  %v546_v35 = vld [vmem:[#allocation2 + $0x18] sm:$0xff] }
 0x165   : > { %518 = vst.msk [vmem:[#allocation2 + $0x38] sm:$0xff] %vm490_vm6, %v514_v12  ;;  %v558_v37 = vpack.c.bf16 %v546_v35, %v545_v33 }
 0x166   : > { %v536_v41 = vpop.permute.xlu0 %535  ;;  %v551_v50 = vld [vmem:[#allocation2 + $0x40] sm:$0xff] }
 0x167   : > { %541 = vst.msk [vmem:[#allocation2 + $0x60] sm:$0xff] %vm490_vm6, %v536_v41  ;;  %758 = vmatpush3.bf16.msra.mxu0 %v558_v37 }
 0x168   : > { %v522_v42 = vpop.permute.xlu1 %521  ;;  %759 = vmatprep.subr.bf16.mxu0 %v856_v5  ;;  %v548_v44 = vld [vmem:[#allocation2 + $0x28] sm:$0xff] }
 0x169   : > { %526 = vst.msk [vmem:[#allocation2 + $0x48] sm:$0xff] %vm490_vm6, %v522_v42  ;;  %v559_v45 = vpack.c.bf16 %v548_v44, %v547_v43 }
 0x16a   : > { %v553_v54 = vld [vmem:[#allocation2 + $0x50] sm:$0xff] }
 0x16b   : > { %760 = vmatpush3.bf16.msra.mxu0 %v559_v45 }
 0x16c   : > { %v530_v39 = vpop.permute.xlu1 %529  ;;  %761 = vmatprep.subr.bf16.mxu0 %v856_v5  ;;  %v550_v48 = vld [vmem:[#allocation2 + $0x38] sm:$0xff] }
 0x16d   : > { %534 = vst.msk [vmem:[#allocation2 + $0x58] sm:$0xff] %vm490_vm6, %v530_v39  ;;  %v560_v46 = vpack.c.bf16 %v550_v48, %v549_v47 }
 0x16e   : > { %v555_v29 = vld [vmem:[#allocation2 + $0x60] sm:$0xff] }
 0x16f   : > { %762 = vmatpush3.bf16.msra.mxu0 %v560_v46 }
 0x170   : > { %v538_v49 = vpop.permute.xlu1 %537  ;;  %763 = vmatprep.subr.bf16.mxu0 %v856_v5  ;;  %v552_v52 = vld [vmem:[#allocation2 + $0x48] sm:$0xff] }
 0x171   : > { %542 = vst.msk [vmem:[#allocation2 + $0x68] sm:$0xff] %vm490_vm6, %v538_v49  ;;  %v561_v53 = vpack.c.bf16 %v552_v52, %v551_v50 }
 0x173   : > { %764 = vmatpush3.bf16.msra.mxu0 %v561_v53 }
 0x174   : > { %765 = vmatprep.subr.bf16.mxu0 %v856_v5  ;;  %v554_v55 = vld [vmem:[#allocation2 + $0x58] sm:$0xff] }
 0x175   : > { %v562_v56 = vpack.c.bf16 %v554_v55, %v553_v54 }
 0x177   : > { %766 = vmatpush3.bf16.msra.mxu0 %v562_v56  ;;  %v571_v58 = vpop.permute.xlu0 %570 }
 0x178   : > { %767 = vmatprep.subr.bf16.mxu0 %v856_v5  ;;  %v556_v11 = vld [vmem:[#allocation2 + $0x68] sm:$0xff] }
 0x179   : > { %v563_v51 = vpack.c.bf16 %v556_v11, %v555_v29 }
 0x17b   : > { %768 = vmatpush3.bf16.msra.mxu0 %v563_v51 }
 0x17e   : > { %770 = vmatmul.mubr.msk.bf16.vlgmr.msra.gmra.mrb[0].mxu0 %vm583_vm12, %v822_v57 }
 0x181   : > { %v576_v5 = vpop.permute.xlu1 %575 }
 0x251   : > { %v621_v59 = vpop.f32.mrb[0].mxu0 }
 0x252   : > { %v622_v60 = vadd.f32 %v621_v59, %v571_v58  ;;  %v771_v61 = vpop.f32.mrb[1].mxu0 }
 0x253   : > { %v624_v62 = vpop.f32.mrb[2].mxu0 }
 0x254   : > { %v741_v22 = vpack.c.bf16 %v622_v60, %v622_v60  ;;  %v625_v63 = vadd.f32 %v624_v62, %v576_v5  ;;  %v772_v0 = vpop.f32.mrb[3].mxu0 }
 0x256   : > { %637 = vst.msk [vmem:[%s244_s27] sm:$0xf] %vm636_vm13, %v741_v22  ;;  %v742_v1 = vpack.c.bf16 %v625_v63, %v625_v63 }
 0x258   : > { %638 = vst.msk [vmem:[%s244_s27 + $0x4] sm:$0xf] %vm636_vm13, %v742_v1 }
 0x259 PF: > { %s15_s20 = sadd.s32 1, %s853_s20   ;;  %s1071_s18 = smov %s849_s19 }
 0x25a   : > { %p12_p5 = scmp.ge.s32.totalorder %s15_s20, 4   ;;  %s1072_s19 = smov %s1074_s21 }
 0x25c   :  { %14 = sbr.rel (!%p12_p5) target bundleno = 2 (0x2), region = 70 }

// kernel: decoder_pallas.22
= control target key start
LH: loop header
LB: loop body
LE: loop exit
PB: predicated region body
PF: predicated region fallthrough
CT: control target
= control target key end

     0   :  { %s900_s18 = smov 0   ;;  %s902_s19 = smov 0   ;;  %s1063_s0 = inlined_call_operand.vmem [shape: bf16[2,16,86], index: 0, kind: input, shape index: {}]   ;;  %s1064_s1 = inlined_call_operand.vmem [shape: bf16[16,112], index: 1, kind: input, shape index: {}]   ;;  %s1065_s2 = inlined_call_operand.vmem [shape: f32[16,1], index: 2, kind: input, shape index: {}]   ;;  %s1066_s3 = inlined_call_operand.vmem [shape: f32[16,1], index: 3, kind: input, shape index: {}]   ;;  %s1067_s4 = inlined_call_operand.vmem [shape: f32[16,1], index: 4, kind: input, shape index: {}]   ;;  %s1068_s5 = inlined_call_operand.vmem [shape: bf16[2,16,32], index: 5, kind: output, shape index: {}]  }
   0x1   :  { %s904_s20 = smov 0  }
   0x2 LB: > { %s27_s21 = sadd.s32 1, %s849_s19  ;;  %p720_p0 = scmp.ge.s32.totalorder %s853_s20, 1  ;;  %s853_s20 = sphi %s904_s20, %s15_s20   ;;  %s849_s19 = sphi %s902_s19, %s1072_s19   ;;  %s845_s18 = sphi %s900_s18, %s1071_s18  }
   0x3   : > { %p29_p1 = scmp.ge.s32.totalorder %s27_s21, 2  ;;  %p201_p2 = scmp.lt.s32.totalorder %s853_s20, 3 }
   0x5   : > { %s1074_s21 = smov (%p29_p1, %s27_s21), 0  ;;  %p202_p3 = pnand %p720_p0, %p201_p2 }
   0x6   : > { %v250_v0 = vld [vmem:[%s1066_s3] sm:$0xff] (!%p202_p3)  ;;  %v855_v2 = vmov (!%p202_p3), 0   ;;  %v251_v3 = vld [vmem:[%s1066_s3 + $0x8] sm:$0xff] (!%p202_p3)  ;;  %p232_p4 = scmp.lt.s32.totalorder (!%p202_p3), %s845_s18, 1  ;;  %v856_v5 = vmov (!%p202_p3), 0.0   ;;  %s863_s9 = smov (!%p202_p3), 119  }
   0x7   : > { %205 = sbr.rel (%p202_p3) target bundleno = 601 (0x259), region = 40  ;;  %v252_v1 = vld [vmem:[%s1067_s4] sm:$0xff] (!%p202_p3)  ;;  %820 = vset.pattern.permute.xlu0 (!%p202_p3), %v855_v2  ;;  %821 = vset.pattern.permute.xlu1 (!%p202_p3), %v855_v2  ;;  %v253_v4 = vld [vmem:[%s1067_s4 + $0x8] sm:$0xff] (!%p202_p3)  ;;  %v857_v29 = vmov (!%p202_p3), 683565275   ;;  %s864_s10 = smov (!%p202_p3), 110  }
   0x8   : > { %256 = vperm.xlu0 (!%p202_p3), %820, %v250_v0   ;;  %478 = vperm.xlu1 (!%p202_p3), %821, %v252_v1   ;;  %v858_v33 = vmov (!%p202_p3), 2475754826   ;;  %v859_v35 = vmov (!%p202_p3), 2131351028   ;;  %v860_v37 = vmov (!%p202_p3), 2102212464  }
   0x9   : > { %755 = vmatprep.subr.bf16.mxu0 (!%p202_p3), %v856_v5  ;;  %v861_v39 = vmov (!%p202_p3), 920167782   ;;  %v862_v46 = vmov (!%p202_p3), 1326507024   ;;  %s865_s11 = smov (!%p202_p3), 101   ;;  %s866_s12 = smov (!%p202_p3), 92  }
   0xa   : > { %s867_s13 = smov (!%p202_p3), 83   ;;  %s868_s14 = smov (!%p202_p3), 74  }
   0xc   : > { %261 = vperm.xlu0 (!%p202_p3), %820, %v251_v3   ;;  %483 = vperm.xlu1 (!%p202_p3), %821, %v253_v4  }
   0xe   : > { %s1076_s18 = smov (!%p232_p4, %s845_s18), 1 }
   0xf   : > { %s739_s30 = sshll.u32 %s1076_s18, 3 }
  0x10   : > { %s236_s8 = scalar_lea.vmem %s1063_s0, %s739_s30  ;;  %s244_s27 = scalar_lea.vmem %s1068_s5, %s739_s30 }
  0x11   : > { %v939_v6 = vld [vmem:[%s236_s8] sm:$0xff]  }
  0x12   : > { %v745_v7 = vunpack.c.l.bf16 %v939_v6  ;;  %v746_v10 = vunpack.c.h.bf16 %v939_v6  ;;  %v566_v6 = vld [vmem:[%s1065_s2] sm:$0xff] }
  0x87   : > { %v257_v8 = vpop.permute.xlu0 %256 }
  0x88   : > { %v944_v9 = vmul.f32 %v745_v7, %v257_v8 }
  0x8a   : > { %v266_v11 = vand.u32 2147483647, %v944_v9  ;;  %v269_v12 = vand.u32 2139095040, %v944_v9  ;;  %vm268_vm14 = vcmp.lt.s32.totalorder %v944_v9, 0 }
  0x8b   : > { %v262_v13 = vpop.permute.xlu0 %261 }
  0x8c   : > { %v270_v14 = vshrl.u32 %v269_v12, 23  ;;  %v951_v15 = vmul.f32 %v746_v10, %v262_v13  ;;  %v273_v16 = vand.u32 8388607, %v266_v11  ;;  %vm267_vm15 = vcmp.le.f32.partialorder %v266_v11, 0.7853982 }
  0x8e   : > { %v725_v17 = vadd.s32 4294967169, %v270_v14  ;;  %v373_v18 = vand.u32 2139095040, %v951_v15  ;;  %v274_v20 = vor.u32 8388608, %v273_v16  ;;  %v370_v22 = vand.u32 2147483647, %v951_v15 }
  0x90   : > { %v276_v19 = vadd.s32 1, %v725_v17  ;;  %v374_v21 = vshrl.u32 %v373_v18, 23  ;;  %v957_v27 = vshll.u32 %v274_v20, 8  ;;  %v377_v31 = vand.u32 8388607, %v370_v22 }
  0x92   : > { %vm277_vm0 = vcmp.gt.s32.totalorder %v276_v19, 0  ;;  %v729_v24 = vadd.s32 4294967169, %v374_v21  ;;  %v378_v61 = vor.u32 8388608, %v377_v31 }
  0x93   : > { %v278_v23 = vsel %vm277_vm0, %v276_v19, 0  ;;  %vm372_vm0 = vcmp.lt.s32.totalorder %v951_v15, 0 }
  0x94   : > { %v279_v25 = vshrl.u32 %v278_v23, 5  ;;  %v280_v26 = vand.u32 31, %v278_v23  ;;  %v380_v32 = vadd.s32 1, %v729_v24  ;;  %v418_v17 = vshll.u32 %v378_v61, 8 }
  0x96   : > { %v281_v28 = vsub.s32 32, %v280_v26  ;;  %v283_v30 = vshll.u32 %v857_v29, %v280_v26  ;;  %v286_v34 = vshll.u32 %v858_v33, %v280_v26  ;;  %v289_v36 = vshll.u32 %v859_v35, %v280_v26 }
  0x97   : > { %v292_v38 = vshll.u32 %v860_v37, %v280_v26  ;;  %v295_v40 = vshll.u32 %v861_v39, %v280_v26  ;;  %vm298_vm1 = vcmp.lt.s32.totalorder %v279_v25, 1  ;;  %vm300_vm2 = vcmp.lt.s32.totalorder %v279_v25, 3 }
  0x98   : > { %v284_v41 = vshrl.u32 %v858_v33, %v281_v28  ;;  %v287_v42 = vshrl.u32 %v859_v35, %v281_v28  ;;  %v290_v43 = vshrl.u32 %v860_v37, %v281_v28  ;;  %v282_v44 = vshrl.u32 %v857_v29, %v281_v28 }
  0x99   : > { %v293_v45 = vshrl.u32 %v861_v39, %v281_v28  ;;  %v296_v47 = vshrl.u32 %v862_v46, %v281_v28  ;;  %vm381_vm3 = vcmp.gt.s32.totalorder %v380_v32, 0  ;;  %vm301_vm4 = vcmp.lt.s32.totalorder %v279_v25, 4 }
  0x9a   : > { %v285_v48 = vor.u32 %v284_v41, %v283_v30  ;;  %v288_v49 = vor.u32 %v287_v42, %v286_v34  ;;  %v291_v50 = vor.u32 %v290_v43, %v289_v36  ;;  %v382_v53 = vsel %vm381_vm3, %v380_v32, 0 }
  0x9b   : > { %v294_v51 = vor.u32 %v293_v45, %v292_v38  ;;  %v297_v52 = vor.u32 %v296_v47, %v295_v40  ;;  %vm299_vm5 = vcmp.lt.s32.totalorder %v279_v25, 2  ;;  %v384_v0 = vand.u32 31, %v382_v53 }
  0x9c   : > { %v302_v54 = vsel %vm298_vm1, %v282_v44, %v285_v48  ;;  %v303_v55 = vsel %vm301_vm4, %v291_v50, 2102212464  ;;  %v306_v56 = vsel %vm298_vm1, %v285_v48, %v288_v49  ;;  %v310_v57 = vsel %vm298_vm1, %v288_v49, %v291_v50 }
  0x9d   : > { %v304_v58 = vsel %vm300_vm2, %v288_v49, %v303_v55  ;;  %v307_v59 = vsel %vm301_vm4, %v294_v51, 920167782  ;;  %v311_v60 = vsel %vm301_vm4, %v297_v52, 1326507024  ;;  %v383_v14 = vshrl.u32 %v382_v53, 5 }
  0x9e   : > { %v308_v62 = vsel %vm300_vm2, %v291_v50, %v307_v59  ;;  %v312_v63 = vsel %vm300_vm2, %v294_v51, %v311_v60  ;;  %v305_v1 = vsel %vm299_vm5, %v302_v54, %v304_v58  ;;  %v385_v16 = vsub.s32 32, %v384_v0 }
  0x9f   : > { %v309_v2 = vsel %vm299_vm5, %v306_v56, %v308_v62  ;;  %v313_v3 = vsel %vm299_vm5, %v310_v57, %v312_v63  ;;  %v321_v18 = vmul.u32 %v957_v27, %v305_v1  ;;  %v387_v19 = vshll.u32 %v857_v29, %v384_v0 }
  0xa0   : > { %v970_v4 = vmul.u32.u64.low %v957_v27, %v313_v3  ;;  %v971_v8 = vmul.u32.u64.high %v957_v27, %v313_v3, %v970_v4  ;;  %v974_v12 = vmul.u32.u64.low %v957_v27, %v309_v2  ;;  %v975_v13 = vmul.u32.u64.high %v957_v27, %v309_v2, %v974_v12 }
  0xa1   : > { %v390_v20 = vshll.u32 %v858_v33, %v384_v0  ;;  %v393_v21 = vshll.u32 %v859_v35, %v384_v0  ;;  %v388_v23 = vshrl.u32 %v858_v33, %v385_v16  ;;  %v391_v24 = vshrl.u32 %v859_v35, %v385_v16 }
  0xa2   : > { %v394_v25 = vshrl.u32 %v860_v37, %v385_v16  ;;  %v396_v26 = vshll.u32 %v860_v37, %v384_v0  ;;  %vm323_vm6 = vc.u32 %v971_v8, %v974_v12  ;;  %v324_v28 = vadd.s32 1, %v975_v13 }
  0xa3   : > { %v397_v30 = vshrl.u32 %v861_v39, %v385_v16  ;;  %v399_v31 = vshll.u32 %v861_v39, %v384_v0  ;;  %v389_v32 = vor.u32 %v388_v23, %v387_v19  ;;  %v392_v34 = vor.u32 %v391_v24, %v390_v20 }
  0xa4   : > { %v395_v36 = vor.u32 %v394_v25, %v393_v21  ;;  %v400_v38 = vshrl.u32 %v862_v46, %v385_v16  ;;  %v325_v27 = vsel %vm323_vm6, %v324_v28, %v975_v13  ;;  %vm402_vm7 = vcmp.lt.s32.totalorder %v383_v14, 1 }
  0xa5   : > { %v398_v40 = vor.u32 %v397_v30, %v396_v26  ;;  %vm405_vm8 = vcmp.lt.s32.totalorder %v383_v14, 4  ;;  %v326_v33 = vadd.s32 %v325_v27, %v321_v18  ;;  %vm404_vm9 = vcmp.lt.s32.totalorder %v383_v14, 3 }
  0xa6   : > { %v401_v35 = vor.u32 %v400_v38, %v399_v31  ;;  %v407_v37 = vsel %vm405_vm8, %v395_v36, 2102212464  ;;  %v386_v41 = vshrl.u32 %v857_v29, %v385_v16  ;;  %v410_v42 = vsel %vm402_vm7, %v389_v32, %v392_v34 }
  0xa7   : > { %v411_v43 = vsel %vm405_vm8, %v398_v40, 920167782  ;;  %v414_v44 = vsel %vm402_vm7, %v392_v34, %v395_v36  ;;  %v327_v45 = vadd.s32 536870912, %v326_v33  ;;  %vm403_vm10 = vcmp.lt.s32.totalorder %v383_v14, 2 }
  0xa8   : > { %v412_v39 = vsel %vm404_vm9, %v395_v36, %v411_v43  ;;  %v415_v47 = vsel %vm405_vm8, %v401_v35, 1326507024  ;;  %v406_v48 = vsel %vm402_vm7, %v386_v41, %v389_v32  ;;  %v408_v46 = vsel %vm404_vm9, %v392_v34, %v407_v37 }
  0xa9   : > { %v413_v49 = vsel %vm403_vm10, %v410_v42, %v412_v39  ;;  %v416_v50 = vsel %vm404_vm9, %v398_v40, %v415_v47  ;;  %v328_v51 = vshrl.u32 %v327_v45, 30  ;;  %v409_v57 = vsel %vm403_vm10, %v406_v48, %v408_v46 }
  0xaa   : > { %v417_v52 = vsel %vm403_vm10, %v414_v44, %v416_v50  ;;  %v985_v53 = vmul.u32.u64.low %v418_v17, %v413_v49  ;;  %v986_v54 = vmul.u32.u64.high %v418_v17, %v413_v49, %v985_v53  ;;  %v425_v60 = vmul.u32 %v418_v17, %v409_v57 }
  0xab   : > { %v988_v55 = vmul.u32.u64.low %v418_v17, %v417_v52  ;;  %v989_v56 = vmul.u32.u64.high %v418_v17, %v417_v52, %v988_v55  ;;  %v329_v29 = vshll.u32 %v328_v51, 30  ;;  %v322_v18 = vadd.s32 %v974_v12, %v971_v8 }
  0xac   : > { %v428_v59 = vadd.s32 1, %v986_v54  ;;  %v352_v40 = vsub.s32 4, %v328_v51  ;;  %vm1004_vm1 = vcmp.le.f32.partialorder %v370_v22, 0.7853982  ;;  %vm358_vm5 = vweird.f32 %v944_v9 }
  0xad   : > { %v330_v58 = vsub.s32 %v326_v33, %v329_v29  ;;  %vm427_vm11 = vc.u32 %v989_v56, %v985_v53  ;;  %v426_v8 = vadd.s32 %v985_v53, %v989_v56  ;;  %vm490_vm6 = vcmask 261120  }
  0xae   : > { %v429_v62 = vsel %vm427_vm11, %v428_v59, %v986_v54  ;;  %v353_v44 = vsel %vm268_vm14, %v352_v40, %v328_v51  ;;  %vm462_vm10 = vweird.f32 %v951_v15  ;;  %vm869_vm11 = vmmov 0  }
  0xaf   : > { %v332_v61 = vsub.s32 0, %v330_v58  ;;  %v430_v63 = vadd.s32 %v429_v62, %v425_v60  ;;  %v355_v46 = vsel %vm267_vm15, 0, %v353_v44  ;;  %769 = vmatprep.mubr.msk.bf16.mxu0 %vm869_vm11, %v856_v5 }
  0xb0   : > { %v359_v52 = vadd.s32 3, %v355_v46 }
  0xb1   : > { %v726_v0 = vmin.u32 %v332_v61, %v330_v58  ;;  %v431_v1 = vadd.s32 536870912, %v430_v63 }
  0xb2   : > { %v360_v56 = vand.u32 3, %v359_v52 }
  0xb3   : > { %v334_v2 = vclz %v726_v0  ;;  %v432_v3 = vshrl.u32 %v431_v1, 30 }
  0xb4   : > { %vm365_vm2 = vcmp.eq.s32.totalorder %v360_v56, 2  ;;  %vm362_vm3 = vcmp.eq.s32.totalorder %v360_v56, 0  ;;  %vm361_vm4 = vcmp.lt.s32.totalorder %v360_v56, 2 }
  0xb5   : > { %v727_v4 = vadd.s32 4294967294, %v334_v2  ;;  %v433_v13 = vshll.u32 %v432_v3, 30  ;;  %v456_v54 = vsub.s32 4, %v432_v3 }
  0xb7   : > { %vm728_vm12 = vcmp.lt.s32.totalorder %v727_v4, 0  ;;  %v434_v16 = vsub.s32 %v430_v63, %v433_v13  ;;  %v457_v51 = vsel %vm372_vm0, %v456_v54, %v432_v3 }
  0xb8   : > { %v337_v14 = vsel %vm728_vm12, 0, %v727_v4  ;;  %v459_v62 = vsel %vm1004_vm1, 0, %v457_v51  ;;  %v479_v4 = vpop.permute.xlu1 %478  ;;  %vm583_vm12 = vcmask 916480  }
  0xb9   : > { %v338_v19 = vsub.s32 32, %v337_v14  ;;  %v342_v17 = vsub.s32 4294967266, %v337_v14  ;;  %v436_v20 = vsub.s32 0, %v434_v16  ;;  %v339_v21 = vshll.u32 %v330_v58, %v337_v14 }
  0xba   : > { %v463_v1 = vadd.s32 3, %v459_v62 }
  0xbb   : > { %v340_v23 = vshrl.u32 %v322_v18, %v338_v19  ;;  %v343_v24 = vadd.s32 127, %v342_v17  ;;  %v730_v25 = vmin.u32 %v436_v20, %v434_v16 }
  0xbc   : > { %v464_v14 = vand.u32 3, %v463_v1 }
  0xbd   : > { %v341_v26 = vor.u32 %v340_v23, %v339_v21  ;;  %v344_v28 = vshll.u32 %v343_v24, 23  ;;  %v438_v30 = vclz %v730_v25 }
  0xbe   : > { %vm469_vm7 = vcmp.eq.s32.totalorder %v464_v14, 2  ;;  %vm466_vm8 = vcmp.eq.s32.totalorder %v464_v14, 0  ;;  %vm465_vm9 = vcmp.lt.s32.totalorder %v464_v14, 2 }
  0xbf   : > { %v345_v31 = vor.u32 4788187, %v344_v28  ;;  %v731_v32 = vadd.s32 4294967294, %v438_v30  ;;  %v348_v36 = vcvt.s32.f32 %v341_v26 }
  0xc1   : > { %v346_v34 = vand.u32 2147483647, %v345_v31  ;;  %vm732_vm13 = vcmp.lt.s32.totalorder %v731_v32, 0 }
  0xc2   : > { %v441_v27 = vsel %vm732_vm13, 0, %v731_v32  ;;  %vm636_vm13 = vcmask 257024  }
  0xc3   : > { %v349_v38 = vmul.f32 %v348_v36, %v346_v34  ;;  %v442_v12 = vsub.s32 32, %v441_v27  ;;  %v446_v33 = vsub.s32 4294967266, %v441_v27  ;;  %v443_v37 = vshll.u32 %v434_v16, %v441_v27 }
  0xc5   : > { %v350_v35 = vxor.u32 2147483648, %v349_v38  ;;  %v444_v41 = vshrl.u32 %v426_v8, %v442_v12  ;;  %v447_v42 = vadd.s32 127, %v446_v33 }
  0xc7   : > { %v351_v43 = vsel %vm268_vm14, %v350_v35, %v349_v38  ;;  %v445_v45 = vor.u32 %v444_v41, %v443_v37  ;;  %v448_v39 = vshll.u32 %v447_v42, 23 }
  0xc8   : > { %v354_v47 = vsel %vm267_vm15, %v944_v9, %v351_v43 }
  0xc9   : > { %823 = vcosq.f32 %v354_v47  ;;  %v449_v48 = vor.u32 4788187, %v448_v39  ;;  %v452_v50 = vcvt.s32.f32 %v445_v45 }
  0xca   : > { %825 = vsinq.f32 %v354_v47 }
  0xcb   : > { %v450_v49 = vand.u32 2147483647, %v449_v48 }
  0xcd   : > { %v453_v53 = vmul.f32 %v452_v50, %v450_v49 }
  0xcf   : > { %v454_v55 = vxor.u32 2147483648, %v453_v53 }
  0xd1   : > { %v455_v29 = vsel %vm372_vm0, %v454_v55, %v453_v53 }
  0xd2   : > { %v458_v58 = vsel %vm1004_vm1, %v951_v15, %v455_v29 }
  0xd3   : > { %v824_v57 = vpop.eup %823  ;;  %827 = vcosq.f32 %v458_v58 }
  0xd4   : > { %v826_v59 = vpop.eup %825  ;;  %v366_v60 = vxor.u32 2147483648, %v824_v57  ;;  %829 = vsinq.f32 %v458_v58 }
  0xd5   : > { %v363_v61 = vxor.u32 2147483648, %v826_v59 }
  0xd6   : > { %v367_v22 = vsel %vm365_vm2, %v366_v60, %v826_v59 }
  0xd7   : > { %v364_v63 = vsel %vm362_vm3, %v824_v57, %v363_v61  ;;  %v822_v57 = vld [vmem:[%s1064_s1] sm:$0xff]  }
  0xd8   : > { %v368_v0 = vsel %vm361_vm4, %v364_v63, %v367_v22 }
  0xd9   : > { %v369_v2 = vsel %vm358_vm5, nan, %v368_v0 }
  0xda   : > { %v474_v3 = vmul.f32 %v369_v2, %v369_v2 }
  0xdc   : > { %v486_v13 = vmul.f32 %v479_v4, %v474_v3 }
  0xdd   : > { %v828_v16 = vpop.eup %827 }
  0xde   : > { %v488_v18 = vadd.f32 %v745_v7, %v486_v13  ;;  %v830_v19 = vpop.eup %829  ;;  %v470_v17 = vxor.u32 2147483648, %v828_v16  ;;  %v484_v7 = vpop.permute.xlu1 %483 }
  0xdf   : > { %v467_v20 = vxor.u32 2147483648, %v830_v19 }
  0xe0   : > { %491 = vst.msk [vmem:[#allocation2] sm:$0xff] %vm490_vm6, %v488_v18  ;;  %495 = vrot.lane.b32.xlu0 %v488_v18, %s863_s9  ;;  %v471_v9 = vsel %vm469_vm7, %v470_v17, %v830_v19 }
  0xe1   : > { %v468_v21 = vsel %vm466_vm8, %v828_v16, %v467_v20 }
  0xe2   : > { %v472_v23 = vsel %vm465_vm9, %v468_v21, %v471_v9 }
  0xe3   : > { %v473_v24 = vsel %vm462_vm10, nan, %v472_v23 }
  0xe4   : > { %503 = vrot.lane.b32.xlu0 %v488_v18, %s864_s10  ;;  %v475_v25 = vmul.f32 %v473_v24, %v473_v24 }
  0xe6   : > { %v487_v26 = vmul.f32 %v484_v7, %v475_v25 }
  0xe7   : > { %v543_v15 = vld [vmem:[#allocation2] sm:$0xff] }
  0xe8   : > { %511 = vrot.lane.b32.xlu0 %v488_v18, %s865_s11  ;;  %v489_v28 = vadd.f32 %v746_v10, %v487_v26  ;;  %v567_v10 = vld [vmem:[%s1065_s2 + $0x8] sm:$0xff] }
  0xea   : > { %492 = vst.msk [vmem:[#allocation2 + $0x8] sm:$0xff] %vm490_vm6, %v489_v28  ;;  %497 = vrot.lane.b32.xlu1 %v489_v28, %s863_s9 }
  0xec   : > { %519 = vrot.lane.b32.xlu0 %v488_v18, %s866_s12 }
  0xee   : > { %505 = vrot.lane.b32.xlu1 %v489_v28, %s864_s10 }
  0xf0   : > { %527 = vrot.lane.b32.xlu0 %v488_v18, %s867_s13 }
  0xf1   : > { %v544_v30 = vld [vmem:[#allocation2 + $0x8] sm:$0xff] }
  0xf2   : > { %513 = vrot.lane.b32.xlu1 %v489_v28, %s865_s11  ;;  %v557_v31 = vpack.c.bf16 %v544_v30, %v543_v15 }
  0xf4   : > { %535 = vrot.lane.b32.xlu0 %v488_v18, %s868_s14  ;;  %756 = vmatpush3.bf16.msra.mxu0 %v557_v31 }
  0xf5   : > { %757 = vmatprep.subr.bf16.mxu0 %v856_v5 }
  0xf6   : > { %521 = vrot.lane.b32.xlu1 %v489_v28, %s866_s12 }
  0xf8   : > { %570 = vperm.xlu0 %820, %v566_v6  }
  0xfa   : > { %529 = vrot.lane.b32.xlu1 %v489_v28, %s867_s13 }
  0xfe   : > { %537 = vrot.lane.b32.xlu1 %v489_v28, %s868_s14 }
 0x102   : > { %575 = vperm.xlu1 %821, %v567_v10  }
 0x152   : > { %v496_v32 = vpop.permute.xlu0 %495 }
 0x153   : > { %501 = vst.msk [vmem:[#allocation2 + $0x10] sm:$0xff] %vm490_vm6, %v496_v32 }
 0x156   : > { %v504_v34 = vpop.permute.xlu0 %503 }
 0x157   : > { %509 = vst.msk [vmem:[#allocation2 + $0x20] sm:$0xff] %vm490_vm6, %v504_v34 }
 0x15a   : > { %v512_v36 = vpop.permute.xlu0 %511  ;;  %v545_v33 = vld [vmem:[#allocation2 + $0x10] sm:$0xff] }
 0x15b   : > { %517 = vst.msk [vmem:[#allocation2 + $0x30] sm:$0xff] %vm490_vm6, %v512_v36 }
 0x15c   : > { %v498_v38 = vpop.permute.xlu1 %497 }
 0x15d   : > { %502 = vst.msk [vmem:[#allocation2 + $0x18] sm:$0xff] %vm490_vm6, %v498_v38 }
 0x15e   : > { %v520_v27 = vpop.permute.xlu0 %519  ;;  %v547_v43 = vld [vmem:[#allocation2 + $0x20] sm:$0xff] }
 0x15f   : > { %525 = vst.msk [vmem:[#allocation2 + $0x40] sm:$0xff] %vm490_vm6, %v520_v27 }
 0x160   : > { %v506_v40 = vpop.permute.xlu1 %505 }
 0x161   : > { %510 = vst.msk [vmem:[#allocation2 + $0x28] sm:$0xff] %vm490_vm6, %v506_v40 }
 0x162   : > { %v528_v8 = vpop.permute.xlu0 %527  ;;  %v549_v47 = vld [vmem:[#allocation2 + $0x30] sm:$0xff] }
 0x163   : > { %533 = vst.msk [vmem:[#allocation2 + $0x50] sm:$0xff] %vm490_vm6, %v528_v8 }
 0x164   : > { %v514_v12 = vpop.permute.xlu1 %513  ;;  %v546_v35 = vld [vmem:[#allocation2 + $0x18] sm:$0xff] }
 0x165   : > { %518 = vst.msk [vmem:[#allocation2 + $0x38] sm:$0xff] %vm490_vm6, %v514_v12  ;;  %v558_v37 = vpack.c.bf16 %v546_v35, %v545_v33 }
 0x166   : > { %v536_v41 = vpop.permute.xlu0 %535  ;;  %v551_v50 = vld [vmem:[#allocation2 + $0x40] sm:$0xff] }
 0x167   : > { %541 = vst.msk [vmem:[#allocation2 + $0x60] sm:$0xff] %vm490_vm6, %v536_v41  ;;  %758 = vmatpush3.bf16.msra.mxu0 %v558_v37 }
 0x168   : > { %v522_v42 = vpop.permute.xlu1 %521  ;;  %759 = vmatprep.subr.bf16.mxu0 %v856_v5  ;;  %v548_v44 = vld [vmem:[#allocation2 + $0x28] sm:$0xff] }
 0x169   : > { %526 = vst.msk [vmem:[#allocation2 + $0x48] sm:$0xff] %vm490_vm6, %v522_v42  ;;  %v559_v45 = vpack.c.bf16 %v548_v44, %v547_v43 }
 0x16a   : > { %v553_v54 = vld [vmem:[#allocation2 + $0x50] sm:$0xff] }
 0x16b   : > { %760 = vmatpush3.bf16.msra.mxu0 %v559_v45 }
 0x16c   : > { %v530_v39 = vpop.permute.xlu1 %529  ;;  %761 = vmatprep.subr.bf16.mxu0 %v856_v5  ;;  %v550_v48 = vld [vmem:[#allocation2 + $0x38] sm:$0xff] }
 0x16d   : > { %534 = vst.msk [vmem:[#allocation2 + $0x58] sm:$0xff] %vm490_vm6, %v530_v39  ;;  %v560_v46 = vpack.c.bf16 %v550_v48, %v549_v47 }
 0x16e   : > { %v555_v29 = vld [vmem:[#allocation2 + $0x60] sm:$0xff] }
 0x16f   : > { %762 = vmatpush3.bf16.msra.mxu0 %v560_v46 }
 0x170   : > { %v538_v49 = vpop.permute.xlu1 %537  ;;  %763 = vmatprep.subr.bf16.mxu0 %v856_v5  ;;  %v552_v52 = vld [vmem:[#allocation2 + $0x48] sm:$0xff] }
 0x171   : > { %542 = vst.msk [vmem:[#allocation2 + $0x68] sm:$0xff] %vm490_vm6, %v538_v49  ;;  %v561_v53 = vpack.c.bf16 %v552_v52, %v551_v50 }
 0x173   : > { %764 = vmatpush3.bf16.msra.mxu0 %v561_v53 }
 0x174   : > { %765 = vmatprep.subr.bf16.mxu0 %v856_v5  ;;  %v554_v55 = vld [vmem:[#allocation2 + $0x58] sm:$0xff] }
 0x175   : > { %v562_v56 = vpack.c.bf16 %v554_v55, %v553_v54 }
 0x177   : > { %766 = vmatpush3.bf16.msra.mxu0 %v562_v56  ;;  %v571_v58 = vpop.permute.xlu0 %570 }
 0x178   : > { %767 = vmatprep.subr.bf16.mxu0 %v856_v5  ;;  %v556_v11 = vld [vmem:[#allocation2 + $0x68] sm:$0xff] }
 0x179   : > { %v563_v51 = vpack.c.bf16 %v556_v11, %v555_v29 }
 0x17b   : > { %768 = vmatpush3.bf16.msra.mxu0 %v563_v51 }
 0x17e   : > { %770 = vmatmul.mubr.msk.bf16.vlgmr.msra.gmra.mrb[0].mxu0 %vm583_vm12, %v822_v57 }
 0x181   : > { %v576_v5 = vpop.permute.xlu1 %575 }
 0x251   : > { %v621_v59 = vpop.f32.mrb[0].mxu0 }
 0x252   : > { %v622_v60 = vadd.f32 %v621_v59, %v571_v58  ;;  %v771_v61 = vpop.f32.mrb[1].mxu0 }
 0x253   : > { %v624_v62 = vpop.f32.mrb[2].mxu0 }
 0x254   : > { %v741_v22 = vpack.c.bf16 %v622_v60, %v622_v60  ;;  %v625_v63 = vadd.f32 %v624_v62, %v576_v5  ;;  %v772_v0 = vpop.f32.mrb[3].mxu0 }
 0x256   : > { %637 = vst.msk [vmem:[%s244_s27] sm:$0xf] %vm636_vm13, %v741_v22  ;;  %v742_v1 = vpack.c.bf16 %v625_v63, %v625_v63 }
 0x258   : > { %638 = vst.msk [vmem:[%s244_s27 + $0x4] sm:$0xf] %vm636_vm13, %v742_v1 }
 0x259 PF: > { %s15_s20 = sadd.s32 1, %s853_s20   ;;  %s1071_s18 = smov %s849_s19 }
 0x25a   : > { %p12_p5 = scmp.ge.s32.totalorder %s15_s20, 4   ;;  %s1072_s19 = smov %s1074_s21 }
 0x25c   :  { %14 = sbr.rel (!%p12_p5) target bundleno = 2 (0x2), region = 70 }

// kernel: decoder_pallas.24
= control target key start
LH: loop header
LB: loop body
LE: loop exit
PB: predicated region body
PF: predicated region fallthrough
CT: control target
= control target key end

     0   :  { %s820_s18 = smov 0   ;;  %s822_s19 = smov 0   ;;  %s968_s0 = inlined_call_operand.vmem [shape: bf16[2,16,34], index: 0, kind: input, shape index: {}]   ;;  %s969_s1 = inlined_call_operand.vmem [shape: bf16[16,32], index: 1, kind: input, shape index: {}]   ;;  %s970_s2 = inlined_call_operand.vmem [shape: f32[16,1], index: 2, kind: input, shape index: {}]   ;;  %s971_s3 = inlined_call_operand.vmem [shape: f32[16,1], index: 3, kind: input, shape index: {}]   ;;  %s972_s4 = inlined_call_operand.vmem [shape: f32[16,1], index: 4, kind: input, shape index: {}]   ;;  %s973_s5 = inlined_call_operand.vmem [shape: bf16[2,16,33], index: 5, kind: output, shape index: {}]  }
   0x1   :  { %s824_s20 = smov 0  }
   0x2 LB: > { %s27_s21 = sadd.s32 1, %s774_s19  ;;  %p665_p0 = scmp.ge.s32.totalorder %s778_s20, 1  ;;  %s778_s20 = sphi %s824_s20, %s15_s20   ;;  %s774_s19 = sphi %s822_s19, %s977_s19   ;;  %s770_s18 = sphi %s820_s18, %s976_s18  }
   0x3   : > { %p29_p1 = scmp.ge.s32.totalorder %s27_s21, 2  ;;  %p201_p2 = scmp.lt.s32.totalorder %s778_s20, 3 }
   0x5   : > { %s979_s21 = smov (%p29_p1, %s27_s21), 0  ;;  %p202_p3 = pnand %p665_p0, %p201_p2 }
   0x6   : > { %v250_v0 = vld [vmem:[%s971_s3] sm:$0xff] (!%p202_p3)  ;;  %v780_v2 = vmov (!%p202_p3), 0   ;;  %v251_v3 = vld [vmem:[%s971_s3 + $0x8] sm:$0xff] (!%p202_p3)  ;;  %v781_v5 = vmov (!%p202_p3), 0.0   ;;  %p232_p4 = scmp.lt.s32.totalorder (!%p202_p3), %s770_s18, 1  ;;  %s788_s9 = smov (!%p202_p3), 127  }
   0x7   : > { %205 = sbr.rel (%p202_p3) target bundleno = 581 (0x245), region = 40  ;;  %v252_v1 = vld [vmem:[%s972_s4] sm:$0xff] (!%p202_p3)  ;;  %745 = vset.pattern.permute.xlu0 (!%p202_p3), %v780_v2  ;;  %746 = vset.pattern.permute.xlu1 (!%p202_p3), %v780_v2  ;;  %v253_v4 = vld [vmem:[%s972_s4 + $0x8] sm:$0xff] (!%p202_p3)  ;;  %v782_v29 = vmov (!%p202_p3), 683565275  }
   0x8   : > { %256 = vperm.xlu0 (!%p202_p3), %745, %v250_v0   ;;  %478 = vperm.xlu1 (!%p202_p3), %746, %v252_v1   ;;  %v783_v33 = vmov (!%p202_p3), 2475754826   ;;  %v784_v35 = vmov (!%p202_p3), 2131351028   ;;  %v785_v37 = vmov (!%p202_p3), 2102212464  }
   0x9   : > { %695 = vmatprep.subr.bf16.mxu0 (!%p202_p3), %v781_v5  ;;  %v786_v39 = vmov (!%p202_p3), 920167782   ;;  %v787_v46 = vmov (!%p202_p3), 1326507024  }
   0xc   : > { %261 = vperm.xlu0 (!%p202_p3), %745, %v251_v3   ;;  %483 = vperm.xlu1 (!%p202_p3), %746, %v253_v4  }
   0xe   : > { %s981_s18 = smov (!%p232_p4, %s770_s18), 1 }
   0xf   : > { %s684_s30 = sshll.u32 %s981_s18, 3 }
  0x10   : > { %s236_s8 = scalar_lea.vmem %s968_s0, %s684_s30  ;;  %s244_s22 = scalar_lea.vmem %s973_s5, %s684_s30 }
  0x11   : > { %v859_v6 = vld [vmem:[%s236_s8] sm:$0xff]  }
  0x12   : > { %v690_v7 = vunpack.c.l.bf16 %v859_v6  ;;  %v691_v10 = vunpack.c.h.bf16 %v859_v6 }
  0x87   : > { %v257_v8 = vpop.permute.xlu0 %256 }
  0x88   : > { %v864_v9 = vmul.f32 %v690_v7, %v257_v8 }
  0x8a   : > { %v266_v11 = vand.u32 2147483647, %v864_v9  ;;  %v269_v12 = vand.u32 2139095040, %v864_v9  ;;  %vm268_vm14 = vcmp.lt.s32.totalorder %v864_v9, 0 }
  0x8b   : > { %v262_v13 = vpop.permute.xlu0 %261 }
  0x8c   : > { %v270_v14 = vshrl.u32 %v269_v12, 23  ;;  %v871_v15 = vmul.f32 %v691_v10, %v262_v13  ;;  %v273_v16 = vand.u32 8388607, %v266_v11  ;;  %vm267_vm15 = vcmp.le.f32.partialorder %v266_v11, 0.7853982 }
  0x8e   : > { %v670_v17 = vadd.s32 4294967169, %v270_v14  ;;  %v373_v18 = vand.u32 2139095040, %v871_v15  ;;  %v274_v20 = vor.u32 8388608, %v273_v16  ;;  %v370_v22 = vand.u32 2147483647, %v871_v15 }
  0x90   : > { %v276_v19 = vadd.s32 1, %v670_v17  ;;  %v374_v21 = vshrl.u32 %v373_v18, 23  ;;  %v877_v27 = vshll.u32 %v274_v20, 8  ;;  %v377_v31 = vand.u32 8388607, %v370_v22 }
  0x92   : > { %vm277_vm0 = vcmp.gt.s32.totalorder %v276_v19, 0  ;;  %v674_v24 = vadd.s32 4294967169, %v374_v21  ;;  %v378_v61 = vor.u32 8388608, %v377_v31 }
  0x93   : > { %v278_v23 = vsel %vm277_vm0, %v276_v19, 0  ;;  %vm372_vm0 = vcmp.lt.s32.totalorder %v871_v15, 0 }
  0x94   : > { %v279_v25 = vshrl.u32 %v278_v23, 5  ;;  %v280_v26 = vand.u32 31, %v278_v23  ;;  %v380_v32 = vadd.s32 1, %v674_v24  ;;  %v418_v17 = vshll.u32 %v378_v61, 8 }
  0x96   : > { %v281_v28 = vsub.s32 32, %v280_v26  ;;  %v283_v30 = vshll.u32 %v782_v29, %v280_v26  ;;  %v286_v34 = vshll.u32 %v783_v33, %v280_v26  ;;  %v289_v36 = vshll.u32 %v784_v35, %v280_v26 }
  0x97   : > { %v292_v38 = vshll.u32 %v785_v37, %v280_v26  ;;  %v295_v40 = vshll.u32 %v786_v39, %v280_v26  ;;  %vm298_vm1 = vcmp.lt.s32.totalorder %v279_v25, 1  ;;  %vm300_vm2 = vcmp.lt.s32.totalorder %v279_v25, 3 }
  0x98   : > { %v284_v41 = vshrl.u32 %v783_v33, %v281_v28  ;;  %v287_v42 = vshrl.u32 %v784_v35, %v281_v28  ;;  %v290_v43 = vshrl.u32 %v785_v37, %v281_v28  ;;  %v282_v44 = vshrl.u32 %v782_v29, %v281_v28 }
  0x99   : > { %v293_v45 = vshrl.u32 %v786_v39, %v281_v28  ;;  %v296_v47 = vshrl.u32 %v787_v46, %v281_v28  ;;  %vm381_vm3 = vcmp.gt.s32.totalorder %v380_v32, 0  ;;  %vm301_vm4 = vcmp.lt.s32.totalorder %v279_v25, 4 }
  0x9a   : > { %v285_v48 = vor.u32 %v284_v41, %v283_v30  ;;  %v288_v49 = vor.u32 %v287_v42, %v286_v34  ;;  %v291_v50 = vor.u32 %v290_v43, %v289_v36  ;;  %v382_v53 = vsel %vm381_vm3, %v380_v32, 0 }
  0x9b   : > { %v294_v51 = vor.u32 %v293_v45, %v292_v38  ;;  %v297_v52 = vor.u32 %v296_v47, %v295_v40  ;;  %vm299_vm5 = vcmp.lt.s32.totalorder %v279_v25, 2  ;;  %v384_v0 = vand.u32 31, %v382_v53 }
  0x9c   : > { %v302_v54 = vsel %vm298_vm1, %v282_v44, %v285_v48  ;;  %v303_v55 = vsel %vm301_vm4, %v291_v50, 2102212464  ;;  %v306_v56 = vsel %vm298_vm1, %v285_v48, %v288_v49  ;;  %v310_v57 = vsel %vm298_vm1, %v288_v49, %v291_v50 }
  0x9d   : > { %v304_v58 = vsel %vm300_vm2, %v288_v49, %v303_v55  ;;  %v307_v59 = vsel %vm301_vm4, %v294_v51, 920167782  ;;  %v311_v60 = vsel %vm301_vm4, %v297_v52, 1326507024  ;;  %v383_v14 = vshrl.u32 %v382_v53, 5 }
  0x9e   : > { %v308_v62 = vsel %vm300_vm2, %v291_v50, %v307_v59  ;;  %v312_v63 = vsel %vm300_vm2, %v294_v51, %v311_v60  ;;  %v305_v1 = vsel %vm299_vm5, %v302_v54, %v304_v58  ;;  %v385_v16 = vsub.s32 32, %v384_v0 }
  0x9f   : > { %v309_v2 = vsel %vm299_vm5, %v306_v56, %v308_v62  ;;  %v313_v3 = vsel %vm299_vm5, %v310_v57, %v312_v63  ;;  %v321_v18 = vmul.u32 %v877_v27, %v305_v1  ;;  %v387_v19 = vshll.u32 %v782_v29, %v384_v0 }
  0xa0   : > { %v890_v4 = vmul.u32.u64.low %v877_v27, %v313_v3  ;;  %v891_v8 = vmul.u32.u64.high %v877_v27, %v313_v3, %v890_v4  ;;  %v894_v12 = vmul.u32.u64.low %v877_v27, %v309_v2  ;;  %v895_v13 = vmul.u32.u64.high %v877_v27, %v309_v2, %v894_v12 }
  0xa1   : > { %v390_v20 = vshll.u32 %v783_v33, %v384_v0  ;;  %v393_v21 = vshll.u32 %v784_v35, %v384_v0  ;;  %v388_v23 = vshrl.u32 %v783_v33, %v385_v16  ;;  %v391_v24 = vshrl.u32 %v784_v35, %v385_v16 }
  0xa2   : > { %v394_v25 = vshrl.u32 %v785_v37, %v385_v16  ;;  %v396_v26 = vshll.u32 %v785_v37, %v384_v0  ;;  %vm323_vm6 = vc.u32 %v891_v8, %v894_v12  ;;  %v324_v28 = vadd.s32 1, %v895_v13 }
  0xa3   : > { %v397_v30 = vshrl.u32 %v786_v39, %v385_v16  ;;  %v399_v31 = vshll.u32 %v786_v39, %v384_v0  ;;  %v389_v32 = vor.u32 %v388_v23, %v387_v19  ;;  %v392_v34 = vor.u32 %v391_v24, %v390_v20 }
  0xa4   : > { %v395_v36 = vor.u32 %v394_v25, %v393_v21  ;;  %v400_v38 = vshrl.u32 %v787_v46, %v385_v16  ;;  %v325_v27 = vsel %vm323_vm6, %v324_v28, %v895_v13  ;;  %vm402_vm7 = vcmp.lt.s32.totalorder %v383_v14, 1 }
  0xa5   : > { %v398_v40 = vor.u32 %v397_v30, %v396_v26  ;;  %vm405_vm8 = vcmp.lt.s32.totalorder %v383_v14, 4  ;;  %v326_v33 = vadd.s32 %v325_v27, %v321_v18  ;;  %vm404_vm9 = vcmp.lt.s32.totalorder %v383_v14, 3 }
  0xa6   : > { %v401_v35 = vor.u32 %v400_v38, %v399_v31  ;;  %v407_v37 = vsel %vm405_vm8, %v395_v36, 2102212464  ;;  %v386_v41 = vshrl.u32 %v782_v29, %v385_v16  ;;  %v410_v42 = vsel %vm402_vm7, %v389_v32, %v392_v34 }
  0xa7   : > { %v411_v43 = vsel %vm405_vm8, %v398_v40, 920167782  ;;  %v414_v44 = vsel %vm402_vm7, %v392_v34, %v395_v36  ;;  %v327_v45 = vadd.s32 536870912, %v326_v33  ;;  %vm403_vm10 = vcmp.lt.s32.totalorder %v383_v14, 2 }
  0xa8   : > { %v412_v39 = vsel %vm404_vm9, %v395_v36, %v411_v43  ;;  %v415_v47 = vsel %vm405_vm8, %v401_v35, 1326507024  ;;  %v406_v48 = vsel %vm402_vm7, %v386_v41, %v389_v32  ;;  %v408_v46 = vsel %vm404_vm9, %v392_v34, %v407_v37 }
  0xa9   : > { %v413_v49 = vsel %vm403_vm10, %v410_v42, %v412_v39  ;;  %v416_v50 = vsel %vm404_vm9, %v398_v40, %v415_v47  ;;  %v328_v51 = vshrl.u32 %v327_v45, 30  ;;  %v409_v57 = vsel %vm403_vm10, %v406_v48, %v408_v46 }
  0xaa   : > { %v417_v52 = vsel %vm403_vm10, %v414_v44, %v416_v50  ;;  %v905_v53 = vmul.u32.u64.low %v418_v17, %v413_v49  ;;  %v906_v54 = vmul.u32.u64.high %v418_v17, %v413_v49, %v905_v53  ;;  %v425_v60 = vmul.u32 %v418_v17, %v409_v57 }
  0xab   : > { %v908_v55 = vmul.u32.u64.low %v418_v17, %v417_v52  ;;  %v909_v56 = vmul.u32.u64.high %v418_v17, %v417_v52, %v908_v55  ;;  %v329_v29 = vshll.u32 %v328_v51, 30  ;;  %v322_v18 = vadd.s32 %v894_v12, %v891_v8 }
  0xac   : > { %v428_v59 = vadd.s32 1, %v906_v54  ;;  %v352_v40 = vsub.s32 4, %v328_v51  ;;  %vm924_vm1 = vcmp.le.f32.partialorder %v370_v22, 0.7853982  ;;  %vm358_vm5 = vweird.f32 %v864_v9 }
  0xad   : > { %v330_v58 = vsub.s32 %v326_v33, %v329_v29  ;;  %vm427_vm11 = vc.u32 %v909_v56, %v905_v53  ;;  %v426_v8 = vadd.s32 %v905_v53, %v909_v56  ;;  %vm490_vm6 = vcmask 269312  }
  0xae   : > { %v429_v62 = vsel %vm427_vm11, %v428_v59, %v906_v54  ;;  %v353_v44 = vsel %vm268_vm14, %v352_v40, %v328_v51  ;;  %vm462_vm10 = vweird.f32 %v871_v15  ;;  %vm789_vm11 = vmmov 0   ;;  %v747_v40 = vld [vmem:[%s969_s1] sm:$0xff]  }
  0xaf   : > { %v332_v61 = vsub.s32 0, %v330_v58  ;;  %v430_v63 = vadd.s32 %v429_v62, %v425_v60  ;;  %v355_v46 = vsel %vm267_vm15, 0, %v353_v44  ;;  %699 = vmatprep.mubr.msk.bf16.mxu0 %vm789_vm11, %v781_v5 }
  0xb0   : > { %v359_v52 = vadd.s32 3, %v355_v46 }
  0xb1   : > { %v671_v0 = vmin.u32 %v332_v61, %v330_v58  ;;  %v431_v1 = vadd.s32 536870912, %v430_v63 }
  0xb2   : > { %v360_v56 = vand.u32 3, %v359_v52 }
  0xb3   : > { %v334_v2 = vclz %v671_v0  ;;  %v432_v3 = vshrl.u32 %v431_v1, 30 }
  0xb4   : > { %vm365_vm2 = vcmp.eq.s32.totalorder %v360_v56, 2  ;;  %vm362_vm3 = vcmp.eq.s32.totalorder %v360_v56, 0  ;;  %vm361_vm4 = vcmp.lt.s32.totalorder %v360_v56, 2 }
  0xb5   : > { %v672_v4 = vadd.s32 4294967294, %v334_v2  ;;  %v433_v13 = vshll.u32 %v432_v3, 30  ;;  %v456_v54 = vsub.s32 4, %v432_v3 }
  0xb7   : > { %vm673_vm12 = vcmp.lt.s32.totalorder %v672_v4, 0  ;;  %v434_v16 = vsub.s32 %v430_v63, %v433_v13  ;;  %v457_v51 = vsel %vm372_vm0, %v456_v54, %v432_v3 }
  0xb8   : > { %v337_v14 = vsel %vm673_vm12, 0, %v672_v4  ;;  %v459_v62 = vsel %vm924_vm1, 0, %v457_v51  ;;  %v479_v4 = vpop.permute.xlu1 %478  ;;  %vm528_vm12 = vcmask 261120  }
  0xb9   : > { %v338_v19 = vsub.s32 32, %v337_v14  ;;  %v342_v17 = vsub.s32 4294967266, %v337_v14  ;;  %v436_v20 = vsub.s32 0, %v434_v16  ;;  %v339_v21 = vshll.u32 %v330_v58, %v337_v14 }
  0xba   : > { %v463_v1 = vadd.s32 3, %v459_v62 }
  0xbb   : > { %v340_v23 = vshrl.u32 %v322_v18, %v338_v19  ;;  %v343_v24 = vadd.s32 127, %v342_v17  ;;  %v675_v25 = vmin.u32 %v436_v20, %v434_v16 }
  0xbc   : > { %v464_v14 = vand.u32 3, %v463_v1 }
  0xbd   : > { %v341_v26 = vor.u32 %v340_v23, %v339_v21  ;;  %v344_v28 = vshll.u32 %v343_v24, 23  ;;  %v438_v30 = vclz %v675_v25  ;;  %v511_v21 = vld [vmem:[%s970_s2] sm:$0xff] }
  0xbe   : > { %vm469_vm7 = vcmp.eq.s32.totalorder %v464_v14, 2  ;;  %vm466_vm8 = vcmp.eq.s32.totalorder %v464_v14, 0  ;;  %vm465_vm9 = vcmp.lt.s32.totalorder %v464_v14, 2 }
  0xbf   : > { %v345_v31 = vor.u32 4788187, %v344_v28  ;;  %v676_v32 = vadd.s32 4294967294, %v438_v30  ;;  %v348_v36 = vcvt.s32.f32 %v341_v26  ;;  %v484_v26 = vpop.permute.xlu1 %483 }
  0xc1   : > { %v346_v34 = vand.u32 2147483647, %v345_v31  ;;  %vm677_vm13 = vcmp.lt.s32.totalorder %v676_v32, 0  ;;  %v512_v31 = vld [vmem:[%s970_s2 + $0x8] sm:$0xff] }
  0xc2   : > { %v441_v27 = vsel %vm677_vm13, 0, %v676_v32  ;;  %vm581_vm13 = vcmask 265216  }
  0xc3   : > { %v349_v38 = vmul.f32 %v348_v36, %v346_v34  ;;  %v442_v12 = vsub.s32 32, %v441_v27  ;;  %v446_v33 = vsub.s32 4294967266, %v441_v27  ;;  %v443_v37 = vshll.u32 %v434_v16, %v441_v27 }
  0xc5   : > { %v350_v35 = vxor.u32 2147483648, %v349_v38  ;;  %v444_v41 = vshrl.u32 %v426_v8, %v442_v12  ;;  %v447_v42 = vadd.s32 127, %v446_v33 }
  0xc7   : > { %v351_v43 = vsel %vm268_vm14, %v350_v35, %v349_v38  ;;  %v445_v45 = vor.u32 %v444_v41, %v443_v37  ;;  %v448_v39 = vshll.u32 %v447_v42, 23 }
  0xc8   : > { %v354_v47 = vsel %vm267_vm15, %v864_v9, %v351_v43 }
  0xc9   : > { %748 = vcosq.f32 %v354_v47  ;;  %v449_v48 = vor.u32 4788187, %v448_v39  ;;  %v452_v50 = vcvt.s32.f32 %v445_v45 }
  0xca   : > { %750 = vsinq.f32 %v354_v47 }
  0xcb   : > { %v450_v49 = vand.u32 2147483647, %v449_v48 }
  0xcd   : > { %v453_v53 = vmul.f32 %v452_v50, %v450_v49 }
  0xcf   : > { %v454_v55 = vxor.u32 2147483648, %v453_v53 }
  0xd1   : > { %v455_v29 = vsel %vm372_vm0, %v454_v55, %v453_v53 }
  0xd2   : > { %v458_v58 = vsel %vm924_vm1, %v871_v15, %v455_v29 }
  0xd3   : > { %v749_v57 = vpop.eup %748  ;;  %752 = vcosq.f32 %v458_v58 }
  0xd4   : > { %v751_v59 = vpop.eup %750  ;;  %v366_v60 = vxor.u32 2147483648, %v749_v57  ;;  %754 = vsinq.f32 %v458_v58 }
  0xd5   : > { %v363_v61 = vxor.u32 2147483648, %v751_v59 }
  0xd6   : > { %v367_v22 = vsel %vm365_vm2, %v366_v60, %v751_v59 }
  0xd7   : > { %v364_v63 = vsel %vm362_vm3, %v749_v57, %v363_v61 }
  0xd8   : > { %v368_v0 = vsel %vm361_vm4, %v364_v63, %v367_v22 }
  0xd9   : > { %v369_v2 = vsel %vm358_vm5, nan, %v368_v0 }
  0xda   : > { %v474_v3 = vmul.f32 %v369_v2, %v369_v2 }
  0xdc   : > { %v486_v13 = vmul.f32 %v479_v4, %v474_v3 }
  0xdd   : > { %v753_v16 = vpop.eup %752 }
  0xde   : > { %v488_v18 = vadd.f32 %v690_v7, %v486_v13  ;;  %v755_v19 = vpop.eup %754  ;;  %v470_v17 = vxor.u32 2147483648, %v753_v16 }
  0xdf   : > { %v467_v20 = vxor.u32 2147483648, %v755_v19 }
  0xe0   : > { %491 = vst.msk [vmem:[#allocation2] sm:$0xff] %vm490_vm6, %v488_v18  ;;  %495 = vrot.lane.b32.xlu0 %v488_v18, %s788_s9  ;;  %v471_v9 = vsel %vm469_vm7, %v470_v17, %v755_v19 }
  0xe1   : > { %v468_v23 = vsel %vm466_vm8, %v753_v16, %v467_v20 }
  0xe2   : > { %v472_v24 = vsel %vm465_vm9, %v468_v23, %v471_v9 }
  0xe3   : > { %v473_v7 = vsel %vm462_vm10, nan, %v472_v24 }
  0xe4   : > { %515 = vperm.xlu0 %745, %v511_v21   ;;  %v475_v25 = vmul.f32 %v473_v7, %v473_v7 }
  0xe6   : > { %v487_v28 = vmul.f32 %v484_v26, %v475_v25 }
  0xe7   : > { %v503_v15 = vld [vmem:[#allocation2] sm:$0xff] }
  0xe8   : > { %v489_v30 = vadd.f32 %v691_v10, %v487_v28 }
  0xea   : > { %492 = vst.msk [vmem:[#allocation2 + $0x8] sm:$0xff] %vm490_vm6, %v489_v30  ;;  %497 = vrot.lane.b32.xlu1 %v489_v30, %s788_s9 }
  0xee   : > { %520 = vperm.xlu1 %746, %v512_v31  }
  0xf1   : > { %v504_v32 = vld [vmem:[#allocation2 + $0x8] sm:$0xff] }
  0xf2   : > { %v507_v34 = vpack.c.bf16 %v504_v32, %v503_v15 }
  0xf4   : > { %696 = vmatpush3.bf16.msra.mxu0 %v507_v34 }
  0xf5   : > { %697 = vmatprep.subr.bf16.mxu0 %v781_v5 }
 0x152   : > { %v496_v6 = vpop.permute.xlu0 %495 }
 0x153   : > { %501 = vst.msk [vmem:[#allocation2 + $0x10] sm:$0xff] %vm490_vm6, %v496_v6 }
 0x15a   : > { %v505_v36 = vld [vmem:[#allocation2 + $0x10] sm:$0xff] }
 0x15c   : > { %v498_v10 = vpop.permute.xlu1 %497 }
 0x15d   : > { %502 = vst.msk [vmem:[#allocation2 + $0x18] sm:$0xff] %vm490_vm6, %v498_v10 }
 0x163   : > { %v516_v8 = vpop.permute.xlu0 %515 }
 0x164   : > { %v506_v38 = vld [vmem:[#allocation2 + $0x18] sm:$0xff] }
 0x165   : > { %v508_v27 = vpack.c.bf16 %v506_v38, %v505_v36 }
 0x167   : > { %698 = vmatpush3.bf16.msra.mxu0 %v508_v27 }
 0x16a   : > { %700 = vmatmul.mubr.msk.bf16.vlgmr.msra.gmra.mrb[0].mxu0 %vm528_vm12, %v747_v40 }
 0x16d   : > { %v521_v35 = vpop.permute.xlu1 %520 }
 0x23d   : > { %v566_v12 = vpop.f32.mrb[0].mxu0 }
 0x23e   : > { %v567_v5 = vadd.f32 %v566_v12, %v516_v8  ;;  %v701_v33 = vpop.f32.mrb[1].mxu0 }
 0x23f   : > { %v569_v37 = vpop.f32.mrb[2].mxu0 }
 0x240   : > { %v686_v41 = vpack.c.bf16 %v567_v5, %v567_v5  ;;  %v570_v42 = vadd.f32 %v569_v37, %v521_v35  ;;  %v702_v43 = vpop.f32.mrb[3].mxu0 }
 0x242   : > { %582 = vst.msk [vmem:[%s244_s22] sm:$0xf] %vm581_vm13, %v686_v41  ;;  %v687_v44 = vpack.c.bf16 %v570_v42, %v570_v42 }
 0x244   : > { %583 = vst.msk [vmem:[%s244_s22 + $0x4] sm:$0xf] %vm581_vm13, %v687_v44 }
 0x245 PF: > { %s15_s20 = sadd.s32 1, %s778_s20   ;;  %s976_s18 = smov %s774_s19 }
 0x246   : > { %p12_p5 = scmp.ge.s32.totalorder %s15_s20, 4   ;;  %s977_s19 = smov %s979_s21 }
 0x248   :  { %14 = sbr.rel (!%p12_p5) target bundleno = 2 (0x2), region = 70 }

// kernel: decoder_pallas.25
= control target key start
LH: loop header
LB: loop body
LE: loop exit
PB: predicated region body
PF: predicated region fallthrough
CT: control target
= control target key end

     0   :  { %s678_s18 = smov 0   ;;  %s680_s19 = smov 0   ;;  %s765_s0 = inlined_call_operand.vmem [shape: bf16[2,8,70], index: 0, kind: input, shape index: {}]   ;;  %s766_s1 = inlined_call_operand.vmem [shape: bf16[8,56], index: 1, kind: input, shape index: {}]   ;;  %s767_s2 = inlined_call_operand.vmem [shape: f32[8,1], index: 2, kind: input, shape index: {}]   ;;  %s768_s3 = inlined_call_operand.vmem [shape: f32[8,1], index: 3, kind: input, shape index: {}]   ;;  %s769_s4 = inlined_call_operand.vmem [shape: f32[8,1], index: 4, kind: input, shape index: {}]   ;;  %s770_s5 = inlined_call_operand.vmem [shape: bf16[2,8,64], index: 5, kind: output, shape index: {}]  }
   0x1   :  { %s682_s20 = smov 0  }
   0x2 LB: > { %s27_s21 = sadd.s32 1, %s627_s19  ;;  %p534_p0 = scmp.ge.s32.totalorder %s631_s20, 1  ;;  %s631_s20 = sphi %s682_s20, %s15_s20   ;;  %s627_s19 = sphi %s680_s19, %s772_s19   ;;  %s623_s18 = sphi %s678_s18, %s771_s18  }
   0x3   : > { %p29_p1 = scmp.ge.s32.totalorder %s27_s21, 2  ;;  %p200_p2 = scmp.lt.s32.totalorder %s631_s20, 3 }
   0x5   : > { %s774_s21 = smov (%p29_p1, %s27_s21), 0  ;;  %p201_p3 = pnand %p534_p0, %p200_p2 }
   0x6   : > { %v243_v0 = vld [vmem:[%s768_s3] sm:$0xff] (!%p201_p3)  ;;  %v633_v1 = vmov (!%p201_p3), 0   ;;  %p229_p4 = scmp.lt.s32.totalorder (!%p201_p3), %s623_s18, 1  ;;  %v634_v17 = vmov (!%p201_p3), 683565275   ;;  %vm363_vm13 = vcmask (!%p201_p3), 523264  }
   0x7   : > { %204 = sbr.rel (%p201_p3) target bundleno = 581 (0x245), region = 40  ;;  %604 = vset.pattern.permute.xlu0 (!%p201_p3), %v633_v1  ;;  %v244_v2 = vld [vmem:[%s769_s4] sm:$0xff] (!%p201_p3)  ;;  %v635_v19 = vmov (!%p201_p3), 2475754826   ;;  %v636_v22 = vmov (!%p201_p3), 2131351028  }
   0x8   : > { %247 = vperm.xlu0 (!%p201_p3), %604, %v243_v0   ;;  %v637_v25 = vmov (!%p201_p3), 2102212464   ;;  %v638_v28 = vmov (!%p201_p3), 920167782   ;;  %v639_v31 = vmov (!%p201_p3), 1326507024  }
   0x9   : > { %s641_s30 = smov (!%p201_p3), 125   ;;  %s642_s6 = smov (!%p201_p3), 127   ;;  %vm646_vm14 = vmmov (!%p201_p3), 0   ;;  %vm412_vm15 = vcmask (!%p201_p3), 1043456  }
   0xa   : > { %s643_s7 = smov (!%p201_p3), 123   ;;  %s644_s8 = smov (!%p201_p3), 126  }
   0xb   : > { %s645_s11 = smov (!%p201_p3), 124   ;;  %s647_s12 = smov (!%p201_p3), 122  }
   0xc   : > { %358 = vperm.xlu0 (!%p201_p3), %604, %v244_v2  }
   0xe   : > { %s776_s18 = smov (!%p229_p4, %s623_s18), 1 }
   0xf   : > { %s535_s26 = sshll.u32 %s776_s18, 2 }
  0x10   : > { %s232_s29 = scalar_lea.vmem %s765_s0, %s535_s26  ;;  %s239_s17 = scalar_lea.vmem %s770_s5, %s535_s26 }
  0x11   : > { %v710_v3 = vld [vmem:[%s232_s29] sm:$0xf] }
  0x12   : > { %v242_v4 = vunpack.c.l.bf16 %v710_v3 }
  0x87   : > { %v248_v5 = vpop.permute.xlu0 %247 }
  0x88   : > { %v715_v6 = vmul.f32 %v248_v5, %v242_v4 }
  0x8a   : > { %v254_v7 = vand.u32 2139095040, %v715_v6  ;;  %v251_v11 = vand.u32 2147483647, %v715_v6  ;;  %vm253_vm7 = vcmp.lt.s32.totalorder %v715_v6, 0  ;;  %vm343_vm12 = vweird.f32 %v715_v6 }
  0x8c   : > { %v255_v8 = vshrl.u32 %v254_v7, 23  ;;  %v258_v14 = vand.u32 8388607, %v251_v11  ;;  %vm252_vm8 = vcmp.le.f32.partialorder %v251_v11, 0.7853982 }
  0x8e   : > { %v537_v9 = vadd.s32 4294967169, %v255_v8  ;;  %v259_v33 = vor.u32 8388608, %v258_v14 }
  0x90   : > { %v261_v10 = vadd.s32 1, %v537_v9  ;;  %v299_v47 = vshll.u32 %v259_v33, 8 }
  0x92   : > { %vm262_vm0 = vcmp.gt.s32.totalorder %v261_v10, 0 }
  0x93   : > { %v263_v12 = vsel %vm262_vm0, %v261_v10, 0  ;;  %vm408_vm0 = vcmask 457728  }
  0x94   : > { %v265_v13 = vand.u32 31, %v263_v12  ;;  %v264_v16 = vshrl.u32 %v263_v12, 5 }
  0x96   : > { %v266_v15 = vsub.s32 32, %v265_v13  ;;  %v268_v18 = vshll.u32 %v634_v17, %v265_v13  ;;  %v271_v20 = vshll.u32 %v635_v19, %v265_v13  ;;  %v274_v24 = vshll.u32 %v636_v22, %v265_v13 }
  0x97   : > { %v277_v27 = vshll.u32 %v637_v25, %v265_v13  ;;  %v280_v30 = vshll.u32 %v638_v28, %v265_v13  ;;  %vm283_vm1 = vcmp.lt.s32.totalorder %v264_v16, 1  ;;  %vm286_vm2 = vcmp.lt.s32.totalorder %v264_v16, 4 }
  0x98   : > { %v269_v21 = vshrl.u32 %v635_v19, %v266_v15  ;;  %v272_v23 = vshrl.u32 %v636_v22, %v266_v15  ;;  %v275_v26 = vshrl.u32 %v637_v25, %v266_v15  ;;  %v278_v29 = vshrl.u32 %v638_v28, %v266_v15 }
  0x99   : > { %v281_v32 = vshrl.u32 %v639_v31, %v266_v15  ;;  %v267_v42 = vshrl.u32 %v634_v17, %v266_v15  ;;  %vm285_vm3 = vcmp.lt.s32.totalorder %v264_v16, 3  ;;  %vm284_vm4 = vcmp.lt.s32.totalorder %v264_v16, 2 }
  0x9a   : > { %v270_v34 = vor.u32 %v269_v21, %v268_v18  ;;  %v273_v35 = vor.u32 %v272_v23, %v271_v20  ;;  %v276_v36 = vor.u32 %v275_v26, %v274_v24  ;;  %v279_v37 = vor.u32 %v278_v29, %v277_v27 }
  0x9b   : > { %v282_v38 = vor.u32 %v281_v32, %v280_v30 }
  0x9c   : > { %v288_v39 = vsel %vm286_vm2, %v276_v36, 2102212464  ;;  %v291_v40 = vsel %vm283_vm1, %v270_v34, %v273_v35  ;;  %v295_v41 = vsel %vm283_vm1, %v273_v35, %v276_v36  ;;  %v292_v43 = vsel %vm286_vm2, %v279_v37, 920167782 }
  0x9d   : > { %v296_v44 = vsel %vm286_vm2, %v282_v38, 1326507024  ;;  %v293_v45 = vsel %vm285_vm3, %v276_v36, %v292_v43  ;;  %v287_v48 = vsel %vm283_vm1, %v267_v42, %v270_v34  ;;  %v289_v49 = vsel %vm285_vm3, %v273_v35, %v288_v39  ;;  %v359_v38 = vpop.permute.xlu0 %358 }
  0x9e   : > { %v297_v46 = vsel %vm285_vm3, %v279_v37, %v296_v44  ;;  %v294_v50 = vsel %vm284_vm4, %v291_v40, %v293_v45  ;;  %v290_v56 = vsel %vm284_vm4, %v287_v48, %v289_v49  ;;  %v640_v40 = vmov 0.0  }
  0x9f   : > { %v298_v51 = vsel %vm284_vm4, %v295_v41, %v297_v46  ;;  %v724_v54 = vmul.u32.u64.low %v299_v47, %v294_v50  ;;  %v725_v55 = vmul.u32.u64.high %v299_v47, %v294_v50, %v724_v54  ;;  %v306_v58 = vmul.u32 %v299_v47, %v290_v56  ;;  %549 = vmatprep.subr.bf16.mxu0 %v640_v40  ;;  %557 = vmatprep.mubr.msk.bf16.mxu0 %vm646_vm14, %v640_v40 }
  0xa0   : > { %v721_v52 = vmul.u32.u64.low %v299_v47, %v298_v51  ;;  %v722_v53 = vmul.u32.u64.high %v299_v47, %v298_v51, %v721_v52  ;;  %vm457_vm1 = vcmask 519168  }
  0xa1   : > { %v309_v57 = vadd.s32 1, %v725_v55 }
  0xa2   : > { %vm308_vm5 = vc.u32 %v722_v53, %v724_v54  ;;  %v307_v9 = vadd.s32 %v724_v54, %v722_v53 }
  0xa3   : > { %v310_v59 = vsel %vm308_vm5, %v309_v57, %v725_v55 }
  0xa4   : > { %v311_v60 = vadd.s32 %v310_v59, %v306_v58  ;;  %v401_v58 = vld [vmem:[%s766_s1] sm:$0xf] }
  0xa6   : > { %v312_v61 = vadd.s32 536870912, %v311_v60 }
  0xa8   : > { %v313_v62 = vshrl.u32 %v312_v61, 30 }
  0xaa   : > { %v314_v63 = vshll.u32 %v313_v62, 30  ;;  %v337_v22 = vsub.s32 4, %v313_v62 }
  0xac   : > { %v315_v0 = vsub.s32 %v311_v60, %v314_v63  ;;  %v338_v25 = vsel %vm253_vm7, %v337_v22, %v313_v62 }
  0xad   : > { %v340_v27 = vsel %vm252_vm8, 0, %v338_v25 }
  0xae   : > { %v317_v1 = vsub.s32 0, %v315_v0  ;;  %v344_v28 = vadd.s32 3, %v340_v27 }
  0xb0   : > { %v538_v2 = vmin.u32 %v317_v1, %v315_v0  ;;  %v345_v29 = vand.u32 3, %v344_v28 }
  0xb2   : > { %v319_v5 = vclz %v538_v2  ;;  %vm350_vm9 = vcmp.eq.s32.totalorder %v345_v29, 2  ;;  %vm347_vm10 = vcmp.eq.s32.totalorder %v345_v29, 0  ;;  %vm346_vm11 = vcmp.lt.s32.totalorder %v345_v29, 2 }
  0xb4   : > { %v539_v7 = vadd.s32 4294967294, %v319_v5 }
  0xb6   : > { %vm540_vm6 = vcmp.lt.s32.totalorder %v539_v7, 0 }
  0xb7   : > { %v322_v8 = vsel %vm540_vm6, 0, %v539_v7 }
  0xb8   : > { %v323_v10 = vsub.s32 32, %v322_v8  ;;  %v327_v12 = vsub.s32 4294967266, %v322_v8  ;;  %v324_v13 = vshll.u32 %v315_v0, %v322_v8 }
  0xba   : > { %v325_v14 = vshrl.u32 %v307_v9, %v323_v10  ;;  %v328_v15 = vadd.s32 127, %v327_v12 }
  0xbc   : > { %v326_v16 = vor.u32 %v325_v14, %v324_v13  ;;  %v329_v17 = vshll.u32 %v328_v15, 23 }
  0xbe   : > { %v330_v18 = vor.u32 4788187, %v329_v17  ;;  %v333_v20 = vcvt.s32.f32 %v326_v16 }
  0xc0   : > { %v331_v19 = vand.u32 2147483647, %v330_v18 }
  0xc2   : > { %v334_v21 = vmul.f32 %v333_v20, %v331_v19 }
  0xc4   : > { %v335_v23 = vxor.u32 2147483648, %v334_v21 }
  0xc6   : > { %v336_v24 = vsel %vm253_vm7, %v335_v23, %v334_v21 }
  0xc7   : > { %v339_v26 = vsel %vm252_vm8, %v715_v6, %v336_v24  ;;  %v402_v6 = vld [vmem:[%s767_s2] sm:$0xff] }
  0xc8   : > { %605 = vcosq.f32 %v339_v26 }
  0xc9   : > { %607 = vsinq.f32 %v339_v26 }
  0xd2   : > { %v606_v30 = vpop.eup %605 }
  0xd3   : > { %v608_v31 = vpop.eup %607  ;;  %v351_v32 = vxor.u32 2147483648, %v606_v30 }
  0xd4   : > { %v348_v33 = vxor.u32 2147483648, %v608_v31 }
  0xd5   : > { %v352_v34 = vsel %vm350_vm9, %v351_v32, %v608_v31 }
  0xd6   : > { %v349_v35 = vsel %vm347_vm10, %v606_v30, %v348_v33 }
  0xd7   : > { %v353_v11 = vsel %vm346_vm11, %v349_v35, %v352_v34 }
  0xd8   : > { %v354_v36 = vsel %vm343_vm12, nan, %v353_v11 }
  0xd9   : > { %v355_v37 = vmul.f32 %v354_v36, %v354_v36 }
  0xdb   : > { %v361_v39 = vmul.f32 %v359_v38, %v355_v37 }
  0xdd   : > { %v362_v41 = vadd.f32 %v361_v39, %v242_v4 }
  0xdf   : > { %374 = vrot.lane.b32.xlu0 %v362_v41, %s641_s30  ;;  %366 = vrot.lane.b32.xlu1 %v362_v41, %s642_s6  ;;  %364 = vst.msk [vmem:[#allocation2] sm:$0xff] %vm363_vm13, %v362_v41 }
  0xe3   : > { %382 = vrot.lane.b32.xlu0 %v362_v41, %s643_s7  ;;  %370 = vrot.lane.b32.xlu1 %v362_v41, %s644_s8 }
  0xe6   : > { %v390_v45 = vld [vmem:[#allocation2] sm:$0xff] }
  0xe7   : > { %405 = vperm.xlu0 %604, %v402_v6   ;;  %378 = vrot.lane.b32.xlu1 %v362_v41, %s645_s11 }
  0xeb   : > { %386 = vrot.lane.b32.xlu1 %v362_v41, %s647_s12 }
 0x151   : > { %v375_v3 = vpop.permute.xlu0 %374  ;;  %v367_v4 = vpop.permute.xlu1 %366 }
 0x152   : > { %377 = vst.msk [vmem:[#allocation2 + $0x18] sm:$0xff] %vm363_vm13, %v375_v3  ;;  %369 = vst.msk [vmem:[#allocation2 + $0x8] sm:$0xff] %vm363_vm13, %v367_v4 }
 0x155   : > { %v383_v42 = vpop.permute.xlu0 %382  ;;  %v371_v43 = vpop.permute.xlu1 %370 }
 0x156   : > { %385 = vst.msk [vmem:[#allocation2 + $0x28] sm:$0xff] %vm363_vm13, %v383_v42  ;;  %373 = vst.msk [vmem:[#allocation2 + $0x10] sm:$0xff] %vm363_vm13, %v371_v43 }
 0x159   : > { %v379_v44 = vpop.permute.xlu1 %378  ;;  %v391_v46 = vld [vmem:[#allocation2 + $0x8] sm:$0xff]  ;;  %v393_v50 = vld [vmem:[#allocation2 + $0x18] sm:$0xff] }
 0x15a   : > { %381 = vst.msk [vmem:[#allocation2 + $0x20] sm:$0xff] %vm363_vm13, %v379_v44  ;;  %v397_v47 = vpack.c.bf16 %v391_v46, %v390_v45 }
 0x15c   : > { %550 = vmatpush3.bf16.msra.mxu0 %v397_v47 }
 0x15d   : > { %v387_v48 = vpop.permute.xlu1 %386  ;;  %551 = vmatprep.subr.bf16.mxu0 %v640_v40  ;;  %v392_v49 = vld [vmem:[#allocation2 + $0x10] sm:$0xff]  ;;  %v395_v53 = vld [vmem:[#allocation2 + $0x28] sm:$0xff] }
 0x15e   : > { %389 = vst.msk [vmem:[#allocation2 + $0x30] sm:$0xff] %vm363_vm13, %v387_v48  ;;  %v398_v51 = vpack.c.bf16 %v393_v50, %v392_v49 }
 0x160   : > { %552 = vmatpush3.bf16.msra.mxu0 %v398_v51 }
 0x161   : > { %553 = vmatprep.subr.bf16.mxu0 %v640_v40  ;;  %v394_v52 = vld [vmem:[#allocation2 + $0x20] sm:$0xff] }
 0x162   : > { %v399_v54 = vpack.c.bf16 %v395_v53, %v394_v52 }
 0x164   : > { %554 = vmatpush3.bf16.msra.mxu0 %v399_v54 }
 0x165   : > { %555 = vmatprep.subr.bf16.mxu0 %v640_v40  ;;  %v396_v55 = vld [vmem:[#allocation2 + $0x30] sm:$0xff] }
 0x166   : > { %v400_v56 = vpack.c.bf16 %v396_v55, %v396_v55  ;;  %v406_v59 = vpop.permute.xlu0 %405 }
 0x168   : > { %v414_v57 = vsel %vm412_vm15, %v400_v56, 0 }
 0x169   : > { %556 = vmatpush3.bf16.msra.mxu0 %v414_v57 }
 0x16c   : > { %558 = vmatmul.mubr.msk.bf16.vlgmr.msra.gmra.mrb[0].mxu0 %vm408_vm0, %v401_v58 }
 0x23f   : > { %v450_v60 = vpop.f32.mrb[0].mxu0 }
 0x240   : > { %v451_v61 = vadd.f32 %v450_v60, %v406_v59  ;;  %v559_v62 = vpop.f32.mrb[1].mxu0 }
 0x241   : > { %v453_v63 = vpop.f32.mrb[2].mxu0 }
 0x242   : > { %v456_v0 = vpack.c.bf16 %v451_v61, %v451_v61  ;;  %v560_v1 = vpop.f32.mrb[3].mxu0 }
 0x244   : > { %458 = vst.msk [vmem:[%s239_s17] sm:$0xf] %vm457_vm1, %v456_v0 }
 0x245 PF: > { %s15_s20 = sadd.s32 1, %s631_s20   ;;  %s771_s18 = smov %s627_s19 }
 0x246   : > { %p12_p5 = scmp.ge.s32.totalorder %s15_s20, 4   ;;  %s772_s19 = smov %s774_s21 }
 0x248   :  { %14 = sbr.rel (!%p12_p5) target bundleno = 2 (0x2), region = 70 }

// kernel: decoder_pallas.26
= control target key start
LH: loop header
LB: loop body
LE: loop exit
PB: predicated region body
PF: predicated region fallthrough
CT: control target
= control target key end

     0   :  { %s700_s21 = smov 0   ;;  %s702_s22 = smov 0   ;;  %s781_s0 = inlined_call_operand.vmem [shape: bf16[2,8,64], index: 0, kind: input, shape index: {}]   ;;  %s782_s1 = inlined_call_operand.vmem [shape: bf16[8,8], index: 1, kind: input, shape index: {}]   ;;  %s783_s2 = inlined_call_operand.vmem [shape: f32[8,1], index: 2, kind: input, shape index: {}]   ;;  %s784_s3 = inlined_call_operand.vmem [shape: f32[8,1], index: 3, kind: input, shape index: {}]   ;;  %s785_s4 = inlined_call_operand.vmem [shape: f32[8,1], index: 4, kind: input, shape index: {}]   ;;  %s786_s5 = inlined_call_operand.vmem [shape: bf16[2,8,64], index: 5, kind: input, shape index: {}]   ;;  %s787_s6 = inlined_call_operand.vmem [shape: bf16[2,8,64], index: 6, kind: output, shape index: {}]  }
   0x1   :  { %s704_s23 = smov 0  }
   0x2 LB: > { %s28_s24 = sadd.s32 1, %s650_s22  ;;  %p570_p0 = scmp.ge.s32.totalorder %s654_s23, 1  ;;  %s654_s23 = sphi %s704_s23, %s16_s23   ;;  %s650_s22 = sphi %s702_s22, %s789_s22   ;;  %s646_s21 = sphi %s700_s21, %s788_s21  }
   0x3   : > { %p30_p1 = scmp.ge.s32.totalorder %s28_s24, 2  ;;  %p239_p2 = scmp.lt.s32.totalorder %s654_s23, 3 }
   0x5   : > { %s791_s24 = smov (%p30_p1, %s28_s24), 0  ;;  %p240_p3 = pnand %p570_p0, %p239_p2 }
   0x6   : > { %v298_v0 = vld [vmem:[%s784_s3] sm:$0xff] (!%p240_p3)  ;;  %v656_v1 = vmov (!%p240_p3), 0   ;;  %v657_v3 = vmov (!%p240_p3), 0.0   ;;  %vm658_vm0 = vmmov (!%p240_p3), 0   ;;  %p277_p4 = scmp.lt.s32.totalorder (!%p240_p3), %s646_s21, 1  ;;  %vm430_vm14 = vcmask (!%p240_p3), 1043456  }
   0x7   : > { %243 = sbr.rel (%p240_p3) target bundleno = 448 (0x1c0), region = 44  ;;  %626 = vset.pattern.permute.xlu0 (!%p240_p3), %v656_v1  ;;  %627 = vset.pattern.permute.xlu1 (!%p240_p3), %v656_v1  ;;  %v299_v2 = vld [vmem:[%s785_s4] sm:$0xff] (!%p240_p3)  ;;  %v659_v19 = vmov (!%p240_p3), 683565275   ;;  %v660_v21 = vmov (!%p240_p3), 2475754826  }
   0x8   : > { %302 = vperm.xlu0 (!%p240_p3), %626, %v298_v0   ;;  %583 = vmatprep.subr.bf16.mxu0 (!%p240_p3), %v657_v3  ;;  %v420_v4 = vld [vmem:[%s783_s2] sm:$0xff] (!%p240_p3)  ;;  %v661_v24 = vmov (!%p240_p3), 2131351028   ;;  %v662_v27 = vmov (!%p240_p3), 2102212464   ;;  %vm426_vm15 = vcmask (!%p240_p3), 64512  }
   0x9   : > { %585 = vmatprep.mubr.msk.bf16.mxu0 (!%p240_p3), %vm658_vm0, %v657_v3  ;;  %423 = vperm.xlu1 (!%p240_p3), %627, %v420_v4   ;;  %v663_v30 = vmov (!%p240_p3), 920167782   ;;  %v664_v33 = vmov (!%p240_p3), 1326507024   ;;  %vm478_vm0 = vcmask (!%p240_p3), 519168  }
   0xc   : > { %413 = vperm.xlu0 (!%p240_p3), %626, %v299_v2  }
   0xe   : > { %s793_s21 = smov (!%p277_p4, %s646_s21), 1 }
   0xf   : > { %s727_s7 = sshll.u32 %s793_s21, 2 }
  0x10   : > { %s280_s10 = scalar_lea.vmem %s781_s0, %s727_s7  ;;  %s287_s15 = scalar_lea.vmem %s786_s5, %s727_s7 }
  0x11   : > { %v733_v5 = vld [vmem:[%s280_s10] sm:$0xf]  ;;  %s294_s18 = scalar_lea.vmem %s787_s6, %s727_s7 }
  0x12   : > { %v297_v6 = vunpack.c.l.bf16 %v733_v5 }
  0x87   : > { %v303_v7 = vpop.permute.xlu0 %302 }
  0x88   : > { %v738_v8 = vmul.f32 %v303_v7, %v297_v6 }
  0x8a   : > { %v309_v9 = vand.u32 2139095040, %v738_v8  ;;  %v306_v13 = vand.u32 2147483647, %v738_v8  ;;  %vm308_vm8 = vcmp.lt.s32.totalorder %v738_v8, 0  ;;  %vm398_vm13 = vweird.f32 %v738_v8 }
  0x8c   : > { %v310_v10 = vshrl.u32 %v309_v9, 23  ;;  %v313_v16 = vand.u32 8388607, %v306_v13  ;;  %vm307_vm9 = vcmp.le.f32.partialorder %v306_v13, 0.7853982 }
  0x8e   : > { %v574_v11 = vadd.s32 4294967169, %v310_v10  ;;  %v314_v35 = vor.u32 8388608, %v313_v16 }
  0x90   : > { %v316_v12 = vadd.s32 1, %v574_v11  ;;  %v354_v49 = vshll.u32 %v314_v35, 8 }
  0x92   : > { %vm317_vm1 = vcmp.gt.s32.totalorder %v316_v12, 0 }
  0x93   : > { %v318_v14 = vsel %vm317_vm1, %v316_v12, 0 }
  0x94   : > { %v320_v15 = vand.u32 31, %v318_v14  ;;  %v319_v18 = vshrl.u32 %v318_v14, 5 }
  0x96   : > { %v321_v17 = vsub.s32 32, %v320_v15  ;;  %v323_v20 = vshll.u32 %v659_v19, %v320_v15  ;;  %v326_v22 = vshll.u32 %v660_v21, %v320_v15  ;;  %v329_v26 = vshll.u32 %v661_v24, %v320_v15 }
  0x97   : > { %v332_v29 = vshll.u32 %v662_v27, %v320_v15  ;;  %v335_v32 = vshll.u32 %v663_v30, %v320_v15  ;;  %vm338_vm2 = vcmp.lt.s32.totalorder %v319_v18, 1  ;;  %vm341_vm3 = vcmp.lt.s32.totalorder %v319_v18, 4 }
  0x98   : > { %v324_v23 = vshrl.u32 %v660_v21, %v321_v17  ;;  %v327_v25 = vshrl.u32 %v661_v24, %v321_v17  ;;  %v330_v28 = vshrl.u32 %v662_v27, %v321_v17  ;;  %v333_v31 = vshrl.u32 %v663_v30, %v321_v17 }
  0x99   : > { %v336_v34 = vshrl.u32 %v664_v33, %v321_v17  ;;  %v322_v44 = vshrl.u32 %v659_v19, %v321_v17  ;;  %vm340_vm4 = vcmp.lt.s32.totalorder %v319_v18, 3  ;;  %vm339_vm5 = vcmp.lt.s32.totalorder %v319_v18, 2 }
  0x9a   : > { %v325_v36 = vor.u32 %v324_v23, %v323_v20  ;;  %v328_v37 = vor.u32 %v327_v25, %v326_v22  ;;  %v331_v38 = vor.u32 %v330_v28, %v329_v26  ;;  %v334_v39 = vor.u32 %v333_v31, %v332_v29 }
  0x9b   : > { %v337_v40 = vor.u32 %v336_v34, %v335_v32 }
  0x9c   : > { %v343_v41 = vsel %vm341_vm3, %v331_v38, 2102212464  ;;  %v346_v42 = vsel %vm338_vm2, %v325_v36, %v328_v37  ;;  %v350_v43 = vsel %vm338_vm2, %v328_v37, %v331_v38  ;;  %v347_v45 = vsel %vm341_vm3, %v334_v39, 920167782 }
  0x9d   : > { %v351_v46 = vsel %vm341_vm3, %v337_v40, 1326507024  ;;  %v348_v47 = vsel %vm340_vm4, %v331_v38, %v347_v45  ;;  %v342_v50 = vsel %vm338_vm2, %v322_v44, %v325_v36  ;;  %v344_v51 = vsel %vm340_vm4, %v328_v37, %v343_v41  ;;  %v414_v40 = vpop.permute.xlu0 %413  ;;  %v419_v45 = vld [vmem:[%s782_s1] sm:$0xf] }
  0x9e   : > { %v352_v48 = vsel %vm340_vm4, %v334_v39, %v351_v46  ;;  %v349_v52 = vsel %vm339_vm5, %v346_v42, %v348_v47  ;;  %v345_v58 = vsel %vm339_vm5, %v342_v50, %v344_v51  ;;  %v424_v46 = vpop.permute.xlu1 %423 }
  0x9f   : > { %v353_v53 = vsel %vm339_vm5, %v350_v43, %v352_v48  ;;  %v747_v56 = vmul.u32.u64.low %v354_v49, %v349_v52  ;;  %v748_v57 = vmul.u32.u64.high %v354_v49, %v349_v52, %v747_v56  ;;  %v361_v60 = vmul.u32 %v354_v49, %v345_v58 }
  0xa0   : > { %v744_v54 = vmul.u32.u64.low %v354_v49, %v353_v53  ;;  %v745_v55 = vmul.u32.u64.high %v354_v49, %v353_v53, %v744_v54 }
  0xa1   : > { %v364_v59 = vadd.s32 1, %v748_v57 }
  0xa2   : > { %vm363_vm6 = vc.u32 %v745_v55, %v747_v56  ;;  %v362_v11 = vadd.s32 %v747_v56, %v745_v55 }
  0xa3   : > { %v365_v61 = vsel %vm363_vm6, %v364_v59, %v748_v57 }
  0xa4   : > { %v366_v62 = vadd.s32 %v365_v61, %v361_v60 }
  0xa6   : > { %v367_v63 = vadd.s32 536870912, %v366_v62 }
  0xa8   : > { %v368_v0 = vshrl.u32 %v367_v63, 30 }
  0xaa   : > { %v369_v1 = vshll.u32 %v368_v0, 30  ;;  %v392_v24 = vsub.s32 4, %v368_v0 }
  0xac   : > { %v370_v2 = vsub.s32 %v366_v62, %v369_v1  ;;  %v393_v27 = vsel %vm308_vm8, %v392_v24, %v368_v0 }
  0xad   : > { %v395_v29 = vsel %vm307_vm9, 0, %v393_v27 }
  0xae   : > { %v372_v3 = vsub.s32 0, %v370_v2  ;;  %v399_v30 = vadd.s32 3, %v395_v29 }
  0xb0   : > { %v575_v4 = vmin.u32 %v372_v3, %v370_v2  ;;  %v400_v31 = vand.u32 3, %v399_v30 }
  0xb2   : > { %v374_v7 = vclz %v575_v4  ;;  %vm405_vm10 = vcmp.eq.s32.totalorder %v400_v31, 2  ;;  %vm402_vm11 = vcmp.eq.s32.totalorder %v400_v31, 0  ;;  %vm401_vm12 = vcmp.lt.s32.totalorder %v400_v31, 2 }
  0xb4   : > { %v576_v9 = vadd.s32 4294967294, %v374_v7 }
  0xb6   : > { %vm577_vm7 = vcmp.lt.s32.totalorder %v576_v9, 0 }
  0xb7   : > { %v377_v10 = vsel %vm577_vm7, 0, %v576_v9 }
  0xb8   : > { %v378_v12 = vsub.s32 32, %v377_v10  ;;  %v382_v14 = vsub.s32 4294967266, %v377_v10  ;;  %v379_v15 = vshll.u32 %v370_v2, %v377_v10 }
  0xba   : > { %v380_v16 = vshrl.u32 %v362_v11, %v378_v12  ;;  %v383_v17 = vadd.s32 127, %v382_v14 }
  0xbc   : > { %v381_v18 = vor.u32 %v380_v16, %v379_v15  ;;  %v384_v19 = vshll.u32 %v383_v17, 23 }
  0xbe   : > { %v385_v20 = vor.u32 4788187, %v384_v19  ;;  %v388_v22 = vcvt.s32.f32 %v381_v18 }
  0xc0   : > { %v386_v21 = vand.u32 2147483647, %v385_v20 }
  0xc2   : > { %v389_v23 = vmul.f32 %v388_v22, %v386_v21 }
  0xc4   : > { %v390_v25 = vxor.u32 2147483648, %v389_v23 }
  0xc6   : > { %v391_v26 = vsel %vm308_vm8, %v390_v25, %v389_v23 }
  0xc7   : > { %v394_v28 = vsel %vm307_vm9, %v738_v8, %v391_v26  ;;  %v474_v8 = vld [vmem:[%s287_s15] sm:$0xf] }
  0xc8   : > { %628 = vcosq.f32 %v394_v28  ;;  %v475_v47 = vunpack.c.l.bf16 %v474_v8 }
  0xc9   : > { %630 = vsinq.f32 %v394_v28 }
  0xd2   : > { %v629_v32 = vpop.eup %628 }
  0xd3   : > { %v631_v33 = vpop.eup %630  ;;  %v406_v34 = vxor.u32 2147483648, %v629_v32 }
  0xd4   : > { %v403_v35 = vxor.u32 2147483648, %v631_v33 }
  0xd5   : > { %v407_v36 = vsel %vm405_vm10, %v406_v34, %v631_v33 }
  0xd6   : > { %v404_v37 = vsel %vm402_vm11, %v629_v32, %v403_v35 }
  0xd7   : > { %v408_v13 = vsel %vm401_vm12, %v404_v37, %v407_v36 }
  0xd8   : > { %v409_v38 = vsel %vm398_vm13, nan, %v408_v13 }
  0xd9   : > { %v410_v39 = vmul.f32 %v409_v38, %v409_v38 }
  0xdb   : > { %v416_v41 = vmul.f32 %v414_v40, %v410_v39 }
  0xdd   : > { %v417_v42 = vadd.f32 %v416_v41, %v297_v6 }
  0xdf   : > { %v418_v43 = vpack.c.bf16 %v417_v42, %v417_v42 }
  0xe1   : > { %v432_v44 = vsel %vm430_vm14, %v418_v43, 0 }
  0xe2   : > { %584 = vmatpush3.bf16.msra.mxu0 %v432_v44 }
  0xe5   : > { %586 = vmatmul.mubr.msk.bf16.vlgmr.msra.gmra.mrb[0].mxu0 %vm426_vm15, %v419_v45 }
 0x1b8   : > { %v468_v5 = vpop.f32.mrb[0].mxu0 }
 0x1b9   : > { %v469_v6 = vadd.f32 %v468_v5, %v424_v46  ;;  %v587_v48 = vpop.f32.mrb[1].mxu0 }
 0x1ba   : > { %v471_v49 = vpop.f32.mrb[2].mxu0 }
 0x1bb   : > { %v476_v50 = vadd.f32 %v475_v47, %v469_v6  ;;  %v588_v51 = vpop.f32.mrb[3].mxu0 }
 0x1bd   : > { %v477_v52 = vpack.c.bf16 %v476_v50, %v476_v50 }
 0x1bf   : > { %479 = vst.msk [vmem:[%s294_s18] sm:$0xf] %vm478_vm0, %v477_v52 }
 0x1c0 PF: > { %s16_s23 = sadd.s32 1, %s654_s23   ;;  %s788_s21 = smov %s650_s22 }
 0x1c1   : > { %p13_p5 = scmp.ge.s32.totalorder %s16_s23, 4   ;;  %s789_s22 = smov %s791_s24 }
 0x1c3   :  { %15 = sbr.rel (!%p13_p5) target bundleno = 2 (0x2), region = 77 }

// kernel: decoder_pallas.27
= control target key start
LH: loop header
LB: loop body
LE: loop exit
PB: predicated region body
PF: predicated region fallthrough
CT: control target
= control target key end

     0   :  { %s678_s18 = smov 0   ;;  %s680_s19 = smov 0   ;;  %s765_s0 = inlined_call_operand.vmem [shape: bf16[2,8,82], index: 0, kind: input, shape index: {}]   ;;  %s766_s1 = inlined_call_operand.vmem [shape: bf16[8,56], index: 1, kind: input, shape index: {}]   ;;  %s767_s2 = inlined_call_operand.vmem [shape: f32[8,1], index: 2, kind: input, shape index: {}]   ;;  %s768_s3 = inlined_call_operand.vmem [shape: f32[8,1], index: 3, kind: input, shape index: {}]   ;;  %s769_s4 = inlined_call_operand.vmem [shape: f32[8,1], index: 4, kind: input, shape index: {}]   ;;  %s770_s5 = inlined_call_operand.vmem [shape: bf16[2,8,64], index: 5, kind: output, shape index: {}]  }
   0x1   :  { %s682_s20 = smov 0  }
   0x2 LB: > { %s27_s21 = sadd.s32 1, %s627_s19  ;;  %p534_p0 = scmp.ge.s32.totalorder %s631_s20, 1  ;;  %s631_s20 = sphi %s682_s20, %s15_s20   ;;  %s627_s19 = sphi %s680_s19, %s772_s19   ;;  %s623_s18 = sphi %s678_s18, %s771_s18  }
   0x3   : > { %p29_p1 = scmp.ge.s32.totalorder %s27_s21, 2  ;;  %p200_p2 = scmp.lt.s32.totalorder %s631_s20, 3 }
   0x5   : > { %s774_s21 = smov (%p29_p1, %s27_s21), 0  ;;  %p201_p3 = pnand %p534_p0, %p200_p2 }
   0x6   : > { %v243_v0 = vld [vmem:[%s768_s3] sm:$0xff] (!%p201_p3)  ;;  %v633_v1 = vmov (!%p201_p3), 0   ;;  %p229_p4 = scmp.lt.s32.totalorder (!%p201_p3), %s623_s18, 1  ;;  %v634_v17 = vmov (!%p201_p3), 683565275   ;;  %vm363_vm13 = vcmask (!%p201_p3), 523264  }
   0x7   : > { %204 = sbr.rel (%p201_p3) target bundleno = 581 (0x245), region = 40  ;;  %604 = vset.pattern.permute.xlu0 (!%p201_p3), %v633_v1  ;;  %v244_v2 = vld [vmem:[%s769_s4] sm:$0xff] (!%p201_p3)  ;;  %v635_v19 = vmov (!%p201_p3), 2475754826   ;;  %v636_v22 = vmov (!%p201_p3), 2131351028  }
   0x8   : > { %247 = vperm.xlu0 (!%p201_p3), %604, %v243_v0   ;;  %v637_v25 = vmov (!%p201_p3), 2102212464   ;;  %v638_v28 = vmov (!%p201_p3), 920167782   ;;  %v639_v31 = vmov (!%p201_p3), 1326507024  }
   0x9   : > { %s641_s30 = smov (!%p201_p3), 119   ;;  %s642_s6 = smov (!%p201_p3), 125   ;;  %vm646_vm14 = vmmov (!%p201_p3), 0   ;;  %vm412_vm15 = vcmask (!%p201_p3), 1043456  }
   0xa   : > { %s643_s7 = smov (!%p201_p3), 113   ;;  %s644_s8 = smov (!%p201_p3), 122  }
   0xb   : > { %s645_s11 = smov (!%p201_p3), 116   ;;  %s647_s12 = smov (!%p201_p3), 110  }
   0xc   : > { %358 = vperm.xlu0 (!%p201_p3), %604, %v244_v2  }
   0xe   : > { %s776_s18 = smov (!%p229_p4, %s623_s18), 1 }
   0xf   : > { %s535_s26 = sshll.u32 %s776_s18, 2 }
  0x10   : > { %s232_s29 = scalar_lea.vmem %s765_s0, %s535_s26  ;;  %s239_s17 = scalar_lea.vmem %s770_s5, %s535_s26 }
  0x11   : > { %v710_v3 = vld [vmem:[%s232_s29] sm:$0xf] }
  0x12   : > { %v242_v4 = vunpack.c.l.bf16 %v710_v3 }
  0x87   : > { %v248_v5 = vpop.permute.xlu0 %247 }
  0x88   : > { %v715_v6 = vmul.f32 %v248_v5, %v242_v4 }
  0x8a   : > { %v254_v7 = vand.u32 2139095040, %v715_v6  ;;  %v251_v11 = vand.u32 2147483647, %v715_v6  ;;  %vm253_vm7 = vcmp.lt.s32.totalorder %v715_v6, 0  ;;  %vm343_vm12 = vweird.f32 %v715_v6 }
  0x8c   : > { %v255_v8 = vshrl.u32 %v254_v7, 23  ;;  %v258_v14 = vand.u32 8388607, %v251_v11  ;;  %vm252_vm8 = vcmp.le.f32.partialorder %v251_v11, 0.7853982 }
  0x8e   : > { %v537_v9 = vadd.s32 4294967169, %v255_v8  ;;  %v259_v33 = vor.u32 8388608, %v258_v14 }
  0x90   : > { %v261_v10 = vadd.s32 1, %v537_v9  ;;  %v299_v47 = vshll.u32 %v259_v33, 8 }
  0x92   : > { %vm262_vm0 = vcmp.gt.s32.totalorder %v261_v10, 0 }
  0x93   : > { %v263_v12 = vsel %vm262_vm0, %v261_v10, 0  ;;  %vm408_vm0 = vcmask 457728  }
  0x94   : > { %v265_v13 = vand.u32 31, %v263_v12  ;;  %v264_v16 = vshrl.u32 %v263_v12, 5 }
  0x96   : > { %v266_v15 = vsub.s32 32, %v265_v13  ;;  %v268_v18 = vshll.u32 %v634_v17, %v265_v13  ;;  %v271_v20 = vshll.u32 %v635_v19, %v265_v13  ;;  %v274_v24 = vshll.u32 %v636_v22, %v265_v13 }
  0x97   : > { %v277_v27 = vshll.u32 %v637_v25, %v265_v13  ;;  %v280_v30 = vshll.u32 %v638_v28, %v265_v13  ;;  %vm283_vm1 = vcmp.lt.s32.totalorder %v264_v16, 1  ;;  %vm286_vm2 = vcmp.lt.s32.totalorder %v264_v16, 4 }
  0x98   : > { %v269_v21 = vshrl.u32 %v635_v19, %v266_v15  ;;  %v272_v23 = vshrl.u32 %v636_v22, %v266_v15  ;;  %v275_v26 = vshrl.u32 %v637_v25, %v266_v15  ;;  %v278_v29 = vshrl.u32 %v638_v28, %v266_v15 }
  0x99   : > { %v281_v32 = vshrl.u32 %v639_v31, %v266_v15  ;;  %v267_v42 = vshrl.u32 %v634_v17, %v266_v15  ;;  %vm285_vm3 = vcmp.lt.s32.totalorder %v264_v16, 3  ;;  %vm284_vm4 = vcmp.lt.s32.totalorder %v264_v16, 2 }
  0x9a   : > { %v270_v34 = vor.u32 %v269_v21, %v268_v18  ;;  %v273_v35 = vor.u32 %v272_v23, %v271_v20  ;;  %v276_v36 = vor.u32 %v275_v26, %v274_v24  ;;  %v279_v37 = vor.u32 %v278_v29, %v277_v27 }
  0x9b   : > { %v282_v38 = vor.u32 %v281_v32, %v280_v30 }
  0x9c   : > { %v288_v39 = vsel %vm286_vm2, %v276_v36, 2102212464  ;;  %v291_v40 = vsel %vm283_vm1, %v270_v34, %v273_v35  ;;  %v295_v41 = vsel %vm283_vm1, %v273_v35, %v276_v36  ;;  %v292_v43 = vsel %vm286_vm2, %v279_v37, 920167782 }
  0x9d   : > { %v296_v44 = vsel %vm286_vm2, %v282_v38, 1326507024  ;;  %v293_v45 = vsel %vm285_vm3, %v276_v36, %v292_v43  ;;  %v287_v48 = vsel %vm283_vm1, %v267_v42, %v270_v34  ;;  %v289_v49 = vsel %vm285_vm3, %v273_v35, %v288_v39  ;;  %v359_v38 = vpop.permute.xlu0 %358 }
  0x9e   : > { %v297_v46 = vsel %vm285_vm3, %v279_v37, %v296_v44  ;;  %v294_v50 = vsel %vm284_vm4, %v291_v40, %v293_v45  ;;  %v290_v56 = vsel %vm284_vm4, %v287_v48, %v289_v49  ;;  %v640_v40 = vmov 0.0  }
  0x9f   : > { %v298_v51 = vsel %vm284_vm4, %v295_v41, %v297_v46  ;;  %v724_v54 = vmul.u32.u64.low %v299_v47, %v294_v50  ;;  %v725_v55 = vmul.u32.u64.high %v299_v47, %v294_v50, %v724_v54  ;;  %v306_v58 = vmul.u32 %v299_v47, %v290_v56  ;;  %549 = vmatprep.subr.bf16.mxu0 %v640_v40  ;;  %557 = vmatprep.mubr.msk.bf16.mxu0 %vm646_vm14, %v640_v40 }
  0xa0   : > { %v721_v52 = vmul.u32.u64.low %v299_v47, %v298_v51  ;;  %v722_v53 = vmul.u32.u64.high %v299_v47, %v298_v51, %v721_v52  ;;  %vm457_vm1 = vcmask 519168  }
  0xa1   : > { %v309_v57 = vadd.s32 1, %v725_v55 }
  0xa2   : > { %vm308_vm5 = vc.u32 %v722_v53, %v724_v54  ;;  %v307_v9 = vadd.s32 %v724_v54, %v722_v53 }
  0xa3   : > { %v310_v59 = vsel %vm308_vm5, %v309_v57, %v725_v55 }
  0xa4   : > { %v311_v60 = vadd.s32 %v310_v59, %v306_v58  ;;  %v401_v58 = vld [vmem:[%s766_s1] sm:$0xf] }
  0xa6   : > { %v312_v61 = vadd.s32 536870912, %v311_v60 }
  0xa8   : > { %v313_v62 = vshrl.u32 %v312_v61, 30 }
  0xaa   : > { %v314_v63 = vshll.u32 %v313_v62, 30  ;;  %v337_v22 = vsub.s32 4, %v313_v62 }
  0xac   : > { %v315_v0 = vsub.s32 %v311_v60, %v314_v63  ;;  %v338_v25 = vsel %vm253_vm7, %v337_v22, %v313_v62 }
  0xad   : > { %v340_v27 = vsel %vm252_vm8, 0, %v338_v25 }
  0xae   : > { %v317_v1 = vsub.s32 0, %v315_v0  ;;  %v344_v28 = vadd.s32 3, %v340_v27 }
  0xb0   : > { %v538_v2 = vmin.u32 %v317_v1, %v315_v0  ;;  %v345_v29 = vand.u32 3, %v344_v28 }
  0xb2   : > { %v319_v5 = vclz %v538_v2  ;;  %vm350_vm9 = vcmp.eq.s32.totalorder %v345_v29, 2  ;;  %vm347_vm10 = vcmp.eq.s32.totalorder %v345_v29, 0  ;;  %vm346_vm11 = vcmp.lt.s32.totalorder %v345_v29, 2 }
  0xb4   : > { %v539_v7 = vadd.s32 4294967294, %v319_v5 }
  0xb6   : > { %vm540_vm6 = vcmp.lt.s32.totalorder %v539_v7, 0 }
  0xb7   : > { %v322_v8 = vsel %vm540_vm6, 0, %v539_v7 }
  0xb8   : > { %v323_v10 = vsub.s32 32, %v322_v8  ;;  %v327_v12 = vsub.s32 4294967266, %v322_v8  ;;  %v324_v13 = vshll.u32 %v315_v0, %v322_v8 }
  0xba   : > { %v325_v14 = vshrl.u32 %v307_v9, %v323_v10  ;;  %v328_v15 = vadd.s32 127, %v327_v12 }
  0xbc   : > { %v326_v16 = vor.u32 %v325_v14, %v324_v13  ;;  %v329_v17 = vshll.u32 %v328_v15, 23 }
  0xbe   : > { %v330_v18 = vor.u32 4788187, %v329_v17  ;;  %v333_v20 = vcvt.s32.f32 %v326_v16 }
  0xc0   : > { %v331_v19 = vand.u32 2147483647, %v330_v18 }
  0xc2   : > { %v334_v21 = vmul.f32 %v333_v20, %v331_v19 }
  0xc4   : > { %v335_v23 = vxor.u32 2147483648, %v334_v21 }
  0xc6   : > { %v336_v24 = vsel %vm253_vm7, %v335_v23, %v334_v21 }
  0xc7   : > { %v339_v26 = vsel %vm252_vm8, %v715_v6, %v336_v24  ;;  %v402_v6 = vld [vmem:[%s767_s2] sm:$0xff] }
  0xc8   : > { %605 = vcosq.f32 %v339_v26 }
  0xc9   : > { %607 = vsinq.f32 %v339_v26 }
  0xd2   : > { %v606_v30 = vpop.eup %605 }
  0xd3   : > { %v608_v31 = vpop.eup %607  ;;  %v351_v32 = vxor.u32 2147483648, %v606_v30 }
  0xd4   : > { %v348_v33 = vxor.u32 2147483648, %v608_v31 }
  0xd5   : > { %v352_v34 = vsel %vm350_vm9, %v351_v32, %v608_v31 }
  0xd6   : > { %v349_v35 = vsel %vm347_vm10, %v606_v30, %v348_v33 }
  0xd7   : > { %v353_v11 = vsel %vm346_vm11, %v349_v35, %v352_v34 }
  0xd8   : > { %v354_v36 = vsel %vm343_vm12, nan, %v353_v11 }
  0xd9   : > { %v355_v37 = vmul.f32 %v354_v36, %v354_v36 }
  0xdb   : > { %v361_v39 = vmul.f32 %v359_v38, %v355_v37 }
  0xdd   : > { %v362_v41 = vadd.f32 %v361_v39, %v242_v4 }
  0xdf   : > { %374 = vrot.lane.b32.xlu0 %v362_v41, %s641_s30  ;;  %366 = vrot.lane.b32.xlu1 %v362_v41, %s642_s6  ;;  %364 = vst.msk [vmem:[#allocation2] sm:$0xff] %vm363_vm13, %v362_v41 }
  0xe3   : > { %382 = vrot.lane.b32.xlu0 %v362_v41, %s643_s7  ;;  %370 = vrot.lane.b32.xlu1 %v362_v41, %s644_s8 }
  0xe6   : > { %v390_v45 = vld [vmem:[#allocation2] sm:$0xff] }
  0xe7   : > { %405 = vperm.xlu0 %604, %v402_v6   ;;  %378 = vrot.lane.b32.xlu1 %v362_v41, %s645_s11 }
  0xeb   : > { %386 = vrot.lane.b32.xlu1 %v362_v41, %s647_s12 }
 0x151   : > { %v375_v3 = vpop.permute.xlu0 %374  ;;  %v367_v4 = vpop.permute.xlu1 %366 }
 0x152   : > { %377 = vst.msk [vmem:[#allocation2 + $0x18] sm:$0xff] %vm363_vm13, %v375_v3  ;;  %369 = vst.msk [vmem:[#allocation2 + $0x8] sm:$0xff] %vm363_vm13, %v367_v4 }
 0x155   : > { %v383_v42 = vpop.permute.xlu0 %382  ;;  %v371_v43 = vpop.permute.xlu1 %370 }
 0x156   : > { %385 = vst.msk [vmem:[#allocation2 + $0x28] sm:$0xff] %vm363_vm13, %v383_v42  ;;  %373 = vst.msk [vmem:[#allocation2 + $0x10] sm:$0xff] %vm363_vm13, %v371_v43 }
 0x159   : > { %v379_v44 = vpop.permute.xlu1 %378  ;;  %v391_v46 = vld [vmem:[#allocation2 + $0x8] sm:$0xff]  ;;  %v393_v50 = vld [vmem:[#allocation2 + $0x18] sm:$0xff] }
 0x15a   : > { %381 = vst.msk [vmem:[#allocation2 + $0x20] sm:$0xff] %vm363_vm13, %v379_v44  ;;  %v397_v47 = vpack.c.bf16 %v391_v46, %v390_v45 }
 0x15c   : > { %550 = vmatpush3.bf16.msra.mxu0 %v397_v47 }
 0x15d   : > { %v387_v48 = vpop.permute.xlu1 %386  ;;  %551 = vmatprep.subr.bf16.mxu0 %v640_v40  ;;  %v392_v49 = vld [vmem:[#allocation2 + $0x10] sm:$0xff]  ;;  %v395_v53 = vld [vmem:[#allocation2 + $0x28] sm:$0xff] }
 0x15e   : > { %389 = vst.msk [vmem:[#allocation2 + $0x30] sm:$0xff] %vm363_vm13, %v387_v48  ;;  %v398_v51 = vpack.c.bf16 %v393_v50, %v392_v49 }
 0x160   : > { %552 = vmatpush3.bf16.msra.mxu0 %v398_v51 }
 0x161   : > { %553 = vmatprep.subr.bf16.mxu0 %v640_v40  ;;  %v394_v52 = vld [vmem:[#allocation2 + $0x20] sm:$0xff] }
 0x162   : > { %v399_v54 = vpack.c.bf16 %v395_v53, %v394_v52 }
 0x164   : > { %554 = vmatpush3.bf16.msra.mxu0 %v399_v54 }
 0x165   : > { %555 = vmatprep.subr.bf16.mxu0 %v640_v40  ;;  %v396_v55 = vld [vmem:[#allocation2 + $0x30] sm:$0xff] }
 0x166   : > { %v400_v56 = vpack.c.bf16 %v396_v55, %v396_v55  ;;  %v406_v59 = vpop.permute.xlu0 %405 }
 0x168   : > { %v414_v57 = vsel %vm412_vm15, %v400_v56, 0 }
 0x169   : > { %556 = vmatpush3.bf16.msra.mxu0 %v414_v57 }
 0x16c   : > { %558 = vmatmul.mubr.msk.bf16.vlgmr.msra.gmra.mrb[0].mxu0 %vm408_vm0, %v401_v58 }
 0x23f   : > { %v450_v60 = vpop.f32.mrb[0].mxu0 }
 0x240   : > { %v451_v61 = vadd.f32 %v450_v60, %v406_v59  ;;  %v559_v62 = vpop.f32.mrb[1].mxu0 }
 0x241   : > { %v453_v63 = vpop.f32.mrb[2].mxu0 }
 0x242   : > { %v456_v0 = vpack.c.bf16 %v451_v61, %v451_v61  ;;  %v560_v1 = vpop.f32.mrb[3].mxu0 }
 0x244   : > { %458 = vst.msk [vmem:[%s239_s17] sm:$0xf] %vm457_vm1, %v456_v0 }
 0x245 PF: > { %s15_s20 = sadd.s32 1, %s631_s20   ;;  %s771_s18 = smov %s627_s19 }
 0x246   : > { %p12_p5 = scmp.ge.s32.totalorder %s15_s20, 4   ;;  %s772_s19 = smov %s774_s21 }
 0x248   :  { %14 = sbr.rel (!%p12_p5) target bundleno = 2 (0x2), region = 70 }

// kernel: decoder_pallas.29
= control target key start
LH: loop header
LB: loop body
LE: loop exit
PB: predicated region body
PF: predicated region fallthrough
CT: control target
= control target key end

     0   :  { %s678_s18 = smov 0   ;;  %s680_s19 = smov 0   ;;  %s765_s0 = inlined_call_operand.vmem [shape: bf16[2,8,118], index: 0, kind: input, shape index: {}]   ;;  %s766_s1 = inlined_call_operand.vmem [shape: bf16[8,56], index: 1, kind: input, shape index: {}]   ;;  %s767_s2 = inlined_call_operand.vmem [shape: f32[8,1], index: 2, kind: input, shape index: {}]   ;;  %s768_s3 = inlined_call_operand.vmem [shape: f32[8,1], index: 3, kind: input, shape index: {}]   ;;  %s769_s4 = inlined_call_operand.vmem [shape: f32[8,1], index: 4, kind: input, shape index: {}]   ;;  %s770_s5 = inlined_call_operand.vmem [shape: bf16[2,8,64], index: 5, kind: output, shape index: {}]  }
   0x1   :  { %s682_s20 = smov 0  }
   0x2 LB: > { %s27_s21 = sadd.s32 1, %s627_s19  ;;  %p534_p0 = scmp.ge.s32.totalorder %s631_s20, 1  ;;  %s631_s20 = sphi %s682_s20, %s15_s20   ;;  %s627_s19 = sphi %s680_s19, %s772_s19   ;;  %s623_s18 = sphi %s678_s18, %s771_s18  }
   0x3   : > { %p29_p1 = scmp.ge.s32.totalorder %s27_s21, 2  ;;  %p200_p2 = scmp.lt.s32.totalorder %s631_s20, 3 }
   0x5   : > { %s774_s21 = smov (%p29_p1, %s27_s21), 0  ;;  %p201_p3 = pnand %p534_p0, %p200_p2 }
   0x6   : > { %v243_v0 = vld [vmem:[%s768_s3] sm:$0xff] (!%p201_p3)  ;;  %v633_v1 = vmov (!%p201_p3), 0   ;;  %p229_p4 = scmp.lt.s32.totalorder (!%p201_p3), %s623_s18, 1  ;;  %v634_v17 = vmov (!%p201_p3), 683565275   ;;  %vm363_vm13 = vcmask (!%p201_p3), 523264  }
   0x7   : > { %204 = sbr.rel (%p201_p3) target bundleno = 581 (0x245), region = 40  ;;  %604 = vset.pattern.permute.xlu0 (!%p201_p3), %v633_v1  ;;  %v244_v2 = vld [vmem:[%s769_s4] sm:$0xff] (!%p201_p3)  ;;  %v635_v19 = vmov (!%p201_p3), 2475754826   ;;  %v636_v22 = vmov (!%p201_p3), 2131351028  }
   0x8   : > { %247 = vperm.xlu0 (!%p201_p3), %604, %v243_v0   ;;  %v637_v25 = vmov (!%p201_p3), 2102212464   ;;  %v638_v28 = vmov (!%p201_p3), 920167782   ;;  %v639_v31 = vmov (!%p201_p3), 1326507024  }
   0x9   : > { %s641_s30 = smov (!%p201_p3), 101   ;;  %s642_s6 = smov (!%p201_p3), 119   ;;  %vm646_vm14 = vmmov (!%p201_p3), 0   ;;  %vm412_vm15 = vcmask (!%p201_p3), 1043456  }
   0xa   : > { %s643_s7 = smov (!%p201_p3), 83   ;;  %s644_s8 = smov (!%p201_p3), 110  }
   0xb   : > { %s645_s11 = smov (!%p201_p3), 92   ;;  %s647_s12 = smov (!%p201_p3), 74  }
   0xc   : > { %358 = vperm.xlu0 (!%p201_p3), %604, %v244_v2  }
   0xe   : > { %s776_s18 = smov (!%p229_p4, %s623_s18), 1 }
   0xf   : > { %s535_s26 = sshll.u32 %s776_s18, 2 }
  0x10   : > { %s232_s29 = scalar_lea.vmem %s765_s0, %s535_s26  ;;  %s239_s17 = scalar_lea.vmem %s770_s5, %s535_s26 }
  0x11   : > { %v710_v3 = vld [vmem:[%s232_s29] sm:$0xf] }
  0x12   : > { %v242_v4 = vunpack.c.l.bf16 %v710_v3 }
  0x87   : > { %v248_v5 = vpop.permute.xlu0 %247 }
  0x88   : > { %v715_v6 = vmul.f32 %v248_v5, %v242_v4 }
  0x8a   : > { %v254_v7 = vand.u32 2139095040, %v715_v6  ;;  %v251_v11 = vand.u32 2147483647, %v715_v6  ;;  %vm253_vm7 = vcmp.lt.s32.totalorder %v715_v6, 0  ;;  %vm343_vm12 = vweird.f32 %v715_v6 }
  0x8c   : > { %v255_v8 = vshrl.u32 %v254_v7, 23  ;;  %v258_v14 = vand.u32 8388607, %v251_v11  ;;  %vm252_vm8 = vcmp.le.f32.partialorder %v251_v11, 0.7853982 }
  0x8e   : > { %v537_v9 = vadd.s32 4294967169, %v255_v8  ;;  %v259_v33 = vor.u32 8388608, %v258_v14 }
  0x90   : > { %v261_v10 = vadd.s32 1, %v537_v9  ;;  %v299_v47 = vshll.u32 %v259_v33, 8 }
  0x92   : > { %vm262_vm0 = vcmp.gt.s32.totalorder %v261_v10, 0 }
  0x93   : > { %v263_v12 = vsel %vm262_vm0, %v261_v10, 0  ;;  %vm408_vm0 = vcmask 457728  }
  0x94   : > { %v265_v13 = vand.u32 31, %v263_v12  ;;  %v264_v16 = vshrl.u32 %v263_v12, 5 }
  0x96   : > { %v266_v15 = vsub.s32 32, %v265_v13  ;;  %v268_v18 = vshll.u32 %v634_v17, %v265_v13  ;;  %v271_v20 = vshll.u32 %v635_v19, %v265_v13  ;;  %v274_v24 = vshll.u32 %v636_v22, %v265_v13 }
  0x97   : > { %v277_v27 = vshll.u32 %v637_v25, %v265_v13  ;;  %v280_v30 = vshll.u32 %v638_v28, %v265_v13  ;;  %vm283_vm1 = vcmp.lt.s32.totalorder %v264_v16, 1  ;;  %vm286_vm2 = vcmp.lt.s32.totalorder %v264_v16, 4 }
  0x98   : > { %v269_v21 = vshrl.u32 %v635_v19, %v266_v15  ;;  %v272_v23 = vshrl.u32 %v636_v22, %v266_v15  ;;  %v275_v26 = vshrl.u32 %v637_v25, %v266_v15  ;;  %v278_v29 = vshrl.u32 %v638_v28, %v266_v15 }
  0x99   : > { %v281_v32 = vshrl.u32 %v639_v31, %v266_v15  ;;  %v267_v42 = vshrl.u32 %v634_v17, %v266_v15  ;;  %vm285_vm3 = vcmp.lt.s32.totalorder %v264_v16, 3  ;;  %vm284_vm4 = vcmp.lt.s32.totalorder %v264_v16, 2 }
  0x9a   : > { %v270_v34 = vor.u32 %v269_v21, %v268_v18  ;;  %v273_v35 = vor.u32 %v272_v23, %v271_v20  ;;  %v276_v36 = vor.u32 %v275_v26, %v274_v24  ;;  %v279_v37 = vor.u32 %v278_v29, %v277_v27 }
  0x9b   : > { %v282_v38 = vor.u32 %v281_v32, %v280_v30 }
  0x9c   : > { %v288_v39 = vsel %vm286_vm2, %v276_v36, 2102212464  ;;  %v291_v40 = vsel %vm283_vm1, %v270_v34, %v273_v35  ;;  %v295_v41 = vsel %vm283_vm1, %v273_v35, %v276_v36  ;;  %v292_v43 = vsel %vm286_vm2, %v279_v37, 920167782 }
  0x9d   : > { %v296_v44 = vsel %vm286_vm2, %v282_v38, 1326507024  ;;  %v293_v45 = vsel %vm285_vm3, %v276_v36, %v292_v43  ;;  %v287_v48 = vsel %vm283_vm1, %v267_v42, %v270_v34  ;;  %v289_v49 = vsel %vm285_vm3, %v273_v35, %v288_v39  ;;  %v359_v38 = vpop.permute.xlu0 %358 }
  0x9e   : > { %v297_v46 = vsel %vm285_vm3, %v279_v37, %v296_v44  ;;  %v294_v50 = vsel %vm284_vm4, %v291_v40, %v293_v45  ;;  %v290_v56 = vsel %vm284_vm4, %v287_v48, %v289_v49  ;;  %v640_v40 = vmov 0.0  }
  0x9f   : > { %v298_v51 = vsel %vm284_vm4, %v295_v41, %v297_v46  ;;  %v724_v54 = vmul.u32.u64.low %v299_v47, %v294_v50  ;;  %v725_v55 = vmul.u32.u64.high %v299_v47, %v294_v50, %v724_v54  ;;  %v306_v58 = vmul.u32 %v299_v47, %v290_v56  ;;  %549 = vmatprep.subr.bf16.mxu0 %v640_v40  ;;  %557 = vmatprep.mubr.msk.bf16.mxu0 %vm646_vm14, %v640_v40 }
  0xa0   : > { %v721_v52 = vmul.u32.u64.low %v299_v47, %v298_v51  ;;  %v722_v53 = vmul.u32.u64.high %v299_v47, %v298_v51, %v721_v52  ;;  %vm457_vm1 = vcmask 519168  }
  0xa1   : > { %v309_v57 = vadd.s32 1, %v725_v55 }
  0xa2   : > { %vm308_vm5 = vc.u32 %v722_v53, %v724_v54  ;;  %v307_v9 = vadd.s32 %v724_v54, %v722_v53 }
  0xa3   : > { %v310_v59 = vsel %vm308_vm5, %v309_v57, %v725_v55 }
  0xa4   : > { %v311_v60 = vadd.s32 %v310_v59, %v306_v58  ;;  %v401_v58 = vld [vmem:[%s766_s1] sm:$0xf] }
  0xa6   : > { %v312_v61 = vadd.s32 536870912, %v311_v60 }
  0xa8   : > { %v313_v62 = vshrl.u32 %v312_v61, 30 }
  0xaa   : > { %v314_v63 = vshll.u32 %v313_v62, 30  ;;  %v337_v22 = vsub.s32 4, %v313_v62 }
  0xac   : > { %v315_v0 = vsub.s32 %v311_v60, %v314_v63  ;;  %v338_v25 = vsel %vm253_vm7, %v337_v22, %v313_v62 }
  0xad   : > { %v340_v27 = vsel %vm252_vm8, 0, %v338_v25 }
  0xae   : > { %v317_v1 = vsub.s32 0, %v315_v0  ;;  %v344_v28 = vadd.s32 3, %v340_v27 }
  0xb0   : > { %v538_v2 = vmin.u32 %v317_v1, %v315_v0  ;;  %v345_v29 = vand.u32 3, %v344_v28 }
  0xb2   : > { %v319_v5 = vclz %v538_v2  ;;  %vm350_vm9 = vcmp.eq.s32.totalorder %v345_v29, 2  ;;  %vm347_vm10 = vcmp.eq.s32.totalorder %v345_v29, 0  ;;  %vm346_vm11 = vcmp.lt.s32.totalorder %v345_v29, 2 }
  0xb4   : > { %v539_v7 = vadd.s32 4294967294, %v319_v5 }
  0xb6   : > { %vm540_vm6 = vcmp.lt.s32.totalorder %v539_v7, 0 }
  0xb7   : > { %v322_v8 = vsel %vm540_vm6, 0, %v539_v7 }
  0xb8   : > { %v323_v10 = vsub.s32 32, %v322_v8  ;;  %v327_v12 = vsub.s32 4294967266, %v322_v8  ;;  %v324_v13 = vshll.u32 %v315_v0, %v322_v8 }
  0xba   : > { %v325_v14 = vshrl.u32 %v307_v9, %v323_v10  ;;  %v328_v15 = vadd.s32 127, %v327_v12 }
  0xbc   : > { %v326_v16 = vor.u32 %v325_v14, %v324_v13  ;;  %v329_v17 = vshll.u32 %v328_v15, 23 }
  0xbe   : > { %v330_v18 = vor.u32 4788187, %v329_v17  ;;  %v333_v20 = vcvt.s32.f32 %v326_v16 }
  0xc0   : > { %v331_v19 = vand.u32 2147483647, %v330_v18 }
  0xc2   : > { %v334_v21 = vmul.f32 %v333_v20, %v331_v19 }
  0xc4   : > { %v335_v23 = vxor.u32 2147483648, %v334_v21 }
  0xc6   : > { %v336_v24 = vsel %vm253_vm7, %v335_v23, %v334_v21 }
  0xc7   : > { %v339_v26 = vsel %vm252_vm8, %v715_v6, %v336_v24  ;;  %v402_v6 = vld [vmem:[%s767_s2] sm:$0xff] }
  0xc8   : > { %605 = vcosq.f32 %v339_v26 }
  0xc9   : > { %607 = vsinq.f32 %v339_v26 }
  0xd2   : > { %v606_v30 = vpop.eup %605 }
  0xd3   : > { %v608_v31 = vpop.eup %607  ;;  %v351_v32 = vxor.u32 2147483648, %v606_v30 }
  0xd4   : > { %v348_v33 = vxor.u32 2147483648, %v608_v31 }
  0xd5   : > { %v352_v34 = vsel %vm350_vm9, %v351_v32, %v608_v31 }
  0xd6   : > { %v349_v35 = vsel %vm347_vm10, %v606_v30, %v348_v33 }
  0xd7   : > { %v353_v11 = vsel %vm346_vm11, %v349_v35, %v352_v34 }
  0xd8   : > { %v354_v36 = vsel %vm343_vm12, nan, %v353_v11 }
  0xd9   : > { %v355_v37 = vmul.f32 %v354_v36, %v354_v36 }
  0xdb   : > { %v361_v39 = vmul.f32 %v359_v38, %v355_v37 }
  0xdd   : > { %v362_v41 = vadd.f32 %v361_v39, %v242_v4 }
  0xdf   : > { %374 = vrot.lane.b32.xlu0 %v362_v41, %s641_s30  ;;  %366 = vrot.lane.b32.xlu1 %v362_v41, %s642_s6  ;;  %364 = vst.msk [vmem:[#allocation2] sm:$0xff] %vm363_vm13, %v362_v41 }
  0xe3   : > { %382 = vrot.lane.b32.xlu0 %v362_v41, %s643_s7  ;;  %370 = vrot.lane.b32.xlu1 %v362_v41, %s644_s8 }
  0xe6   : > { %v390_v45 = vld [vmem:[#allocation2] sm:$0xff] }
  0xe7   : > { %405 = vperm.xlu0 %604, %v402_v6   ;;  %378 = vrot.lane.b32.xlu1 %v362_v41, %s645_s11 }
  0xeb   : > { %386 = vrot.lane.b32.xlu1 %v362_v41, %s647_s12 }
 0x151   : > { %v375_v3 = vpop.permute.xlu0 %374  ;;  %v367_v4 = vpop.permute.xlu1 %366 }
 0x152   : > { %377 = vst.msk [vmem:[#allocation2 + $0x18] sm:$0xff] %vm363_vm13, %v375_v3  ;;  %369 = vst.msk [vmem:[#allocation2 + $0x8] sm:$0xff] %vm363_vm13, %v367_v4 }
 0x155   : > { %v383_v42 = vpop.permute.xlu0 %382  ;;  %v371_v43 = vpop.permute.xlu1 %370 }
 0x156   : > { %385 = vst.msk [vmem:[#allocation2 + $0x28] sm:$0xff] %vm363_vm13, %v383_v42  ;;  %373 = vst.msk [vmem:[#allocation2 + $0x10] sm:$0xff] %vm363_vm13, %v371_v43 }
 0x159   : > { %v379_v44 = vpop.permute.xlu1 %378  ;;  %v391_v46 = vld [vmem:[#allocation2 + $0x8] sm:$0xff]  ;;  %v393_v50 = vld [vmem:[#allocation2 + $0x18] sm:$0xff] }
 0x15a   : > { %381 = vst.msk [vmem:[#allocation2 + $0x20] sm:$0xff] %vm363_vm13, %v379_v44  ;;  %v397_v47 = vpack.c.bf16 %v391_v46, %v390_v45 }
 0x15c   : > { %550 = vmatpush3.bf16.msra.mxu0 %v397_v47 }
 0x15d   : > { %v387_v48 = vpop.permute.xlu1 %386  ;;  %551 = vmatprep.subr.bf16.mxu0 %v640_v40  ;;  %v392_v49 = vld [vmem:[#allocation2 + $0x10] sm:$0xff]  ;;  %v395_v53 = vld [vmem:[#allocation2 + $0x28] sm:$0xff] }
 0x15e   : > { %389 = vst.msk [vmem:[#allocation2 + $0x30] sm:$0xff] %vm363_vm13, %v387_v48  ;;  %v398_v51 = vpack.c.bf16 %v393_v50, %v392_v49 }
 0x160   : > { %552 = vmatpush3.bf16.msra.mxu0 %v398_v51 }
 0x161   : > { %553 = vmatprep.subr.bf16.mxu0 %v640_v40  ;;  %v394_v52 = vld [vmem:[#allocation2 + $0x20] sm:$0xff] }
 0x162   : > { %v399_v54 = vpack.c.bf16 %v395_v53, %v394_v52 }
 0x164   : > { %554 = vmatpush3.bf16.msra.mxu0 %v399_v54 }
 0x165   : > { %555 = vmatprep.subr.bf16.mxu0 %v640_v40  ;;  %v396_v55 = vld [vmem:[#allocation2 + $0x30] sm:$0xff] }
 0x166   : > { %v400_v56 = vpack.c.bf16 %v396_v55, %v396_v55  ;;  %v406_v59 = vpop.permute.xlu0 %405 }
 0x168   : > { %v414_v57 = vsel %vm412_vm15, %v400_v56, 0 }
 0x169   : > { %556 = vmatpush3.bf16.msra.mxu0 %v414_v57 }
 0x16c   : > { %558 = vmatmul.mubr.msk.bf16.vlgmr.msra.gmra.mrb[0].mxu0 %vm408_vm0, %v401_v58 }
 0x23f   : > { %v450_v60 = vpop.f32.mrb[0].mxu0 }
 0x240   : > { %v451_v61 = vadd.f32 %v450_v60, %v406_v59  ;;  %v559_v62 = vpop.f32.mrb[1].mxu0 }
 0x241   : > { %v453_v63 = vpop.f32.mrb[2].mxu0 }
 0x242   : > { %v456_v0 = vpack.c.bf16 %v451_v61, %v451_v61  ;;  %v560_v1 = vpop.f32.mrb[3].mxu0 }
 0x244   : > { %458 = vst.msk [vmem:[%s239_s17] sm:$0xf] %vm457_vm1, %v456_v0 }
 0x245 PF: > { %s15_s20 = sadd.s32 1, %s631_s20   ;;  %s771_s18 = smov %s627_s19 }
 0x246   : > { %p12_p5 = scmp.ge.s32.totalorder %s15_s20, 4   ;;  %s772_s19 = smov %s774_s21 }
 0x248   :  { %14 = sbr.rel (!%p12_p5) target bundleno = 2 (0x2), region = 70 }

// kernel: decoder_pallas.31
= control target key start
LH: loop header
LB: loop body
LE: loop exit
PB: predicated region body
PF: predicated region fallthrough
CT: control target
= control target key end

     0   :  { %s933_s0 = inlined_call_operand.vmem [shape: bf16[2,8,70], index: 0, kind: input, shape index: {}]   ;;  %s934_s1 = inlined_call_operand.vmem [shape: bf16[1,56], index: 1, kind: input, shape index: {}]   ;;  %s935_s2 = inlined_call_operand.<no memory space> [shape: f32[1,1], index: 2, kind: input, shape index: {}]   ;;  %s936_s3 = inlined_call_operand.vmem [shape: f32[8,1], index: 3, kind: input, shape index: {}]   ;;  %s937_s4 = inlined_call_operand.vmem [shape: f32[8,1], index: 4, kind: input, shape index: {}]   ;;  %s938_s5 = inlined_call_operand.hbm [shape: f32[2,1,64], index: 5, kind: output, shape index: {}]  }
   0x1   :  { %v10_v0 = vstv %s935_s2 }
   0x2   :  { %11 = vst [vmem:[#allocation3] sm:$0x1] %v10_v0 }
   0x3   :  { %12 = vsyncpa [#allocation5], 0 }
   0x4   :  { %14 = vsyncpa [#allocation5 + $0x1], 0  ;;  %s777_s20 = smov 0   ;;  %s779_s21 = smov 0  }
   0x5   :  { %s781_s22 = smov 0   ;;  %s783_s23 = smov 0  }
   0x6   :  { %s785_s24 = smov 0   ;;  %s787_s25 = smov 0  }
   0x7 LB: > { %s536_s2 = sadd.s32 4294967295, %s726_s25   ;;  %s537_s26 = sadd.s32 4294967294, %s726_s25   ;;  %s726_s25 = sphi %s787_s25, %s20_s25   ;;  %s722_s24 = sphi %s785_s24, %s945_s24   ;;  %s718_s23 = sphi %s783_s23, %s944_s23   ;;  %s714_s22 = sphi %s781_s22, %s943_s22   ;;  %s710_s21 = sphi %s779_s21, %s942_s21   ;;  %s706_s20 = sphi %s777_s20, %s941_s20  }
   0x8   : > { %s32_s27 = sadd.s32 1, %s722_s24  ;;  %s151_s28 = sadd.s32 1, %s714_s22 }
   0x9   : > { %p34_p0 = scmp.ge.s32.totalorder %s32_s27, 2  ;;  %p161_p1 = scmp.ne.s32.totalorder %s714_s22, %s710_s21 }
   0xa   : > { %p162_p2 = scmp.eq.s32.totalorder %s536_s2, 1  ;;  %p167_p3 = scmp.ne.s32.totalorder %s710_s21, %s706_s20 }
   0xb   : > { %s947_s27 = smov (%p34_p0, %s32_s27), 0  ;;  %p168_p5 = scmp.eq.s32.totalorder %s537_s26, 1 }
   0xc   : > { %p817_p4 = por %p162_p2, %p161_p1  ;;  %s146_s30 = ssub.s32 %s722_s24, %s947_s27 }
   0xd   : > { %p540_p6 = scmp.ge.s32.totalorder %s726_s25, 1  ;;  %p149_p7 = scmp.eq.s32.totalorder %s146_s30, 0 }
   0xe   : > { %p824_p8 = por %p168_p5, %p167_p3  ;;  %p205_p9 = scmp.lt.s32.totalorder %s726_s25, 3 }
   0xf   : > { %s830_s7 = scalar_select %p149_p7, %s714_s22, %s151_s28  }
  0x10   : > { %p206_p10 = pnand %p540_p6, %p205_p9 }
  0x11   : > { %v238_v1 = vld [vmem:[%s936_s3] sm:$0xff] (!%p206_p10)  ;;  %v728_v2 = vmov (!%p206_p10), 0   ;;  %p231_p11 = scmp.lt.s32.totalorder (!%p206_p10), %s718_s23, 1  ;;  %v729_v18 = vmov (!%p206_p10), 683565275   ;;  %vm358_vm13 = vcmask (!%p206_p10), 523264  }
  0x12   : > { %209 = sbr.rel (%p206_p10) target bundleno = 614 (0x266), region = 40  ;;  %641 = vset.pattern.permute.xlu0 (!%p206_p10), %v728_v2  ;;  %v239_v3 = vld [vmem:[%s937_s4] sm:$0xff] (!%p206_p10)  ;;  %v730_v20 = vmov (!%p206_p10), 2475754826   ;;  %v731_v23 = vmov (!%p206_p10), 2131351028  }
  0x13   : > { %242 = vperm.xlu0 (!%p206_p10), %641, %v238_v1   ;;  %v732_v26 = vmov (!%p206_p10), 2102212464   ;;  %v733_v29 = vmov (!%p206_p10), 920167782   ;;  %v734_v32 = vmov (!%p206_p10), 1326507024  }
  0x14   : > { %s736_s17 = smov (!%p206_p10), 125   ;;  %s737_s18 = smov (!%p206_p10), 127   ;;  %vm741_vm14 = vmmov (!%p206_p10), 0   ;;  %vm411_vm15 = vcmask (!%p206_p10), 1043456  }
  0x15   : > { %s738_s19 = smov (!%p206_p10), 123   ;;  %s739_s2 = smov (!%p206_p10), 126  }
  0x16   : > { %s740_s26 = smov (!%p206_p10), 124   ;;  %s742_s28 = smov (!%p206_p10), 122  }
  0x17   : > { %353 = vperm.xlu0 (!%p206_p10), %641, %v239_v3   ;;  %s229_s9 = sand.u32 (!%p206_p10), 1, %s710_s21   ;;  %s547_s10 = sshll.u32 (!%p206_p10), %s718_s23, 4 }
  0x18   : > { %s230_s11 = scalar_lea.vmem (!%p206_p10), [#allocation4], %s229_s9  ;;  %s886_s15 = scalar_lea.hbm (!%p206_p10), %s938_s5, %s547_s10 }
  0x19   : > { %s232_s12 = scalar_select %p231_p11, %s718_s23, 1 }
  0x1a   : > { %s743_s23 = smov [#allocation4]  }
  0x1b   : > { %s541_s13 = sshll.u32 %s232_s12, 2  ;;  %s472_s12 = sshll.u32 %s230_s11, 4  ;;  %s888_s12 = int_to_ptr.vmem [resolvable:$true] %s472_s12 }
  0x1c   : > { %s234_s16 = scalar_lea.vmem %s933_s0, %s541_s13 }
  0x1d   : > { %v843_v4 = vld [vmem:[%s234_s16] sm:$0xf]  ;;  %s459_s16 = scalar_lea.sflag [#allocation5], %s229_s9 }
  0x1e   : > { %v237_v5 = vunpack.c.l.bf16 %v843_v4 }
  0x92   : > { %v243_v6 = vpop.permute.xlu0 %242 }
  0x93   : > { %v848_v7 = vmul.f32 %v243_v6, %v237_v5 }
  0x95   : > { %v249_v8 = vand.u32 2139095040, %v848_v7  ;;  %v246_v12 = vand.u32 2147483647, %v848_v7  ;;  %vm248_vm7 = vcmp.lt.s32.totalorder %v848_v7, 0  ;;  %vm338_vm12 = vweird.f32 %v848_v7 }
  0x97   : > { %v250_v9 = vshrl.u32 %v249_v8, 23  ;;  %v253_v15 = vand.u32 8388607, %v246_v12  ;;  %vm247_vm8 = vcmp.le.f32.partialorder %v246_v12, 0.7853982 }
  0x99   : > { %v542_v10 = vadd.s32 4294967169, %v250_v9  ;;  %v254_v34 = vor.u32 8388608, %v253_v15 }
  0x9b   : > { %v256_v11 = vadd.s32 1, %v542_v10  ;;  %v294_v48 = vshll.u32 %v254_v34, 8 }
  0x9d   : > { %vm257_vm0 = vcmp.gt.s32.totalorder %v256_v11, 0 }
  0x9e   : > { %v258_v13 = vsel %vm257_vm0, %v256_v11, 0  ;;  %vm407_vm0 = vcmask 457728  }
  0x9f   : > { %v260_v14 = vand.u32 31, %v258_v13  ;;  %v259_v17 = vshrl.u32 %v258_v13, 5 }
  0xa1   : > { %v261_v16 = vsub.s32 32, %v260_v14  ;;  %v263_v19 = vshll.u32 %v729_v18, %v260_v14  ;;  %v266_v21 = vshll.u32 %v730_v20, %v260_v14  ;;  %v269_v25 = vshll.u32 %v731_v23, %v260_v14 }
  0xa2   : > { %v272_v28 = vshll.u32 %v732_v26, %v260_v14  ;;  %v275_v31 = vshll.u32 %v733_v29, %v260_v14  ;;  %vm278_vm1 = vcmp.lt.s32.totalorder %v259_v17, 1  ;;  %vm281_vm2 = vcmp.lt.s32.totalorder %v259_v17, 4 }
  0xa3   : > { %v264_v22 = vshrl.u32 %v730_v20, %v261_v16  ;;  %v267_v24 = vshrl.u32 %v731_v23, %v261_v16  ;;  %v270_v27 = vshrl.u32 %v732_v26, %v261_v16  ;;  %v273_v30 = vshrl.u32 %v733_v29, %v261_v16 }
  0xa4   : > { %v276_v33 = vshrl.u32 %v734_v32, %v261_v16  ;;  %v262_v43 = vshrl.u32 %v729_v18, %v261_v16  ;;  %vm280_vm3 = vcmp.lt.s32.totalorder %v259_v17, 3  ;;  %vm279_vm4 = vcmp.lt.s32.totalorder %v259_v17, 2 }
  0xa5   : > { %v265_v35 = vor.u32 %v264_v22, %v263_v19  ;;  %v268_v36 = vor.u32 %v267_v24, %v266_v21  ;;  %v271_v37 = vor.u32 %v270_v27, %v269_v25  ;;  %v274_v38 = vor.u32 %v273_v30, %v272_v28 }
  0xa6   : > { %v277_v39 = vor.u32 %v276_v33, %v275_v31 }
  0xa7   : > { %v283_v40 = vsel %vm281_vm2, %v271_v37, 2102212464  ;;  %v286_v41 = vsel %vm278_vm1, %v265_v35, %v268_v36  ;;  %v290_v42 = vsel %vm278_vm1, %v268_v36, %v271_v37  ;;  %v287_v44 = vsel %vm281_vm2, %v274_v38, 920167782 }
  0xa8   : > { %v291_v45 = vsel %vm281_vm2, %v277_v39, 1326507024  ;;  %v288_v46 = vsel %vm280_vm3, %v271_v37, %v287_v44  ;;  %v282_v49 = vsel %vm278_vm1, %v262_v43, %v265_v35  ;;  %v284_v50 = vsel %vm280_vm3, %v268_v36, %v283_v40  ;;  %v354_v39 = vpop.permute.xlu0 %353 }
  0xa9   : > { %v292_v47 = vsel %vm280_vm3, %v274_v38, %v291_v45  ;;  %v289_v51 = vsel %vm279_vm4, %v286_v41, %v288_v46  ;;  %v285_v57 = vsel %vm279_vm4, %v282_v49, %v284_v50  ;;  %v735_v41 = vmov 0.0  }
  0xaa   : > { %v293_v52 = vsel %vm279_vm4, %v290_v42, %v292_v47  ;;  %v857_v55 = vmul.u32.u64.low %v294_v48, %v289_v51  ;;  %v858_v56 = vmul.u32.u64.high %v294_v48, %v289_v51, %v857_v55  ;;  %v301_v59 = vmul.u32 %v294_v48, %v285_v57  ;;  %555 = vmatprep.subr.bf16.mxu0 %v735_v41  ;;  %563 = vmatprep.mubr.msk.bf16.mxu0 %vm741_vm14, %v735_v41 }
  0xab   : > { %v854_v53 = vmul.u32.u64.low %v294_v48, %v293_v52  ;;  %v855_v54 = vmul.u32.u64.high %v294_v48, %v293_v52, %v854_v53  ;;  %vm456_vm1 = vcmask 516096  }
  0xac   : > { %v304_v58 = vadd.s32 1, %v858_v56 }
  0xad   : > { %vm303_vm5 = vc.u32 %v855_v54, %v857_v55  ;;  %v302_v10 = vadd.s32 %v857_v55, %v855_v54 }
  0xae   : > { %v305_v60 = vsel %vm303_vm5, %v304_v58, %v858_v56 }
  0xaf   : > { %v306_v61 = vadd.s32 %v305_v60, %v301_v59  ;;  %v396_v59 = vld [vmem:[%s934_s1] sm:$0x1]  ;;  %v403_v60 = vlaneseq }
  0xb1   : > { %v307_v62 = vadd.s32 536870912, %v306_v61 }
  0xb3   : > { %v308_v63 = vshrl.u32 %v307_v62, 30 }
  0xb5   : > { %v309_v0 = vshll.u32 %v308_v63, 30  ;;  %v332_v23 = vsub.s32 4, %v308_v63 }
  0xb7   : > { %v310_v1 = vsub.s32 %v306_v61, %v309_v0  ;;  %v333_v26 = vsel %vm248_vm7, %v332_v23, %v308_v63  ;;  %v404_v61 = vshrl.u32 %v403_v60, 7 }
  0xb8   : > { %v335_v28 = vsel %vm247_vm8, 0, %v333_v26 }
  0xb9   : > { %v312_v2 = vsub.s32 0, %v310_v1  ;;  %v339_v29 = vadd.s32 3, %v335_v28  ;;  %v405_v62 = vsub.s32 0, %v404_v61 }
  0xbb   : > { %v543_v3 = vmin.u32 %v312_v2, %v310_v1  ;;  %v340_v30 = vand.u32 3, %v339_v29 }
  0xbd   : > { %v314_v6 = vclz %v543_v3  ;;  %vm345_vm9 = vcmp.eq.s32.totalorder %v340_v30, 2  ;;  %vm342_vm10 = vcmp.eq.s32.totalorder %v340_v30, 0  ;;  %vm341_vm11 = vcmp.lt.s32.totalorder %v340_v30, 2 }
  0xbf   : > { %v544_v8 = vadd.s32 4294967294, %v314_v6 }
  0xc1   : > { %vm545_vm6 = vcmp.lt.s32.totalorder %v544_v8, 0 }
  0xc2   : > { %v317_v9 = vsel %vm545_vm6, 0, %v544_v8 }
  0xc3   : > { %v318_v11 = vsub.s32 32, %v317_v9  ;;  %v322_v13 = vsub.s32 4294967266, %v317_v9  ;;  %v319_v14 = vshll.u32 %v310_v1, %v317_v9 }
  0xc5   : > { %v320_v15 = vshrl.u32 %v302_v10, %v318_v11  ;;  %v323_v16 = vadd.s32 127, %v322_v13 }
  0xc7   : > { %v321_v17 = vor.u32 %v320_v15, %v319_v14  ;;  %v324_v18 = vshll.u32 %v323_v16, 23 }
  0xc9   : > { %v325_v19 = vor.u32 4788187, %v324_v18  ;;  %v328_v21 = vcvt.s32.f32 %v321_v17 }
  0xcb   : > { %v326_v20 = vand.u32 2147483647, %v325_v19 }
  0xcd   : > { %v329_v22 = vmul.f32 %v328_v21, %v326_v20 }
  0xcf   : > { %v330_v24 = vxor.u32 2147483648, %v329_v22 }
  0xd1   : > { %v331_v25 = vsel %vm248_vm7, %v330_v24, %v329_v22 }
  0xd2   : > { %v334_v27 = vsel %vm247_vm8, %v848_v7, %v331_v25  ;;  %v397_v7 = vld [vmem:[#allocation3] sm:$0x1] }
  0xd3   : > { %642 = vcosq.f32 %v334_v27 }
  0xd4   : > { %644 = vsinq.f32 %v334_v27 }
  0xdd   : > { %v643_v31 = vpop.eup %642 }
  0xde   : > { %v645_v32 = vpop.eup %644  ;;  %v346_v33 = vxor.u32 2147483648, %v643_v31 }
  0xdf   : > { %v343_v34 = vxor.u32 2147483648, %v645_v32 }
  0xe0   : > { %v347_v35 = vsel %vm345_vm9, %v346_v33, %v645_v32 }
  0xe1   : > { %v344_v36 = vsel %vm342_vm10, %v643_v31, %v343_v34 }
  0xe2   : > { %v348_v12 = vsel %vm341_vm11, %v344_v36, %v347_v35 }
  0xe3   : > { %v349_v37 = vsel %vm338_vm12, nan, %v348_v12 }
  0xe4   : > { %v350_v38 = vmul.f32 %v349_v37, %v349_v37 }
  0xe6   : > { %v356_v40 = vmul.f32 %v354_v39, %v350_v38 }
  0xe8   : > { %v357_v42 = vadd.f32 %v356_v40, %v237_v5 }
  0xea   : > { %369 = vrot.lane.b32.xlu0 %v357_v42, %s736_s17  ;;  %361 = vrot.lane.b32.xlu1 %v357_v42, %s737_s18  ;;  %359 = vst.msk [vmem:[#allocation2] sm:$0xff] %vm358_vm13, %v357_v42  ;;  %s648_s17 = scalar_lea.vmem %s888_s12, 16  ;;  %s652_s18 = sshll.u32 %s743_s23, 4  ;;  %s653_s18 = int_to_ptr.vmem [resolvable:$false] %s652_s18 }
  0xeb   : > { %p649_p12 = scmp.ne.s32.totalorder %s888_s12, %s648_s17  ;;  %p655_p1 = scmp.lt.s32.totalorder %s888_s12, %s653_s18 }
  0xed   : > { %p650_p13 = pnand %p649_p12, %p817_p4 }
  0xee   : > { %377 = vrot.lane.b32.xlu0 %v357_v42, %s738_s19  ;;  %365 = vrot.lane.b32.xlu1 %v357_v42, %s739_s2  ;;  %s654_s19 = scalar_lea.vmem %s653_s18, 32 }
  0xef   : > { %p651_p0 = pneg %p650_p13  ;;  %p656_p2 = scmp.lt.s32.totalorder %s654_s19, %s648_s17 }
  0xf1   : > { %v385_v46 = vld [vmem:[#allocation2] sm:$0xff]  ;;  %p657_p3 = por %p656_p2, %p655_p1 }
  0xf2   : > { %400 = vperm.xlu0 %641, %v397_v7   ;;  %373 = vrot.lane.b32.xlu1 %v357_v42, %s740_s26 }
  0xf3   : > { %p658_p5 = pnand %p657_p3, %p651_p0 }
  0xf6   : > { %381 = vrot.lane.b32.xlu1 %v357_v42, %s742_s28 }
 0x15c   : > { %v370_v4 = vpop.permute.xlu0 %369  ;;  %v362_v5 = vpop.permute.xlu1 %361 }
 0x15d   : > { %372 = vst.msk [vmem:[#allocation2 + $0x18] sm:$0xff] %vm358_vm13, %v370_v4  ;;  %364 = vst.msk [vmem:[#allocation2 + $0x8] sm:$0xff] %vm358_vm13, %v362_v5 }
 0x160   : > { %v378_v43 = vpop.permute.xlu0 %377  ;;  %v366_v44 = vpop.permute.xlu1 %365 }
 0x161   : > { %380 = vst.msk [vmem:[#allocation2 + $0x28] sm:$0xff] %vm358_vm13, %v378_v43  ;;  %368 = vst.msk [vmem:[#allocation2 + $0x10] sm:$0xff] %vm358_vm13, %v366_v44 }
 0x164   : > { %v374_v45 = vpop.permute.xlu1 %373  ;;  %v386_v47 = vld [vmem:[#allocation2 + $0x8] sm:$0xff]  ;;  %v388_v51 = vld [vmem:[#allocation2 + $0x18] sm:$0xff] }
 0x165   : > { %376 = vst.msk [vmem:[#allocation2 + $0x20] sm:$0xff] %vm358_vm13, %v374_v45  ;;  %v392_v48 = vpack.c.bf16 %v386_v47, %v385_v46 }
 0x167   : > { %556 = vmatpush3.bf16.msra.mxu0 %v392_v48 }
 0x168   : > { %v382_v49 = vpop.permute.xlu1 %381  ;;  %557 = vmatprep.subr.bf16.mxu0 %v735_v41  ;;  %v387_v50 = vld [vmem:[#allocation2 + $0x10] sm:$0xff]  ;;  %v390_v54 = vld [vmem:[#allocation2 + $0x28] sm:$0xff] }
 0x169   : > { %384 = vst.msk [vmem:[#allocation2 + $0x30] sm:$0xff] %vm358_vm13, %v382_v49  ;;  %v393_v52 = vpack.c.bf16 %v388_v51, %v387_v50 }
 0x16b   : > { %558 = vmatpush3.bf16.msra.mxu0 %v393_v52 }
 0x16c   : > { %559 = vmatprep.subr.bf16.mxu0 %v735_v41  ;;  %v389_v53 = vld [vmem:[#allocation2 + $0x20] sm:$0xff] }
 0x16d   : > { %v394_v55 = vpack.c.bf16 %v390_v54, %v389_v53 }
 0x16f   : > { %560 = vmatpush3.bf16.msra.mxu0 %v394_v55 }
 0x170   : > { %561 = vmatprep.subr.bf16.mxu0 %v735_v41  ;;  %v391_v56 = vld [vmem:[#allocation2 + $0x30] sm:$0xff] }
 0x171   : > { %v395_v57 = vpack.c.bf16 %v391_v56, %v391_v56  ;;  %v401_v63 = vpop.permute.xlu0 %400 }
 0x172   : > { %v406_v0 = vrot.slane %v401_v63, %v405_v62 }
 0x173   : > { %v413_v58 = vsel %vm411_vm15, %v395_v57, 0 }
 0x174   : > { %562 = vmatpush3.bf16.msra.mxu0 %v413_v58 }
 0x177   : > { %564 = vmatmul.mubr.msk.bf16.vlgmr.msra.gmra.mrb[0].mxu0 %vm407_vm0, %v396_v59 }
 0x24a   : > { %v449_v1 = vpop.f32.mrb[0].mxu0 }
 0x24b   : > { %v450_v2 = vadd.f32 %v449_v1, %v406_v0  ;;  %v565_v3 = vpop.f32.mrb[1].mxu0 }
 0x24c   : > { %v452_v6 = vpop.f32.mrb[2].mxu0 }
 0x24d   : > { %646 = vtanh.f32 %v450_v2  ;;  %v566_v8 = vpop.f32.mrb[3].mxu0 }
 0x257   : > { %v647_v9 = vpop.eup %646 }
 0x258   : > { %457 = vst.msk [vmem:[%s230_s11] sm:$0x1] %vm456_vm1, %v647_v9 }
 0x259   : > { %661 = shalt.err (!%p658_p5)
}
 0x25a   : > { %s662_s2 = scalar_lea.hbm %s886_s15, 16  ;;  %s666_s30 = scalar_lea.hbm %s938_s5, 32 }
 0x25b   : > { %p663_p6 = scmp.ne.s32.totalorder %s886_s15, %s662_s2  ;;  %p667_p10 = scmp.lt.u32.totalorder %s886_s15, %s938_s5 }
 0x25c   : > { %p668_p11 = scmp.lt.u32.totalorder %s666_s30, %s662_s2  ;;  %p670_p13 = scmp.lt.u32.totalorder %s662_s2, %s886_s15 }
 0x25d   : > { %p664_p7 = pnand %p663_p6, %p817_p4 }
 0x25e   : > { %p669_p12 = por %p668_p11, %p667_p10 }
 0x25f   : > { %p665_p9 = pneg %p664_p7 }
 0x260   : > { %p671_p0 = por %p670_p13, %p669_p12 }
 0x262   : > { %p672_p1 = pnand %p671_p0, %p665_p9 }
 0x264   : > { %675 = shalt.err (!%p672_p1)
}
 0x265   : > { %571 = dma.vmem_to_hbm [thread:$0]  (%p817_p4), %s888_s12, 16, %s886_s15, %s459_s16  }
 0x266 PF: > { %p577_p2 = scmp.ge.s32.totalorder %s726_s25, 2  ;;  %s484_s10 = sand.u32 1, %s706_s20  }
 0x267   : > { %s485_s11 = scalar_lea.sflag [#allocation5], %s484_s10 }
 0x268   : > { %p574_p3 = pnand %p577_p2, %p824_p8 }
 0x26a   : > { %701 = dma.done.wait (!%p574_p3), %s485_s11, 16  }
 0x26b   : > { %703 = vsyncadd (!%p574_p3), %s485_s11, 4294967280  ;;  %s20_s25 = sadd.s32 1, %s726_s25   ;;  %s941_s20 = smov %s710_s21 }
 0x26c   : > { %p17_p5 = scmp.ge.s32.totalorder %s20_s25, 4   ;;  %s942_s21 = smov %s714_s22 }
 0x26d   : > { %s943_s22 = smov %s830_s7  ;;  %s944_s23 = smov %s722_s24 }
 0x26e   : > { %s945_s24 = smov %s947_s27  ;;  %19 = sbr.rel (!%p17_p5) target bundleno = 7 (0x7), region = 75 }
 0x275   :  { %489 = vsyncpa [#allocation5], 1 }
 0x276   :  { %491 = vsyncpa [#allocation5 + $0x1], 1 }

</bundles_post_ra>
